<compile_context>
chip_gen: v7x
topology: tpu7x:2x2x1
jax: 0.10.0
libtpu: 0.0.40
codegen_flags: <defaults>
</compile_context>

<pallas_src>
import numpy as np

import jax
import jax.numpy as jnp
from jax.experimental import pallas as pl
from jax.experimental.pallas import tpu as pltpu


# ----------------------------------------------------------------------------
# Fused kernel: conv1 + pool + gated stage + pool + fc1/fc2/fc3 for B samples
# ----------------------------------------------------------------------------
def _net_kernel(x_ref, t1_ref, b1_ref, vuc_ref, buc_ref, vsh_ref, bsh_ref,
                w1_ref, fb1_ref, w2_ref, fb2_ref, w3_ref, fb3_ref, o_ref):
    """Whole forward pass for one batch block of B samples.

    x:(32,B,96) bf16 rows [h][b][w*3+c]
    t1:(480,256) bf16 banded conv1 weights, rows di*96 + w*3 + c,
       cols parity*128 + o*14 + (wo//2);  b1:(1,256).
    vuc:(10,640,256) bf16 per-output-row untied-conv weights, rows
       di*128 + c*14 + w, cols parity*128 + o*5 + (wo//2);  buc:(10,1,256).
    vsh:(640,512) bf16 shared conv + gate weights (de-duplicated across ho),
       cols [pc_e|pc_o|wl_e|wl_o] 128-wide blocks;  bsh:(1,512).
    w1:(5,128,120) fc1 with the torch .view(-1,400) permutation folded in;
    w3:(84,128) fc3 padded to 128 lanes.  out:(B,128) f32.
    """
    B = x_ref.shape[1]
    f32, bf16 = jnp.float32, jnp.bfloat16

    # ---- stage 1: conv1 as a single K=480 matmul, + bias + relu + 2x2 pool --
    xk = x_ref[...]                                              # (32, B, 96)
    l1 = jnp.concatenate([xk[di:di + 28] for di in range(5)], axis=2)  # (28,B,480)
    acc1 = jnp.dot(l1.reshape(28 * B, 480), t1_ref[...],
                   preferred_element_type=f32)                   # (28B, 256)
    acc1 = jnp.maximum(acc1 + b1_ref[...], 0.0)                  # bias + relu
    wmax1 = jnp.maximum(acc1[:, :128], acc1[:, 128:])            # width pool
    w4 = wmax1.reshape(14, 2, B, 128)
    hp1 = jnp.maximum(w4[:, 0], w4[:, 1]).astype(bf16)           # height pool (14,B,128)

    # ---- stage 2: shifted layout (all lane offsets are multiples of 128) ----
    l2 = jnp.concatenate([hp1[di:di + 10] for di in range(5)], axis=2)  # (10,B,640)

    # shared conv (pc2) + gate (wl2): ONE de-duplicated matmul over all rows.
    zsh = jnp.dot(l2.reshape(10 * B, 640), vsh_ref[...],
                  preferred_element_type=f32) + bsh_ref[...]     # (10B, 512)
    zsh = zsh.reshape(10, B, 512)

    # untied conv (uc2): per-output-row matmuls fused with gate mix, relu,
    # 2x2 maxpool and the fc1 accumulation (keeps the working set tiny).
    h = jnp.zeros((B, 120), f32)
    for h2 in range(5):
        rows = []
        for r in range(2):
            ho = 2 * h2 + r
            zu = jnp.dot(l2[ho], vuc_ref[ho],
                         preferred_element_type=f32) + buc_ref[ho]        # (B,256)
            zs = zsh[ho]                                                  # (B,512)
            ge = jax.nn.sigmoid(zs[:, 256:384])                           # even-col gate
            go = jax.nn.sigmoid(zs[:, 384:512])                           # odd-col gate
            me = jnp.maximum(zu[:, :128] * ge + zs[:, :128] * (1.0 - ge), 0.0)
            mo = jnp.maximum(zu[:, 128:] * go + zs[:, 128:256] * (1.0 - go), 0.0)
            rows.append(jnp.maximum(me, mo))                              # width pool
        pooled = jnp.maximum(rows[0], rows[1]).astype(bf16)               # height pool
        h = h + jnp.dot(pooled, w1_ref[h2], preferred_element_type=f32)   # fc1 partial

    # ---- FC head ------------------------------------------------------------
    h = jnp.maximum(h + fb1_ref[...], 0.0).astype(bf16)          # (B,120)
    h = jnp.maximum(jnp.dot(h, w2_ref[...], preferred_element_type=f32)
                    + fb2_ref[...], 0.0).astype(bf16)            # (B,84)
    out = jnp.dot(h, w3_ref[...], preferred_element_type=f32) + fb3_ref[...]
    o_ref[...] = out                                             # (B,128) lane-dense


# ----------------------------------------------------------------------------
# Parameter init + one-time layout packing (hoisted out of the forward pass)
# ----------------------------------------------------------------------------
def _uniform(key, shape, bound):
    return jax.random.uniform(key, shape, jnp.float32, -bound, bound)


def init_params(key):
    ks = jax.random.split(key, 16)
    b = (3 * 5 * 5) ** -0.5
    conv1_w = np.asarray(_uniform(ks[0], (6, 3, 5, 5), b))
    conv1_b = np.asarray(_uniform(ks[1], (6,), b))
    b = (6 * 5 * 5) ** -0.5
    uc2_w = np.asarray(_uniform(ks[2], (100, 16, 6, 5, 5), b))   # per-position
    uc2_b = np.asarray(_uniform(ks[3], (100, 16), b))
    pc2_w = np.asarray(_uniform(ks[4], (16, 6, 5, 5), b))
    pc2_b = np.asarray(_uniform(ks[5], (16,), b))
    wl2_w = np.asarray(_uniform(ks[6], (1, 6, 5, 5), b))
    wl2_b = np.asarray(_uniform(ks[7], (1,), b))
    b = 400 ** -0.5
    fc1_w = np.asarray(_uniform(ks[8], (400, 120), b))
    fc1_b = np.asarray(_uniform(ks[9], (120,), b))
    b = 120 ** -0.5
    fc2_w = np.asarray(_uniform(ks[10], (120, 84), b))
    fc2_b = np.asarray(_uniform(ks[11], (84,), b))
    b = 84 ** -0.5
    fc3_w = np.asarray(_uniform(ks[12], (84, 10), b))
    fc3_b = np.asarray(_uniform(ks[13], (10,), b))

    # ---- stage 1: banded conv1 matrix, rows di*96 + w*3 + c ------------------
    E1 = np.zeros((28, 480, 75), np.float32)
    for wo in range(28):
        for c in range(3):
            for di in range(5):
                for dj in range(5):
                    E1[wo, di * 96 + (wo + dj) * 3 + c, c * 25 + di * 5 + dj] = 1.0
    c1_cols = np.einsum('wek,ko->weo', E1, conv1_w.reshape(6, 75).T)   # (28,480,6)
    t1 = np.zeros((480, 256), np.float32)
    bias1 = np.zeros((1, 256), np.float32)
    for p in range(2):
        sel = c1_cols[p::2]                                   # (14,480,6) [k,e,o]
        t1[:, p * 128:p * 128 + 84] = sel.transpose(1, 2, 0).reshape(480, 84)
        bias1[0, p * 128:p * 128 + 84] = np.repeat(conv1_b, 14)

    # ---- stage 2 shift/gather structure: rows e = di*128 + c*14 + w ----------
    E2 = np.zeros((10, 640, 150), np.float32)
    for wo in range(10):
        for c in range(6):
            for di in range(5):
                for dj in range(5):
                    E2[wo, di * 128 + c * 14 + wo + dj, c * 25 + di * 5 + dj] = 1.0

    # untied conv uc2: per-output-row (ho) weights.
    uc_flat = uc2_w.reshape(100, 16, 150).transpose(0, 2, 1).reshape(10, 10, 150, 16)
    uc_cols = np.einsum('wek,hwko->hweo', E2, uc_flat)        # (10,10,640,16)
    vuc = np.zeros((10, 640, 256), np.float32)
    buc = np.zeros((10, 1, 256), np.float32)
    ub3 = uc2_b.reshape(10, 10, 16)
    for p in range(2):
        sel = uc_cols[:, p::2]                                # (10,5,640,16) [ho,k,e,o]
        vuc[:, :, p * 128:p * 128 + 80] = sel.transpose(0, 2, 3, 1).reshape(10, 640, 80)
        bs = ub3[:, p::2, :]                                  # (10,5,16) [ho,k,o]
        buc[:, 0, p * 128:p * 128 + 80] = bs.transpose(0, 2, 1).reshape(10, 80)

    # shared conv pc2 + gate wl2: de-duplicated single (640,512) matrix.
    pc_cols = np.einsum('wek,ko->weo', E2, pc2_w.reshape(16, 150).T)   # (10,640,16)
    wl_cols = np.einsum('wek,ko->weo', E2, wl2_w.reshape(1, 150).T)    # (10,640,1)
    vsh = np.zeros((640, 512), np.float32)
    bsh = np.zeros((1, 512), np.float32)
    for p in range(2):
        pcs = pc_cols[p::2]                                   # (5,640,16) [k,e,o]
        vsh[:, p * 128:p * 128 + 80] = pcs.transpose(1, 2, 0).reshape(640, 80)
        bsh[0, p * 128:p * 128 + 80] = np.repeat(pc2_b, 5)
        wls = wl_cols[p::2].transpose(1, 2, 0)                # (640,1,5)
        vsh[:, 256 + p * 128:256 + p * 128 + 80] = np.broadcast_to(
            wls, (640, 16, 5)).reshape(640, 80)
        bsh[0, 256 + p * 128:256 + p * 128 + 80] = wl2_b[0]

    # ---- FC head: fold torch .view(-1,400) permutation into fc1; pad fc3 -----
    w1p = np.zeros((5, 128, 120), np.float32)
    w1p[:, :80, :] = fc1_w.reshape(16, 5, 5, 120).transpose(1, 0, 2, 3).reshape(5, 80, 120)
    w3p = np.zeros((84, 128), np.float32)
    w3p[:, :10] = fc3_w
    b3p = np.zeros((1, 128), np.float32)
    b3p[0, :10] = fc3_b

    f32, bf16 = jnp.float32, jnp.bfloat16
    packed = {
        "t1": jnp.asarray(t1, bf16), "bias1": jnp.asarray(bias1, f32),
        "vuc": jnp.asarray(vuc, bf16), "buc": jnp.asarray(buc, f32),
        "vsh": jnp.asarray(vsh, bf16), "bsh": jnp.asarray(bsh, f32),
        "w1": jnp.asarray(w1p, bf16), "fb1": jnp.asarray(fc1_b.reshape(1, 120), f32),
        "w2": jnp.asarray(fc2_w, bf16), "fb2": jnp.asarray(fc2_b.reshape(1, 84), f32),
        "w3": jnp.asarray(w3p, bf16), "fb3": jnp.asarray(b3p, f32),
    }
    raw = {
        "conv1_w": jnp.asarray(conv1_w), "conv1_b": jnp.asarray(conv1_b),
        "uc2_w": jnp.asarray(uc2_w), "uc2_b": jnp.asarray(uc2_b),
        "pc2_w": jnp.asarray(pc2_w), "pc2_b": jnp.asarray(pc2_b),
        "wl2_w": jnp.asarray(wl2_w), "wl2_b": jnp.asarray(wl2_b),
        "fc1_w": jnp.asarray(fc1_w), "fc1_b": jnp.asarray(fc1_b),
        "fc2_w": jnp.asarray(fc2_w), "fc2_b": jnp.asarray(fc2_b),
        "fc3_w": jnp.asarray(fc3_w), "fc3_b": jnp.asarray(fc3_b),
    }
    return packed, raw


# ----------------------------------------------------------------------------
# Forward pass: one fused pallas_call, grid over batch blocks ("parallel")
# ----------------------------------------------------------------------------
def _const_spec(shape):
    nz = len(shape)
    return pl.BlockSpec(shape, lambda n, _nz=nz: (0,) * _nz)


def _batch_block(n):
    """Pick a batch block size B (multiple of 8) and the padded batch size."""
    n8 = max(8, ((n + 7) // 8) * 8)
    for b in (32, 16, 8):                  # prefer >=2 grid steps (v7x megacore)
        if n8 % b == 0 and n8 // b >= 2:
            return b, n8
    for b in (32, 16, 8):
        if n8 % b == 0:
            return b, n8
    return 8, n8


# Worst-case per-step VMEM (B=32): ~8.8 MiB double-buffered weights + ~4 MiB
# activations/temporaries + blocks  ->  comfortably under 28 MiB (< v7x's
# 32 MiB scoped default; v5e/v6e have far more headroom).
_CPARAMS = pltpu.CompilerParams(
    dimension_semantics=("parallel",),
    vmem_limit_bytes=28 * 1024 * 1024,
)


@jax.jit
def net_forward(params, x):
    N = x.shape[0]
    B, Npad = _batch_block(N)
    # NCHW -> (H, N, W*C) so in-kernel conv shifts are aligned slab slices.
    xr = jnp.transpose(x, (2, 0, 3, 1)).reshape(32, N, 96).astype(jnp.bfloat16)
    if Npad != N:
        xr = jnp.pad(xr, ((0, 0), (0, Npad - N), (0, 0)))

    out = pl.pallas_call(
        _net_kernel,
        grid=(Npad // B,),
        in_specs=[
            pl.BlockSpec((32, B, 96), lambda n: (0, n, 0)),
            _const_spec((480, 256)),
            _const_spec((1, 256)),
            _const_spec((10, 640, 256)),
            _const_spec((10, 1, 256)),
            _const_spec((640, 512)),
            _const_spec((1, 512)),
            _const_spec((5, 128, 120)),
            _const_spec((1, 120)),
            _const_spec((120, 84)),
            _const_spec((1, 84)),
            _const_spec((84, 128)),
            _const_spec((1, 128)),
        ],
        out_specs=pl.BlockSpec((B, 128), lambda n: (n, 0)),
        out_shape=jax.ShapeDtypeStruct((Npad, 128), jnp.float32),
        compiler_params=_CPARAMS,
    )(xr, params["t1"], params["bias1"], params["vuc"], params["buc"],
      params["vsh"], params["bsh"], params["w1"], params["fb1"],
      params["w2"], params["fb2"], params["w3"], params["fb3"])

    return out[:N, :10]


# ----------------------------------------------------------------------------
# Pure-JAX f32 reference (uc2 modelled as a locally-connected layer)
# ----------------------------------------------------------------------------
@jax.jit
def _ref_forward(raw, x):
    def conv(a, w, bb):
        y = jax.lax.conv_general_dilated(
            a, w, (1, 1), 'VALID', dimension_numbers=('NCHW', 'OIHW', 'NCHW'))
        return y + bb.reshape(1, -1, 1, 1)

    def pool(a):
        return jax.lax.reduce_window(a, -jnp.inf, jax.lax.max,
                                     (1, 1, 2, 2), (1, 1, 2, 2), 'VALID')

    a = pool(jax.nn.relu(conv(x, raw["conv1_w"], raw["conv1_b"])))      # (N,6,14,14)
    n = a.shape[0]
    pats = [a[:, :, ho:ho + 5, wo:wo + 5].reshape(n, 150)
            for ho in range(10) for wo in range(10)]
    P = jnp.stack(pats, axis=1)                                         # (N,100,150)
    ucw = raw["uc2_w"].reshape(100, 16, 150)
    x1 = jnp.einsum('npk,pok->npo', P, ucw) + raw["uc2_b"][None]        # (N,100,16)
    x1 = x1.transpose(0, 2, 1).reshape(n, 16, 10, 10)
    x2 = conv(a, raw["pc2_w"], raw["pc2_b"])
    g = jax.nn.sigmoid(conv(a, raw["wl2_w"], raw["wl2_b"]))
    m = pool(jax.nn.relu(x1 * g + x2 * (1.0 - g)))                      # (N,16,5,5)
    h = m.reshape(n, 400)
    h = jax.nn.relu(h @ raw["fc1_w"] + raw["fc1_b"])
    h = jax.nn.relu(h @ raw["fc2_w"] + raw["fc2_b"])
    return h @ raw["fc3_w"] + raw["fc3_b"]


if __name__ == "__main__":
    key = jax.random.PRNGKey(0)
    pkey, xkey = jax.random.split(key)
    params, raw = init_params(pkey)
    # The forward pass requires 32x32 spatial input (x.view(-1, 16*5*5)).
    x = jax.random.normal(xkey, (2, 3, 32, 32), jnp.float32)

    out = jax.block_until_ready(net_forward(params, x))
    assert out.shape == (2, 10), out.shape
    assert bool(jnp.all(jnp.isfinite(out)))

    ref = jax.block_until_ready(_ref_forward(raw, x))
    err = float(jnp.max(jnp.abs(out - ref)))
    assert err < 1e-1, f"max|out - ref| = {err}"   # bf16 MXU operands, f32 accum

    print("KERNEL_OK")
</pallas_src>

<mosaic_0001>
module attributes {stable_mosaic.version = 11 : i64} {
  func.func @_net_kernel(%arg0: i32, %arg1: memref<32x8x96xbf16, #tpu.memory_space<vmem>>, %arg2: memref<480x256xbf16, #tpu.memory_space<vmem>>, %arg3: memref<1x256xf32, #tpu.memory_space<vmem>>, %arg4: memref<10x640x256xbf16, #tpu.memory_space<vmem>>, %arg5: memref<10x1x256xf32, #tpu.memory_space<vmem>>, %arg6: memref<640x512xbf16, #tpu.memory_space<vmem>>, %arg7: memref<1x512xf32, #tpu.memory_space<vmem>>, %arg8: memref<5x128x120xbf16, #tpu.memory_space<vmem>>, %arg9: memref<1x120xf32, #tpu.memory_space<vmem>>, %arg10: memref<120x84xbf16, #tpu.memory_space<vmem>>, %arg11: memref<1x84xf32, #tpu.memory_space<vmem>>, %arg12: memref<84x128xbf16, #tpu.memory_space<vmem>>, %arg13: memref<1x128xf32, #tpu.memory_space<vmem>>, %arg14: memref<8x128xf32, #tpu.memory_space<vmem>>) attributes {dimension_semantics = [#tpu.dimension_semantics<parallel>], iteration_bounds = array<i64: 1>, scalar_prefetch = 0 : i64, scratch_operands = 0 : i64, tpu.core_type = #tpu.core_type<tc>, window_params = [{transform_indices = @transform_0, window_bounds = array<i64: 32, 8, 96>}, {pipeline_mode = #tpu.pipeline_mode<synchronous>, transform_indices = @transform_1, window_bounds = array<i64: 480, 256>}, {pipeline_mode = #tpu.pipeline_mode<synchronous>, transform_indices = @transform_2, window_bounds = array<i64: 1, 256>}, {pipeline_mode = #tpu.pipeline_mode<synchronous>, transform_indices = @transform_3, window_bounds = array<i64: 10, 640, 256>}, {pipeline_mode = #tpu.pipeline_mode<synchronous>, transform_indices = @transform_4, window_bounds = array<i64: 10, 1, 256>}, {pipeline_mode = #tpu.pipeline_mode<synchronous>, transform_indices = @transform_5, window_bounds = array<i64: 640, 512>}, {pipeline_mode = #tpu.pipeline_mode<synchronous>, transform_indices = @transform_6, window_bounds = array<i64: 1, 512>}, {pipeline_mode = #tpu.pipeline_mode<synchronous>, transform_indices = @transform_7, window_bounds = array<i64: 5, 128, 120>}, {pipeline_mode = #tpu.pipeline_mode<synchronous>, transform_indices = @transform_8, window_bounds = array<i64: 1, 120>}, {pipeline_mode = #tpu.pipeline_mode<synchronous>, transform_indices = @transform_9, window_bounds = array<i64: 120, 84>}, {pipeline_mode = #tpu.pipeline_mode<synchronous>, transform_indices = @transform_10, window_bounds = array<i64: 1, 84>}, {pipeline_mode = #tpu.pipeline_mode<synchronous>, transform_indices = @transform_11, window_bounds = array<i64: 84, 128>}, {pipeline_mode = #tpu.pipeline_mode<synchronous>, transform_indices = @transform_12, window_bounds = array<i64: 1, 128>}, {transform_indices = @transform_13, window_bounds = array<i64: 8, 128>}]} {
    %c0 = arith.constant 0 : index
    %c0_0 = arith.constant 0 : index
    %c0_1 = arith.constant 0 : index
    %0 = vector.load %arg1[%c0, %c0_0, %c0_1] : memref<32x8x96xbf16, #tpu.memory_space<vmem>>, vector<32x8x96xbf16>
    %1 = vector.extract_strided_slice %0 {offsets = [0, 0, 0], sizes = [28, 8, 96], strides = [1, 1, 1]} : vector<32x8x96xbf16> to vector<28x8x96xbf16>
    %2 = vector.extract_strided_slice %0 {offsets = [1, 0, 0], sizes = [28, 8, 96], strides = [1, 1, 1]} : vector<32x8x96xbf16> to vector<28x8x96xbf16>
    %3 = vector.extract_strided_slice %0 {offsets = [2, 0, 0], sizes = [28, 8, 96], strides = [1, 1, 1]} : vector<32x8x96xbf16> to vector<28x8x96xbf16>
    %4 = vector.extract_strided_slice %0 {offsets = [3, 0, 0], sizes = [28, 8, 96], strides = [1, 1, 1]} : vector<32x8x96xbf16> to vector<28x8x96xbf16>
    %5 = vector.extract_strided_slice %0 {offsets = [4, 0, 0], sizes = [28, 8, 96], strides = [1, 1, 1]} : vector<32x8x96xbf16> to vector<28x8x96xbf16>
    %6 = tpu.concatenate %1, %2, %3, %4, %5 in 2 : vector<28x8x96xbf16>, vector<28x8x96xbf16>, vector<28x8x96xbf16>, vector<28x8x96xbf16>, vector<28x8x96xbf16> -> vector<28x8x480xbf16>
    %7 = vector.shape_cast %6 : vector<28x8x480xbf16> to vector<224x480xbf16>
    %c0_2 = arith.constant 0 : index
    %c0_3 = arith.constant 0 : index
    %8 = vector.load %arg2[%c0_2, %c0_3] : memref<480x256xbf16, #tpu.memory_space<vmem>>, vector<480x256xbf16>
    %cst = arith.constant dense<0.000000e+00> : vector<224x256xf32>
    %9 = tpu.matmul %7, %8, %cst {dimension_numbers = #tpu.dot_dimension_numbers<[1], [0], [0], [1], [0, 0, 1, 1], [], []>} : vector<224x480xbf16>, vector<480x256xbf16>, vector<224x256xf32> -> vector<224x256xf32>
    %c0_4 = arith.constant 0 : index
    %c0_5 = arith.constant 0 : index
    %10 = vector.load %arg3[%c0_4, %c0_5] : memref<1x256xf32, #tpu.memory_space<vmem>>, vector<1x256xf32>
    %11 = vector.broadcast %10 : vector<1x256xf32> to vector<224x256xf32>
    %12 = arith.addf %9, %11 : vector<224x256xf32>
    %cst_6 = arith.constant 0.000000e+00 : f32
    %13 = vector.broadcast %cst_6 : f32 to vector<224x256xf32>
    %14 = arith.maximumf %12, %13 : vector<224x256xf32>
    %15 = vector.extract_strided_slice %14 {offsets = [0, 0], sizes = [224, 128], strides = [1, 1]} : vector<224x256xf32> to vector<224x128xf32>
    %16 = vector.extract_strided_slice %14 {offsets = [0, 128], sizes = [224, 128], strides = [1, 1]} : vector<224x256xf32> to vector<224x128xf32>
    %17 = arith.maximumf %15, %16 : vector<224x128xf32>
    %18 = vector.shape_cast %17 : vector<224x128xf32> to vector<14x2x8x128xf32>
    %19 = vector.extract_strided_slice %18 {offsets = [0, 0, 0, 0], sizes = [14, 1, 8, 128], strides = [1, 1, 1, 1]} : vector<14x2x8x128xf32> to vector<14x1x8x128xf32>
    %20 = vector.shape_cast %19 : vector<14x1x8x128xf32> to vector<14x8x128xf32>
    %21 = vector.extract_strided_slice %18 {offsets = [0, 1, 0, 0], sizes = [14, 1, 8, 128], strides = [1, 1, 1, 1]} : vector<14x2x8x128xf32> to vector<14x1x8x128xf32>
    %22 = vector.shape_cast %21 : vector<14x1x8x128xf32> to vector<14x8x128xf32>
    %23 = arith.maximumf %20, %22 : vector<14x8x128xf32>
    %24 = arith.truncf %23 : vector<14x8x128xf32> to vector<14x8x128xbf16>
    %25 = vector.extract_strided_slice %24 {offsets = [0, 0, 0], sizes = [10, 8, 128], strides = [1, 1, 1]} : vector<14x8x128xbf16> to vector<10x8x128xbf16>
    %26 = vector.extract_strided_slice %24 {offsets = [1, 0, 0], sizes = [10, 8, 128], strides = [1, 1, 1]} : vector<14x8x128xbf16> to vector<10x8x128xbf16>
    %27 = vector.extract_strided_slice %24 {offsets = [2, 0, 0], sizes = [10, 8, 128], strides = [1, 1, 1]} : vector<14x8x128xbf16> to vector<10x8x128xbf16>
    %28 = vector.extract_strided_slice %24 {offsets = [3, 0, 0], sizes = [10, 8, 128], strides = [1, 1, 1]} : vector<14x8x128xbf16> to vector<10x8x128xbf16>
    %29 = vector.extract_strided_slice %24 {offsets = [4, 0, 0], sizes = [10, 8, 128], strides = [1, 1, 1]} : vector<14x8x128xbf16> to vector<10x8x128xbf16>
    %30 = tpu.concatenate %25, %26, %27, %28, %29 in 2 : vector<10x8x128xbf16>, vector<10x8x128xbf16>, vector<10x8x128xbf16>, vector<10x8x128xbf16>, vector<10x8x128xbf16> -> vector<10x8x640xbf16>
    %31 = vector.shape_cast %30 : vector<10x8x640xbf16> to vector<80x640xbf16>
    %c0_7 = arith.constant 0 : index
    %c0_8 = arith.constant 0 : index
    %32 = vector.load %arg6[%c0_7, %c0_8] : memref<640x512xbf16, #tpu.memory_space<vmem>>, vector<640x512xbf16>
    %cst_9 = arith.constant dense<0.000000e+00> : vector<80x512xf32>
    %33 = tpu.matmul %31, %32, %cst_9 {dimension_numbers = #tpu.dot_dimension_numbers<[1], [0], [0], [1], [0, 0, 1, 1], [], []>} : vector<80x640xbf16>, vector<640x512xbf16>, vector<80x512xf32> -> vector<80x512xf32>
    %c0_10 = arith.constant 0 : index
    %c0_11 = arith.constant 0 : index
    %34 = vector.load %arg7[%c0_10, %c0_11] : memref<1x512xf32, #tpu.memory_space<vmem>>, vector<1x512xf32>
    %35 = vector.broadcast %34 : vector<1x512xf32> to vector<80x512xf32>
    %36 = arith.addf %33, %35 : vector<80x512xf32>
    %37 = vector.shape_cast %36 : vector<80x512xf32> to vector<10x8x512xf32>
    %cst_12 = arith.constant 0.000000e+00 : f32
    %38 = vector.broadcast %cst_12 : f32 to vector<8x120xf32>
    %39 = vector.extract_strided_slice %30 {offsets = [0, 0, 0], sizes = [1, 8, 640], strides = [1, 1, 1]} : vector<10x8x640xbf16> to vector<1x8x640xbf16>
    %40 = vector.shape_cast %39 : vector<1x8x640xbf16> to vector<8x640xbf16>
    %c0_13 = arith.constant 0 : index
    %c0_14 = arith.constant 0 : index
    %c0_15 = arith.constant 0 : index
    %41 = vector.load %arg4[%c0_13, %c0_14, %c0_15] : memref<10x640x256xbf16, #tpu.memory_space<vmem>>, vector<1x640x256xbf16>
    %42 = vector.shape_cast %41 : vector<1x640x256xbf16> to vector<640x256xbf16>
    %cst_16 = arith.constant dense<0.000000e+00> : vector<8x256xf32>
    %43 = tpu.matmul %40, %42, %cst_16 {dimension_numbers = #tpu.dot_dimension_numbers<[1], [0], [0], [1], [0, 0, 1, 1], [], []>} : vector<8x640xbf16>, vector<640x256xbf16>, vector<8x256xf32> -> vector<8x256xf32>
    %c0_17 = arith.constant 0 : index
    %c0_18 = arith.constant 0 : index
    %c0_19 = arith.constant 0 : index
    %44 = vector.load %arg5[%c0_17, %c0_18, %c0_19] : memref<10x1x256xf32, #tpu.memory_space<vmem>>, vector<1x1x256xf32>
    %45 = vector.shape_cast %44 : vector<1x1x256xf32> to vector<1x256xf32>
    %46 = vector.broadcast %45 : vector<1x256xf32> to vector<8x256xf32>
    %47 = arith.addf %43, %46 : vector<8x256xf32>
    %48 = vector.extract_strided_slice %37 {offsets = [0, 0, 0], sizes = [1, 8, 512], strides = [1, 1, 1]} : vector<10x8x512xf32> to vector<1x8x512xf32>
    %49 = vector.shape_cast %48 : vector<1x8x512xf32> to vector<8x512xf32>
    %50 = vector.extract_strided_slice %49 {offsets = [0, 256], sizes = [8, 128], strides = [1, 1]} : vector<8x512xf32> to vector<8x128xf32>
    %51 = arith.negf %50 : vector<8x128xf32>
    %52 = math.exp %51 : vector<8x128xf32>
    %cst_20 = arith.constant 1.000000e+00 : f32
    %53 = vector.broadcast %cst_20 : f32 to vector<8x128xf32>
    %54 = arith.addf %53, %52 : vector<8x128xf32>
    %55 = arith.divf %53, %54 : vector<8x128xf32>
    %56 = vector.extract_strided_slice %49 {offsets = [0, 384], sizes = [8, 128], strides = [1, 1]} : vector<8x512xf32> to vector<8x128xf32>
    %57 = arith.negf %56 : vector<8x128xf32>
    %58 = math.exp %57 : vector<8x128xf32>
    %cst_21 = arith.constant 1.000000e+00 : f32
    %59 = vector.broadcast %cst_21 : f32 to vector<8x128xf32>
    %60 = arith.addf %59, %58 : vector<8x128xf32>
    %61 = arith.divf %59, %60 : vector<8x128xf32>
    %62 = vector.extract_strided_slice %47 {offsets = [0, 0], sizes = [8, 128], strides = [1, 1]} : vector<8x256xf32> to vector<8x128xf32>
    %63 = arith.mulf %62, %55 : vector<8x128xf32>
    %64 = vector.extract_strided_slice %49 {offsets = [0, 0], sizes = [8, 128], strides = [1, 1]} : vector<8x512xf32> to vector<8x128xf32>
    %cst_22 = arith.constant 1.000000e+00 : f32
    %65 = vector.broadcast %cst_22 : f32 to vector<8x128xf32>
    %66 = arith.subf %65, %55 : vector<8x128xf32>
    %67 = arith.mulf %64, %66 : vector<8x128xf32>
    %68 = arith.addf %63, %67 : vector<8x128xf32>
    %cst_23 = arith.constant 0.000000e+00 : f32
    %69 = vector.broadcast %cst_23 : f32 to vector<8x128xf32>
    %70 = arith.maximumf %68, %69 : vector<8x128xf32>
    %71 = vector.extract_strided_slice %47 {offsets = [0, 128], sizes = [8, 128], strides = [1, 1]} : vector<8x256xf32> to vector<8x128xf32>
    %72 = arith.mulf %71, %61 : vector<8x128xf32>
    %73 = vector.extract_strided_slice %49 {offsets = [0, 128], sizes = [8, 128], strides = [1, 1]} : vector<8x512xf32> to vector<8x128xf32>
    %cst_24 = arith.constant 1.000000e+00 : f32
    %74 = vector.broadcast %cst_24 : f32 to vector<8x128xf32>
    %75 = arith.subf %74, %61 : vector<8x128xf32>
    %76 = arith.mulf %73, %75 : vector<8x128xf32>
    %77 = arith.addf %72, %76 : vector<8x128xf32>
    %cst_25 = arith.constant 0.000000e+00 : f32
    %78 = vector.broadcast %cst_25 : f32 to vector<8x128xf32>
    %79 = arith.maximumf %77, %78 : vector<8x128xf32>
    %80 = arith.maximumf %70, %79 : vector<8x128xf32>
    %81 = vector.extract_strided_slice %30 {offsets = [1, 0, 0], sizes = [1, 8, 640], strides = [1, 1, 1]} : vector<10x8x640xbf16> to vector<1x8x640xbf16>
    %82 = vector.shape_cast %81 : vector<1x8x640xbf16> to vector<8x640xbf16>
    %c1 = arith.constant 1 : index
    %c0_26 = arith.constant 0 : index
    %c0_27 = arith.constant 0 : index
    %83 = vector.load %arg4[%c1, %c0_26, %c0_27] : memref<10x640x256xbf16, #tpu.memory_space<vmem>>, vector<1x640x256xbf16>
    %84 = vector.shape_cast %83 : vector<1x640x256xbf16> to vector<640x256xbf16>
    %cst_28 = arith.constant dense<0.000000e+00> : vector<8x256xf32>
    %85 = tpu.matmul %82, %84, %cst_28 {dimension_numbers = #tpu.dot_dimension_numbers<[1], [0], [0], [1], [0, 0, 1, 1], [], []>} : vector<8x640xbf16>, vector<640x256xbf16>, vector<8x256xf32> -> vector<8x256xf32>
    %c1_29 = arith.constant 1 : index
    %c0_30 = arith.constant 0 : index
    %c0_31 = arith.constant 0 : index
    %86 = vector.load %arg5[%c1_29, %c0_30, %c0_31] : memref<10x1x256xf32, #tpu.memory_space<vmem>>, vector<1x1x256xf32>
    %87 = vector.shape_cast %86 : vector<1x1x256xf32> to vector<1x256xf32>
    %88 = vector.broadcast %87 : vector<1x256xf32> to vector<8x256xf32>
    %89 = arith.addf %85, %88 : vector<8x256xf32>
    %90 = vector.extract_strided_slice %37 {offsets = [1, 0, 0], sizes = [1, 8, 512], strides = [1, 1, 1]} : vector<10x8x512xf32> to vector<1x8x512xf32>
    %91 = vector.shape_cast %90 : vector<1x8x512xf32> to vector<8x512xf32>
    %92 = vector.extract_strided_slice %91 {offsets = [0, 256], sizes = [8, 128], strides = [1, 1]} : vector<8x512xf32> to vector<8x128xf32>
    %93 = arith.negf %92 : vector<8x128xf32>
    %94 = math.exp %93 : vector<8x128xf32>
    %cst_32 = arith.constant 1.000000e+00 : f32
    %95 = vector.broadcast %cst_32 : f32 to vector<8x128xf32>
    %96 = arith.addf %95, %94 : vector<8x128xf32>
    %97 = arith.divf %95, %96 : vector<8x128xf32>
    %98 = vector.extract_strided_slice %91 {offsets = [0, 384], sizes = [8, 128], strides = [1, 1]} : vector<8x512xf32> to vector<8x128xf32>
    %99 = arith.negf %98 : vector<8x128xf32>
    %100 = math.exp %99 : vector<8x128xf32>
    %cst_33 = arith.constant 1.000000e+00 : f32
    %101 = vector.broadcast %cst_33 : f32 to vector<8x128xf32>
    %102 = arith.addf %101, %100 : vector<8x128xf32>
    %103 = arith.divf %101, %102 : vector<8x128xf32>
    %104 = vector.extract_strided_slice %89 {offsets = [0, 0], sizes = [8, 128], strides = [1, 1]} : vector<8x256xf32> to vector<8x128xf32>
    %105 = arith.mulf %104, %97 : vector<8x128xf32>
    %106 = vector.extract_strided_slice %91 {offsets = [0, 0], sizes = [8, 128], strides = [1, 1]} : vector<8x512xf32> to vector<8x128xf32>
    %cst_34 = arith.constant 1.000000e+00 : f32
    %107 = vector.broadcast %cst_34 : f32 to vector<8x128xf32>
    %108 = arith.subf %107, %97 : vector<8x128xf32>
    %109 = arith.mulf %106, %108 : vector<8x128xf32>
    %110 = arith.addf %105, %109 : vector<8x128xf32>
    %cst_35 = arith.constant 0.000000e+00 : f32
    %111 = vector.broadcast %cst_35 : f32 to vector<8x128xf32>
    %112 = arith.maximumf %110, %111 : vector<8x128xf32>
    %113 = vector.extract_strided_slice %89 {offsets = [0, 128], sizes = [8, 128], strides = [1, 1]} : vector<8x256xf32> to vector<8x128xf32>
    %114 = arith.mulf %113, %103 : vector<8x128xf32>
    %115 = vector.extract_strided_slice %91 {offsets = [0, 128], sizes = [8, 128], strides = [1, 1]} : vector<8x512xf32> to vector<8x128xf32>
    %cst_36 = arith.constant 1.000000e+00 : f32
    %116 = vector.broadcast %cst_36 : f32 to vector<8x128xf32>
    %117 = arith.subf %116, %103 : vector<8x128xf32>
    %118 = arith.mulf %115, %117 : vector<8x128xf32>
    %119 = arith.addf %114, %118 : vector<8x128xf32>
    %cst_37 = arith.constant 0.000000e+00 : f32
    %120 = vector.broadcast %cst_37 : f32 to vector<8x128xf32>
    %121 = arith.maximumf %119, %120 : vector<8x128xf32>
    %122 = arith.maximumf %112, %121 : vector<8x128xf32>
    %123 = arith.maximumf %80, %122 : vector<8x128xf32>
    %124 = arith.truncf %123 : vector<8x128xf32> to vector<8x128xbf16>
    %c0_38 = arith.constant 0 : index
    %c0_39 = arith.constant 0 : index
    %c0_40 = arith.constant 0 : index
    %125 = vector.load %arg8[%c0_38, %c0_39, %c0_40] : memref<5x128x120xbf16, #tpu.memory_space<vmem>>, vector<1x128x120xbf16>
    %126 = vector.shape_cast %125 : vector<1x128x120xbf16> to vector<128x120xbf16>
    %cst_41 = arith.constant dense<0.000000e+00> : vector<8x120xf32>
    %127 = tpu.matmul %124, %126, %cst_41 {dimension_numbers = #tpu.dot_dimension_numbers<[1], [0], [0], [1], [0, 0, 1, 1], [], []>} : vector<8x128xbf16>, vector<128x120xbf16>, vector<8x120xf32> -> vector<8x120xf32>
    %128 = arith.addf %38, %127 : vector<8x120xf32>
    %129 = vector.extract_strided_slice %30 {offsets = [2, 0, 0], sizes = [1, 8, 640], strides = [1, 1, 1]} : vector<10x8x640xbf16> to vector<1x8x640xbf16>
    %130 = vector.shape_cast %129 : vector<1x8x640xbf16> to vector<8x640xbf16>
    %c2 = arith.constant 2 : index
    %c0_42 = arith.constant 0 : index
    %c0_43 = arith.constant 0 : index
    %131 = vector.load %arg4[%c2, %c0_42, %c0_43] : memref<10x640x256xbf16, #tpu.memory_space<vmem>>, vector<1x640x256xbf16>
    %132 = vector.shape_cast %131 : vector<1x640x256xbf16> to vector<640x256xbf16>
    %cst_44 = arith.constant dense<0.000000e+00> : vector<8x256xf32>
    %133 = tpu.matmul %130, %132, %cst_44 {dimension_numbers = #tpu.dot_dimension_numbers<[1], [0], [0], [1], [0, 0, 1, 1], [], []>} : vector<8x640xbf16>, vector<640x256xbf16>, vector<8x256xf32> -> vector<8x256xf32>
    %c2_45 = arith.constant 2 : index
    %c0_46 = arith.constant 0 : index
    %c0_47 = arith.constant 0 : index
    %134 = vector.load %arg5[%c2_45, %c0_46, %c0_47] : memref<10x1x256xf32, #tpu.memory_space<vmem>>, vector<1x1x256xf32>
    %135 = vector.shape_cast %134 : vector<1x1x256xf32> to vector<1x256xf32>
    %136 = vector.broadcast %135 : vector<1x256xf32> to vector<8x256xf32>
    %137 = arith.addf %133, %136 : vector<8x256xf32>
    %138 = vector.extract_strided_slice %37 {offsets = [2, 0, 0], sizes = [1, 8, 512], strides = [1, 1, 1]} : vector<10x8x512xf32> to vector<1x8x512xf32>
    %139 = vector.shape_cast %138 : vector<1x8x512xf32> to vector<8x512xf32>
    %140 = vector.extract_strided_slice %139 {offsets = [0, 256], sizes = [8, 128], strides = [1, 1]} : vector<8x512xf32> to vector<8x128xf32>
    %141 = arith.negf %140 : vector<8x128xf32>
    %142 = math.exp %141 : vector<8x128xf32>
    %cst_48 = arith.constant 1.000000e+00 : f32
    %143 = vector.broadcast %cst_48 : f32 to vector<8x128xf32>
    %144 = arith.addf %143, %142 : vector<8x128xf32>
    %145 = arith.divf %143, %144 : vector<8x128xf32>
    %146 = vector.extract_strided_slice %139 {offsets = [0, 384], sizes = [8, 128], strides = [1, 1]} : vector<8x512xf32> to vector<8x128xf32>
    %147 = arith.negf %146 : vector<8x128xf32>
    %148 = math.exp %147 : vector<8x128xf32>
    %cst_49 = arith.constant 1.000000e+00 : f32
    %149 = vector.broadcast %cst_49 : f32 to vector<8x128xf32>
    %150 = arith.addf %149, %148 : vector<8x128xf32>
    %151 = arith.divf %149, %150 : vector<8x128xf32>
    %152 = vector.extract_strided_slice %137 {offsets = [0, 0], sizes = [8, 128], strides = [1, 1]} : vector<8x256xf32> to vector<8x128xf32>
    %153 = arith.mulf %152, %145 : vector<8x128xf32>
    %154 = vector.extract_strided_slice %139 {offsets = [0, 0], sizes = [8, 128], strides = [1, 1]} : vector<8x512xf32> to vector<8x128xf32>
    %cst_50 = arith.constant 1.000000e+00 : f32
    %155 = vector.broadcast %cst_50 : f32 to vector<8x128xf32>
    %156 = arith.subf %155, %145 : vector<8x128xf32>
    %157 = arith.mulf %154, %156 : vector<8x128xf32>
    %158 = arith.addf %153, %157 : vector<8x128xf32>
    %cst_51 = arith.constant 0.000000e+00 : f32
    %159 = vector.broadcast %cst_51 : f32 to vector<8x128xf32>
    %160 = arith.maximumf %158, %159 : vector<8x128xf32>
    %161 = vector.extract_strided_slice %137 {offsets = [0, 128], sizes = [8, 128], strides = [1, 1]} : vector<8x256xf32> to vector<8x128xf32>
    %162 = arith.mulf %161, %151 : vector<8x128xf32>
    %163 = vector.extract_strided_slice %139 {offsets = [0, 128], sizes = [8, 128], strides = [1, 1]} : vector<8x512xf32> to vector<8x128xf32>
    %cst_52 = arith.constant 1.000000e+00 : f32
    %164 = vector.broadcast %cst_52 : f32 to vector<8x128xf32>
    %165 = arith.subf %164, %151 : vector<8x128xf32>
    %166 = arith.mulf %163, %165 : vector<8x128xf32>
    %167 = arith.addf %162, %166 : vector<8x128xf32>
    %cst_53 = arith.constant 0.000000e+00 : f32
    %168 = vector.broadcast %cst_53 : f32 to vector<8x128xf32>
    %169 = arith.maximumf %167, %168 : vector<8x128xf32>
    %170 = arith.maximumf %160, %169 : vector<8x128xf32>
    %171 = vector.extract_strided_slice %30 {offsets = [3, 0, 0], sizes = [1, 8, 640], strides = [1, 1, 1]} : vector<10x8x640xbf16> to vector<1x8x640xbf16>
    %172 = vector.shape_cast %171 : vector<1x8x640xbf16> to vector<8x640xbf16>
    %c3 = arith.constant 3 : index
    %c0_54 = arith.constant 0 : index
    %c0_55 = arith.constant 0 : index
    %173 = vector.load %arg4[%c3, %c0_54, %c0_55] : memref<10x640x256xbf16, #tpu.memory_space<vmem>>, vector<1x640x256xbf16>
    %174 = vector.shape_cast %173 : vector<1x640x256xbf16> to vector<640x256xbf16>
    %cst_56 = arith.constant dense<0.000000e+00> : vector<8x256xf32>
    %175 = tpu.matmul %172, %174, %cst_56 {dimension_numbers = #tpu.dot_dimension_numbers<[1], [0], [0], [1], [0, 0, 1, 1], [], []>} : vector<8x640xbf16>, vector<640x256xbf16>, vector<8x256xf32> -> vector<8x256xf32>
    %c3_57 = arith.constant 3 : index
    %c0_58 = arith.constant 0 : index
    %c0_59 = arith.constant 0 : index
    %176 = vector.load %arg5[%c3_57, %c0_58, %c0_59] : memref<10x1x256xf32, #tpu.memory_space<vmem>>, vector<1x1x256xf32>
    %177 = vector.shape_cast %176 : vector<1x1x256xf32> to vector<1x256xf32>
    %178 = vector.broadcast %177 : vector<1x256xf32> to vector<8x256xf32>
    %179 = arith.addf %175, %178 : vector<8x256xf32>
    %180 = vector.extract_strided_slice %37 {offsets = [3, 0, 0], sizes = [1, 8, 512], strides = [1, 1, 1]} : vector<10x8x512xf32> to vector<1x8x512xf32>
    %181 = vector.shape_cast %180 : vector<1x8x512xf32> to vector<8x512xf32>
    %182 = vector.extract_strided_slice %181 {offsets = [0, 256], sizes = [8, 128], strides = [1, 1]} : vector<8x512xf32> to vector<8x128xf32>
    %183 = arith.negf %182 : vector<8x128xf32>
    %184 = math.exp %183 : vector<8x128xf32>
    %cst_60 = arith.constant 1.000000e+00 : f32
    %185 = vector.broadcast %cst_60 : f32 to vector<8x128xf32>
    %186 = arith.addf %185, %184 : vector<8x128xf32>
    %187 = arith.divf %185, %186 : vector<8x128xf32>
    %188 = vector.extract_strided_slice %181 {offsets = [0, 384], sizes = [8, 128], strides = [1, 1]} : vector<8x512xf32> to vector<8x128xf32>
    %189 = arith.negf %188 : vector<8x128xf32>
    %190 = math.exp %189 : vector<8x128xf32>
    %cst_61 = arith.constant 1.000000e+00 : f32
    %191 = vector.broadcast %cst_61 : f32 to vector<8x128xf32>
    %192 = arith.addf %191, %190 : vector<8x128xf32>
    %193 = arith.divf %191, %192 : vector<8x128xf32>
    %194 = vector.extract_strided_slice %179 {offsets = [0, 0], sizes = [8, 128], strides = [1, 1]} : vector<8x256xf32> to vector<8x128xf32>
    %195 = arith.mulf %194, %187 : vector<8x128xf32>
    %196 = vector.extract_strided_slice %181 {offsets = [0, 0], sizes = [8, 128], strides = [1, 1]} : vector<8x512xf32> to vector<8x128xf32>
    %cst_62 = arith.constant 1.000000e+00 : f32
    %197 = vector.broadcast %cst_62 : f32 to vector<8x128xf32>
    %198 = arith.subf %197, %187 : vector<8x128xf32>
    %199 = arith.mulf %196, %198 : vector<8x128xf32>
    %200 = arith.addf %195, %199 : vector<8x128xf32>
    %cst_63 = arith.constant 0.000000e+00 : f32
    %201 = vector.broadcast %cst_63 : f32 to vector<8x128xf32>
    %202 = arith.maximumf %200, %201 : vector<8x128xf32>
    %203 = vector.extract_strided_slice %179 {offsets = [0, 128], sizes = [8, 128], strides = [1, 1]} : vector<8x256xf32> to vector<8x128xf32>
    %204 = arith.mulf %203, %193 : vector<8x128xf32>
    %205 = vector.extract_strided_slice %181 {offsets = [0, 128], sizes = [8, 128], strides = [1, 1]} : vector<8x512xf32> to vector<8x128xf32>
    %cst_64 = arith.constant 1.000000e+00 : f32
    %206 = vector.broadcast %cst_64 : f32 to vector<8x128xf32>
    %207 = arith.subf %206, %193 : vector<8x128xf32>
    %208 = arith.mulf %205, %207 : vector<8x128xf32>
    %209 = arith.addf %204, %208 : vector<8x128xf32>
    %cst_65 = arith.constant 0.000000e+00 : f32
    %210 = vector.broadcast %cst_65 : f32 to vector<8x128xf32>
    %211 = arith.maximumf %209, %210 : vector<8x128xf32>
    %212 = arith.maximumf %202, %211 : vector<8x128xf32>
    %213 = arith.maximumf %170, %212 : vector<8x128xf32>
    %214 = arith.truncf %213 : vector<8x128xf32> to vector<8x128xbf16>
    %c1_66 = arith.constant 1 : index
    %c0_67 = arith.constant 0 : index
    %c0_68 = arith.constant 0 : index
    %215 = vector.load %arg8[%c1_66, %c0_67, %c0_68] : memref<5x128x120xbf16, #tpu.memory_space<vmem>>, vector<1x128x120xbf16>
    %216 = vector.shape_cast %215 : vector<1x128x120xbf16> to vector<128x120xbf16>
    %cst_69 = arith.constant dense<0.000000e+00> : vector<8x120xf32>
    %217 = tpu.matmul %214, %216, %cst_69 {dimension_numbers = #tpu.dot_dimension_numbers<[1], [0], [0], [1], [0, 0, 1, 1], [], []>} : vector<8x128xbf16>, vector<128x120xbf16>, vector<8x120xf32> -> vector<8x120xf32>
    %218 = arith.addf %128, %217 : vector<8x120xf32>
    %219 = vector.extract_strided_slice %30 {offsets = [4, 0, 0], sizes = [1, 8, 640], strides = [1, 1, 1]} : vector<10x8x640xbf16> to vector<1x8x640xbf16>
    %220 = vector.shape_cast %219 : vector<1x8x640xbf16> to vector<8x640xbf16>
    %c4 = arith.constant 4 : index
    %c0_70 = arith.constant 0 : index
    %c0_71 = arith.constant 0 : index
    %221 = vector.load %arg4[%c4, %c0_70, %c0_71] : memref<10x640x256xbf16, #tpu.memory_space<vmem>>, vector<1x640x256xbf16>
    %222 = vector.shape_cast %221 : vector<1x640x256xbf16> to vector<640x256xbf16>
    %cst_72 = arith.constant dense<0.000000e+00> : vector<8x256xf32>
    %223 = tpu.matmul %220, %222, %cst_72 {dimension_numbers = #tpu.dot_dimension_numbers<[1], [0], [0], [1], [0, 0, 1, 1], [], []>} : vector<8x640xbf16>, vector<640x256xbf16>, vector<8x256xf32> -> vector<8x256xf32>
    %c4_73 = arith.constant 4 : index
    %c0_74 = arith.constant 0 : index
    %c0_75 = arith.constant 0 : index
    %224 = vector.load %arg5[%c4_73, %c0_74, %c0_75] : memref<10x1x256xf32, #tpu.memory_space<vmem>>, vector<1x1x256xf32>
    %225 = vector.shape_cast %224 : vector<1x1x256xf32> to vector<1x256xf32>
    %226 = vector.broadcast %225 : vector<1x256xf32> to vector<8x256xf32>
    %227 = arith.addf %223, %226 : vector<8x256xf32>
    %228 = vector.extract_strided_slice %37 {offsets = [4, 0, 0], sizes = [1, 8, 512], strides = [1, 1, 1]} : vector<10x8x512xf32> to vector<1x8x512xf32>
    %229 = vector.shape_cast %228 : vector<1x8x512xf32> to vector<8x512xf32>
    %230 = vector.extract_strided_slice %229 {offsets = [0, 256], sizes = [8, 128], strides = [1, 1]} : vector<8x512xf32> to vector<8x128xf32>
    %231 = arith.negf %230 : vector<8x128xf32>
    %232 = math.exp %231 : vector<8x128xf32>
    %cst_76 = arith.constant 1.000000e+00 : f32
    %233 = vector.broadcast %cst_76 : f32 to vector<8x128xf32>
    %234 = arith.addf %233, %232 : vector<8x128xf32>
    %235 = arith.divf %233, %234 : vector<8x128xf32>
    %236 = vector.extract_strided_slice %229 {offsets = [0, 384], sizes = [8, 128], strides = [1, 1]} : vector<8x512xf32> to vector<8x128xf32>
    %237 = arith.negf %236 : vector<8x128xf32>
    %238 = math.exp %237 : vector<8x128xf32>
    %cst_77 = arith.constant 1.000000e+00 : f32
    %239 = vector.broadcast %cst_77 : f32 to vector<8x128xf32>
    %240 = arith.addf %239, %238 : vector<8x128xf32>
    %241 = arith.divf %239, %240 : vector<8x128xf32>
    %242 = vector.extract_strided_slice %227 {offsets = [0, 0], sizes = [8, 128], strides = [1, 1]} : vector<8x256xf32> to vector<8x128xf32>
    %243 = arith.mulf %242, %235 : vector<8x128xf32>
    %244 = vector.extract_strided_slice %229 {offsets = [0, 0], sizes = [8, 128], strides = [1, 1]} : vector<8x512xf32> to vector<8x128xf32>
    %cst_78 = arith.constant 1.000000e+00 : f32
    %245 = vector.broadcast %cst_78 : f32 to vector<8x128xf32>
    %246 = arith.subf %245, %235 : vector<8x128xf32>
    %247 = arith.mulf %244, %246 : vector<8x128xf32>
    %248 = arith.addf %243, %247 : vector<8x128xf32>
    %cst_79 = arith.constant 0.000000e+00 : f32
    %249 = vector.broadcast %cst_79 : f32 to vector<8x128xf32>
    %250 = arith.maximumf %248, %249 : vector<8x128xf32>
    %251 = vector.extract_strided_slice %227 {offsets = [0, 128], sizes = [8, 128], strides = [1, 1]} : vector<8x256xf32> to vector<8x128xf32>
    %252 = arith.mulf %251, %241 : vector<8x128xf32>
    %253 = vector.extract_strided_slice %229 {offsets = [0, 128], sizes = [8, 128], strides = [1, 1]} : vector<8x512xf32> to vector<8x128xf32>
    %cst_80 = arith.constant 1.000000e+00 : f32
    %254 = vector.broadcast %cst_80 : f32 to vector<8x128xf32>
    %255 = arith.subf %254, %241 : vector<8x128xf32>
    %256 = arith.mulf %253, %255 : vector<8x128xf32>
    %257 = arith.addf %252, %256 : vector<8x128xf32>
    %cst_81 = arith.constant 0.000000e+00 : f32
    %258 = vector.broadcast %cst_81 : f32 to vector<8x128xf32>
    %259 = arith.maximumf %257, %258 : vector<8x128xf32>
    %260 = arith.maximumf %250, %259 : vector<8x128xf32>
    %261 = vector.extract_strided_slice %30 {offsets = [5, 0, 0], sizes = [1, 8, 640], strides = [1, 1, 1]} : vector<10x8x640xbf16> to vector<1x8x640xbf16>
    %262 = vector.shape_cast %261 : vector<1x8x640xbf16> to vector<8x640xbf16>
    %c5 = arith.constant 5 : index
    %c0_82 = arith.constant 0 : index
    %c0_83 = arith.constant 0 : index
    %263 = vector.load %arg4[%c5, %c0_82, %c0_83] : memref<10x640x256xbf16, #tpu.memory_space<vmem>>, vector<1x640x256xbf16>
    %264 = vector.shape_cast %263 : vector<1x640x256xbf16> to vector<640x256xbf16>
    %cst_84 = arith.constant dense<0.000000e+00> : vector<8x256xf32>
    %265 = tpu.matmul %262, %264, %cst_84 {dimension_numbers = #tpu.dot_dimension_numbers<[1], [0], [0], [1], [0, 0, 1, 1], [], []>} : vector<8x640xbf16>, vector<640x256xbf16>, vector<8x256xf32> -> vector<8x256xf32>
    %c5_85 = arith.constant 5 : index
    %c0_86 = arith.constant 0 : index
    %c0_87 = arith.constant 0 : index
    %266 = vector.load %arg5[%c5_85, %c0_86, %c0_87] : memref<10x1x256xf32, #tpu.memory_space<vmem>>, vector<1x1x256xf32>
    %267 = vector.shape_cast %266 : vector<1x1x256xf32> to vector<1x256xf32>
    %268 = vector.broadcast %267 : vector<1x256xf32> to vector<8x256xf32>
    %269 = arith.addf %265, %268 : vector<8x256xf32>
    %270 = vector.extract_strided_slice %37 {offsets = [5, 0, 0], sizes = [1, 8, 512], strides = [1, 1, 1]} : vector<10x8x512xf32> to vector<1x8x512xf32>
    %271 = vector.shape_cast %270 : vector<1x8x512xf32> to vector<8x512xf32>
    %272 = vector.extract_strided_slice %271 {offsets = [0, 256], sizes = [8, 128], strides = [1, 1]} : vector<8x512xf32> to vector<8x128xf32>
    %273 = arith.negf %272 : vector<8x128xf32>
    %274 = math.exp %273 : vector<8x128xf32>
    %cst_88 = arith.constant 1.000000e+00 : f32
    %275 = vector.broadcast %cst_88 : f32 to vector<8x128xf32>
    %276 = arith.addf %275, %274 : vector<8x128xf32>
    %277 = arith.divf %275, %276 : vector<8x128xf32>
    %278 = vector.extract_strided_slice %271 {offsets = [0, 384], sizes = [8, 128], strides = [1, 1]} : vector<8x512xf32> to vector<8x128xf32>
    %279 = arith.negf %278 : vector<8x128xf32>
    %280 = math.exp %279 : vector<8x128xf32>
    %cst_89 = arith.constant 1.000000e+00 : f32
    %281 = vector.broadcast %cst_89 : f32 to vector<8x128xf32>
    %282 = arith.addf %281, %280 : vector<8x128xf32>
    %283 = arith.divf %281, %282 : vector<8x128xf32>
    %284 = vector.extract_strided_slice %269 {offsets = [0, 0], sizes = [8, 128], strides = [1, 1]} : vector<8x256xf32> to vector<8x128xf32>
    %285 = arith.mulf %284, %277 : vector<8x128xf32>
    %286 = vector.extract_strided_slice %271 {offsets = [0, 0], sizes = [8, 128], strides = [1, 1]} : vector<8x512xf32> to vector<8x128xf32>
    %cst_90 = arith.constant 1.000000e+00 : f32
    %287 = vector.broadcast %cst_90 : f32 to vector<8x128xf32>
    %288 = arith.subf %287, %277 : vector<8x128xf32>
    %289 = arith.mulf %286, %288 : vector<8x128xf32>
    %290 = arith.addf %285, %289 : vector<8x128xf32>
    %cst_91 = arith.constant 0.000000e+00 : f32
    %291 = vector.broadcast %cst_91 : f32 to vector<8x128xf32>
    %292 = arith.maximumf %290, %291 : vector<8x128xf32>
    %293 = vector.extract_strided_slice %269 {offsets = [0, 128], sizes = [8, 128], strides = [1, 1]} : vector<8x256xf32> to vector<8x128xf32>
    %294 = arith.mulf %293, %283 : vector<8x128xf32>
    %295 = vector.extract_strided_slice %271 {offsets = [0, 128], sizes = [8, 128], strides = [1, 1]} : vector<8x512xf32> to vector<8x128xf32>
    %cst_92 = arith.constant 1.000000e+00 : f32
    %296 = vector.broadcast %cst_92 : f32 to vector<8x128xf32>
    %297 = arith.subf %296, %283 : vector<8x128xf32>
    %298 = arith.mulf %295, %297 : vector<8x128xf32>
    %299 = arith.addf %294, %298 : vector<8x128xf32>
    %cst_93 = arith.constant 0.000000e+00 : f32
    %300 = vector.broadcast %cst_93 : f32 to vector<8x128xf32>
    %301 = arith.maximumf %299, %300 : vector<8x128xf32>
    %302 = arith.maximumf %292, %301 : vector<8x128xf32>
    %303 = arith.maximumf %260, %302 : vector<8x128xf32>
    %304 = arith.truncf %303 : vector<8x128xf32> to vector<8x128xbf16>
    %c2_94 = arith.constant 2 : index
    %c0_95 = arith.constant 0 : index
    %c0_96 = arith.constant 0 : index
    %305 = vector.load %arg8[%c2_94, %c0_95, %c0_96] : memref<5x128x120xbf16, #tpu.memory_space<vmem>>, vector<1x128x120xbf16>
    %306 = vector.shape_cast %305 : vector<1x128x120xbf16> to vector<128x120xbf16>
    %cst_97 = arith.constant dense<0.000000e+00> : vector<8x120xf32>
    %307 = tpu.matmul %304, %306, %cst_97 {dimension_numbers = #tpu.dot_dimension_numbers<[1], [0], [0], [1], [0, 0, 1, 1], [], []>} : vector<8x128xbf16>, vector<128x120xbf16>, vector<8x120xf32> -> vector<8x120xf32>
    %308 = arith.addf %218, %307 : vector<8x120xf32>
    %309 = vector.extract_strided_slice %30 {offsets = [6, 0, 0], sizes = [1, 8, 640], strides = [1, 1, 1]} : vector<10x8x640xbf16> to vector<1x8x640xbf16>
    %310 = vector.shape_cast %309 : vector<1x8x640xbf16> to vector<8x640xbf16>
    %c6 = arith.constant 6 : index
    %c0_98 = arith.constant 0 : index
    %c0_99 = arith.constant 0 : index
    %311 = vector.load %arg4[%c6, %c0_98, %c0_99] : memref<10x640x256xbf16, #tpu.memory_space<vmem>>, vector<1x640x256xbf16>
    %312 = vector.shape_cast %311 : vector<1x640x256xbf16> to vector<640x256xbf16>
    %cst_100 = arith.constant dense<0.000000e+00> : vector<8x256xf32>
    %313 = tpu.matmul %310, %312, %cst_100 {dimension_numbers = #tpu.dot_dimension_numbers<[1], [0], [0], [1], [0, 0, 1, 1], [], []>} : vector<8x640xbf16>, vector<640x256xbf16>, vector<8x256xf32> -> vector<8x256xf32>
    %c6_101 = arith.constant 6 : index
    %c0_102 = arith.constant 0 : index
    %c0_103 = arith.constant 0 : index
    %314 = vector.load %arg5[%c6_101, %c0_102, %c0_103] : memref<10x1x256xf32, #tpu.memory_space<vmem>>, vector<1x1x256xf32>
    %315 = vector.shape_cast %314 : vector<1x1x256xf32> to vector<1x256xf32>
    %316 = vector.broadcast %315 : vector<1x256xf32> to vector<8x256xf32>
    %317 = arith.addf %313, %316 : vector<8x256xf32>
    %318 = vector.extract_strided_slice %37 {offsets = [6, 0, 0], sizes = [1, 8, 512], strides = [1, 1, 1]} : vector<10x8x512xf32> to vector<1x8x512xf32>
    %319 = vector.shape_cast %318 : vector<1x8x512xf32> to vector<8x512xf32>
    %320 = vector.extract_strided_slice %319 {offsets = [0, 256], sizes = [8, 128], strides = [1, 1]} : vector<8x512xf32> to vector<8x128xf32>
    %321 = arith.negf %320 : vector<8x128xf32>
    %322 = math.exp %321 : vector<8x128xf32>
    %cst_104 = arith.constant 1.000000e+00 : f32
    %323 = vector.broadcast %cst_104 : f32 to vector<8x128xf32>
    %324 = arith.addf %323, %322 : vector<8x128xf32>
    %325 = arith.divf %323, %324 : vector<8x128xf32>
    %326 = vector.extract_strided_slice %319 {offsets = [0, 384], sizes = [8, 128], strides = [1, 1]} : vector<8x512xf32> to vector<8x128xf32>
    %327 = arith.negf %326 : vector<8x128xf32>
    %328 = math.exp %327 : vector<8x128xf32>
    %cst_105 = arith.constant 1.000000e+00 : f32
    %329 = vector.broadcast %cst_105 : f32 to vector<8x128xf32>
    %330 = arith.addf %329, %328 : vector<8x128xf32>
    %331 = arith.divf %329, %330 : vector<8x128xf32>
    %332 = vector.extract_strided_slice %317 {offsets = [0, 0], sizes = [8, 128], strides = [1, 1]} : vector<8x256xf32> to vector<8x128xf32>
    %333 = arith.mulf %332, %325 : vector<8x128xf32>
    %334 = vector.extract_strided_slice %319 {offsets = [0, 0], sizes = [8, 128], strides = [1, 1]} : vector<8x512xf32> to vector<8x128xf32>
    %cst_106 = arith.constant 1.000000e+00 : f32
    %335 = vector.broadcast %cst_106 : f32 to vector<8x128xf32>
    %336 = arith.subf %335, %325 : vector<8x128xf32>
    %337 = arith.mulf %334, %336 : vector<8x128xf32>
    %338 = arith.addf %333, %337 : vector<8x128xf32>
    %cst_107 = arith.constant 0.000000e+00 : f32
    %339 = vector.broadcast %cst_107 : f32 to vector<8x128xf32>
    %340 = arith.maximumf %338, %339 : vector<8x128xf32>
    %341 = vector.extract_strided_slice %317 {offsets = [0, 128], sizes = [8, 128], strides = [1, 1]} : vector<8x256xf32> to vector<8x128xf32>
    %342 = arith.mulf %341, %331 : vector<8x128xf32>
    %343 = vector.extract_strided_slice %319 {offsets = [0, 128], sizes = [8, 128], strides = [1, 1]} : vector<8x512xf32> to vector<8x128xf32>
    %cst_108 = arith.constant 1.000000e+00 : f32
    %344 = vector.broadcast %cst_108 : f32 to vector<8x128xf32>
    %345 = arith.subf %344, %331 : vector<8x128xf32>
    %346 = arith.mulf %343, %345 : vector<8x128xf32>
    %347 = arith.addf %342, %346 : vector<8x128xf32>
    %cst_109 = arith.constant 0.000000e+00 : f32
    %348 = vector.broadcast %cst_109 : f32 to vector<8x128xf32>
    %349 = arith.maximumf %347, %348 : vector<8x128xf32>
    %350 = arith.maximumf %340, %349 : vector<8x128xf32>
    %351 = vector.extract_strided_slice %30 {offsets = [7, 0, 0], sizes = [1, 8, 640], strides = [1, 1, 1]} : vector<10x8x640xbf16> to vector<1x8x640xbf16>
    %352 = vector.shape_cast %351 : vector<1x8x640xbf16> to vector<8x640xbf16>
    %c7 = arith.constant 7 : index
    %c0_110 = arith.constant 0 : index
    %c0_111 = arith.constant 0 : index
    %353 = vector.load %arg4[%c7, %c0_110, %c0_111] : memref<10x640x256xbf16, #tpu.memory_space<vmem>>, vector<1x640x256xbf16>
    %354 = vector.shape_cast %353 : vector<1x640x256xbf16> to vector<640x256xbf16>
    %cst_112 = arith.constant dense<0.000000e+00> : vector<8x256xf32>
    %355 = tpu.matmul %352, %354, %cst_112 {dimension_numbers = #tpu.dot_dimension_numbers<[1], [0], [0], [1], [0, 0, 1, 1], [], []>} : vector<8x640xbf16>, vector<640x256xbf16>, vector<8x256xf32> -> vector<8x256xf32>
    %c7_113 = arith.constant 7 : index
    %c0_114 = arith.constant 0 : index
    %c0_115 = arith.constant 0 : index
    %356 = vector.load %arg5[%c7_113, %c0_114, %c0_115] : memref<10x1x256xf32, #tpu.memory_space<vmem>>, vector<1x1x256xf32>
    %357 = vector.shape_cast %356 : vector<1x1x256xf32> to vector<1x256xf32>
    %358 = vector.broadcast %357 : vector<1x256xf32> to vector<8x256xf32>
    %359 = arith.addf %355, %358 : vector<8x256xf32>
    %360 = vector.extract_strided_slice %37 {offsets = [7, 0, 0], sizes = [1, 8, 512], strides = [1, 1, 1]} : vector<10x8x512xf32> to vector<1x8x512xf32>
    %361 = vector.shape_cast %360 : vector<1x8x512xf32> to vector<8x512xf32>
    %362 = vector.extract_strided_slice %361 {offsets = [0, 256], sizes = [8, 128], strides = [1, 1]} : vector<8x512xf32> to vector<8x128xf32>
    %363 = arith.negf %362 : vector<8x128xf32>
    %364 = math.exp %363 : vector<8x128xf32>
    %cst_116 = arith.constant 1.000000e+00 : f32
    %365 = vector.broadcast %cst_116 : f32 to vector<8x128xf32>
    %366 = arith.addf %365, %364 : vector<8x128xf32>
    %367 = arith.divf %365, %366 : vector<8x128xf32>
    %368 = vector.extract_strided_slice %361 {offsets = [0, 384], sizes = [8, 128], strides = [1, 1]} : vector<8x512xf32> to vector<8x128xf32>
    %369 = arith.negf %368 : vector<8x128xf32>
    %370 = math.exp %369 : vector<8x128xf32>
    %cst_117 = arith.constant 1.000000e+00 : f32
    %371 = vector.broadcast %cst_117 : f32 to vector<8x128xf32>
    %372 = arith.addf %371, %370 : vector<8x128xf32>
    %373 = arith.divf %371, %372 : vector<8x128xf32>
    %374 = vector.extract_strided_slice %359 {offsets = [0, 0], sizes = [8, 128], strides = [1, 1]} : vector<8x256xf32> to vector<8x128xf32>
    %375 = arith.mulf %374, %367 : vector<8x128xf32>
    %376 = vector.extract_strided_slice %361 {offsets = [0, 0], sizes = [8, 128], strides = [1, 1]} : vector<8x512xf32> to vector<8x128xf32>
    %cst_118 = arith.constant 1.000000e+00 : f32
    %377 = vector.broadcast %cst_118 : f32 to vector<8x128xf32>
    %378 = arith.subf %377, %367 : vector<8x128xf32>
    %379 = arith.mulf %376, %378 : vector<8x128xf32>
    %380 = arith.addf %375, %379 : vector<8x128xf32>
    %cst_119 = arith.constant 0.000000e+00 : f32
    %381 = vector.broadcast %cst_119 : f32 to vector<8x128xf32>
    %382 = arith.maximumf %380, %381 : vector<8x128xf32>
    %383 = vector.extract_strided_slice %359 {offsets = [0, 128], sizes = [8, 128], strides = [1, 1]} : vector<8x256xf32> to vector<8x128xf32>
    %384 = arith.mulf %383, %373 : vector<8x128xf32>
    %385 = vector.extract_strided_slice %361 {offsets = [0, 128], sizes = [8, 128], strides = [1, 1]} : vector<8x512xf32> to vector<8x128xf32>
    %cst_120 = arith.constant 1.000000e+00 : f32
    %386 = vector.broadcast %cst_120 : f32 to vector<8x128xf32>
    %387 = arith.subf %386, %373 : vector<8x128xf32>
    %388 = arith.mulf %385, %387 : vector<8x128xf32>
    %389 = arith.addf %384, %388 : vector<8x128xf32>
    %cst_121 = arith.constant 0.000000e+00 : f32
    %390 = vector.broadcast %cst_121 : f32 to vector<8x128xf32>
    %391 = arith.maximumf %389, %390 : vector<8x128xf32>
    %392 = arith.maximumf %382, %391 : vector<8x128xf32>
    %393 = arith.maximumf %350, %392 : vector<8x128xf32>
    %394 = arith.truncf %393 : vector<8x128xf32> to vector<8x128xbf16>
    %c3_122 = arith.constant 3 : index
    %c0_123 = arith.constant 0 : index
    %c0_124 = arith.constant 0 : index
    %395 = vector.load %arg8[%c3_122, %c0_123, %c0_124] : memref<5x128x120xbf16, #tpu.memory_space<vmem>>, vector<1x128x120xbf16>
    %396 = vector.shape_cast %395 : vector<1x128x120xbf16> to vector<128x120xbf16>
    %cst_125 = arith.constant dense<0.000000e+00> : vector<8x120xf32>
    %397 = tpu.matmul %394, %396, %cst_125 {dimension_numbers = #tpu.dot_dimension_numbers<[1], [0], [0], [1], [0, 0, 1, 1], [], []>} : vector<8x128xbf16>, vector<128x120xbf16>, vector<8x120xf32> -> vector<8x120xf32>
    %398 = arith.addf %308, %397 : vector<8x120xf32>
    %399 = vector.extract_strided_slice %30 {offsets = [8, 0, 0], sizes = [1, 8, 640], strides = [1, 1, 1]} : vector<10x8x640xbf16> to vector<1x8x640xbf16>
    %400 = vector.shape_cast %399 : vector<1x8x640xbf16> to vector<8x640xbf16>
    %c8 = arith.constant 8 : index
    %c0_126 = arith.constant 0 : index
    %c0_127 = arith.constant 0 : index
    %401 = vector.load %arg4[%c8, %c0_126, %c0_127] : memref<10x640x256xbf16, #tpu.memory_space<vmem>>, vector<1x640x256xbf16>
    %402 = vector.shape_cast %401 : vector<1x640x256xbf16> to vector<640x256xbf16>
    %cst_128 = arith.constant dense<0.000000e+00> : vector<8x256xf32>
    %403 = tpu.matmul %400, %402, %cst_128 {dimension_numbers = #tpu.dot_dimension_numbers<[1], [0], [0], [1], [0, 0, 1, 1], [], []>} : vector<8x640xbf16>, vector<640x256xbf16>, vector<8x256xf32> -> vector<8x256xf32>
    %c8_129 = arith.constant 8 : index
    %c0_130 = arith.constant 0 : index
    %c0_131 = arith.constant 0 : index
    %404 = vector.load %arg5[%c8_129, %c0_130, %c0_131] : memref<10x1x256xf32, #tpu.memory_space<vmem>>, vector<1x1x256xf32>
    %405 = vector.shape_cast %404 : vector<1x1x256xf32> to vector<1x256xf32>
    %406 = vector.broadcast %405 : vector<1x256xf32> to vector<8x256xf32>
    %407 = arith.addf %403, %406 : vector<8x256xf32>
    %408 = vector.extract_strided_slice %37 {offsets = [8, 0, 0], sizes = [1, 8, 512], strides = [1, 1, 1]} : vector<10x8x512xf32> to vector<1x8x512xf32>
    %409 = vector.shape_cast %408 : vector<1x8x512xf32> to vector<8x512xf32>
    %410 = vector.extract_strided_slice %409 {offsets = [0, 256], sizes = [8, 128], strides = [1, 1]} : vector<8x512xf32> to vector<8x128xf32>
    %411 = arith.negf %410 : vector<8x128xf32>
    %412 = math.exp %411 : vector<8x128xf32>
    %cst_132 = arith.constant 1.000000e+00 : f32
    %413 = vector.broadcast %cst_132 : f32 to vector<8x128xf32>
    %414 = arith.addf %413, %412 : vector<8x128xf32>
    %415 = arith.divf %413, %414 : vector<8x128xf32>
    %416 = vector.extract_strided_slice %409 {offsets = [0, 384], sizes = [8, 128], strides = [1, 1]} : vector<8x512xf32> to vector<8x128xf32>
    %417 = arith.negf %416 : vector<8x128xf32>
    %418 = math.exp %417 : vector<8x128xf32>
    %cst_133 = arith.constant 1.000000e+00 : f32
    %419 = vector.broadcast %cst_133 : f32 to vector<8x128xf32>
    %420 = arith.addf %419, %418 : vector<8x128xf32>
    %421 = arith.divf %419, %420 : vector<8x128xf32>
    %422 = vector.extract_strided_slice %407 {offsets = [0, 0], sizes = [8, 128], strides = [1, 1]} : vector<8x256xf32> to vector<8x128xf32>
    %423 = arith.mulf %422, %415 : vector<8x128xf32>
    %424 = vector.extract_strided_slice %409 {offsets = [0, 0], sizes = [8, 128], strides = [1, 1]} : vector<8x512xf32> to vector<8x128xf32>
    %cst_134 = arith.constant 1.000000e+00 : f32
    %425 = vector.broadcast %cst_134 : f32 to vector<8x128xf32>
    %426 = arith.subf %425, %415 : vector<8x128xf32>
    %427 = arith.mulf %424, %426 : vector<8x128xf32>
    %428 = arith.addf %423, %427 : vector<8x128xf32>
    %cst_135 = arith.constant 0.000000e+00 : f32
    %429 = vector.broadcast %cst_135 : f32 to vector<8x128xf32>
    %430 = arith.maximumf %428, %429 : vector<8x128xf32>
    %431 = vector.extract_strided_slice %407 {offsets = [0, 128], sizes = [8, 128], strides = [1, 1]} : vector<8x256xf32> to vector<8x128xf32>
    %432 = arith.mulf %431, %421 : vector<8x128xf32>
    %433 = vector.extract_strided_slice %409 {offsets = [0, 128], sizes = [8, 128], strides = [1, 1]} : vector<8x512xf32> to vector<8x128xf32>
    %cst_136 = arith.constant 1.000000e+00 : f32
    %434 = vector.broadcast %cst_136 : f32 to vector<8x128xf32>
    %435 = arith.subf %434, %421 : vector<8x128xf32>
    %436 = arith.mulf %433, %435 : vector<8x128xf32>
    %437 = arith.addf %432, %436 : vector<8x128xf32>
    %cst_137 = arith.constant 0.000000e+00 : f32
    %438 = vector.broadcast %cst_137 : f32 to vector<8x128xf32>
    %439 = arith.maximumf %437, %438 : vector<8x128xf32>
    %440 = arith.maximumf %430, %439 : vector<8x128xf32>
    %441 = vector.extract_strided_slice %30 {offsets = [9, 0, 0], sizes = [1, 8, 640], strides = [1, 1, 1]} : vector<10x8x640xbf16> to vector<1x8x640xbf16>
    %442 = vector.shape_cast %441 : vector<1x8x640xbf16> to vector<8x640xbf16>
    %c9 = arith.constant 9 : index
    %c0_138 = arith.constant 0 : index
    %c0_139 = arith.constant 0 : index
    %443 = vector.load %arg4[%c9, %c0_138, %c0_139] : memref<10x640x256xbf16, #tpu.memory_space<vmem>>, vector<1x640x256xbf16>
    %444 = vector.shape_cast %443 : vector<1x640x256xbf16> to vector<640x256xbf16>
    %cst_140 = arith.constant dense<0.000000e+00> : vector<8x256xf32>
    %445 = tpu.matmul %442, %444, %cst_140 {dimension_numbers = #tpu.dot_dimension_numbers<[1], [0], [0], [1], [0, 0, 1, 1], [], []>} : vector<8x640xbf16>, vector<640x256xbf16>, vector<8x256xf32> -> vector<8x256xf32>
    %c9_141 = arith.constant 9 : index
    %c0_142 = arith.constant 0 : index
    %c0_143 = arith.constant 0 : index
    %446 = vector.load %arg5[%c9_141, %c0_142, %c0_143] : memref<10x1x256xf32, #tpu.memory_space<vmem>>, vector<1x1x256xf32>
    %447 = vector.shape_cast %446 : vector<1x1x256xf32> to vector<1x256xf32>
    %448 = vector.broadcast %447 : vector<1x256xf32> to vector<8x256xf32>
    %449 = arith.addf %445, %448 : vector<8x256xf32>
    %450 = vector.extract_strided_slice %37 {offsets = [9, 0, 0], sizes = [1, 8, 512], strides = [1, 1, 1]} : vector<10x8x512xf32> to vector<1x8x512xf32>
    %451 = vector.shape_cast %450 : vector<1x8x512xf32> to vector<8x512xf32>
    %452 = vector.extract_strided_slice %451 {offsets = [0, 256], sizes = [8, 128], strides = [1, 1]} : vector<8x512xf32> to vector<8x128xf32>
    %453 = arith.negf %452 : vector<8x128xf32>
    %454 = math.exp %453 : vector<8x128xf32>
    %cst_144 = arith.constant 1.000000e+00 : f32
    %455 = vector.broadcast %cst_144 : f32 to vector<8x128xf32>
    %456 = arith.addf %455, %454 : vector<8x128xf32>
    %457 = arith.divf %455, %456 : vector<8x128xf32>
    %458 = vector.extract_strided_slice %451 {offsets = [0, 384], sizes = [8, 128], strides = [1, 1]} : vector<8x512xf32> to vector<8x128xf32>
    %459 = arith.negf %458 : vector<8x128xf32>
    %460 = math.exp %459 : vector<8x128xf32>
    %cst_145 = arith.constant 1.000000e+00 : f32
    %461 = vector.broadcast %cst_145 : f32 to vector<8x128xf32>
    %462 = arith.addf %461, %460 : vector<8x128xf32>
    %463 = arith.divf %461, %462 : vector<8x128xf32>
    %464 = vector.extract_strided_slice %449 {offsets = [0, 0], sizes = [8, 128], strides = [1, 1]} : vector<8x256xf32> to vector<8x128xf32>
    %465 = arith.mulf %464, %457 : vector<8x128xf32>
    %466 = vector.extract_strided_slice %451 {offsets = [0, 0], sizes = [8, 128], strides = [1, 1]} : vector<8x512xf32> to vector<8x128xf32>
    %cst_146 = arith.constant 1.000000e+00 : f32
    %467 = vector.broadcast %cst_146 : f32 to vector<8x128xf32>
    %468 = arith.subf %467, %457 : vector<8x128xf32>
    %469 = arith.mulf %466, %468 : vector<8x128xf32>
    %470 = arith.addf %465, %469 : vector<8x128xf32>
    %cst_147 = arith.constant 0.000000e+00 : f32
    %471 = vector.broadcast %cst_147 : f32 to vector<8x128xf32>
    %472 = arith.maximumf %470, %471 : vector<8x128xf32>
    %473 = vector.extract_strided_slice %449 {offsets = [0, 128], sizes = [8, 128], strides = [1, 1]} : vector<8x256xf32> to vector<8x128xf32>
    %474 = arith.mulf %473, %463 : vector<8x128xf32>
    %475 = vector.extract_strided_slice %451 {offsets = [0, 128], sizes = [8, 128], strides = [1, 1]} : vector<8x512xf32> to vector<8x128xf32>
    %cst_148 = arith.constant 1.000000e+00 : f32
    %476 = vector.broadcast %cst_148 : f32 to vector<8x128xf32>
    %477 = arith.subf %476, %463 : vector<8x128xf32>
    %478 = arith.mulf %475, %477 : vector<8x128xf32>
    %479 = arith.addf %474, %478 : vector<8x128xf32>
    %cst_149 = arith.constant 0.000000e+00 : f32
    %480 = vector.broadcast %cst_149 : f32 to vector<8x128xf32>
    %481 = arith.maximumf %479, %480 : vector<8x128xf32>
    %482 = arith.maximumf %472, %481 : vector<8x128xf32>
    %483 = arith.maximumf %440, %482 : vector<8x128xf32>
    %484 = arith.truncf %483 : vector<8x128xf32> to vector<8x128xbf16>
    %c4_150 = arith.constant 4 : index
    %c0_151 = arith.constant 0 : index
    %c0_152 = arith.constant 0 : index
    %485 = vector.load %arg8[%c4_150, %c0_151, %c0_152] : memref<5x128x120xbf16, #tpu.memory_space<vmem>>, vector<1x128x120xbf16>
    %486 = vector.shape_cast %485 : vector<1x128x120xbf16> to vector<128x120xbf16>
    %cst_153 = arith.constant dense<0.000000e+00> : vector<8x120xf32>
    %487 = tpu.matmul %484, %486, %cst_153 {dimension_numbers = #tpu.dot_dimension_numbers<[1], [0], [0], [1], [0, 0, 1, 1], [], []>} : vector<8x128xbf16>, vector<128x120xbf16>, vector<8x120xf32> -> vector<8x120xf32>
    %488 = arith.addf %398, %487 : vector<8x120xf32>
    %c0_154 = arith.constant 0 : index
    %c0_155 = arith.constant 0 : index
    %489 = vector.load %arg9[%c0_154, %c0_155] : memref<1x120xf32, #tpu.memory_space<vmem>>, vector<1x120xf32>
    %490 = vector.broadcast %489 : vector<1x120xf32> to vector<8x120xf32>
    %491 = arith.addf %488, %490 : vector<8x120xf32>
    %cst_156 = arith.constant 0.000000e+00 : f32
    %492 = vector.broadcast %cst_156 : f32 to vector<8x120xf32>
    %493 = arith.maximumf %491, %492 : vector<8x120xf32>
    %494 = arith.truncf %493 : vector<8x120xf32> to vector<8x120xbf16>
    %c0_157 = arith.constant 0 : index
    %c0_158 = arith.constant 0 : index
    %495 = vector.load %arg10[%c0_157, %c0_158] : memref<120x84xbf16, #tpu.memory_space<vmem>>, vector<120x84xbf16>
    %cst_159 = arith.constant dense<0.000000e+00> : vector<8x84xf32>
    %496 = tpu.matmul %494, %495, %cst_159 {dimension_numbers = #tpu.dot_dimension_numbers<[1], [0], [0], [1], [0, 0, 1, 1], [], []>} : vector<8x120xbf16>, vector<120x84xbf16>, vector<8x84xf32> -> vector<8x84xf32>
    %c0_160 = arith.constant 0 : index
    %c0_161 = arith.constant 0 : index
    %497 = vector.load %arg11[%c0_160, %c0_161] : memref<1x84xf32, #tpu.memory_space<vmem>>, vector<1x84xf32>
    %498 = vector.broadcast %497 : vector<1x84xf32> to vector<8x84xf32>
    %499 = arith.addf %496, %498 : vector<8x84xf32>
    %cst_162 = arith.constant 0.000000e+00 : f32
    %500 = vector.broadcast %cst_162 : f32 to vector<8x84xf32>
    %501 = arith.maximumf %499, %500 : vector<8x84xf32>
    %502 = arith.truncf %501 : vector<8x84xf32> to vector<8x84xbf16>
    %c0_163 = arith.constant 0 : index
    %c0_164 = arith.constant 0 : index
    %503 = vector.load %arg12[%c0_163, %c0_164] : memref<84x128xbf16, #tpu.memory_space<vmem>>, vector<84x128xbf16>
    %cst_165 = arith.constant dense<0.000000e+00> : vector<8x128xf32>
    %504 = tpu.matmul %502, %503, %cst_165 {dimension_numbers = #tpu.dot_dimension_numbers<[1], [0], [0], [1], [0, 0, 1, 1], [], []>} : vector<8x84xbf16>, vector<84x128xbf16>, vector<8x128xf32> -> vector<8x128xf32>
    %c0_166 = arith.constant 0 : index
    %c0_167 = arith.constant 0 : index
    %505 = vector.load %arg13[%c0_166, %c0_167] : memref<1x128xf32, #tpu.memory_space<vmem>>, vector<1x128xf32>
    %506 = vector.broadcast %505 : vector<1x128xf32> to vector<8x128xf32>
    %507 = arith.addf %504, %506 : vector<8x128xf32>
    %c0_168 = arith.constant 0 : index
    %c0_169 = arith.constant 0 : index
    %508 = vector.load %arg14[%c0_168, %c0_169] : memref<8x128xf32, #tpu.memory_space<vmem>>, vector<8x128xf32>
    tpu.vector_store %arg14[%c0_168, %c0_169], %507 {strides = array<i32>} : memref<8x128xf32, #tpu.memory_space<vmem>>, vector<8x128xf32>,
    return
  }
  func.func @transform_0(%arg0: i32) -> (i32, i32, i32) {
    %c0_i32 = arith.constant 0 : i32
    %c0_i32_0 = arith.constant 0 : i32
    %c0_i32_1 = arith.constant 0 : i32
    return %c0_i32, %arg0, %c0_i32_0 : i32, i32, i32
  }
  func.func @transform_1(%arg0: i32) -> (i32, i32) {
    %c0_i32 = arith.constant 0 : i32
    %c0_i32_0 = arith.constant 0 : i32
    %c0_i32_1 = arith.constant 0 : i32
    return %c0_i32, %c0_i32_0 : i32, i32
  }
  func.func @transform_2(%arg0: i32) -> (i32, i32) {
    %c0_i32 = arith.constant 0 : i32
    %c0_i32_0 = arith.constant 0 : i32
    %c0_i32_1 = arith.constant 0 : i32
    return %c0_i32, %c0_i32_0 : i32, i32
  }
  func.func @transform_3(%arg0: i32) -> (i32, i32, i32) {
    %c0_i32 = arith.constant 0 : i32
    %c0_i32_0 = arith.constant 0 : i32
    %c0_i32_1 = arith.constant 0 : i32
    %c0_i32_2 = arith.constant 0 : i32
    return %c0_i32, %c0_i32_0, %c0_i32_1 : i32, i32, i32
  }
  func.func @transform_4(%arg0: i32) -> (i32, i32, i32) {
    %c0_i32 = arith.constant 0 : i32
    %c0_i32_0 = arith.constant 0 : i32
    %c0_i32_1 = arith.constant 0 : i32
    %c0_i32_2 = arith.constant 0 : i32
    return %c0_i32, %c0_i32_0, %c0_i32_1 : i32, i32, i32
  }
  func.func @transform_5(%arg0: i32) -> (i32, i32) {
    %c0_i32 = arith.constant 0 : i32
    %c0_i32_0 = arith.constant 0 : i32
    %c0_i32_1 = arith.constant 0 : i32
    return %c0_i32, %c0_i32_0 : i32, i32
  }
  func.func @transform_6(%arg0: i32) -> (i32, i32) {
    %c0_i32 = arith.constant 0 : i32
    %c0_i32_0 = arith.constant 0 : i32
    %c0_i32_1 = arith.constant 0 : i32
    return %c0_i32, %c0_i32_0 : i32, i32
  }
  func.func @transform_7(%arg0: i32) -> (i32, i32, i32) {
    %c0_i32 = arith.constant 0 : i32
    %c0_i32_0 = arith.constant 0 : i32
    %c0_i32_1 = arith.constant 0 : i32
    %c0_i32_2 = arith.constant 0 : i32
    return %c0_i32, %c0_i32_0, %c0_i32_1 : i32, i32, i32
  }
  func.func @transform_8(%arg0: i32) -> (i32, i32) {
    %c0_i32 = arith.constant 0 : i32
    %c0_i32_0 = arith.constant 0 : i32
    %c0_i32_1 = arith.constant 0 : i32
    return %c0_i32, %c0_i32_0 : i32, i32
  }
  func.func @transform_9(%arg0: i32) -> (i32, i32) {
    %c0_i32 = arith.constant 0 : i32
    %c0_i32_0 = arith.constant 0 : i32
    %c0_i32_1 = arith.constant 0 : i32
    return %c0_i32, %c0_i32_0 : i32, i32
  }
  func.func @transform_10(%arg0: i32) -> (i32, i32) {
    %c0_i32 = arith.constant 0 : i32
    %c0_i32_0 = arith.constant 0 : i32
    %c0_i32_1 = arith.constant 0 : i32
    return %c0_i32, %c0_i32_0 : i32, i32
  }
  func.func @transform_11(%arg0: i32) -> (i32, i32) {
    %c0_i32 = arith.constant 0 : i32
    %c0_i32_0 = arith.constant 0 : i32
    %c0_i32_1 = arith.constant 0 : i32
    return %c0_i32, %c0_i32_0 : i32, i32
  }
  func.func @transform_12(%arg0: i32) -> (i32, i32) {
    %c0_i32 = arith.constant 0 : i32
    %c0_i32_0 = arith.constant 0 : i32
    %c0_i32_1 = arith.constant 0 : i32
    return %c0_i32, %c0_i32_0 : i32, i32
  }
  func.func @transform_13(%arg0: i32) -> (i32, i32) {
    %c0_i32 = arith.constant 0 : i32
    %c0_i32_0 = arith.constant 0 : i32
    return %arg0, %c0_i32 : i32, i32
  }
}

</mosaic_0001>

<bundles_post_ra>
// kernel: net_forward.1
= control target key start
LH: loop header
LB: loop body
LE: loop exit
PB: predicated region body
PF: predicated region fallthrough
CT: control target
= control target key end

     0   :  { %18 = vsyncpa [#allocation3], 0  ;;  %s16129_s0 = inlined_call_operand.vmem [shape: bf16[32,8,96], index: 0, kind: input, shape index: {}]   ;;  %s16130_s1 = inlined_call_operand.hbm [shape: bf16[480,256], index: 1, kind: input, shape index: {}]   ;;  %s16131_s2 = inlined_call_operand.hbm [shape: f32[1,256], index: 2, kind: input, shape index: {}]   ;;  %s16132_s3 = inlined_call_operand.hbm [shape: bf16[10,640,256], index: 3, kind: input, shape index: {}]   ;;  %s16133_s4 = inlined_call_operand.hbm [shape: f32[10,1,256], index: 4, kind: input, shape index: {}]   ;;  %s16134_s5 = inlined_call_operand.hbm [shape: bf16[640,512], index: 5, kind: input, shape index: {}]   ;;  %s16135_s6 = inlined_call_operand.hbm [shape: f32[1,512], index: 6, kind: input, shape index: {}]   ;;  %s16136_s7 = inlined_call_operand.vmem [shape: bf16[5,128,120], index: 7, kind: input, shape index: {}]   ;;  %s16137_s8 = inlined_call_operand.hbm [shape: f32[1,120], index: 8, kind: input, shape index: {}]   ;;  %s16138_s9 = inlined_call_operand.vmem [shape: bf16[120,84], index: 9, kind: input, shape index: {}]   ;;  %s16139_s10 = inlined_call_operand.hbm [shape: f32[1,84], index: 10, kind: input, shape index: {}]   ;;  %s16140_s11 = inlined_call_operand.hbm [shape: bf16[84,128], index: 11, kind: input, shape index: {}]   ;;  %s16141_s12 = inlined_call_operand.hbm [shape: f32[1,128], index: 12, kind: input, shape index: {}]   ;;  %s16142_s13 = inlined_call_operand.vmem [shape: f32[8,128], index: 13, kind: output, shape index: {}]  }
   0x1   :  { %19 = vsyncpa [#allocation5], 0 }
   0x2   :  { %20 = vsyncpa [#allocation8], 0 }
   0x3   :  { %21 = vsyncpa [#allocation11], 0 }
   0x4   :  { %22 = vsyncpa [#allocation14], 0 }
   0x5   :  { %23 = vsyncpa [#allocation17], 0  ;;  %s14311_s25 = smov [#allocation4]   ;;  %s14312_s27 = smov [#allocation7]  }
   0x6   :  { %s44_s26 = sshll.u32 %s14311_s25, 4  ;;  %s65_s28 = sshll.u32 %s14312_s27, 4  ;;  %s45_s26 = int_to_ptr.vmem [resolvable:$true] %s44_s26  ;;  %s14403_s28 = int_to_ptr.vmem [resolvable:$true] %s65_s28 }
   0x7   :  { %s14079_s14 = scalar_lea.hbm %s16131_s2, 32 }
   0x8   :  { %p14080_p0 = scmp.ne.s32.totalorder %s16131_s2, %s14079_s14  ;;  %p14083_p1 = scmp.lt.u32.totalorder %s14079_s14, %s16131_s2 }
   0xa   :  { %p14085_p2 = pnand %p14083_p1, %p14080_p0 }
   0xc   :  { %14088 = shalt.err (!%p14085_p2)
}
   0xd   :  { %s14089_s19 = scalar_lea.vmem %s45_s26, 32  ;;  %p14094_p4 = scmp.lt.s32.totalorder %s45_s26, %s45_s26 }
   0xe   :  { %p14090_p3 = scmp.ne.s32.totalorder %s45_s26, %s14089_s19  ;;  %p14095_p5 = scmp.lt.s32.totalorder %s14089_s19, %s14089_s19 }
  0x10   :  { %p14096_p6 = por %p14095_p5, %p14094_p4 }
  0x12   :  { %p14097_p7 = pnand %p14096_p6, %p14090_p3 }
  0x14   :  { %14100 = shalt.err (!%p14097_p7)
}
  0x15   :  { %47 = dma.hbm_to_vmem [thread:$0]  %s16131_s2, 32, %s45_s26, [#allocation5]  }
  0x16   :  { %s14101_s24 = scalar_lea.hbm %s16133_s4, 320 }
  0x17   :  { %p14102_p8 = scmp.ne.s32.totalorder %s16133_s4, %s14101_s24  ;;  %p14105_p9 = scmp.lt.u32.totalorder %s14101_s24, %s16133_s4 }
  0x19   :  { %p14107_p10 = pnand %p14105_p9, %p14102_p8 }
  0x1b   :  { %14110 = shalt.err (!%p14107_p10)
}
  0x1c   :  { %s14111_s14 = scalar_lea.vmem %s14403_s28, 320  ;;  %p14116_p12 = scmp.lt.s32.totalorder %s14403_s28, %s14403_s28 }
  0x1d   :  { %p14112_p11 = scmp.ne.s32.totalorder %s14403_s28, %s14111_s14  ;;  %p14117_p13 = scmp.lt.s32.totalorder %s14111_s14, %s14111_s14 }
  0x1f   :  { %p14118_p0 = por %p14117_p13, %p14116_p12 }
  0x21   :  { %p14119_p1 = pnand %p14118_p0, %p14112_p11 }
  0x23   :  { %14122 = shalt.err (!%p14119_p1)
}
  0x24   :  { %s14313_s2 = smov 32   ;;  %s14314_s26 = smov 2  }
  0x25   :  { %71 = dma.hbm_to_vmem [thread:$0]  %s16133_s4, 320, %s14403_s28, [#allocation8], %s14313_s2, %s14313_s2, %s14314_s26  }
  0x26   :  { %s14315_s17 = smov [#allocation10]   ;;  %s14316_s19 = smov [#allocation13]  }
  0x27   :  { %s90_s18 = sshll.u32 %s14315_s17, 4  ;;  %s114_s20 = sshll.u32 %s14316_s19, 4  ;;  %s91_s18 = int_to_ptr.vmem [resolvable:$true] %s90_s18  ;;  %s115_s20 = int_to_ptr.vmem [resolvable:$true] %s114_s20 }
  0x28   :  { %s14123_s23 = scalar_lea.hbm %s16135_s6, 64 }
  0x29   :  { %p14124_p2 = scmp.ne.s32.totalorder %s16135_s6, %s14123_s23  ;;  %p14127_p3 = scmp.lt.u32.totalorder %s14123_s23, %s16135_s6 }
  0x2b   :  { %p14129_p4 = pnand %p14127_p3, %p14124_p2 }
  0x2d   :  { %14132 = shalt.err (!%p14129_p4)
}
  0x2e   :  { %s14133_s4 = scalar_lea.vmem %s91_s18, 64  ;;  %p14138_p6 = scmp.lt.s32.totalorder %s91_s18, %s91_s18 }
  0x2f   :  { %p14134_p5 = scmp.ne.s32.totalorder %s91_s18, %s14133_s4  ;;  %p14139_p7 = scmp.lt.s32.totalorder %s14133_s4, %s14133_s4 }
  0x31   :  { %p14140_p8 = por %p14139_p7, %p14138_p6 }
  0x33   :  { %p14141_p9 = pnand %p14140_p8, %p14134_p5 }
  0x35   :  { %14144 = shalt.err (!%p14141_p9)
}
  0x36   :  { %93 = dma.hbm_to_vmem [thread:$0]  %s16135_s6, 64, %s91_s18, [#allocation11]  }
  0x37   :  { %s14145_s15 = scalar_lea.hbm %s16139_s10, 16 }
  0x38   :  { %p14146_p10 = scmp.ne.s32.totalorder %s16139_s10, %s14145_s15  ;;  %p14149_p11 = scmp.lt.u32.totalorder %s14145_s15, %s16139_s10 }
  0x3a   :  { %p14151_p12 = pnand %p14149_p11, %p14146_p10 }
  0x3c   :  { %14154 = shalt.err (!%p14151_p12)
}
  0x3d   :  { %s14155_s22 = scalar_lea.vmem %s115_s20, 16  ;;  %s14159_s23 = scalar_lea.vmem %s115_s20, 32 }
  0x3e   :  { %p14156_p13 = scmp.ne.s32.totalorder %s115_s20, %s14155_s22  ;;  %p14160_p0 = scmp.lt.s32.totalorder %s115_s20, %s115_s20 }
  0x3f   :  { %p14161_p1 = scmp.lt.s32.totalorder %s14159_s23, %s14155_s22 }
  0x41   :  { %p14162_p2 = por %p14161_p1, %p14160_p0 }
  0x43   :  { %p14163_p3 = pnand %p14162_p2, %p14156_p13 }
  0x45   :  { %14166 = shalt.err (!%p14163_p3)
}
  0x46   :  { %117 = dma.hbm_to_vmem [thread:$0]  %s16139_s10, 16, %s115_s20, [#allocation14]  }
  0x47   :  { %s14317_s24 = smov [#allocation2]   ;;  %s14167_s4 = scalar_lea.hbm %s16130_s1, 7680 }
  0x48   :  { %s31_s25 = sshll.u32 %s14317_s24, 4  ;;  %p14168_p4 = scmp.ne.s32.totalorder %s16130_s1, %s14167_s4  ;;  %s32_s25 = int_to_ptr.vmem [resolvable:$true] %s31_s25 }
  0x49   :  { %p14171_p5 = scmp.lt.u32.totalorder %s14167_s4, %s16130_s1 }
  0x4b   :  { %p14173_p6 = pnand %p14171_p5, %p14168_p4 }
  0x4d   :  { %14176 = shalt.err (!%p14173_p6)
}
  0x4e   :  { %s14177_s15 = scalar_lea.vmem %s32_s25, 7680  ;;  %p14182_p8 = scmp.lt.s32.totalorder %s32_s25, %s32_s25 }
  0x4f   :  { %p14178_p7 = scmp.ne.s32.totalorder %s32_s25, %s14177_s15  ;;  %p14183_p9 = scmp.lt.s32.totalorder %s14177_s15, %s14177_s15 }
  0x51   :  { %p14184_p10 = por %p14183_p9, %p14182_p8 }
  0x53   :  { %p14185_p11 = pnand %p14184_p10, %p14178_p7 }
  0x55   :  { %14188 = shalt.err (!%p14185_p11)
}
  0x56   :  { %s14318_s10 = smov 128   ;;  %s14319_s20 = smov 8  }
  0x57   :  { %37 = dma.hbm_to_vmem [thread:$0]  %s16130_s1, 7680, %s32_s25, [#allocation3], %s14318_s10, %s14318_s10, %s14319_s20  }
  0x58   :  { %s14320_s19 = smov [#allocation6]   ;;  %s14321_s22 = smov [#allocation9]  }
  0x59   :  { %s53_s21 = sshll.u32 %s14320_s19, 4  ;;  %s77_s23 = sshll.u32 %s14321_s22, 4  ;;  %s54_s21 = int_to_ptr.vmem [resolvable:$true] %s53_s21  ;;  %s78_s23 = int_to_ptr.vmem [resolvable:$true] %s77_s23 }
  0x5a   :  { %s14189_s24 = scalar_lea.hbm %s16132_s3, 102400 }
  0x5b   :  { %p14190_p12 = scmp.ne.s32.totalorder %s16132_s3, %s14189_s24  ;;  %p14193_p13 = scmp.lt.u32.totalorder %s14189_s24, %s16132_s3 }
  0x5d   :  { %p14195_p0 = pnand %p14193_p13, %p14190_p12 }
  0x5f   :  { %14198 = shalt.err (!%p14195_p0)
}
  0x60   :  { %s14199_s1 = scalar_lea.vmem %s54_s21, 102400  ;;  %p14204_p2 = scmp.lt.s32.totalorder %s54_s21, %s54_s21 }
  0x61   :  { %p14200_p1 = scmp.ne.s32.totalorder %s54_s21, %s14199_s1  ;;  %p14205_p3 = scmp.lt.s32.totalorder %s14199_s1, %s14199_s1 }
  0x63   :  { %p14206_p4 = por %p14205_p3, %p14204_p2 }
  0x65   :  { %p14207_p5 = pnand %p14206_p4, %p14200_p1 }
  0x67   :  { %14210 = shalt.err (!%p14207_p5)
}
  0x68   :  { %59 = dma.hbm_to_vmem [thread:$0]  %s16132_s3, 102400, %s54_s21, [#allocation5], %s14318_s10, %s14318_s10, %s14319_s20  }
  0x69   :  { %s14211_s15 = scalar_lea.hbm %s16134_s5, 20480 }
  0x6a   :  { %p14212_p6 = scmp.ne.s32.totalorder %s16134_s5, %s14211_s15  ;;  %p14215_p7 = scmp.lt.u32.totalorder %s14211_s15, %s16134_s5 }
  0x6c   :  { %p14217_p8 = pnand %p14215_p7, %p14212_p6 }
  0x6e   :  { %14220 = shalt.err (!%p14217_p8)
}
  0x6f   :  { %s14221_s6 = scalar_lea.vmem %s78_s23, 20480  ;;  %p14226_p10 = scmp.lt.s32.totalorder %s78_s23, %s78_s23 }
  0x70   :  { %p14222_p9 = scmp.ne.s32.totalorder %s78_s23, %s14221_s6  ;;  %p14227_p11 = scmp.lt.s32.totalorder %s14221_s6, %s14221_s6 }
  0x72   :  { %p14228_p12 = por %p14227_p11, %p14226_p10 }
  0x74   :  { %p14229_p13 = pnand %p14228_p12, %p14222_p9 }
  0x76   :  { %14232 = shalt.err (!%p14229_p13)
}
  0x77   :  { %s14322_s3 = smov 256   ;;  %s14323_s10 = smov 16  }
  0x78   :  { %83 = dma.hbm_to_vmem [thread:$0]  %s16134_s5, 20480, %s78_s23, [#allocation8], %s14322_s3, %s14322_s3, %s14323_s10  }
  0x79   :  { %s14324_s18 = smov [#allocation12]   ;;  %s14325_s27 = smov [#allocation15]  }
  0x7a   :  { %s102_s24 = sshll.u32 %s14324_s18, 4  ;;  %s123_s29 = sshll.u32 %s14325_s27, 4  ;;  %s103_s24 = int_to_ptr.vmem [resolvable:$true] %s102_s24  ;;  %s124_s29 = int_to_ptr.vmem [resolvable:$true] %s123_s29 }
  0x7b   :  { %s14233_s1 = scalar_lea.hbm %s16137_s8, 16 }
  0x7c   :  { %p14234_p0 = scmp.ne.s32.totalorder %s16137_s8, %s14233_s1  ;;  %p14237_p1 = scmp.lt.u32.totalorder %s14233_s1, %s16137_s8 }
  0x7e   :  { %p14239_p2 = pnand %p14237_p1, %p14234_p0 }
  0x80   :  { %14242 = shalt.err (!%p14239_p2)
}
  0x81   :  { %s14243_s5 = scalar_lea.vmem %s103_s24, 16  ;;  %s14247_s23 = scalar_lea.vmem %s103_s24, 32 }
  0x82   :  { %p14244_p3 = scmp.ne.s32.totalorder %s103_s24, %s14243_s5  ;;  %p14248_p4 = scmp.lt.s32.totalorder %s103_s24, %s103_s24 }
  0x83   :  { %p14249_p5 = scmp.lt.s32.totalorder %s14247_s23, %s14243_s5 }
  0x85   :  { %p14250_p6 = por %p14249_p5, %p14248_p4 }
  0x87   :  { %p14251_p7 = pnand %p14250_p6, %p14244_p3 }
  0x89   :  { %14254 = shalt.err (!%p14251_p7)
}
  0x8a   :  { %105 = dma.hbm_to_vmem [thread:$0]  %s16137_s8, 16, %s103_s24, [#allocation11]  }
  0x8b   :  { %s14255_s22 = scalar_lea.hbm %s16140_s11, 704 }
  0x8c   :  { %p14256_p8 = scmp.ne.s32.totalorder %s16140_s11, %s14255_s22  ;;  %p14259_p9 = scmp.lt.u32.totalorder %s14255_s22, %s16140_s11 }
  0x8e   :  { %p14261_p10 = pnand %p14259_p9, %p14256_p8 }
  0x90   :  { %14264 = shalt.err (!%p14261_p10)
}
  0x91   :  { %s14265_s21 = scalar_lea.vmem %s124_s29, 704  ;;  %p14270_p12 = scmp.lt.s32.totalorder %s124_s29, %s124_s29 }
  0x92   :  { %p14266_p11 = scmp.ne.s32.totalorder %s124_s29, %s14265_s21  ;;  %p14271_p13 = scmp.lt.s32.totalorder %s14265_s21, %s14265_s21 }
  0x94   :  { %p14272_p0 = por %p14271_p13, %p14270_p12 }
  0x96   :  { %p14273_p1 = pnand %p14272_p0, %p14266_p11 }
  0x98   :  { %14276 = shalt.err (!%p14273_p1)
}
  0x99   :  { %s14326_s8 = smov 64   ;;  %s14327_s18 = smov 4  }
  0x9a   :  { %129 = dma.hbm_to_vmem [thread:$0]  %s16140_s11, 704, %s124_s29, [#allocation14], %s14326_s8, %s14326_s8, %s14327_s18  }
  0x9b   :  { %s14328_s4 = smov [#allocation16]   ;;  %s14277_s30 = scalar_lea.hbm %s16141_s12, 16 }
  0x9c   :  { %s136_s28 = sshll.u32 %s14328_s4, 4  ;;  %p14278_p2 = scmp.ne.s32.totalorder %s16141_s12, %s14277_s30  ;;  %s137_s28 = int_to_ptr.vmem [resolvable:$true] %s136_s28 }
  0x9d   :  { %p14281_p3 = scmp.lt.u32.totalorder %s14277_s30, %s16141_s12 }
  0x9f   :  { %p14283_p4 = pnand %p14281_p3, %p14278_p2 }
  0xa1   :  { %14286 = shalt.err (!%p14283_p4)
}
  0xa2   :  { %s14287_s15 = scalar_lea.vmem %s137_s28, 16  ;;  %s14291_s11 = scalar_lea.vmem %s137_s28, 32 }
  0xa3   :  { %p14288_p5 = scmp.ne.s32.totalorder %s137_s28, %s14287_s15  ;;  %p14292_p6 = scmp.lt.s32.totalorder %s137_s28, %s137_s28 }
  0xa4   :  { %p14293_p7 = scmp.lt.s32.totalorder %s14291_s11, %s14287_s15 }
  0xa6   :  { %p14294_p8 = por %p14293_p7, %p14292_p6 }
  0xa8   :  { %p14295_p9 = pnand %p14294_p8, %p14288_p5 }
  0xaa   :  { %14298 = shalt.err (!%p14295_p9)
}
  0xab   :  { %139 = dma.hbm_to_vmem [thread:$0]  %s16141_s12, 16, %s137_s28, [#allocation17]  }
  0xac   :  { %14299 = dma.done.wait [#allocation3], 7680  }
  0xad   :  { %14300 = vsyncadd [#allocation3], 4294959616 }
  0xae   :  { %14301 = dma.done.wait [#allocation5], 102432  }
  0xaf   :  { %14302 = vsyncadd [#allocation5], 4294864864 }
  0xb0   :  { %14303 = dma.done.wait [#allocation8], 20800  }
  0xb1   :  { %14304 = vsyncadd [#allocation8], 4294946496 }
  0xb2   :  { %14305 = dma.done.wait [#allocation11], 80  }
  0xb3   :  { %14306 = vsyncadd [#allocation11], 4294967216 }
  0xb4   :  { %14307 = dma.done.wait [#allocation14], 720  }
  0xb5   :  { %14308 = vsyncadd [#allocation14], 4294966576 }
  0xb6   :  { %14309 = dma.done.wait [#allocation17], 16  }
  0xb7   :  { %14310 = vsyncadd [#allocation17], 4294967280  ;;  %v14537_v0 = vld [vmem:[%s16129_s0 + $0x8] sm:$0xf]  ;;  %v14542_v1 = vld [vmem:[%s16129_s0 + $0x4] sm:$0xf] }
  0xb8   :  { %v14547_v2 = vld [vmem:[%s16129_s0 + $0xc] sm:$0xf]  ;;  %v10507_v3 = vcombine.low %v14537_v0, %v14537_v0  ;;  %v10506_v4 = vcombine.low %v14542_v1, %v14542_v1  ;;  %s14329_s10 = smov 96   ;;  %v175_v6 = vld [vmem:[%s16129_s0 + $0x10] sm:$0xf]  ;;  %vm461_vm0 = vcmask 785408  }
  0xb9   :  { %v14557_v5 = vcombine.low %v14547_v2, %v14547_v2  ;;  %v12362_v7 = vld [vmem:[#allocation2 + $0x4] ss:$8 sps:$4 sm:$0xff]   ;;  %v12364_v8 = vld [vmem:[#allocation2] ss:$8 sps:$4 sm:$0xff]   ;;  %v14565_v9 = vcombine.low %v175_v6, %v175_v6  ;;  %v12366_v10 = vld [vmem:[#allocation2 + $0x14] ss:$8 sps:$4 sm:$0xff]  }
  0xba   :  { %346 = vrot.lane.b32.xlu1 %v10507_v3, %s14326_s8  ;;  %287 = vrot.lane.b32.xlu0 %v10506_v4, %s14329_s10  ;;  %v176_v11 = vld [vmem:[%s16129_s0 + $0x14] sm:$0xf]  ;;  %v12368_v12 = vld [vmem:[#allocation2 + $0x10] ss:$8 sps:$4 sm:$0xff]   ;;  %v12370_v13 = vld [vmem:[#allocation2 + $0x24] ss:$8 sps:$4 sm:$0xff]  }
  0xbb   :  { %1342 = vmatprep.subr.bf16.mxu0 %v12362_v7  ;;  %v14574_v14 = vcombine.low %v176_v11, %v176_v11  ;;  %v177_v15 = vld [vmem:[%s16129_s0 + $0x18] sm:$0xf]  ;;  %v12372_v16 = vld [vmem:[#allocation2 + $0x20] ss:$8 sps:$4 sm:$0xff]   ;;  %v12374_v17 = vld [vmem:[#allocation2 + $0x34] ss:$8 sps:$4 sm:$0xff]  }
  0xbc   :  { %1343 = vmatpush1.bf16.msra.mxu0 %v12364_v8  ;;  %v14583_v18 = vcombine.low %v177_v15, %v177_v15  ;;  %v178_v19 = vld [vmem:[%s16129_s0 + $0x1c] sm:$0xf]  ;;  %v12376_v20 = vld [vmem:[#allocation2 + $0x30] ss:$8 sps:$4 sm:$0xff]   ;;  %v12378_v21 = vld [vmem:[#allocation2 + $0x44] ss:$8 sps:$4 sm:$0xff]  }
  0xbd   :  { %1344 = vmatprep.subr.bf16.mxu0 %v12366_v10  ;;  %v14592_v22 = vcombine.low %v178_v19, %v178_v19  ;;  %v179_v23 = vld [vmem:[%s16129_s0 + $0x20] sm:$0xf]  ;;  %v12382_v25 = vld [vmem:[#allocation2 + $0x54] ss:$8 sps:$4 sm:$0xff]   ;;  %v180_v27 = vld [vmem:[%s16129_s0 + $0x24] sm:$0xf] }
  0xbe   :  { %348 = vrot.lane.b32.xlu1 %v14557_v5, %s14326_s8  ;;  %289 = vrot.lane.b32.xlu0 %v10507_v3, %s14329_s10  ;;  %v12380_v24 = vld [vmem:[#allocation2 + $0x40] ss:$8 sps:$4 sm:$0xff]   ;;  %v14601_v26 = vcombine.low %v179_v23, %v179_v23  ;;  %v12384_v28 = vld [vmem:[#allocation2 + $0x50] ss:$8 sps:$4 sm:$0xff]   ;;  %v12386_v29 = vld [vmem:[#allocation2 + $0x64] ss:$8 sps:$4 sm:$0xff]   ;;  %v14620_v32 = vcombine.low %v180_v27, %v180_v27 }
  0xbf   :  { %v14609_v30 = vld [vmem:[%s16129_s0 + $0x70] sm:$0xf]  ;;  %v14614_v31 = vld [vmem:[%s16129_s0 + $0x74] sm:$0xf]  ;;  %v181_v34 = vld [vmem:[%s16129_s0 + $0x28] sm:$0xf] }
  0xc0   :  { %1345 = vmatpush1.bf16.msra.mxu0 %v12368_v12  ;;  %16152 = vst [vmem:[#allocation24_spill] sm:$0xff] %v14609_v30  ;;  %16153 = vst [vmem:[#allocation25_spill] sm:$0xff] %v14614_v31  ;;  %v12388_v35 = vld [vmem:[#allocation2 + $0x60] ss:$8 sps:$4 sm:$0xff]   ;;  %v12390_v36 = vld [vmem:[#allocation2 + $0x74] ss:$8 sps:$4 sm:$0xff]   ;;  %v14631_v37 = vcombine.low %v181_v34, %v181_v34 }
  0xc1   :  { %1346 = vmatprep.subr.bf16.mxu0 %v12370_v13  ;;  %v182_v38 = vld [vmem:[%s16129_s0 + $0x2c] sm:$0xf]  ;;  %v12392_v39 = vld [vmem:[#allocation2 + $0x70] ss:$8 sps:$4 sm:$0xff]   ;;  %v12396_v43 = vld [vmem:[#allocation2 + $0x80] ss:$8 sps:$4 sm:$0xff]  }
  0xc2   :  { %293 = vrot.lane.b32.xlu1 %v14565_v9, %s14329_s10  ;;  %291 = vrot.lane.b32.xlu0 %v14557_v5, %s14329_s10  ;;  %v12394_v40 = vld [vmem:[#allocation2 + $0x84] ss:$8 sps:$4 sm:$0xff]   ;;  %v14640_v41 = vcombine.low %v182_v38, %v182_v38  ;;  %v183_v42 = vld [vmem:[%s16129_s0 + $0x30] sm:$0xf]  ;;  %v12398_v44 = vld [vmem:[#allocation2 + $0x94] ss:$8 sps:$4 sm:$0xff]  }
  0xc3   :  { %v14649_v45 = vcombine.low %v183_v42, %v183_v42  ;;  %v184_v46 = vld [vmem:[%s16129_s0 + $0x34] sm:$0xf]  ;;  %v12400_v47 = vld [vmem:[#allocation2 + $0x90] ss:$8 sps:$4 sm:$0xff]   ;;  %v12402_v48 = vld [vmem:[#allocation2 + $0xa4] ss:$8 sps:$4 sm:$0xff]   ;;  %v14800_v42 = vcombine.low %v14614_v31, %v14614_v31 }
  0xc4   :  { %1347 = vmatpush1.bf16.msra.mxu0 %v12372_v16  ;;  %v185_v49 = vld [vmem:[%s16129_s0 + $0x38] sm:$0xf]  ;;  %v14661_v50 = vcombine.low %v184_v46, %v184_v46  ;;  %v12404_v51 = vld [vmem:[#allocation2 + $0xa0] ss:$8 sps:$4 sm:$0xff]   ;;  %v12406_v52 = vld [vmem:[#allocation2 + $0xb4] ss:$8 sps:$4 sm:$0xff]  }
  0xc5   :  { %1348 = vmatprep.subr.bf16.mxu0 %v12374_v17  ;;  %v14667_v53 = vcombine.low %v185_v49, %v185_v49  ;;  %v186_v54 = vld [vmem:[%s16129_s0 + $0x3c] sm:$0xf]  ;;  %v12408_v55 = vld [vmem:[#allocation2 + $0xb0] ss:$8 sps:$4 sm:$0xff]   ;;  %v12410_v56 = vld [vmem:[#allocation2 + $0xc4] ss:$8 sps:$4 sm:$0xff]  }
  0xc6   :  { %352 = vrot.lane.b32.xlu1 %v14574_v14, %s14326_s8  ;;  %350 = vrot.lane.b32.xlu0 %v14565_v9, %s14326_s8  ;;  %v187_v57 = vld [vmem:[%s16129_s0 + $0x40] sm:$0xf]  ;;  %v14679_v58 = vcombine.low %v186_v54, %v186_v54  ;;  %v12415_v60 = vld [vmem:[#allocation2 + $0xd4] ss:$8 sps:$4 sm:$0xff]   ;;  %v188_v62 = vld [vmem:[%s16129_s0 + $0x44] sm:$0xf] }
  0xc7   :  { %v12412_v59 = vld [vmem:[#allocation2 + $0xc0] ss:$8 sps:$4 sm:$0xff]   ;;  %v14685_v61 = vcombine.low %v187_v57, %v187_v57  ;;  %v12417_v63 = vld [vmem:[#allocation2 + $0xd0] ss:$8 sps:$4 sm:$0xff]   ;;  %v12418_v3 = vld [vmem:[#allocation2 + $0xe4] ss:$8 sps:$4 sm:$0xff]   ;;  %v14697_v6 = vcombine.low %v188_v62, %v188_v62 }
  0xc8   :  { %1349 = vmatpush1.bf16.msra.mxu0 %v12376_v20  ;;  %v189_v4 = vld [vmem:[%s16129_s0 + $0x48] sm:$0xf]  ;;  %v12421_v8 = vld [vmem:[#allocation2 + $0xf4] ss:$8 sps:$4 sm:$0xff]   ;;  %v190_v11 = vld [vmem:[%s16129_s0 + $0x4c] sm:$0xf] }
  0xc9   :  { %1350 = vmatprep.subr.bf16.mxu0 %v12378_v21  ;;  %v12420_v7 = vld [vmem:[#allocation2 + $0xe0] ss:$8 sps:$4 sm:$0xff]   ;;  %v14703_v10 = vcombine.low %v189_v4, %v189_v4  ;;  %v12423_v12 = vld [vmem:[#allocation2 + $0xf0] ss:$8 sps:$4 sm:$0xff]   ;;  %v12426_v13 = vld [vmem:[#allocation2 + $0x104] ss:$8 sps:$4 sm:$0xff]   ;;  %v14715_v16 = vcombine.low %v190_v11, %v190_v11 }
  0xca   :  { %297 = vrot.lane.b32.xlu1 %v14583_v18, %s14329_s10  ;;  %295 = vrot.lane.b32.xlu0 %v14574_v14, %s14329_s10  ;;  %v191_v15 = vld [vmem:[%s16129_s0 + $0x50] sm:$0xf]  ;;  %v192_v19 = vld [vmem:[%s16129_s0 + $0x54] sm:$0xf]  ;;  %vm546_vm1 = vcmask 523264   ;;  %vm603_vm2 = vcmask 261120  }
  0xcb   :  { %v14721_v17 = vcombine.low %v191_v15, %v191_v15  ;;  %v193_v20 = vld [vmem:[%s16129_s0 + $0x58] sm:$0xf]  ;;  %v14733_v21 = vcombine.low %v192_v19, %v192_v19  ;;  %v197_v34 = vld [vmem:[%s16129_s0 + $0x68] sm:$0xf]  ;;  %v198_v38 = vld [vmem:[%s16129_s0 + $0x6c] sm:$0xf] }
  0xcc   :  { %1351 = vmatpush1.bf16.msra.mxu0 %v12380_v24  ;;  %v14739_v23 = vcombine.low %v193_v20, %v193_v20  ;;  %v194_v24 = vld [vmem:[%s16129_s0 + $0x5c] sm:$0xf]  ;;  %v171_v46 = vld [vmem:[%s16129_s0] sm:$0xf]  ;;  %v12432_v57 = vld [vmem:[#allocation2 + $0x124] ss:$8 sps:$4 sm:$0xff]  }
  0xcd   :  { %1352 = vmatprep.subr.bf16.mxu0 %v12382_v25  ;;  %v195_v25 = vld [vmem:[%s16129_s0 + $0x60] sm:$0xf]  ;;  %v14751_v27 = vcombine.low %v194_v24, %v194_v24  ;;  %v12429_v54 = vld [vmem:[#allocation2 + $0x114] ss:$8 sps:$4 sm:$0xff]   ;;  %v14866_v11 = vld [vmem:[%s16129_s0 + $0x10] sm:$0xf] }
  0xce   :  { %356 = vrot.lane.b32.xlu1 %v14592_v22, %s14326_s8  ;;  %354 = vrot.lane.b32.xlu0 %v14583_v18, %s14326_s8  ;;  %v12436_v19 = vld [vmem:[#allocation2 + $0x140] ss:$8 sps:$4 sm:$0xff]   ;;  %v12441_v24 = vld [vmem:[#allocation2 + $0x154] ss:$8 sps:$4 sm:$0xff]   ;;  %vm14332_vm3 = vmmov 0   ;;  %vm10350_vm4 = vcmask 1043456  }
  0xcf   :  { %vm10346_vm5 = vcmask 982016   ;;  %vm10451_vm6 = vcmask 1041408   ;;  %vm10447_vm7 = vcmask 687104  }
  0xd0   :  { %1353 = vmatpush1.bf16.msra.mxu0 %v12384_v28  ;;  %v14757_v28 = vcombine.low %v195_v25, %v195_v25 }
  0xd1   :  { %1354 = vmatprep.subr.bf16.mxu0 %v12386_v29  ;;  %v196_v29 = vld [vmem:[%s16129_s0 + $0x64] sm:$0xf] }
  0xd2   :  { %301 = vrot.lane.b32.xlu1 %v14601_v26, %s14329_s10  ;;  %299 = vrot.lane.b32.xlu0 %v14592_v22, %s14329_s10 }
  0xd4   :  { %1355 = vmatpush1.bf16.msra.mxu0 %v12388_v35  ;;  %v14769_v35 = vcombine.low %v196_v29, %v196_v29 }
  0xd5   :  { %1356 = vmatprep.subr.bf16.mxu0 %v12390_v36  ;;  %v14775_v36 = vcombine.low %v197_v34, %v197_v34 }
  0xd6   :  { %360 = vrot.lane.b32.xlu1 %v14620_v32, %s14326_s8  ;;  %358 = vrot.lane.b32.xlu0 %v14601_v26, %s14326_s8 }
  0xd8   :  { %1357 = vmatpush1.bf16.msra.mxu0 %v12392_v39  ;;  %v14784_v39 = vcombine.low %v198_v38, %v198_v38  ;;  %v12439_v38 = vld [vmem:[#allocation2 + $0x150] ss:$8 sps:$4 sm:$0xff]  }
  0xd9   :  { %1358 = vmatprep.subr.bf16.mxu0 %v12394_v40  ;;  %v14792_v40 = vcombine.low %v14609_v30, %v14609_v30  ;;  %v12503_v30 = vld [vmem:[#allocation9 + $0x40] ss:$16 sps:$4 sm:$0xff]  }
  0xda   :  { %305 = vrot.lane.b32.xlu1 %v14631_v37, %s14329_s10  ;;  %303 = vrot.lane.b32.xlu0 %v14620_v32, %s14329_s10 }
  0xdc   :  { %1359 = vmatpush1.bf16.msra.mxu0 %v12396_v43 }
  0xdd   :  { %1360 = vmatprep.subr.bf16.mxu0 %v12398_v44 }
  0xde   :  { %364 = vrot.lane.b32.xlu1 %v14640_v41, %s14326_s8  ;;  %362 = vrot.lane.b32.xlu0 %v14631_v37, %s14326_s8 }
  0xe0   :  { %1361 = vmatpush1.bf16.msra.mxu0 %v12400_v47 }
  0xe1   :  { %1362 = vmatprep.subr.bf16.mxu0 %v12402_v48 }
  0xe2   :  { %309 = vrot.lane.b32.xlu1 %v14649_v45, %s14329_s10  ;;  %307 = vrot.lane.b32.xlu0 %v14640_v41, %s14329_s10 }
  0xe4   :  { %1363 = vmatpush1.bf16.msra.mxu0 %v12404_v51 }
  0xe5   :  { %1364 = vmatprep.subr.bf16.mxu0 %v12406_v52  ;;  %v12424_v52 = vld [vmem:[#allocation2 + $0x100] ss:$8 sps:$4 sm:$0xff]  }
  0xe6   :  { %368 = vrot.lane.b32.xlu1 %v14661_v50, %s14326_s8  ;;  %366 = vrot.lane.b32.xlu0 %v14649_v45, %s14326_s8 }
  0xe8   :  { %1365 = vmatpush1.bf16.msra.mxu0 %v12408_v55 }
  0xe9   :  { %1366 = vmatprep.subr.bf16.mxu0 %v12410_v56 }
  0xea   :  { %313 = vrot.lane.b32.xlu1 %v14667_v53, %s14329_s10  ;;  %311 = vrot.lane.b32.xlu0 %v14661_v50, %s14329_s10 }
  0xec   :  { %1367 = vmatpush1.bf16.msra.mxu0 %v12412_v59 }
  0xed   :  { %1368 = vmatprep.subr.bf16.mxu0 %v12415_v60 }
  0xee   :  { %372 = vrot.lane.b32.xlu1 %v14679_v58, %s14326_s8  ;;  %370 = vrot.lane.b32.xlu0 %v14667_v53, %s14326_s8 }
  0xf0   :  { %1369 = vmatpush1.bf16.msra.mxu0 %v12417_v63 }
  0xf1   :  { %1370 = vmatprep.subr.bf16.mxu0 %v12418_v3 }
  0xf2   :  { %317 = vrot.lane.b32.xlu1 %v14685_v61, %s14329_s10  ;;  %315 = vrot.lane.b32.xlu0 %v14679_v58, %s14329_s10 }
  0xf4   :  { %1371 = vmatpush1.bf16.msra.mxu0 %v12420_v7  ;;  %v12433_v7 = vld [vmem:[#allocation2 + $0x130] ss:$8 sps:$4 sm:$0xff]  }
  0xf5   :  { %1372 = vmatprep.subr.bf16.mxu0 %v12421_v8  ;;  %v12438_v8 = vld [vmem:[#allocation2 + $0x144] ss:$8 sps:$4 sm:$0xff]  }
  0xf6   :  { %376 = vrot.lane.b32.xlu1 %v14697_v6, %s14326_s8  ;;  %374 = vrot.lane.b32.xlu0 %v14685_v61, %s14326_s8 }
  0xf8   :  { %1373 = vmatpush1.bf16.msra.mxu0 %v12423_v12 }
  0xf9   :  { %1515 = vmatprep.subr.bf16.mxu0 %v12426_v13 }
  0xfa   :  { %321 = vrot.lane.b32.xlu1 %v14703_v10, %s14329_s10  ;;  %319 = vrot.lane.b32.xlu0 %v14697_v6, %s14329_s10 }
  0xfe   :  { %380 = vrot.lane.b32.xlu1 %v14715_v16, %s14326_s8  ;;  %378 = vrot.lane.b32.xlu0 %v14703_v10, %s14326_s8 }
 0x102   :  { %325 = vrot.lane.b32.xlu1 %v14721_v17, %s14329_s10  ;;  %323 = vrot.lane.b32.xlu0 %v14715_v16, %s14329_s10 }
 0x106   :  { %384 = vrot.lane.b32.xlu1 %v14733_v21, %s14326_s8  ;;  %382 = vrot.lane.b32.xlu0 %v14721_v17, %s14326_s8 }
 0x10a   :  { %329 = vrot.lane.b32.xlu1 %v14739_v23, %s14329_s10  ;;  %327 = vrot.lane.b32.xlu0 %v14733_v21, %s14329_s10 }
 0x10e   :  { %388 = vrot.lane.b32.xlu1 %v14751_v27, %s14326_s8  ;;  %386 = vrot.lane.b32.xlu0 %v14739_v23, %s14326_s8 }
 0x112   :  { %333 = vrot.lane.b32.xlu1 %v14757_v28, %s14329_s10  ;;  %331 = vrot.lane.b32.xlu0 %v14751_v27, %s14329_s10 }
 0x116   :  { %392 = vrot.lane.b32.xlu1 %v14769_v35, %s14326_s8  ;;  %390 = vrot.lane.b32.xlu0 %v14757_v28, %s14326_s8 }
 0x11a   :  { %337 = vrot.lane.b32.xlu1 %v14775_v36, %s14329_s10  ;;  %335 = vrot.lane.b32.xlu0 %v14769_v35, %s14329_s10 }
 0x11e   :  { %396 = vrot.lane.b32.xlu1 %v14784_v39, %s14326_s8  ;;  %394 = vrot.lane.b32.xlu0 %v14775_v36, %s14326_s8 }
 0x122   :  { %341 = vrot.lane.b32.xlu1 %v14792_v40, %s14329_s10  ;;  %339 = vrot.lane.b32.xlu0 %v14784_v39, %s14329_s10 }
 0x126   :  { %400 = vrot.lane.b32.xlu1 %v14800_v42, %s14326_s8  ;;  %398 = vrot.lane.b32.xlu0 %v14792_v40, %s14326_s8 }
 0x12a   :  { %407 = vrot.lane.b32.xlu1 %v14565_v9, %s14313_s2  ;;  %405 = vrot.lane.b32.xlu0 %v14557_v5, %s14313_s2 }
 0x12c   :  { %v14810_v43 = vpop.permute.xlu1 %346  ;;  %v288_v44 = vpop.permute.xlu0 %287 }
 0x12d   :  { %v464_v5 = vsel %vm461_vm0, %v171_v46, %v288_v44  ;;  %v548_v49 = vsel %vm546_vm1, %v288_v44, %v14810_v43  ;;  %v12446_v44 = vld [vmem:[#allocation2 + $0x164] ss:$8 sps:$4 sm:$0xff]   ;;  %v14896_v46 = vld [vmem:[%s16129_s0 + $0x18] sm:$0xf] }
 0x12e   :  { %411 = vrot.lane.b32.xlu1 %v14583_v18, %s14313_s2  ;;  %409 = vrot.lane.b32.xlu0 %v14574_v14, %s14313_s2 }
 0x130   :  { %v14819_v47 = vpop.permute.xlu1 %348  ;;  %v290_v9 = vpop.permute.xlu0 %289 }
 0x131   :  { %v467_v48 = vsel %vm461_vm0, %v14542_v1, %v290_v9  ;;  %v550_v51 = vsel %vm546_vm1, %v290_v9, %v14819_v47  ;;  %v12427_v1 = vld [vmem:[#allocation2 + $0x110] ss:$8 sps:$4 sm:$0xff]  }
 0x132   :  { %v10536_v18 = vcombine.low %v464_v5, %v467_v48  ;;  %415 = vrot.lane.b32.xlu1 %v14601_v26, %s14313_s2  ;;  %413 = vrot.lane.b32.xlu0 %v14592_v22, %s14313_s2  ;;  %v10537_v14 = vcombine.low %v548_v49, %v550_v51  ;;  %v12444_v49 = vld [vmem:[#allocation2 + $0x160] ss:$8 sps:$4 sm:$0xff]  }
 0x134   :  { %v294_v55 = vpop.permute.xlu1 %293  ;;  %1374 = vmatprep.mubr.bf16.mxu0 %v10537_v14  ;;  %v292_v56 = vpop.permute.xlu0 %291 }
 0x135   :  { %1375 = vmatmul.mubr.bf16.vlgmr.msra.gmra.mrb[0].mxu0 %v10536_v18  ;;  %v473_v26 = vsel %vm461_vm0, %v14547_v2, %v294_v55  ;;  %v470_v22 = vsel %vm461_vm0, %v14537_v0, %v292_v56  ;;  %v12435_v0 = vld [vmem:[#allocation2 + $0x134] ss:$8 sps:$4 sm:$0xff]  }
 0x136   :  { %419 = vrot.lane.b32.xlu1 %v14631_v37, %s14313_s2  ;;  %417 = vrot.lane.b32.xlu0 %v14620_v32, %s14313_s2  ;;  %v12430_v32 = vld [vmem:[#allocation2 + $0x120] ss:$8 sps:$4 sm:$0xff]   ;;  %v10540_v2 = vcombine.low %v470_v22, %v473_v26 }
 0x137   :  { %1516 = vmatpush1.bf16.msra.mxu0 %v12424_v52  ;;  %v12449_v52 = vld [vmem:[#allocation2 + $0x174] ss:$8 sps:$4 sm:$0xff]  }
 0x138   :  { %v14840_v59 = vpop.permute.xlu1 %352  ;;  %v14842_v60 = vpop.permute.xlu0 %350  ;;  %1517 = vmatprep.subr.bf16.mxu0 %v12429_v54 }
 0x139   :  { %v554_v62 = vsel %vm546_vm1, %v294_v55, %v14840_v59  ;;  %v552_v37 = vsel %vm546_vm1, %v292_v56, %v14842_v60  ;;  %v12447_v55 = vld [vmem:[#allocation2 + $0x170] ss:$8 sps:$4 sm:$0xff]   ;;  %v12452_v56 = vld [vmem:[#allocation2 + $0x184] ss:$8 sps:$4 sm:$0xff]  }
 0x13a   :  { %v10541_v63 = vcombine.low %v552_v37, %v554_v62  ;;  %423 = vrot.lane.b32.xlu1 %v14649_v45, %s14313_s2  ;;  %421 = vrot.lane.b32.xlu0 %v14640_v41, %s14313_s2  ;;  %v14859_v41 = vld [vmem:[%s16129_s0 + $0x14] sm:$0xf]  ;;  %v12450_v62 = vld [vmem:[#allocation2 + $0x180] ss:$8 sps:$4 sm:$0xff]  }
 0x13b   :  { %1518 = vmatpush1.bf16.msra.mxu0 %v12427_v1  ;;  %v14926_v1 = vld [vmem:[%s16129_s0 + $0x20] sm:$0xf] }
 0x13c   :  { %v298_v3 = vpop.permute.xlu1 %297  ;;  %v296_v4 = vpop.permute.xlu0 %295  ;;  %1384 = vmatprep.mubr.bf16.mxu0 %v10541_v63  ;;  %1519 = vmatprep.subr.bf16.mxu0 %v12432_v57 }
 0x13d   :  { %1385 = vmatmul.mubr.bf16.gmra.mrb[4].mxu0 %v10540_v2  ;;  %v479_v45 = vsel %vm461_vm0, %v14859_v41, %v298_v3 }
 0x13e   :  { %427 = vrot.lane.b32.xlu1 %v14667_v53, %s14313_s2  ;;  %425 = vrot.lane.b32.xlu0 %v14661_v50, %s14313_s2  ;;  %v476_v53 = vsel %vm461_vm0, %v14866_v11, %v296_v4 }
 0x13f   :  { %1520 = vmatpush1.bf16.msra.mxu0 %v12430_v32  ;;  %v10544_v25 = vcombine.low %v476_v53, %v479_v45  ;;  %v12455_v32 = vld [vmem:[#allocation2 + $0x194] ss:$8 sps:$4 sm:$0xff]  }
 0x140   :  { %v14870_v12 = vpop.permute.xlu1 %356  ;;  %v14872_v50 = vpop.permute.xlu0 %354  ;;  %1521 = vmatprep.subr.bf16.mxu0 %v12435_v0 }
 0x141   :  { %v558_v13 = vsel %vm546_vm1, %v298_v3, %v14870_v12  ;;  %v556_v15 = vsel %vm546_vm1, %v296_v4, %v14872_v50  ;;  %v201_v3 = vld [vmem:[%s16129_s0 + $0x78] sm:$0xf] }
 0x142   :  { %v10545_v20 = vcombine.low %v556_v15, %v558_v13  ;;  %431 = vrot.lane.b32.xlu1 %v14685_v61, %s14313_s2  ;;  %429 = vrot.lane.b32.xlu0 %v14679_v58, %s14313_s2  ;;  %v14889_v58 = vld [vmem:[%s16129_s0 + $0x1c] sm:$0xf]  ;;  %v12453_v4 = vld [vmem:[#allocation2 + $0x190] ss:$8 sps:$4 sm:$0xff]   ;;  %v12456_v15 = vld [vmem:[#allocation2 + $0x1a0] ss:$8 sps:$4 sm:$0xff]  }
 0x143   :  { %1522 = vmatpush1.bf16.msra.mxu0 %v12433_v7 }
 0x144   :  { %v302_v29 = vpop.permute.xlu1 %301  ;;  %v300_v34 = vpop.permute.xlu0 %299  ;;  %1394 = vmatprep.mubr.bf16.mxu0 %v10545_v20  ;;  %1523 = vmatprep.subr.bf16.mxu0 %v12438_v8  ;;  %v14959_v8 = vld [vmem:[%s16129_s0 + $0x28] sm:$0xf]  ;;  %v10535_v20 = vcombine.low %v201_v3, %v201_v3 }
 0x145   :  { %1395 = vmatmul.mubr.bf16.gmra.mrb[8].mxu0 %v10544_v25  ;;  %v485_v61 = vsel %vm461_vm0, %v14889_v58, %v302_v29 }
 0x146   :  { %435 = vrot.lane.b32.xlu1 %v14703_v10, %s14313_s2  ;;  %433 = vrot.lane.b32.xlu0 %v14697_v6, %s14313_s2  ;;  %v482_v10 = vsel %vm461_vm0, %v14896_v46, %v300_v34 }
 0x147   :  { %1524 = vmatpush1.bf16.msra.mxu0 %v12436_v19  ;;  %v10548_v18 = vcombine.low %v482_v10, %v485_v61  ;;  %v14988_v61 = vld [vmem:[%s16129_s0 + $0x30] sm:$0xf] }
 0x148   :  { %v14900_v9 = vpop.permute.xlu1 %360  ;;  %v14902_v6 = vpop.permute.xlu0 %358  ;;  %1525 = vmatprep.subr.bf16.mxu0 %v12441_v24  ;;  %v12461_v24 = vld [vmem:[#allocation2 + $0x1b4] ss:$8 sps:$4 sm:$0xff]  }
 0x149   :  { %v562_v5 = vsel %vm546_vm1, %v302_v29, %v14900_v9  ;;  %v560_v48 = vsel %vm546_vm1, %v300_v34, %v14902_v6 }
 0x14a   :  { %v10549_v51 = vcombine.low %v560_v48, %v562_v5  ;;  %439 = vrot.lane.b32.xlu1 %v14721_v17, %s14313_s2  ;;  %437 = vrot.lane.b32.xlu0 %v14715_v16, %s14313_s2  ;;  %v14919_v16 = vld [vmem:[%s16129_s0 + $0x24] sm:$0xf] }
 0x14b   :  { %1526 = vmatpush1.bf16.msra.mxu0 %v12439_v38  ;;  %v12459_v38 = vld [vmem:[#allocation2 + $0x1b0] ss:$8 sps:$4 sm:$0xff]  }
 0x14c   :  { %v306_v14 = vpop.permute.xlu1 %305  ;;  %v304_v54 = vpop.permute.xlu0 %303  ;;  %1404 = vmatprep.mubr.bf16.mxu0 %v10549_v51  ;;  %1527 = vmatprep.subr.bf16.mxu0 %v12446_v44  ;;  %v12464_v44 = vld [vmem:[#allocation2 + $0x1c4] ss:$8 sps:$4 sm:$0xff]   ;;  %v12462_v51 = vld [vmem:[#allocation2 + $0x1c0] ss:$8 sps:$4 sm:$0xff]  }
 0x14d   :  { %1405 = vmatmul.mubr.bf16.gmra.mrb[12].mxu0 %v10548_v18  ;;  %v491_v17 = vsel %vm461_vm0, %v14919_v16, %v306_v14  ;;  %v12467_v18 = vld [vmem:[#allocation2 + $0x1d4] ss:$8 sps:$4 sm:$0xff]  }
 0x14e   :  { %443 = vrot.lane.b32.xlu1 %v14739_v23, %s14313_s2  ;;  %441 = vrot.lane.b32.xlu0 %v14733_v21, %s14313_s2  ;;  %v488_v23 = vsel %vm461_vm0, %v14926_v1, %v304_v54 }
 0x14f   :  { %1528 = vmatpush1.bf16.msra.mxu0 %v12444_v49  ;;  %v10552_v63 = vcombine.low %v488_v23, %v491_v17  ;;  %v15003_v17 = vld [vmem:[%s16129_s0 + $0x3c] sm:$0xf] }
 0x150   :  { %v14930_v57 = vpop.permute.xlu1 %364  ;;  %v14932_v21 = vpop.permute.xlu0 %362  ;;  %1529 = vmatprep.subr.bf16.mxu0 %v12449_v52 }
 0x151   :  { %v566_v26 = vsel %vm546_vm1, %v306_v14, %v14930_v57  ;;  %v564_v22 = vsel %vm546_vm1, %v304_v54, %v14932_v21 }
 0x152   :  { %v10553_v37 = vcombine.low %v564_v22, %v566_v26  ;;  %447 = vrot.lane.b32.xlu1 %v14757_v28, %s14313_s2  ;;  %445 = vrot.lane.b32.xlu0 %v14751_v27, %s14313_s2  ;;  %v12458_v27 = vld [vmem:[#allocation2 + $0x1a4] ss:$8 sps:$4 sm:$0xff]   ;;  %v15010_v26 = vld [vmem:[%s16129_s0 + $0x38] sm:$0xf] }
 0x153   :  { %1530 = vmatpush1.bf16.msra.mxu0 %v12447_v55  ;;  %v14952_v28 = vld [vmem:[%s16129_s0 + $0x2c] sm:$0xf] }
 0x154   :  { %v310_v0 = vpop.permute.xlu1 %309  ;;  %v308_v2 = vpop.permute.xlu0 %307  ;;  %1414 = vmatprep.mubr.bf16.mxu0 %v10553_v37  ;;  %1531 = vmatprep.subr.bf16.mxu0 %v12452_v56  ;;  %v12465_v56 = vld [vmem:[#allocation2 + $0x1d0] ss:$8 sps:$4 sm:$0xff]  }
 0x155   :  { %1415 = vmatmul.mubr.bf16.gmra.mrb[16].mxu0 %v10552_v63  ;;  %v497_v7 = vsel %vm461_vm0, %v14952_v28, %v310_v0 }
 0x156   :  { %451 = vrot.lane.b32.xlu1 %v14775_v36, %s14313_s2  ;;  %449 = vrot.lane.b32.xlu0 %v14769_v35, %s14313_s2  ;;  %v494_v36 = vsel %vm461_vm0, %v14959_v8, %v308_v2 }
 0x157   :  { %1532 = vmatpush1.bf16.msra.mxu0 %v12450_v62  ;;  %v10556_v25 = vcombine.low %v494_v36, %v497_v7  ;;  %v15032_v36 = vld [vmem:[%s16129_s0 + $0x40] sm:$0xf] }
 0x158   :  { %v14963_v45 = vpop.permute.xlu1 %368  ;;  %v14965_v35 = vpop.permute.xlu0 %366  ;;  %1533 = vmatprep.subr.bf16.mxu0 %v12455_v32 }
 0x159   :  { %v570_v53 = vsel %vm546_vm1, %v310_v0, %v14963_v45  ;;  %v568_v13 = vsel %vm546_vm1, %v308_v2, %v14965_v35 }
 0x15a   :  { %v10557_v19 = vcombine.low %v568_v13, %v570_v53  ;;  %455 = vrot.lane.b32.xlu1 %v14792_v40, %s14313_s2  ;;  %453 = vrot.lane.b32.xlu0 %v14784_v39, %s14313_s2  ;;  %v14981_v39 = vld [vmem:[%s16129_s0 + $0x34] sm:$0xf] }
 0x15b   :  { %1534 = vmatpush1.bf16.msra.mxu0 %v12453_v4 }
 0x15c   :  { %v314_v29 = vpop.permute.xlu1 %313  ;;  %v312_v34 = vpop.permute.xlu0 %311  ;;  %1424 = vmatprep.mubr.bf16.mxu0 %v10557_v19  ;;  %1535 = vmatprep.subr.bf16.mxu0 %v12458_v27  ;;  %v15025_v27 = vld [vmem:[%s16129_s0 + $0x44] sm:$0xf] }
 0x15d   :  { %1425 = vmatmul.mubr.bf16.gmra.mrb[20].mxu0 %v10556_v25  ;;  %v503_v40 = vsel %vm461_vm0, %v14981_v39, %v314_v29  ;;  %v500_v10 = vsel %vm461_vm0, %v14988_v61, %v312_v34 }
 0x15e   :  { %459 = vrot.lane.b32.xlu1 %v10535_v20, %s14313_s2  ;;  %457 = vrot.lane.b32.xlu0 %v14800_v42, %s14313_s2  ;;  %v10560_v14 = vcombine.low %v500_v10, %v503_v40  ;;  %v15054_v40 = vld [vmem:[%s16129_s0 + $0x48] sm:$0xf] }
 0x15f   :  { %1536 = vmatpush1.bf16.msra.mxu0 %v12456_v15 }
 0x160   :  { %v14992_v5 = vpop.permute.xlu1 %372  ;;  %v14994_v42 = vpop.permute.xlu0 %370  ;;  %1537 = vmatprep.subr.bf16.mxu0 %v12461_v24 }
 0x161   :  { %v574_v48 = vsel %vm546_vm1, %v314_v29, %v14992_v5  ;;  %v572_v49 = vsel %vm546_vm1, %v312_v34, %v14994_v42 }
 0x162   :  { %v10561_v52 = vcombine.low %v572_v49, %v574_v48 }
 0x163   :  { %1538 = vmatpush1.bf16.msra.mxu0 %v12459_v38  ;;  %v15047_v38 = vld [vmem:[%s16129_s0 + $0x4c] sm:$0xf] }
 0x164   :  { %v318_v54 = vpop.permute.xlu1 %317  ;;  %v316_v55 = vpop.permute.xlu0 %315  ;;  %1434 = vmatprep.mubr.bf16.mxu0 %v10561_v52  ;;  %1539 = vmatprep.subr.bf16.mxu0 %v12464_v44 }
 0x165   :  { %1435 = vmatmul.mubr.bf16.gmra.mrb[24].mxu0 %v10560_v14  ;;  %v509_v23 = vsel %vm461_vm0, %v15003_v17, %v318_v54  ;;  %v506_v22 = vsel %vm461_vm0, %v15010_v26, %v316_v55 }
 0x166   :  { %v10564_v2 = vcombine.low %v506_v22, %v509_v23  ;;  %v15076_v22 = vld [vmem:[%s16129_s0 + $0x50] sm:$0xf] }
 0x167   :  { %1540 = vmatpush1.bf16.msra.mxu0 %v12462_v51 }
 0x168   :  { %v15014_v62 = vpop.permute.xlu1 %376  ;;  %v15016_v37 = vpop.permute.xlu0 %374  ;;  %1541 = vmatprep.subr.bf16.mxu0 %v12467_v18 }
 0x169   :  { %v578_v32 = vsel %vm546_vm1, %v318_v54, %v15014_v62  ;;  %v576_v63 = vsel %vm546_vm1, %v316_v55, %v15016_v37 }
 0x16a   :  { %v10565_v0 = vcombine.low %v576_v63, %v578_v32 }
 0x16b   :  { %1542 = vmatpush1.bf16.msra.mxu0 %v12465_v56  ;;  %v15069_v56 = vld [vmem:[%s16129_s0 + $0x54] sm:$0xf] }
 0x16c   :  { %v322_v3 = vpop.permute.xlu1 %321  ;;  %v320_v4 = vpop.permute.xlu0 %319  ;;  %1444 = vmatprep.mubr.bf16.mxu0 %v10565_v0 }
 0x16d   :  { %1445 = vmatmul.mubr.bf16.gmra.mrb[28].mxu0 %v10564_v2  ;;  %v515_v7 = vsel %vm461_vm0, %v15025_v27, %v322_v3  ;;  %v512_v53 = vsel %vm461_vm0, %v15032_v36, %v320_v4 }
 0x16e   :  { %v10568_v25 = vcombine.low %v512_v53, %v515_v7 }
 0x170   :  { %v15036_v13 = vpop.permute.xlu1 %380  ;;  %v15038_v15 = vpop.permute.xlu0 %378 }
 0x171   :  { %v582_v19 = vsel %vm546_vm1, %v322_v3, %v15036_v13  ;;  %v580_v20 = vsel %vm546_vm1, %v320_v4, %v15038_v15 }
 0x172   :  { %v10569_v24 = vcombine.low %v580_v20, %v582_v19  ;;  %v15091_v20 = vld [vmem:[%s16129_s0 + $0x5c] sm:$0xf] }
 0x174   :  { %v326_v29 = vpop.permute.xlu1 %325  ;;  %v324_v34 = vpop.permute.xlu0 %323  ;;  %1454 = vmatprep.mubr.bf16.mxu0 %v10569_v24 }
 0x175   :  { %1455 = vmatmul.mubr.bf16.gmra.mrb[32].mxu0 %v10568_v25  ;;  %v521_v44 = vsel %vm461_vm0, %v15047_v38, %v326_v29  ;;  %v518_v10 = vsel %vm461_vm0, %v15054_v40, %v324_v34  ;;  %v15098_v25 = vld [vmem:[%s16129_s0 + $0x58] sm:$0xf] }
 0x176   :  { %v10572_v14 = vcombine.low %v518_v10, %v521_v44 }
 0x178   :  { %v15058_v48 = vpop.permute.xlu1 %384  ;;  %v15060_v49 = vpop.permute.xlu0 %382 }
 0x179   :  { %v586_v51 = vsel %vm546_vm1, %v326_v29, %v15058_v48  ;;  %v584_v52 = vsel %vm546_vm1, %v324_v34, %v15060_v49 }
 0x17a   :  { %v10573_v18 = vcombine.low %v584_v52, %v586_v51 }
 0x17c   :  { %v330_v54 = vpop.permute.xlu1 %329  ;;  %v328_v55 = vpop.permute.xlu0 %327  ;;  %1464 = vmatprep.mubr.bf16.mxu0 %v10573_v18 }
 0x17d   :  { %1465 = vmatmul.mubr.bf16.gmra.mrb[36].mxu0 %v10572_v14  ;;  %v527_v23 = vsel %vm461_vm0, %v15069_v56, %v330_v54  ;;  %v524_v32 = vsel %vm461_vm0, %v15076_v22, %v328_v55 }
 0x17e   :  { %v10576_v7 = vcombine.low %v524_v32, %v527_v23  ;;  %v12489_v23 = vld [vmem:[#allocation9 + $0x4] ss:$16 sps:$4 sm:$0xff]   ;;  %v12491_v32 = vld [vmem:[#allocation9] ss:$16 sps:$4 sm:$0xff]  }
 0x17f   :  { %2836 = vmatprep.subr.bf16.mxu1 %v12489_v23  ;;  %v15142_v23 = vld [vmem:[%s16129_s0 + $0x68] sm:$0xf] }
 0x180   :  { %v15080_v63 = vpop.permute.xlu1 %388  ;;  %v15082_v0 = vpop.permute.xlu0 %386  ;;  %2837 = vmatpush1.bf16.msra.mxu1 %v12491_v32  ;;  %16158 = vst [vmem:[#allocation30_spill] sm:$0xff] %v15142_v23 }
 0x181   :  { %16154 = vst [vmem:[#allocation26_spill] sm:$0xff] %v15080_v63  ;;  %16155 = vst [vmem:[#allocation27_spill] sm:$0xff] %v15082_v0  ;;  %v590_v2 = vsel %vm546_vm1, %v330_v54, %v15080_v63  ;;  %v588_v3 = vsel %vm546_vm1, %v328_v55, %v15082_v0  ;;  %v12482_v55 = vld [vmem:[#allocation6 + $0x4] ss:$8 sps:$4 sm:$0xff]   ;;  %v12507_v0 = vld [vmem:[#allocation9 + $0x64] ss:$16 sps:$4 sm:$0xff]  }
 0x182   :  { %v10577_v4 = vcombine.low %v588_v3, %v590_v2  ;;  %3826 = vmatprep.subr.bf16.mxu0 %v12482_v55  ;;  %v15113_v2 = vld [vmem:[%s16129_s0 + $0x64] sm:$0xf]  ;;  %v12501_v55 = vld [vmem:[#allocation9 + $0x44] ss:$16 sps:$4 sm:$0xff]  }
 0x183   :  { %v12515_v63 = vld [vmem:[#allocation9 + $0x80] ss:$16 sps:$4 sm:$0xff]  }
 0x184   :  { %v334_v53 = vpop.permute.xlu1 %333  ;;  %v332_v19 = vpop.permute.xlu0 %331  ;;  %1474 = vmatprep.mubr.bf16.mxu0 %v10577_v4  ;;  %v15120_v4 = vld [vmem:[%s16129_s0 + $0x60] sm:$0xf] }
 0x185   :  { %1475 = vmatmul.mubr.bf16.gmra.mrb[40].mxu0 %v10576_v7  ;;  %v533_v24 = vsel %vm461_vm0, %v15091_v20, %v334_v53  ;;  %v530_v29 = vsel %vm461_vm0, %v15098_v25, %v332_v19  ;;  %16156 = vst [vmem:[#allocation28_spill] sm:$0xff] %v15120_v4 }
 0x186   :  { %v10580_v18 = vcombine.low %v530_v29, %v533_v24  ;;  %v12495_v24 = vld [vmem:[#allocation9 + $0x24] ss:$16 sps:$4 sm:$0xff]  }
 0x187   :  { %2838 = vmatprep.subr.bf16.mxu1 %v12495_v24 }
 0x188   :  { %v15102_v34 = vpop.permute.xlu1 %392  ;;  %v15104_v44 = vpop.permute.xlu0 %390 }
 0x189   :  { %v594_v10 = vsel %vm546_vm1, %v334_v53, %v15102_v34  ;;  %v592_v51 = vsel %vm546_vm1, %v332_v19, %v15104_v44 }
 0x18a   :  { %v10581_v52 = vcombine.low %v592_v51, %v594_v10 }
 0x18c   :  { %v338_v14 = vpop.permute.xlu1 %337  ;;  %v336_v54 = vpop.permute.xlu0 %335  ;;  %1484 = vmatprep.mubr.bf16.mxu0 %v10581_v52  ;;  %v12497_v52 = vld [vmem:[#allocation9 + $0x20] ss:$16 sps:$4 sm:$0xff]  }
 0x18d   :  { %1485 = vmatmul.mubr.bf16.gmra.mrb[44].mxu0 %v10580_v18  ;;  %v539_v3 = vsel %vm461_vm0, %v15113_v2, %v338_v14  ;;  %v536_v7 = vsel %vm461_vm0, %v15120_v4, %v336_v54  ;;  %2839 = vmatpush1.bf16.msra.mxu1 %v12497_v52  ;;  %v10539_v52 = vcombine.low %v14866_v11, %v14859_v41  ;;  %v12519_v4 = vld [vmem:[#allocation9 + $0xa4] ss:$16 sps:$4 sm:$0xff]  }
 0x18e   :  { %v10584_v18 = vcombine.low %v536_v7, %v539_v3  ;;  %2840 = vmatprep.subr.bf16.mxu1 %v12501_v55  ;;  %v12480_v11 = vld [vmem:[#allocation6] ss:$8 sps:$4 sm:$0xff]  }
 0x190   :  { %v15124_v53 = vpop.permute.xlu1 %396  ;;  %v15126_v19 = vpop.permute.xlu0 %394 }
 0x191   :  { %v598_v29 = vsel %vm546_vm1, %v338_v14, %v15124_v53  ;;  %v596_v10 = vsel %vm546_vm1, %v336_v54, %v15126_v19  ;;  %v15135_v14 = vld [vmem:[%s16129_s0 + $0x6c] sm:$0xf]  ;;  %2841 = vmatpush1.bf16.msra.mxu1 %v12503_v30 }
 0x192   :  { %v10585_v51 = vcombine.low %v596_v10, %v598_v29  ;;  %16157 = vst [vmem:[#allocation29_spill] sm:$0xff] %v15135_v14  ;;  %v12509_v10 = vld [vmem:[#allocation9 + $0x60] ss:$16 sps:$4 sm:$0xff]   ;;  %2842 = vmatprep.subr.bf16.mxu1 %v12507_v0 }
 0x193   :  { %v12485_v0 = vld [vmem:[#allocation6 + $0x14] ss:$8 sps:$4 sm:$0xff]  }
 0x194   :  { %v342_v33 = vpop.permute.xlu1 %341  ;;  %v340_v31 = vpop.permute.xlu0 %339  ;;  %1494 = vmatprep.mubr.bf16.mxu0 %v10585_v51 }
 0x195   :  { %1495 = vmatmul.mubr.bf16.gmra.mrb[48].mxu0 %v10584_v18  ;;  %v545_v54 = vsel %vm461_vm0, %v15135_v14, %v342_v33  ;;  %v542_v32 = vsel %vm461_vm0, %v15142_v23, %v340_v31  ;;  %v12513_v18 = vld [vmem:[#allocation9 + $0x84] ss:$16 sps:$4 sm:$0xff]   ;;  %2843 = vmatpush1.bf16.msra.mxu1 %v12509_v10 }
 0x196   :  { %v10588_v55 = vcombine.low %v542_v32, %v545_v54  ;;  %2844 = vmatprep.subr.bf16.mxu1 %v12513_v18  ;;  %v12521_v54 = vld [vmem:[#allocation9 + $0xa0] ss:$16 sps:$4 sm:$0xff]   ;;  %v10543_v32 = vcombine.low %v14896_v46, %v14889_v58 }
 0x197   :  { %v12494_v18 = vld [vmem:[#allocation6 + $0x34] ss:$8 sps:$4 sm:$0xff]  }
 0x198   :  { %v15146_v3 = vpop.permute.xlu1 %400  ;;  %v15148_v7 = vpop.permute.xlu0 %398 }
 0x199   :  { %v602_v24 = vsel %vm546_vm1, %v342_v33, %v15146_v3  ;;  %v600_v29 = vsel %vm546_vm1, %v340_v31, %v15148_v7  ;;  %2845 = vmatpush1.bf16.msra.mxu1 %v12515_v63 }
 0x19a   :  { %v10589_v51 = vcombine.low %v600_v29, %v602_v24  ;;  %v12525_v24 = vld [vmem:[#allocation9 + $0xc4] ss:$16 sps:$4 sm:$0xff]   ;;  %2846 = vmatprep.subr.bf16.mxu1 %v12519_v4 }
 0x19b   :  { %v12486_v4 = vld [vmem:[#allocation6 + $0x20] ss:$8 sps:$4 sm:$0xff]  }
 0x19c   :  { %v408_v23 = vpop.permute.xlu1 %407  ;;  %v406_v14 = vpop.permute.xlu0 %405  ;;  %1504 = vmatprep.mubr.bf16.mxu0 %v10589_v51 }
 0x19d   :  { %1505 = vmatmul.mubr.bf16.gmra.mrb[52].mxu0 %v10588_v55  ;;  %v607_v31 = vsel %vm603_vm2, %v14819_v47, %v408_v23  ;;  %v605_v30 = vsel %vm603_vm2, %v14810_v43, %v406_v14  ;;  %v12488_v47 = vld [vmem:[#allocation6 + $0x24] ss:$8 sps:$4 sm:$0xff]   ;;  %v12531_v43 = vld [vmem:[#allocation9 + $0xe4] ss:$16 sps:$4 sm:$0xff]   ;;  %2847 = vmatpush1.bf16.msra.mxu1 %v12521_v54 }
 0x19e   :  { %10652 = vmatprep.mubr.msk.bf16.mxu0 %vm461_vm0, %v10539_v52  ;;  %v10538_v29 = vcombine.low %v605_v30, %v607_v31  ;;  %v12483_v52 = vld [vmem:[#allocation6 + $0x10] ss:$8 sps:$4 sm:$0xff]   ;;  %v12527_v23 = vld [vmem:[#allocation9 + $0xc0] ss:$16 sps:$4 sm:$0xff]   ;;  %2848 = vmatprep.subr.bf16.mxu1 %v12525_v24  ;;  %v10547_v31 = vcombine.low %v14926_v1, %v14919_v16 }
 0x19f   :  { %v12533_v55 = vld [vmem:[#allocation9 + $0xe0] ss:$16 sps:$4 sm:$0xff]   ;;  %v12537_v30 = vld [vmem:[#allocation9 + $0x104] ss:$16 sps:$4 sm:$0xff]  }
 0x1a0   :  { %v412_v33 = vpop.permute.xlu1 %411  ;;  %v410_v41 = vpop.permute.xlu0 %409  ;;  %v12506_v24 = vld [vmem:[#allocation6 + $0x54] ss:$8 sps:$4 sm:$0xff]  }
 0x1a1   :  { %v611_v14 = vsel %vm603_vm2, %v14840_v59, %v412_v33  ;;  %v609_v58 = vsel %vm603_vm2, %v14842_v60, %v410_v41  ;;  %2849 = vmatpush1.bf16.msra.mxu1 %v12527_v23  ;;  %v12492_v59 = vld [vmem:[#allocation6 + $0x30] ss:$8 sps:$4 sm:$0xff]   ;;  %v12500_v60 = vld [vmem:[#allocation6 + $0x44] ss:$8 sps:$4 sm:$0xff]  }
 0x1a2   :  { %2850 = vmatprep.subr.bf16.mxu1 %v12531_v43  ;;  %v12504_v43 = vld [vmem:[#allocation6 + $0x50] ss:$8 sps:$4 sm:$0xff]  }
 0x1a4   :  { %v416_v10 = vpop.permute.xlu1 %415  ;;  %v414_v51 = vpop.permute.xlu0 %413 }
 0x1a5   :  { %1548 = vmatmul.mubr.bf16.vlgmr.msra.gmra.mrb[0].mxu0 %v10538_v29  ;;  %2851 = vmatpush1.bf16.msra.mxu1 %v12533_v55  ;;  %v615_v33 = vsel %vm603_vm2, %v14870_v12, %v416_v10  ;;  %v613_v16 = vsel %vm603_vm2, %v14872_v50, %v414_v51  ;;  %v10551_v29 = vcombine.low %v14959_v8, %v14952_v28  ;;  %v12512_v12 = vld [vmem:[#allocation6 + $0x64] ss:$8 sps:$4 sm:$0xff]   ;;  %v12510_v51 = vld [vmem:[#allocation6 + $0x60] ss:$8 sps:$4 sm:$0xff]  }
 0x1a6   :  { %10653 = vmatprep.mubr.msk.bf16.mxu0 %vm461_vm0, %v10543_v32  ;;  %3827 = vmatpush1.bf16.msra.mxu0 %v12480_v11  ;;  %v10542_v11 = vcombine.low %v609_v58, %v611_v14  ;;  %v12498_v32 = vld [vmem:[#allocation6 + $0x40] ss:$8 sps:$4 sm:$0xff]   ;;  %v12518_v14 = vld [vmem:[#allocation6 + $0x74] ss:$8 sps:$4 sm:$0xff]   ;;  %v10555_v58 = vcombine.low %v14988_v61, %v14981_v39 }
 0x1a7   :  { %3828 = vmatprep.subr.bf16.mxu0 %v12485_v0  ;;  %2852 = vmatprep.subr.bf16.mxu1 %v12537_v30  ;;  %v12530_v30 = vld [vmem:[#allocation6 + $0x94] ss:$8 sps:$4 sm:$0xff]  }
 0x1a8   :  { %v420_v46 = vpop.permute.xlu1 %419  ;;  %v418_v63 = vpop.permute.xlu0 %417 }
 0x1a9   :  { %v619_v50 = vsel %vm603_vm2, %v14900_v9, %v420_v46  ;;  %v617_v28 = vsel %vm603_vm2, %v14902_v6, %v418_v63  ;;  %v12516_v9 = vld [vmem:[#allocation6 + $0x70] ss:$8 sps:$4 sm:$0xff]   ;;  %v12524_v46 = vld [vmem:[#allocation6 + $0x84] ss:$8 sps:$4 sm:$0xff]  }
 0x1aa   :  { %3829 = vmatpush1.bf16.msra.mxu0 %v12483_v52  ;;  %v10546_v52 = vcombine.low %v613_v16, %v615_v33  ;;  %v12528_v16 = vld [vmem:[#allocation6 + $0x90] ss:$8 sps:$4 sm:$0xff]  }
 0x1ab   :  { %3830 = vmatprep.subr.bf16.mxu0 %v12488_v47 }
 0x1ac   :  { %v424_v0 = vpop.permute.xlu1 %423  ;;  %v422_v54 = vpop.permute.xlu0 %421 }
 0x1ad   :  { %1558 = vmatmul.mubr.bf16.gmra.mrb[4].mxu0 %v10542_v11  ;;  %v623_v6 = vsel %vm603_vm2, %v14930_v57, %v424_v0  ;;  %v621_v39 = vsel %vm603_vm2, %v14932_v21, %v422_v54  ;;  %v10559_v11 = vcombine.low %v15010_v26, %v15003_v17  ;;  %v12534_v26 = vld [vmem:[#allocation6 + $0xa0] ss:$8 sps:$4 sm:$0xff]  }
 0x1ae   :  { %10654 = vmatprep.mubr.msk.bf16.mxu0 %vm461_vm0, %v10547_v31  ;;  %3831 = vmatpush1.bf16.msra.mxu0 %v12486_v4  ;;  %v10550_v4 = vcombine.low %v617_v28, %v619_v50  ;;  %v12522_v31 = vld [vmem:[#allocation6 + $0x80] ss:$8 sps:$4 sm:$0xff]  }
 0x1af   :  { %3832 = vmatprep.subr.bf16.mxu0 %v12494_v18 }
 0x1b0   :  { %v428_v1 = vpop.permute.xlu1 %427  ;;  %v426_v41 = vpop.permute.xlu0 %425 }
 0x1b1   :  { %v627_v57 = vsel %vm603_vm2, %v14963_v45, %v428_v1  ;;  %v625_v21 = vsel %vm603_vm2, %v14965_v35, %v426_v41 }
 0x1b2   :  { %3833 = vmatpush1.bf16.msra.mxu0 %v12492_v59  ;;  %v10554_v59 = vcombine.low %v621_v39, %v623_v6  ;;  %v12546_v6 = vld [vmem:[#allocation6 + $0xc0] ss:$8 sps:$4 sm:$0xff]  }
 0x1b3   :  { %3834 = vmatprep.subr.bf16.mxu0 %v12500_v60  ;;  %v12549_v39 = vld [vmem:[#allocation9 + $0x144] ss:$16 sps:$4 sm:$0xff]  }
 0x1b4   :  { %v15177_v47 = vpop.permute.xlu1 %431  ;;  %v15179_v23 = vpop.permute.xlu0 %429 }
 0x1b5   :  { %1568 = vmatmul.mubr.bf16.gmra.mrb[8].mxu0 %v10546_v52  ;;  %v10563_v52 = vcombine.low %v15032_v36, %v15025_v27  ;;  %v631_v27 = vsel %vm603_vm2, %v14992_v5, %v15177_v47  ;;  %v629_v36 = vsel %vm603_vm2, %v14994_v42, %v15179_v23  ;;  %v10567_v5 = vcombine.low %v15054_v40, %v15047_v38 }
 0x1b6   :  { %10655 = vmatprep.mubr.msk.bf16.mxu0 %vm461_vm0, %v10551_v29  ;;  %3835 = vmatpush1.bf16.msra.mxu0 %v12498_v32  ;;  %v12536_v32 = vld [vmem:[#allocation6 + $0xa4] ss:$8 sps:$4 sm:$0xff]   ;;  %v10562_v47 = vcombine.low %v629_v36, %v631_v27 }
 0x1b7   :  { %3836 = vmatprep.subr.bf16.mxu0 %v12506_v24 }
 0x1b8   :  { %v15186_v8 = vpop.permute.xlu1 %435  ;;  %v15188_v10 = vpop.permute.xlu0 %433 }
 0x1b9   :  { %v635_v42 = vsel %vm603_vm2, %v15014_v62, %v15186_v8  ;;  %v10575_v62 = vcombine.low %v15098_v25, %v15091_v20  ;;  %v16161_v25 = vld [vmem:[#allocation27_spill] sm:$0xff] }
 0x1ba   :  { %3837 = vmatpush1.bf16.msra.mxu0 %v12504_v43  ;;  %v10558_v43 = vcombine.low %v625_v21, %v627_v57  ;;  %v12560_v57 = vld [vmem:[#allocation6 + $0xe4] ss:$8 sps:$4 sm:$0xff]   ;;  %v12558_v21 = vld [vmem:[#allocation6 + $0xe0] ss:$8 sps:$4 sm:$0xff]  }
 0x1bb   :  { %3838 = vmatprep.subr.bf16.mxu0 %v12512_v12 }
 0x1bc   :  { %v15192_v18 = vpop.permute.xlu1 %439  ;;  %v15194_v55 = vpop.permute.xlu0 %437 }
 0x1bd   :  { %1578 = vmatmul.mubr.bf16.gmra.mrb[12].mxu0 %v10550_v4  ;;  %v639_v38 = vsel %vm603_vm2, %v15036_v13, %v15192_v18  ;;  %v637_v40 = vsel %vm603_vm2, %v15038_v15, %v15194_v55  ;;  %v16160_v15 = vld [vmem:[#allocation26_spill] sm:$0xff]  ;;  %v12545_v55 = vld [vmem:[#allocation9 + $0x120] ss:$16 sps:$4 sm:$0xff]  }
 0x1be   :  { %10656 = vmatprep.mubr.msk.bf16.mxu0 %vm461_vm0, %v10555_v58  ;;  %3839 = vmatpush1.bf16.msra.mxu0 %v12510_v51  ;;  %v10570_v28 = vcombine.low %v637_v40, %v639_v38  ;;  %v16162_v51 = vld [vmem:[#allocation29_spill] sm:$0xff] }
 0x1bf   :  { %3840 = vmatprep.subr.bf16.mxu0 %v12518_v14  ;;  %v16163_v14 = vld [vmem:[#allocation30_spill] sm:$0xff] }
 0x1c0   :  { %v444_v61 = vpop.permute.xlu1 %443  ;;  %v442_v63 = vpop.permute.xlu0 %441  ;;  %v10583_v58 = vcombine.low %v16163_v14, %v16162_v51  ;;  %v12540_v4 = vld [vmem:[#allocation6 + $0xb0] ss:$8 sps:$4 sm:$0xff]  }
 0x1c1   :  { %v12543_v18 = vld [vmem:[#allocation9 + $0x124] ss:$16 sps:$4 sm:$0xff]  }
 0x1c2   :  { %3841 = vmatpush1.bf16.msra.mxu0 %v12516_v9  ;;  %v12548_v9 = vld [vmem:[#allocation6 + $0xc4] ss:$8 sps:$4 sm:$0xff]  }
 0x1c3   :  { %3842 = vmatprep.subr.bf16.mxu0 %v12524_v46  ;;  %v202_v46 = vld [vmem:[%s16129_s0 + $0x7c] sm:$0xf] }
 0x1c4   :  { %v448_v60 = vpop.permute.xlu1 %447  ;;  %v446_v33 = vpop.permute.xlu0 %445 }
 0x1c5   :  { %1588 = vmatmul.mubr.bf16.gmra.mrb[16].mxu0 %v10554_v59  ;;  %v647_v20 = vsel %vm603_vm2, %v16160_v15, %v448_v60  ;;  %v12552_v59 = vld [vmem:[#allocation6 + $0xd0] ss:$8 sps:$4 sm:$0xff]  }
 0x1c6   :  { %10657 = vmatprep.mubr.msk.bf16.mxu0 %vm461_vm0, %v10559_v11  ;;  %3843 = vmatpush1.bf16.msra.mxu0 %v12522_v31  ;;  %v12554_v11 = vld [vmem:[#allocation6 + $0xd4] ss:$8 sps:$4 sm:$0xff]   ;;  %v12555_v60 = vld [vmem:[#allocation9 + $0x164] ss:$16 sps:$4 sm:$0xff]  }
 0x1c7   :  { %3844 = vmatprep.subr.bf16.mxu0 %v12530_v30  ;;  %v12551_v30 = vld [vmem:[#allocation9 + $0x140] ss:$16 sps:$4 sm:$0xff]  }
 0x1c8   :  { %v452_v0 = vpop.permute.xlu1 %451  ;;  %v450_v17 = vpop.permute.xlu0 %449 }
 0x1c9   :  { %v651_v54 = vsel %vm603_vm2, %v15102_v34, %v452_v0  ;;  %v649_v24 = vsel %vm603_vm2, %v15104_v44, %v450_v17  ;;  %v12561_v0 = vld [vmem:[#allocation9 + $0x184] ss:$16 sps:$4 sm:$0xff]   ;;  %v12563_v17 = vld [vmem:[#allocation9 + $0x180] ss:$16 sps:$4 sm:$0xff]  }
 0x1ca   :  { %v10582_v29 = vcombine.low %v649_v24, %v651_v54  ;;  %3845 = vmatpush1.bf16.msra.mxu0 %v12528_v16  ;;  %v12564_v54 = vld [vmem:[#allocation6 + $0xf0] ss:$8 sps:$4 sm:$0xff]  }
 0x1cb   :  { %3846 = vmatprep.subr.bf16.mxu0 %v12536_v32  ;;  %v12557_v32 = vld [vmem:[#allocation9 + $0x160] ss:$16 sps:$4 sm:$0xff]   ;;  %v12567_v24 = vld [vmem:[#allocation9 + $0x1a4] ss:$16 sps:$4 sm:$0xff]  }
 0x1cc   :  { %v456_v45 = vpop.permute.xlu1 %455  ;;  %v454_v1 = vpop.permute.xlu0 %453 }
 0x1cd   :  { %v15216_v35 = vsel %vm603_vm2, %v15124_v53, %v456_v45  ;;  %v15220_v41 = vsel %vm603_vm2, %v15126_v19, %v454_v1  ;;  %1598 = vmatmul.mubr.bf16.gmra.mrb[20].mxu0 %v10558_v43  ;;  %v12573_v43 = vld [vmem:[#allocation9 + $0x1c4] ss:$16 sps:$4 sm:$0xff]   ;;  %v12575_v45 = vld [vmem:[#allocation9 + $0x1c0] ss:$16 sps:$4 sm:$0xff]  }
 0x1ce   :  { %v10586_v34 = vcombine.low %v15220_v41, %v15216_v35  ;;  %10658 = vmatprep.mubr.msk.bf16.mxu0 %vm461_vm0, %v10563_v52  ;;  %3847 = vmatpush1.bf16.msra.mxu0 %v12534_v26  ;;  %v12566_v26 = vld [vmem:[#allocation6 + $0xf4] ss:$8 sps:$4 sm:$0xff]   ;;  %v12572_v52 = vld [vmem:[#allocation6 + $0x104] ss:$8 sps:$4 sm:$0xff]   ;;  %v12579_v1 = vld [vmem:[#allocation9 + $0x1e4] ss:$16 sps:$4 sm:$0xff]  }
 0x1cf   :  { %v12581_v35 = vld [vmem:[#allocation9 + $0x1e0] ss:$16 sps:$4 sm:$0xff]   ;;  %v12593_v41 = vld [vmem:[#allocation9 + $0x204] ss:$16 sps:$4 sm:$0xff]  }
 0x1d0   :  { %v460_v44 = vpop.permute.xlu1 %459  ;;  %v458_v53 = vpop.permute.xlu0 %457 }
 0x1d1   :  { %v15233_v19 = vsel %vm603_vm2, %v15146_v3, %v460_v44  ;;  %v15237_v12 = vsel %vm603_vm2, %v15148_v7, %v458_v53  ;;  %v633_v3 = vsel %vm603_vm2, %v15016_v37, %v15188_v10  ;;  %v10571_v7 = vcombine.low %v15076_v22, %v15069_v56  ;;  %v16159_v22 = vld [vmem:[#allocation28_spill] sm:$0xff]  ;;  %v890_v44 = vld [vmem:[#allocation4] sm:$0x3] }
 0x1d2   :  { %v10590_v50 = vcombine.low %v15237_v12, %v15233_v19  ;;  %v10566_v23 = vcombine.low %v633_v3, %v635_v42  ;;  %v643_v37 = vsel %vm603_vm2, %v15058_v48, %v444_v61  ;;  %v641_v56 = vsel %vm603_vm2, %v15060_v49, %v442_v63  ;;  %v12539_v49 = vld [vmem:[#allocation9 + $0x100] ss:$16 sps:$4 sm:$0xff]   ;;  %v16164_v61 = vld [vmem:[#allocation24_spill] sm:$0xff] }
 0x1d3   :  { %v10579_v13 = vcombine.low %v16159_v22, %v15113_v2  ;;  %v10574_v8 = vcombine.low %v641_v56, %v643_v37  ;;  %v645_v10 = vsel %vm603_vm2, %v16161_v25, %v446_v33  ;;  %2853 = vmatpush1.bf16.msra.mxu1 %v12539_v49  ;;  %v12542_v2 = vld [vmem:[#allocation6 + $0xb4] ss:$8 sps:$4 sm:$0xff]  }
 0x1d4   :  { %v10578_v48 = vcombine.low %v645_v10, %v647_v20  ;;  %3848 = vmatprep.subr.bf16.mxu0 %v12542_v2  ;;  %2854 = vmatprep.subr.bf16.mxu1 %v12543_v18  ;;  %v16165_v63 = vld [vmem:[#allocation25_spill] sm:$0xff] }
 0x1d5   :  { %1608 = vmatmul.mubr.bf16.gmra.mrb[24].mxu0 %v10562_v47  ;;  %v16166_v31 = vcombine.low %v16164_v61, %v16165_v63  ;;  %v14078_v33 = vld [vmem:[%s16129_s0 + $0x78] sm:$0xf] }
 0x1d6   :  { %10659 = vmatprep.mubr.msk.bf16.mxu0 %vm461_vm0, %v10567_v5  ;;  %3849 = vmatpush1.bf16.msra.mxu0 %v12540_v4  ;;  %v10591_v16 = vcombine.low %v14078_v33, %v202_v46 }
 0x1d7   :  { %2855 = vmatpush1.bf16.msra.mxu1 %v12545_v55  ;;  %3850 = vmatprep.subr.bf16.mxu0 %v12548_v9 }
 0x1d8   :  { %2856 = vmatprep.subr.bf16.mxu1 %v12549_v39 }
 0x1da   :  { %3851 = vmatpush1.bf16.msra.mxu0 %v12546_v6 }
 0x1db   :  { %2857 = vmatpush1.bf16.msra.mxu1 %v12551_v30  ;;  %3852 = vmatprep.subr.bf16.mxu0 %v12554_v11 }
 0x1dc   :  { %2858 = vmatprep.subr.bf16.mxu1 %v12555_v60 }
 0x1dd   :  { %1618 = vmatmul.mubr.bf16.gmra.mrb[28].mxu0 %v10566_v23 }
 0x1de   :  { %10660 = vmatprep.mubr.msk.bf16.mxu0 %vm461_vm0, %v10571_v7  ;;  %3853 = vmatpush1.bf16.msra.mxu0 %v12552_v59 }
 0x1df   :  { %2859 = vmatpush1.bf16.msra.mxu1 %v12557_v32  ;;  %3854 = vmatprep.subr.bf16.mxu0 %v12560_v57 }
 0x1e0   :  { %2860 = vmatprep.subr.bf16.mxu1 %v12561_v0  ;;  %v12578_v0 = vld [vmem:[#allocation6 + $0x114] ss:$8 sps:$4 sm:$0xff]  }
 0x1e2   :  { %3855 = vmatpush1.bf16.msra.mxu0 %v12558_v21 }
 0x1e3   :  { %2861 = vmatpush1.bf16.msra.mxu1 %v12563_v17  ;;  %3856 = vmatprep.subr.bf16.mxu0 %v12566_v26 }
 0x1e4   :  { %2862 = vmatprep.subr.bf16.mxu1 %v12567_v24 }
 0x1e5   :  { %1628 = vmatmul.mubr.bf16.gmra.mrb[32].mxu0 %v10570_v28 }
 0x1e6   :  { %10661 = vmatprep.mubr.msk.bf16.mxu0 %vm461_vm0, %v10575_v62  ;;  %3857 = vmatpush1.bf16.msra.mxu0 %v12564_v54 }
 0x1e7   :  { %3867 = vmatprep.subr.bf16.mxu0 %v12572_v52 }
 0x1ed   :  { %1638 = vmatmul.mubr.bf16.gmra.mrb[36].mxu0 %v10574_v8 }
 0x1ee   :  { %10662 = vmatprep.mubr.msk.bf16.mxu0 %vm461_vm0, %v10579_v13 }
 0x1f5   :  { %1648 = vmatmul.mubr.bf16.gmra.mrb[40].mxu0 %v10578_v48 }
 0x1f6   :  { %10663 = vmatprep.mubr.msk.bf16.mxu0 %vm461_vm0, %v10583_v58 }
 0x1fd   :  { %1658 = vmatmul.mubr.bf16.gmra.mrb[44].mxu0 %v10582_v29  ;;  %v12569_v29 = vld [vmem:[#allocation9 + $0x1a0] ss:$16 sps:$4 sm:$0xff]  }
 0x1fe   :  { %10664 = vmatprep.mubr.msk.bf16.mxu0 %vm461_vm0, %v16166_v31  ;;  %2863 = vmatpush1.bf16.msra.mxu1 %v12569_v29  ;;  %v12576_v29 = vld [vmem:[#allocation6 + $0x110] ss:$8 sps:$4 sm:$0xff]  }
 0x1ff   :  { %2864 = vmatprep.subr.bf16.mxu1 %v12573_v43 }
 0x202   :  { %2865 = vmatpush1.bf16.msra.mxu1 %v12575_v45  ;;  %v12584_v45 = vld [vmem:[#allocation6 + $0x124] ss:$8 sps:$4 sm:$0xff]  }
 0x203   :  { %2866 = vmatprep.subr.bf16.mxu1 %v12579_v1 }
 0x205   :  { %1668 = vmatmul.mubr.bf16.gmra.mrb[48].mxu0 %v10586_v34  ;;  %v892_v34 = vlaneseq }
 0x206   :  { %10665 = vmatprep.mubr.msk.bf16.mxu0 %vm461_vm0, %v10591_v16  ;;  %2867 = vmatpush1.bf16.msra.mxu1 %v12581_v35  ;;  %v12570_v16 = vld [vmem:[#allocation6 + $0x100] ss:$8 sps:$4 sm:$0xff]  }
 0x207   :  { %2919 = vmatprep.subr.bf16.mxu1 %v12593_v41  ;;  %v15293_v27 = vshrl.u32 %v892_v34, 7 }
 0x209   :  { %v15296_v36 = vsub.s32 0, %v15293_v27  ;;  %v15299_v53 = vsub.s32 1, %v15293_v27 }
 0x20b   :  { %v15302_v19 = vrot.slane %v890_v44, %v15296_v36  ;;  %v15305_v12 = vrot.slane %v890_v44, %v15299_v53 }
 0x20d   :  { %1678 = vmatmul.mubr.bf16.gmra.mrb[52].mxu0 %v10590_v50 }
 0x278   :  { %v1549_v50 = vpop.f32.mrb[0].mxu0 }
 0x279   :  { %v11992_v5 = vadd.f32 %v1549_v50, %v15302_v19  ;;  %v1551_v47 = vpop.f32.mrb[1].mxu0 }
 0x27a   :  { %v11993_v42 = vadd.f32 %v1551_v47, %v15305_v12  ;;  %v1553_v3 = vpop.f32.mrb[2].mxu0 }
 0x27b   :  { %v1688_v7 = vmax.f32 %v11992_v5, 0.0  ;;  %v11994_v23 = vadd.f32 %v1553_v3, %v15302_v19  ;;  %v1555_v38 = vpop.f32.mrb[3].mxu0  ;;  %v12582_v3 = vld [vmem:[#allocation6 + $0x120] ss:$8 sps:$4 sm:$0xff]  }
 0x27c   :  { %v1689_v40 = vmax.f32 %v11993_v42, 0.0  ;;  %v11995_v62 = vadd.f32 %v1555_v38, %v15305_v12  ;;  %v12587_v38 = vld [vmem:[#allocation6 + $0x134] ss:$8 sps:$4 sm:$0xff]  }
 0x27d   :  { %v1690_v28 = vmax.f32 %v11994_v23, 0.0 }
 0x27e   :  { %v1744_v37 = vmax.f32 %v1688_v7, %v1689_v40  ;;  %v1691_v56 = vmax.f32 %v11995_v62, 0.0  ;;  %v12591_v7 = vld [vmem:[#allocation9 + $0x200] ss:$16 sps:$4 sm:$0xff]   ;;  %v12599_v40 = vld [vmem:[#allocation9 + $0x224] ss:$16 sps:$4 sm:$0xff]  }
 0x280   :  { %v1745_v22 = vmax.f32 %v1690_v28, %v1691_v56  ;;  %v1559_v13 = vpop.f32.mrb[4].mxu0 }
 0x281   :  { %v11996_v8 = vadd.f32 %v1559_v13, %v15302_v19  ;;  %v1561_v15 = vpop.f32.mrb[5].mxu0  ;;  %v12597_v13 = vld [vmem:[#allocation9 + $0x220] ss:$16 sps:$4 sm:$0xff]  }
 0x282   :  { %v1772_v20 = vmax.f32 %v1744_v37, %v1745_v22  ;;  %v11997_v25 = vadd.f32 %v1561_v15, %v15305_v12  ;;  %v1563_v10 = vpop.f32.mrb[6].mxu0  ;;  %v12585_v22 = vld [vmem:[#allocation6 + $0x130] ss:$8 sps:$4 sm:$0xff]  }
 0x283   :  { %v1692_v51 = vmax.f32 %v11996_v8, 0.0  ;;  %v11998_v14 = vadd.f32 %v1563_v10, %v15302_v19  ;;  %v1565_v58 = vpop.f32.mrb[7].mxu0 }
 0x284   :  { %v1693_v48 = vmax.f32 %v11997_v25, 0.0  ;;  %v11999_v49 = vadd.f32 %v1565_v58, %v15305_v12  ;;  %v1786_v57 = vpack.c.bf16 %v1772_v20, %v1772_v20  ;;  %v12605_v25 = vld [vmem:[#allocation9 + $0x244] ss:$16 sps:$4 sm:$0xff]  }
 0x285   :  { %v1694_v2 = vmax.f32 %v11998_v14, 0.0 }
 0x286   :  { %v1746_v4 = vmax.f32 %v1692_v51, %v1693_v48  ;;  %v1695_v18 = vmax.f32 %v11999_v49, 0.0 }
 0x288   :  { %v1747_v55 = vmax.f32 %v1694_v2, %v1695_v18  ;;  %v1569_v9 = vpop.f32.mrb[8].mxu0  ;;  %v12588_v18 = vld [vmem:[#allocation6 + $0x140] ss:$8 sps:$4 sm:$0xff]  }
 0x289   :  { %v12000_v46 = vadd.f32 %v1569_v9, %v15302_v19  ;;  %v1571_v6 = vpop.f32.mrb[9].mxu0 }
 0x28a   :  { %v1773_v39 = vmax.f32 %v1746_v4, %v1747_v55  ;;  %v12001_v61 = vadd.f32 %v1571_v6, %v15305_v12  ;;  %v1573_v63 = vpop.f32.mrb[10].mxu0 }
 0x28b   :  { %v1696_v31 = vmax.f32 %v12000_v46, 0.0  ;;  %v12002_v30 = vadd.f32 %v1573_v63, %v15302_v19  ;;  %v1575_v11 = vpop.f32.mrb[11].mxu0  ;;  %v12603_v46 = vld [vmem:[#allocation9 + $0x240] ss:$16 sps:$4 sm:$0xff]  }
 0x28c   :  { %v1697_v59 = vmax.f32 %v12001_v61, 0.0  ;;  %v12003_v60 = vadd.f32 %v1575_v11, %v15305_v12  ;;  %v15319_v33 = vpack.c.bf16 %v1773_v39, %v1773_v39  ;;  %v15321_v32 = vpack.c.bf16 %v1773_v39, %v1772_v20  ;;  %v12590_v20 = vld [vmem:[#allocation6 + $0x144] ss:$8 sps:$4 sm:$0xff]   ;;  %v12611_v61 = vld [vmem:[#allocation9 + $0x264] ss:$16 sps:$4 sm:$0xff]  }
 0x28d   :  { %v1698_v21 = vmax.f32 %v12002_v30, 0.0 }
 0x28e   :  { %v1748_v17 = vmax.f32 %v1696_v31, %v1697_v59  ;;  %v1699_v26 = vmax.f32 %v12003_v60, 0.0  ;;  %3858 = vmatprep.mubr.bf16.mxu0 %v15319_v33  ;;  %v12594_v59 = vld [vmem:[#allocation6 + $0x150] ss:$8 sps:$4 sm:$0xff]   ;;  %v12609_v60 = vld [vmem:[#allocation9 + $0x260] ss:$16 sps:$4 sm:$0xff]  }
 0x28f   :  { %3859 = vmatmul.mubr.bf16.vlgmr.msra.gmra.mrb[56].mxu0 %v1786_v57 }
 0x290   :  { %v1749_v54 = vmax.f32 %v1698_v21, %v1699_v26  ;;  %3868 = vmatpush1.bf16.msra.mxu0 %v12570_v16  ;;  %v1579_v24 = vpop.f32.mrb[12].mxu0  ;;  %v12602_v21 = vld [vmem:[#allocation6 + $0x164] ss:$8 sps:$4 sm:$0xff]  }
 0x291   :  { %v12004_v52 = vadd.f32 %v1579_v24, %v15302_v19  ;;  %v1581_v43 = vpop.f32.mrb[13].mxu0  ;;  %3869 = vmatprep.subr.bf16.mxu0 %v12578_v0  ;;  %v12617_v0 = vld [vmem:[#allocation9 + $0x284] ss:$16 sps:$4 sm:$0xff]  }
 0x292   :  { %v15325_v1 = vmax.f32 %v1748_v17, %v1749_v54  ;;  %v12005_v35 = vadd.f32 %v1581_v43, %v15305_v12  ;;  %v1583_v41 = vpop.f32.mrb[14].mxu0 }
 0x293   :  { %v1700_v34 = vmax.f32 %v12004_v52, 0.0  ;;  %v12006_v44 = vadd.f32 %v1583_v41, %v15302_v19  ;;  %v1585_v50 = vpop.f32.mrb[15].mxu0  ;;  %v12600_v41 = vld [vmem:[#allocation6 + $0x160] ss:$8 sps:$4 sm:$0xff]  }
 0x294   :  { %v1701_v5 = vmax.f32 %v12005_v35, 0.0  ;;  %v12007_v47 = vadd.f32 %v1585_v50, %v15305_v12  ;;  %3870 = vmatpush1.bf16.msra.mxu0 %v12576_v29  ;;  %v15331_v42 = vpack.c.bf16 %v15325_v1, %v1773_v39  ;;  %v12596_v39 = vld [vmem:[#allocation6 + $0x154] ss:$8 sps:$4 sm:$0xff]  }
 0x295   :  { %v1702_v23 = vmax.f32 %v12006_v44, 0.0  ;;  %3871 = vmatprep.subr.bf16.mxu0 %v12584_v45  ;;  %v12608_v50 = vld [vmem:[#allocation6 + $0x174] ss:$8 sps:$4 sm:$0xff]  }
 0x296   :  { %v1750_v62 = vmax.f32 %v1700_v34, %v1701_v5  ;;  %v1703_v28 = vmax.f32 %v12007_v47, 0.0  ;;  %2868 = vmatprep.mubr.bf16.mxu1 %v15331_v42  ;;  %v12615_v34 = vld [vmem:[#allocation9 + $0x280] ss:$16 sps:$4 sm:$0xff]   ;;  %v12623_v5 = vld [vmem:[#allocation9 + $0x2a4] ss:$16 sps:$4 sm:$0xff]  }
 0x297   :  { %2869 = vmatmul.mubr.bf16.vlgmr.msra.gmra.mrb[0].mxu1 %v15321_v32 }
 0x298   :  { %v1751_v37 = vmax.f32 %v1702_v23, %v1703_v28  ;;  %3872 = vmatpush1.bf16.msra.mxu0 %v12582_v3  ;;  %v1589_v56 = vpop.f32.mrb[16].mxu0  ;;  %2920 = vmatpush1.bf16.msra.mxu1 %v12591_v7 }
 0x299   :  { %v12008_v8 = vadd.f32 %v1589_v56, %v15302_v19  ;;  %v1591_v15 = vpop.f32.mrb[17].mxu0  ;;  %3873 = vmatprep.subr.bf16.mxu0 %v12587_v38  ;;  %2921 = vmatprep.subr.bf16.mxu1 %v12599_v40  ;;  %v12606_v38 = vld [vmem:[#allocation6 + $0x170] ss:$8 sps:$4 sm:$0xff]   ;;  %v12621_v40 = vld [vmem:[#allocation9 + $0x2a0] ss:$16 sps:$4 sm:$0xff]  }
 0x29a   :  { %v1775_v10 = vmax.f32 %v1750_v62, %v1751_v37  ;;  %v12009_v51 = vadd.f32 %v1591_v15, %v15305_v12  ;;  %v1593_v14 = vpop.f32.mrb[18].mxu0  ;;  %v12614_v37 = vld [vmem:[#allocation6 + $0x184] ss:$8 sps:$4 sm:$0xff]   ;;  %v12629_v56 = vld [vmem:[#allocation9 + $0x2c4] ss:$16 sps:$4 sm:$0xff]  }
 0x29b   :  { %v1704_v58 = vmax.f32 %v12008_v8, 0.0  ;;  %v12010_v48 = vadd.f32 %v1593_v14, %v15302_v19  ;;  %v1595_v49 = vpop.f32.mrb[19].mxu0 }
 0x29c   :  { %v1705_v2 = vmax.f32 %v12009_v51, 0.0  ;;  %v12011_v4 = vadd.f32 %v1595_v49, %v15305_v12  ;;  %3874 = vmatpush1.bf16.msra.mxu0 %v12585_v22  ;;  %v15339_v55 = vpack.c.bf16 %v1775_v10, %v1775_v10  ;;  %2922 = vmatpush1.bf16.msra.mxu1 %v12597_v13  ;;  %v15342_v9 = vpack.c.bf16 %v1775_v10, %v15325_v1 }
 0x29d   :  { %v1706_v6 = vmax.f32 %v12010_v48, 0.0  ;;  %3875 = vmatprep.subr.bf16.mxu0 %v12590_v20  ;;  %2923 = vmatprep.subr.bf16.mxu1 %v12605_v25  ;;  %v12627_v48 = vld [vmem:[#allocation9 + $0x2c0] ss:$16 sps:$4 sm:$0xff]  }
 0x29e   :  { %v1752_v63 = vmax.f32 %v1704_v58, %v1705_v2  ;;  %v1707_v31 = vmax.f32 %v12011_v4, 0.0  ;;  %3899 = vmatprep.mubr.bf16.mxu0 %v15339_v55  ;;  %v12612_v58 = vld [vmem:[#allocation6 + $0x180] ss:$8 sps:$4 sm:$0xff]   ;;  %v12620_v2 = vld [vmem:[#allocation6 + $0x194] ss:$8 sps:$4 sm:$0xff]  }
 0x29f   :  { %v12635_v4 = vld [vmem:[#allocation9 + $0x2e4] ss:$16 sps:$4 sm:$0xff]  }
 0x2a0   :  { %v1753_v30 = vmax.f32 %v1706_v6, %v1707_v31  ;;  %3876 = vmatpush1.bf16.msra.mxu0 %v12588_v18  ;;  %v1599_v11 = vpop.f32.mrb[20].mxu0  ;;  %2924 = vmatpush1.bf16.msra.mxu1 %v12603_v46 }
 0x2a1   :  { %v12012_v16 = vadd.f32 %v1599_v11, %v15302_v19  ;;  %v1601_v57 = vpop.f32.mrb[21].mxu0  ;;  %3877 = vmatprep.subr.bf16.mxu0 %v12596_v39  ;;  %2925 = vmatprep.subr.bf16.mxu1 %v12611_v61  ;;  %v12618_v61 = vld [vmem:[#allocation6 + $0x190] ss:$8 sps:$4 sm:$0xff]   ;;  %v12626_v11 = vld [vmem:[#allocation6 + $0x1a4] ss:$8 sps:$4 sm:$0xff]  }
 0x2a2   :  { %v15346_v17 = vmax.f32 %v1752_v63, %v1753_v30  ;;  %v12013_v26 = vadd.f32 %v1601_v57, %v15305_v12  ;;  %v1603_v54 = vpop.f32.mrb[22].mxu0  ;;  %v12633_v63 = vld [vmem:[#allocation9 + $0x2e0] ss:$16 sps:$4 sm:$0xff]  }
 0x2a3   :  { %v1708_v24 = vmax.f32 %v12012_v16, 0.0  ;;  %v12014_v29 = vadd.f32 %v1603_v54, %v15302_v19  ;;  %v1605_v52 = vpop.f32.mrb[23].mxu0 }
 0x2a4   :  { %v1709_v43 = vmax.f32 %v12013_v26, 0.0  ;;  %v12015_v45 = vadd.f32 %v1605_v52, %v15305_v12  ;;  %3878 = vmatpush1.bf16.msra.mxu0 %v12594_v59  ;;  %v15352_v35 = vpack.c.bf16 %v15346_v17, %v1775_v10  ;;  %2926 = vmatpush1.bf16.msra.mxu1 %v12609_v60  ;;  %v12641_v59 = vld [vmem:[#allocation9 + $0x304] ss:$16 sps:$4 sm:$0xff]  }
 0x2a5   :  { %v1710_v44 = vmax.f32 %v12014_v29, 0.0  ;;  %3879 = vmatprep.subr.bf16.mxu0 %v12602_v21  ;;  %2927 = vmatprep.subr.bf16.mxu1 %v12617_v0  ;;  %v12624_v52 = vld [vmem:[#allocation6 + $0x1a0] ss:$8 sps:$4 sm:$0xff]  }
 0x2a6   :  { %v1754_v47 = vmax.f32 %v1708_v24, %v1709_v43  ;;  %v1711_v3 = vmax.f32 %v12015_v45, 0.0  ;;  %2878 = vmatprep.mubr.bf16.mxu1 %v15352_v35  ;;  %v12639_v43 = vld [vmem:[#allocation9 + $0x300] ss:$16 sps:$4 sm:$0xff]  }
 0x2a7   :  { %2879 = vmatmul.mubr.bf16.gmra.mrb[4].mxu1 %v15342_v9 }
 0x2a8   :  { %v1755_v7 = vmax.f32 %v1710_v44, %v1711_v3  ;;  %3880 = vmatpush1.bf16.msra.mxu0 %v12600_v41  ;;  %v1609_v23 = vpop.f32.mrb[24].mxu0  ;;  %2928 = vmatpush1.bf16.msra.mxu1 %v12615_v34  ;;  %v12632_v41 = vld [vmem:[#allocation6 + $0x1b4] ss:$8 sps:$4 sm:$0xff]   ;;  %v12647_v34 = vld [vmem:[#allocation9 + $0x324] ss:$16 sps:$4 sm:$0xff]  }
 0x2a9   :  { %v12016_v62 = vadd.f32 %v1609_v23, %v15302_v19  ;;  %v1611_v28 = vpop.f32.mrb[25].mxu0  ;;  %3881 = vmatprep.subr.bf16.mxu0 %v12608_v50  ;;  %2929 = vmatprep.subr.bf16.mxu1 %v12623_v5  ;;  %v12630_v3 = vld [vmem:[#allocation6 + $0x1b0] ss:$8 sps:$4 sm:$0xff]  }
 0x2aa   :  { %v15357_v22 = vmax.f32 %v1754_v47, %v1755_v7  ;;  %v12017_v13 = vadd.f32 %v1611_v28, %v15305_v12  ;;  %v1613_v8 = vpop.f32.mrb[26].mxu0  ;;  %v12645_v7 = vld [vmem:[#allocation9 + $0x320] ss:$16 sps:$4 sm:$0xff]  }
 0x2ab   :  { %v1712_v15 = vmax.f32 %v12016_v62, 0.0  ;;  %v12018_v20 = vadd.f32 %v1613_v8, %v15302_v19  ;;  %v1615_v25 = vpop.f32.mrb[27].mxu0  ;;  %v12653_v62 = vld [vmem:[#allocation9 + $0x344] ss:$16 sps:$4 sm:$0xff]  }
 0x2ac   :  { %v15363_v10 = vpack.c.bf16 %v15357_v22, %v15346_v17  ;;  %v1713_v51 = vmax.f32 %v12017_v13, 0.0  ;;  %v12019_v14 = vadd.f32 %v1615_v25, %v15305_v12  ;;  %3882 = vmatpush1.bf16.msra.mxu0 %v12606_v38  ;;  %2930 = vmatpush1.bf16.msra.mxu1 %v12621_v40  ;;  %v12638_v40 = vld [vmem:[#allocation6 + $0x1c4] ss:$8 sps:$4 sm:$0xff]  }
 0x2ad   :  { %v1714_v49 = vmax.f32 %v12018_v20, 0.0  ;;  %3883 = vmatprep.subr.bf16.mxu0 %v12614_v37  ;;  %2931 = vmatprep.subr.bf16.mxu1 %v12629_v56 }
 0x2ae   :  { %v1756_v18 = vmax.f32 %v1712_v15, %v1713_v51  ;;  %v1715_v46 = vmax.f32 %v12019_v14, 0.0  ;;  %v12636_v14 = vld [vmem:[#allocation6 + $0x1c0] ss:$8 sps:$4 sm:$0xff]  }
 0x2b0   :  { %v1757_v6 = vmax.f32 %v1714_v49, %v1715_v46  ;;  %3884 = vmatpush1.bf16.msra.mxu0 %v12612_v58  ;;  %v1619_v39 = vpop.f32.mrb[28].mxu0  ;;  %2932 = vmatpush1.bf16.msra.mxu1 %v12627_v48  ;;  %v12651_v58 = vld [vmem:[#allocation9 + $0x340] ss:$16 sps:$4 sm:$0xff]  }
 0x2b1   :  { %v12020_v31 = vadd.f32 %v1619_v39, %v15302_v19  ;;  %v1621_v30 = vpop.f32.mrb[29].mxu0  ;;  %3885 = vmatprep.subr.bf16.mxu0 %v12620_v2  ;;  %2933 = vmatprep.subr.bf16.mxu1 %v12635_v4  ;;  %v12644_v49 = vld [vmem:[#allocation6 + $0x1d4] ss:$8 sps:$4 sm:$0xff]   ;;  %v12659_v2 = vld [vmem:[#allocation9 + $0x364] ss:$16 sps:$4 sm:$0xff]  }
 0x2b2   :  { %v15367_v60 = vmax.f32 %v1756_v18, %v1757_v6  ;;  %v12021_v16 = vadd.f32 %v1621_v30, %v15305_v12  ;;  %v1623_v57 = vpop.f32.mrb[30].mxu0  ;;  %v12642_v39 = vld [vmem:[#allocation6 + $0x1d0] ss:$8 sps:$4 sm:$0xff]   ;;  %v12650_v30 = vld [vmem:[#allocation6 + $0x1e4] ss:$8 sps:$4 sm:$0xff]  }
 0x2b3   :  { %v1716_v21 = vmax.f32 %v12020_v31, 0.0  ;;  %v12022_v0 = vadd.f32 %v1623_v57, %v15302_v19  ;;  %v1625_v26 = vpop.f32.mrb[31].mxu0 }
 0x2b4   :  { %v1717_v54 = vmax.f32 %v12021_v16, 0.0  ;;  %v12023_v24 = vadd.f32 %v1625_v26, %v15305_v12  ;;  %3886 = vmatpush1.bf16.msra.mxu0 %v12618_v61  ;;  %v15374_v29 = vpack.c.bf16 %v15367_v60, %v15357_v22  ;;  %2934 = vmatpush1.bf16.msra.mxu1 %v12633_v63  ;;  %v12657_v61 = vld [vmem:[#allocation9 + $0x360] ss:$16 sps:$4 sm:$0xff]  }
 0x2b5   :  { %v1718_v45 = vmax.f32 %v12022_v0, 0.0  ;;  %3887 = vmatprep.subr.bf16.mxu0 %v12626_v11  ;;  %2935 = vmatprep.subr.bf16.mxu1 %v12641_v59  ;;  %v12665_v11 = vld [vmem:[#allocation9 + $0x384] ss:$16 sps:$4 sm:$0xff]  }
 0x2b6   :  { %v1758_v44 = vmax.f32 %v1716_v21, %v1717_v54  ;;  %v1719_v50 = vmax.f32 %v12023_v24, 0.0  ;;  %2888 = vmatprep.mubr.bf16.mxu1 %v15374_v29 }
 0x2b7   :  { %2889 = vmatmul.mubr.bf16.gmra.mrb[8].mxu1 %v15363_v10 }
 0x2b8   :  { %v1759_v5 = vmax.f32 %v1718_v45, %v1719_v50  ;;  %3888 = vmatpush1.bf16.msra.mxu0 %v12624_v52  ;;  %v1629_v47 = vpop.f32.mrb[32].mxu0  ;;  %2936 = vmatpush1.bf16.msra.mxu1 %v12639_v43  ;;  %v12648_v43 = vld [vmem:[#allocation6 + $0x1e0] ss:$8 sps:$4 sm:$0xff]   ;;  %v12663_v45 = vld [vmem:[#allocation9 + $0x380] ss:$16 sps:$4 sm:$0xff]  }
 0x2b9   :  { %v12024_v23 = vadd.f32 %v1629_v47, %v15302_v19  ;;  %v1631_v38 = vpop.f32.mrb[33].mxu0  ;;  %3889 = vmatprep.subr.bf16.mxu0 %v12632_v41  ;;  %2937 = vmatprep.subr.bf16.mxu1 %v12647_v34  ;;  %v12656_v34 = vld [vmem:[#allocation6 + $0x1f4] ss:$8 sps:$4 sm:$0xff]  }
 0x2ba   :  { %v15379_v28 = vmax.f32 %v1758_v44, %v1759_v5  ;;  %v12025_v37 = vadd.f32 %v1631_v38, %v15305_v12  ;;  %v1633_v56 = vpop.f32.mrb[34].mxu0  ;;  %v12671_v44 = vld [vmem:[#allocation9 + $0x3a4] ss:$16 sps:$4 sm:$0xff]  }
 0x2bb   :  { %v1720_v13 = vmax.f32 %v12024_v23, 0.0  ;;  %v12026_v8 = vadd.f32 %v1633_v56, %v15302_v19  ;;  %v1635_v15 = vpop.f32.mrb[35].mxu0  ;;  %v12669_v23 = vld [vmem:[#allocation9 + $0x3a0] ss:$16 sps:$4 sm:$0xff]  }
 0x2bc   :  { %v15385_v20 = vpack.c.bf16 %v15379_v28, %v15367_v60  ;;  %v1721_v25 = vmax.f32 %v12025_v37, 0.0  ;;  %v12027_v51 = vadd.f32 %v1635_v15, %v15305_v12  ;;  %3890 = vmatpush1.bf16.msra.mxu0 %v12630_v3  ;;  %2938 = vmatpush1.bf16.msra.mxu1 %v12645_v7  ;;  %v12654_v7 = vld [vmem:[#allocation6 + $0x1f0] ss:$8 sps:$4 sm:$0xff]  }
 0x2bd   :  { %v1722_v48 = vmax.f32 %v12026_v8, 0.0  ;;  %3891 = vmatprep.subr.bf16.mxu0 %v12638_v40  ;;  %2939 = vmatprep.subr.bf16.mxu1 %v12653_v62  ;;  %v12662_v62 = vld [vmem:[#allocation6 + $0x204] ss:$8 sps:$4 sm:$0xff]   ;;  %v12677_v37 = vld [vmem:[#allocation9 + $0x3c4] ss:$16 sps:$4 sm:$0xff]  }
 0x2be   :  { %v1760_v4 = vmax.f32 %v1720_v13, %v1721_v25  ;;  %v1723_v18 = vmax.f32 %v12027_v51, 0.0 }
 0x2c0   :  { %v1761_v46 = vmax.f32 %v1722_v48, %v1723_v18  ;;  %3892 = vmatpush1.bf16.msra.mxu0 %v12636_v14  ;;  %v1639_v6 = vpop.f32.mrb[36].mxu0  ;;  %2940 = vmatpush1.bf16.msra.mxu1 %v12651_v58  ;;  %v15412_v18 = vpack.c.bf16 %v15325_v1, %v15325_v1  ;;  %v12674_v1 = vld [vmem:[#allocation6 + $0x224] ss:$8 sps:$4 sm:$0xff]  }
 0x2c1   :  { %v12028_v63 = vadd.f32 %v1639_v6, %v15302_v19  ;;  %v1641_v31 = vpop.f32.mrb[37].mxu0  ;;  %3893 = vmatprep.subr.bf16.mxu0 %v12644_v49  ;;  %2941 = vmatprep.subr.bf16.mxu1 %v12659_v2  ;;  %v12660_v49 = vld [vmem:[#allocation6 + $0x200] ss:$8 sps:$4 sm:$0xff]   ;;  %v12675_v2 = vld [vmem:[#allocation9 + $0x3c0] ss:$16 sps:$4 sm:$0xff]  }
 0x2c2   :  { %v15389_v59 = vmax.f32 %v1760_v4, %v1761_v46  ;;  %v12029_v16 = vadd.f32 %v1641_v31, %v15305_v12  ;;  %v1643_v57 = vpop.f32.mrb[38].mxu0  ;;  %v12668_v46 = vld [vmem:[#allocation6 + $0x214] ss:$8 sps:$4 sm:$0xff]   ;;  %v12683_v6 = vld [vmem:[#allocation9 + $0x3e4] ss:$16 sps:$4 sm:$0xff]  }
 0x2c3   :  { %v1724_v21 = vmax.f32 %v12028_v63, 0.0  ;;  %v12030_v0 = vadd.f32 %v1643_v57, %v15302_v19  ;;  %v1645_v26 = vpop.f32.mrb[39].mxu0 }
 0x2c4   :  { %v1725_v54 = vmax.f32 %v12029_v16, 0.0  ;;  %v12031_v24 = vadd.f32 %v1645_v26, %v15305_v12  ;;  %3894 = vmatpush1.bf16.msra.mxu0 %v12642_v39  ;;  %v15396_v52 = vpack.c.bf16 %v15389_v59, %v15379_v28  ;;  %2942 = vmatpush1.bf16.msra.mxu1 %v12657_v61 }
 0x2c5   :  { %v1726_v41 = vmax.f32 %v12030_v0, 0.0  ;;  %3895 = vmatprep.subr.bf16.mxu0 %v12650_v30  ;;  %2943 = vmatprep.subr.bf16.mxu1 %v12665_v11  ;;  %v12666_v30 = vld [vmem:[#allocation6 + $0x210] ss:$8 sps:$4 sm:$0xff]   ;;  %v12681_v11 = vld [vmem:[#allocation9 + $0x3e0] ss:$16 sps:$4 sm:$0xff]  }
 0x2c6   :  { %v1762_v50 = vmax.f32 %v1724_v21, %v1725_v54  ;;  %v1727_v5 = vmax.f32 %v12031_v24, 0.0  ;;  %2898 = vmatprep.mubr.bf16.mxu1 %v15396_v52  ;;  %v12689_v21 = vld [vmem:[#allocation9 + $0x404] ss:$16 sps:$4 sm:$0xff]   ;;  %v16150_v24 = vmov 0  }
 0x2c7   :  { %2899 = vmatmul.mubr.bf16.gmra.mrb[12].mxu1 %v15385_v20 }
 0x2c8   :  { %v1763_v47 = vmax.f32 %v1726_v41, %v1727_v5  ;;  %3896 = vmatpush1.bf16.msra.mxu0 %v12648_v43  ;;  %v1649_v3 = vpop.f32.mrb[40].mxu0  ;;  %2944 = vmatpush1.bf16.msra.mxu1 %v12663_v45  ;;  %v12672_v5 = vld [vmem:[#allocation6 + $0x220] ss:$8 sps:$4 sm:$0xff]  }
 0x2c9   :  { %v12032_v38 = vadd.f32 %v1649_v3, %v15302_v19  ;;  %v1651_v40 = vpop.f32.mrb[41].mxu0  ;;  %3897 = vmatprep.subr.bf16.mxu0 %v12656_v34  ;;  %2945 = vmatprep.subr.bf16.mxu1 %v12671_v44  ;;  %v12680_v3 = vld [vmem:[#allocation6 + $0x234] ss:$8 sps:$4 sm:$0xff]  }
 0x2ca   :  { %v15401_v56 = vmax.f32 %v1762_v50, %v1763_v47  ;;  %v12033_v13 = vadd.f32 %v1651_v40, %v15305_v12  ;;  %v1653_v8 = vpop.f32.mrb[42].mxu0 }
 0x2cb   :  { %v1728_v15 = vmax.f32 %v12032_v38, 0.0  ;;  %v12034_v25 = vadd.f32 %v1653_v8, %v15302_v19  ;;  %v1655_v51 = vpop.f32.mrb[43].mxu0  ;;  %v12686_v8 = vld [vmem:[#allocation6 + $0x244] ss:$8 sps:$4 sm:$0xff]  }
 0x2cc   :  { %v15407_v14 = vpack.c.bf16 %v15401_v56, %v15389_v59  ;;  %v1729_v58 = vmax.f32 %v12033_v13, 0.0  ;;  %v12035_v48 = vadd.f32 %v1655_v51, %v15305_v12  ;;  %3898 = vmatpush1.bf16.msra.mxu0 %v12654_v7  ;;  %2946 = vmatpush1.bf16.msra.mxu1 %v12669_v23 }
 0x2cd   :  { %v1730_v4 = vmax.f32 %v12034_v25, 0.0  ;;  %3908 = vmatprep.subr.bf16.mxu0 %v12662_v62  ;;  %2947 = vmatprep.subr.bf16.mxu1 %v12677_v37  ;;  %v12678_v62 = vld [vmem:[#allocation6 + $0x230] ss:$8 sps:$4 sm:$0xff]  }
 0x2ce   :  { %v1764_v39 = vmax.f32 %v1728_v15, %v1729_v58  ;;  %v1731_v61 = vmax.f32 %v12035_v48, 0.0 }
 0x2cf   :  { %3900 = vmatmul.mubr.bf16.vlgmr.msra.gmra.mrb[56].mxu0 %v15412_v18 }
 0x2d0   :  { %v1765_v63 = vmax.f32 %v1730_v4, %v1731_v61  ;;  %3909 = vmatpush1.bf16.msra.mxu0 %v12660_v49  ;;  %v1659_v31 = vpop.f32.mrb[44].mxu0  ;;  %2948 = vmatpush1.bf16.msra.mxu1 %v12675_v2  ;;  %v12687_v61 = vld [vmem:[#allocation9 + $0x400] ss:$16 sps:$4 sm:$0xff]  }
 0x2d1   :  { %v12036_v16 = vadd.f32 %v1659_v31, %v15302_v19  ;;  %v1661_v57 = vpop.f32.mrb[45].mxu0  ;;  %3910 = vmatprep.subr.bf16.mxu0 %v12668_v46  ;;  %2949 = vmatprep.subr.bf16.mxu1 %v12683_v6  ;;  %v12684_v46 = vld [vmem:[#allocation6 + $0x240] ss:$8 sps:$4 sm:$0xff]  }
 0x2d2   :  { %v15416_v0 = vmax.f32 %v1764_v39, %v1765_v63  ;;  %v12037_v26 = vadd.f32 %v1661_v57, %v15305_v12  ;;  %v1663_v54 = vpop.f32.mrb[46].mxu0  ;;  %3940 = vmatprep.mubr.bf16.mxu0 %v16150_v24  ;;  %v12692_v63 = vld [vmem:[#allocation6 + $0x254] ss:$8 sps:$4 sm:$0xff]  }
 0x2d3   :  { %v1732_v43 = vmax.f32 %v12036_v16, 0.0  ;;  %v12038_v45 = vadd.f32 %v1663_v54, %v15302_v19  ;;  %v1665_v41 = vpop.f32.mrb[47].mxu0  ;;  %v12693_v54 = vld [vmem:[#allocation9 + $0x420] ss:$16 sps:$4 sm:$0xff]  }
 0x2d4   :  { %v1733_v34 = vmax.f32 %v12037_v26, 0.0  ;;  %v12039_v44 = vadd.f32 %v1665_v41, %v15305_v12  ;;  %3911 = vmatpush1.bf16.msra.mxu0 %v12666_v30  ;;  %v15424_v50 = vpack.c.bf16 %v15416_v0, %v15401_v56  ;;  %2950 = vmatpush1.bf16.msra.mxu1 %v12681_v11  ;;  %v12695_v11 = vld [vmem:[#allocation9 + $0x424] ss:$16 sps:$4 sm:$0xff]  }
 0x2d5   :  { %v1734_v47 = vmax.f32 %v12038_v45, 0.0  ;;  %3912 = vmatprep.subr.bf16.mxu0 %v12674_v1  ;;  %3002 = vmatprep.subr.bf16.mxu1 %v12689_v21  ;;  %v12690_v1 = vld [vmem:[#allocation6 + $0x250] ss:$8 sps:$4 sm:$0xff]  }
 0x2d6   :  { %v1766_v7 = vmax.f32 %v1732_v43, %v1733_v34  ;;  %v1735_v23 = vmax.f32 %v12039_v44, 0.0  ;;  %2908 = vmatprep.mubr.bf16.mxu1 %v15424_v50  ;;  %v12698_v43 = vld [vmem:[#allocation6 + $0x264] ss:$8 sps:$4 sm:$0xff]   ;;  %v12701_v44 = vld [vmem:[#allocation9 + $0x444] ss:$16 sps:$4 sm:$0xff]  }
 0x2d7   :  { %2909 = vmatmul.mubr.bf16.gmra.mrb[16].mxu1 %v15407_v14 }
 0x2d8   :  { %v1767_v38 = vmax.f32 %v1734_v47, %v1735_v23  ;;  %3913 = vmatpush1.bf16.msra.mxu0 %v12672_v5  ;;  %v1669_v40 = vpop.f32.mrb[48].mxu0  ;;  %2951 = vmatprep.mubr.bf16.mxu1 %v15352_v35 }
 0x2d9   :  { %v12040_v37 = vadd.f32 %v1669_v40, %v15302_v19  ;;  %v1671_v13 = vpop.f32.mrb[49].mxu0  ;;  %3914 = vmatprep.subr.bf16.mxu0 %v12680_v3 }
 0x2da   :  { %v15430_v15 = vmax.f32 %v1766_v7, %v1767_v38  ;;  %v12041_v25 = vadd.f32 %v1671_v13, %v15305_v12  ;;  %v1673_v51 = vpop.f32.mrb[50].mxu0  ;;  %v12696_v38 = vld [vmem:[#allocation6 + $0x260] ss:$8 sps:$4 sm:$0xff]   ;;  %v12704_v13 = vld [vmem:[#allocation6 + $0x274] ss:$8 sps:$4 sm:$0xff]  }
 0x2db   :  { %v1736_v58 = vmax.f32 %v12040_v37, 0.0  ;;  %v12042_v48 = vadd.f32 %v1673_v51, %v15302_v19  ;;  %v1675_v49 = vpop.f32.mrb[51].mxu0  ;;  %v12699_v37 = vld [vmem:[#allocation9 + $0x440] ss:$16 sps:$4 sm:$0xff]   ;;  %v12707_v51 = vld [vmem:[#allocation9 + $0x464] ss:$16 sps:$4 sm:$0xff]  }
 0x2dc   :  { %v1737_v2 = vmax.f32 %v12041_v25, 0.0  ;;  %v12043_v4 = vadd.f32 %v1675_v49, %v15305_v12  ;;  %3915 = vmatpush1.bf16.msra.mxu0 %v12678_v62  ;;  %v15437_v6 = vpack.c.bf16 %v15430_v15, %v15416_v0 }
 0x2dd   :  { %v1738_v39 = vmax.f32 %v12042_v48, 0.0  ;;  %3916 = vmatprep.subr.bf16.mxu0 %v12686_v8  ;;  %v12710_v48 = vld [vmem:[#allocation6 + $0x504] ss:$8 sps:$4 sm:$0xff]  }
 0x2de   :  { %v1768_v31 = vmax.f32 %v1736_v58, %v1737_v2  ;;  %v1739_v30 = vmax.f32 %v12043_v4, 0.0  ;;  %v12705_v58 = vld [vmem:[#allocation9 + $0x460] ss:$16 sps:$4 sm:$0xff]   ;;  %v12716_v2 = vld [vmem:[#allocation9 + $0x484] ss:$16 sps:$4 sm:$0xff]  }
 0x2df   :  { %2952 = vmatmul.mubr.bf16.vlgmr.msra.gmra.mrb[0].mxu1 %v15342_v9  ;;  %v12708_v4 = vld [vmem:[#allocation6 + $0x500] ss:$8 sps:$4 sm:$0xff]  }
 0x2e0   :  { %v1769_v16 = vmax.f32 %v1738_v39, %v1739_v30  ;;  %3917 = vmatpush1.bf16.msra.mxu0 %v12684_v46  ;;  %v1679_v57 = vpop.f32.mrb[52].mxu0  ;;  %2961 = vmatprep.mubr.bf16.mxu1 %v15374_v29  ;;  %v15461_v39 = vpack.c.bf16 %v15346_v17, %v15346_v17  ;;  %v12711_v30 = vld [vmem:[#allocation6 + $0x510] ss:$8 sps:$4 sm:$0xff]   ;;  %v12720_v17 = vld [vmem:[#allocation9 + $0x4a0] ss:$16 sps:$4 sm:$0xff]  }
 0x2e1   :  { %v12044_v21 = vadd.f32 %v1679_v57, %v15302_v19  ;;  %3003 = vmatpush1.bf16.msra.mxu1 %v12687_v61  ;;  %v1681_v26 = vpop.f32.mrb[53].mxu0  ;;  %3918 = vmatprep.subr.bf16.mxu0 %v12692_v63  ;;  %v12713_v61 = vld [vmem:[#allocation6 + $0x514] ss:$8 sps:$4 sm:$0xff]   ;;  %v12717_v57 = vld [vmem:[#allocation6 + $0x520] ss:$8 sps:$4 sm:$0xff]  }
 0x2e2   :  { %v15442_v45 = vmax.f32 %v1768_v31, %v1769_v16  ;;  %v12045_v41 = vadd.f32 %v1681_v26, %v15305_v12  ;;  %v1683_v34 = vpop.f32.mrb[54].mxu0  ;;  %3004 = vmatprep.subr.bf16.mxu1 %v12695_v11  ;;  %v12714_v63 = vld [vmem:[#allocation9 + $0x480] ss:$16 sps:$4 sm:$0xff]   ;;  %v12722_v31 = vld [vmem:[#allocation9 + $0x4a4] ss:$16 sps:$4 sm:$0xff]  }
 0x2e3   :  { %v1740_v5 = vmax.f32 %v12044_v21, 0.0  ;;  %v12046_v47 = vadd.f32 %v1683_v34, %v15302_v19  ;;  %v1685_v3 = vpop.f32.mrb[55].mxu0  ;;  %v12719_v11 = vld [vmem:[#allocation6 + $0x524] ss:$8 sps:$4 sm:$0xff]   ;;  %v12728_v16 = vld [vmem:[#allocation9 + $0x4c4] ss:$16 sps:$4 sm:$0xff]  }
 0x2e4   :  { %v1741_v7 = vmax.f32 %v12045_v41, 0.0  ;;  %v12047_v23 = vadd.f32 %v1685_v3, %v15305_v12  ;;  %3919 = vmatpush1.bf16.msra.mxu0 %v12690_v1  ;;  %v15449_v40 = vpack.c.bf16 %v15442_v45, %v15430_v15  ;;  %v12702_v12 = vld [vmem:[#allocation6 + $0x270] ss:$8 sps:$4 sm:$0xff]   ;;  %v12725_v1 = vld [vmem:[#allocation6 + $0x534] ss:$8 sps:$4 sm:$0xff]  }
 0x2e5   :  { %v1742_v62 = vmax.f32 %v12046_v47, 0.0  ;;  %3005 = vmatpush1.bf16.msra.mxu1 %v12693_v54  ;;  %3920 = vmatprep.subr.bf16.mxu0 %v12698_v43  ;;  %v12726_v21 = vld [vmem:[#allocation9 + $0x4c0] ss:$16 sps:$4 sm:$0xff]   ;;  %v12734_v26 = vld [vmem:[#allocation9 + $0x4e4] ss:$16 sps:$4 sm:$0xff]  }
 0x2e6   :  { %v1770_v8 = vmax.f32 %v1740_v5, %v1741_v7  ;;  %v1743_v25 = vmax.f32 %v12047_v23, 0.0  ;;  %3006 = vmatprep.subr.bf16.mxu1 %v12701_v44  ;;  %v12723_v54 = vld [vmem:[#allocation6 + $0x530] ss:$8 sps:$4 sm:$0xff]   ;;  %v12731_v43 = vld [vmem:[#allocation6 + $0x544] ss:$8 sps:$4 sm:$0xff]  }
 0x2e7   :  { %2962 = vmatmul.mubr.bf16.gmra.mrb[4].mxu1 %v15363_v10  ;;  %v12732_v41 = vld [vmem:[#allocation9 + $0x4e0] ss:$16 sps:$4 sm:$0xff]   ;;  %v12740_v34 = vld [vmem:[#allocation9 + $0xc] ss:$16 sps:$4 sm:$0xff]   ;;  %v12738_v7 = vld [vmem:[#allocation9 + $0x8] ss:$16 sps:$4 sm:$0xff]  }
 0x2e8   :  { %v1771_v19 = vmax.f32 %v1742_v62, %v1743_v25  ;;  %3921 = vmatpush1.bf16.msra.mxu0 %v12696_v38  ;;  %2971 = vmatprep.mubr.bf16.mxu1 %v15396_v52  ;;  %v12729_v44 = vld [vmem:[#allocation6 + $0x540] ss:$8 sps:$4 sm:$0xff]   ;;  %v12737_v5 = vld [vmem:[#allocation6 + $0x554] ss:$8 sps:$4 sm:$0xff]   ;;  %v12735_v47 = vld [vmem:[#allocation6 + $0x550] ss:$8 sps:$4 sm:$0xff]  }
 0x2e9   :  { %3007 = vmatpush1.bf16.msra.mxu1 %v12699_v37  ;;  %3922 = vmatprep.subr.bf16.mxu0 %v12704_v13  ;;  %v12743_v3 = vld [vmem:[#allocation6 + $0x564] ss:$8 sps:$4 sm:$0xff]   ;;  %v12741_v23 = vld [vmem:[#allocation6 + $0x560] ss:$8 sps:$4 sm:$0xff]   ;;  %v12749_v62 = vld [vmem:[#allocation6 + $0x574] ss:$8 sps:$4 sm:$0xff]  }
 0x2ea   :  { %v15453_v49 = vmax.f32 %v1770_v8, %v1771_v19  ;;  %3008 = vmatprep.subr.bf16.mxu1 %v12707_v51  ;;  %v12746_v38 = vld [vmem:[#allocation9 + $0x2c] ss:$16 sps:$4 sm:$0xff]   ;;  %v12744_v37 = vld [vmem:[#allocation9 + $0x28] ss:$16 sps:$4 sm:$0xff]  }
 0x2eb   :  { %v12747_v13 = vld [vmem:[#allocation6 + $0x570] ss:$8 sps:$4 sm:$0xff]   ;;  %v12755_v25 = vld [vmem:[#allocation6 + $0x584] ss:$8 sps:$4 sm:$0xff]   ;;  %v12753_v19 = vld [vmem:[#allocation6 + $0x580] ss:$8 sps:$4 sm:$0xff]  }
 0x2ec   :  { %3923 = vmatpush1.bf16.msra.mxu0 %v12702_v12  ;;  %v15457_v46 = vpack.c.bf16 %v15453_v49, %v15442_v45  ;;  %v12752_v8 = vld [vmem:[#allocation9 + $0x4c] ss:$16 sps:$4 sm:$0xff]   ;;  %v12750_v51 = vld [vmem:[#allocation9 + $0x48] ss:$16 sps:$4 sm:$0xff]  }
 0x2ed   :  { %5124 = vmatprep.subr.bf16.mxu0 %v12710_v48  ;;  %3009 = vmatpush1.bf16.msra.mxu1 %v12705_v58  ;;  %v12758_v12 = vld [vmem:[#allocation9 + $0x6c] ss:$16 sps:$4 sm:$0xff]   ;;  %v12761_v58 = vld [vmem:[#allocation6 + $0x594] ss:$8 sps:$4 sm:$0xff]  }
 0x2ee   :  { %3010 = vmatprep.subr.bf16.mxu1 %v12716_v2  ;;  %v12756_v48 = vld [vmem:[#allocation9 + $0x68] ss:$16 sps:$4 sm:$0xff]   ;;  %v12759_v2 = vld [vmem:[#allocation6 + $0x590] ss:$8 sps:$4 sm:$0xff]  }
 0x2ef   :  { %3941 = vmatmul.mubr.bf16.vlgmr.msra.gmra.mrb[56].mxu0 %v15461_v39  ;;  %2972 = vmatmul.mubr.bf16.gmra.mrb[8].mxu1 %v15385_v20 }
 0x2f0   :  { %5125 = vmatpush1.bf16.msra.mxu0 %v12708_v4  ;;  %5156 = vmatprep.mubr.bf16.mxu0 %v15339_v55  ;;  %v12764_v4 = vld [vmem:[#allocation9 + $0x8c] ss:$16 sps:$4 sm:$0xff]  }
 0x2f1   :  { %2981 = vmatprep.mubr.bf16.mxu1 %v15424_v50  ;;  %5126 = vmatprep.subr.bf16.mxu0 %v12713_v61  ;;  %v12767_v61 = vld [vmem:[#allocation6 + $0x5a4] ss:$8 sps:$4 sm:$0xff]  }
 0x2f2   :  { %3011 = vmatpush1.bf16.msra.mxu1 %v12714_v63  ;;  %v12762_v63 = vld [vmem:[#allocation9 + $0x88] ss:$16 sps:$4 sm:$0xff]  }
 0x2f3   :  { %3012 = vmatprep.subr.bf16.mxu1 %v12722_v31  ;;  %v12765_v31 = vld [vmem:[#allocation6 + $0x5a0] ss:$8 sps:$4 sm:$0xff]  }
 0x2f4   :  { %5127 = vmatpush1.bf16.msra.mxu0 %v12711_v30  ;;  %v12770_v30 = vld [vmem:[#allocation9 + $0xac] ss:$16 sps:$4 sm:$0xff]  }
 0x2f5   :  { %5128 = vmatprep.subr.bf16.mxu0 %v12719_v11  ;;  %v12773_v11 = vld [vmem:[#allocation6 + $0x5b4] ss:$8 sps:$4 sm:$0xff]  }
 0x2f6   :  { %3013 = vmatpush1.bf16.msra.mxu1 %v12720_v17  ;;  %v12768_v17 = vld [vmem:[#allocation9 + $0xa8] ss:$16 sps:$4 sm:$0xff]  }
 0x2f7   :  { %2982 = vmatmul.mubr.bf16.gmra.mrb[12].mxu1 %v15407_v14  ;;  %3014 = vmatprep.subr.bf16.mxu1 %v12728_v16  ;;  %v12771_v16 = vld [vmem:[#allocation6 + $0x5b0] ss:$8 sps:$4 sm:$0xff]  }
 0x2f8   :  { %5129 = vmatpush1.bf16.msra.mxu0 %v12717_v57  ;;  %2991 = vmatprep.mubr.bf16.mxu1 %v15449_v40  ;;  %v12776_v57 = vld [vmem:[#allocation9 + $0xcc] ss:$16 sps:$4 sm:$0xff]  }
 0x2f9   :  { %5130 = vmatprep.subr.bf16.mxu0 %v12725_v1  ;;  %v12779_v1 = vld [vmem:[#allocation6 + $0x5c4] ss:$8 sps:$4 sm:$0xff]  }
 0x2fa   :  { %3015 = vmatpush1.bf16.msra.mxu1 %v12726_v21  ;;  %v12774_v21 = vld [vmem:[#allocation9 + $0xc8] ss:$16 sps:$4 sm:$0xff]  }
 0x2fb   :  { %3016 = vmatprep.subr.bf16.mxu1 %v12734_v26  ;;  %v12777_v26 = vld [vmem:[#allocation6 + $0x5c0] ss:$8 sps:$4 sm:$0xff]  }
 0x2fc   :  { %5131 = vmatpush1.bf16.msra.mxu0 %v12723_v54  ;;  %v12782_v54 = vld [vmem:[#allocation9 + $0xec] ss:$16 sps:$4 sm:$0xff]  }
 0x2fd   :  { %5132 = vmatprep.subr.bf16.mxu0 %v12731_v43  ;;  %v12785_v43 = vld [vmem:[#allocation6 + $0x5d4] ss:$8 sps:$4 sm:$0xff]  }
 0x2fe   :  { %3017 = vmatpush1.bf16.msra.mxu1 %v12732_v41  ;;  %v12780_v41 = vld [vmem:[#allocation9 + $0xe8] ss:$16 sps:$4 sm:$0xff]  }
 0x2ff   :  { %2992 = vmatmul.mubr.bf16.gmra.mrb[16].mxu1 %v15437_v6  ;;  %3085 = vmatprep.subr.bf16.mxu1 %v12740_v34  ;;  %v12783_v34 = vld [vmem:[#allocation6 + $0x5d0] ss:$8 sps:$4 sm:$0xff]  }
 0x300   :  { %5133 = vmatpush1.bf16.msra.mxu0 %v12729_v44  ;;  %3034 = vmatprep.mubr.bf16.mxu1 %v16150_v24  ;;  %v12788_v44 = vld [vmem:[#allocation9 + $0x10c] ss:$16 sps:$4 sm:$0xff]  }
 0x301   :  { %5134 = vmatprep.subr.bf16.mxu0 %v12737_v5  ;;  %v12791_v5 = vld [vmem:[#allocation6 + $0x5e4] ss:$8 sps:$4 sm:$0xff]  }
 0x304   :  { %5135 = vmatpush1.bf16.msra.mxu0 %v12735_v47  ;;  %v12786_v47 = vld [vmem:[#allocation9 + $0x108] ss:$16 sps:$4 sm:$0xff]  }
 0x305   :  { %5136 = vmatprep.subr.bf16.mxu0 %v12743_v3  ;;  %v12789_v3 = vld [vmem:[#allocation6 + $0x5e0] ss:$8 sps:$4 sm:$0xff]  }
 0x307   :  { %3035 = vmatmul.mubr.bf16.vlgmr.msra.gmra.mrb[0].mxu1 %v15363_v10 }
 0x308   :  { %3086 = vmatpush1.bf16.msra.mxu1 %v12738_v7  ;;  %5137 = vmatpush1.bf16.msra.mxu0 %v12741_v23  ;;  %v12794_v7 = vld [vmem:[#allocation9 + $0x12c] ss:$16 sps:$4 sm:$0xff]   ;;  %v12797_v23 = vld [vmem:[#allocation6 + $0x5f4] ss:$8 sps:$4 sm:$0xff]  }
 0x309   :  { %3087 = vmatprep.subr.bf16.mxu1 %v12746_v38  ;;  %5138 = vmatprep.subr.bf16.mxu0 %v12749_v62  ;;  %v12792_v38 = vld [vmem:[#allocation9 + $0x128] ss:$16 sps:$4 sm:$0xff]   ;;  %v12795_v62 = vld [vmem:[#allocation6 + $0x5f0] ss:$8 sps:$4 sm:$0xff]  }
 0x30a   :  { %3044 = vmatprep.mubr.bf16.mxu1 %v16150_v24 }
 0x30c   :  { %3088 = vmatpush1.bf16.msra.mxu1 %v12744_v37  ;;  %5139 = vmatpush1.bf16.msra.mxu0 %v12747_v13  ;;  %v12800_v37 = vld [vmem:[#allocation9 + $0x14c] ss:$16 sps:$4 sm:$0xff]   ;;  %v12803_v13 = vld [vmem:[#allocation6 + $0x604] ss:$8 sps:$4 sm:$0xff]  }
 0x30d   :  { %3089 = vmatprep.subr.bf16.mxu1 %v12752_v8  ;;  %5140 = vmatprep.subr.bf16.mxu0 %v12755_v25  ;;  %v12798_v8 = vld [vmem:[#allocation9 + $0x148] ss:$16 sps:$4 sm:$0xff]   ;;  %v12801_v25 = vld [vmem:[#allocation6 + $0x600] ss:$8 sps:$4 sm:$0xff]  }
 0x30f   :  { %3045 = vmatmul.mubr.bf16.gmra.mrb[4].mxu1 %v15385_v20 }
 0x310   :  { %3090 = vmatpush1.bf16.msra.mxu1 %v12750_v51  ;;  %5141 = vmatpush1.bf16.msra.mxu0 %v12753_v19  ;;  %v12806_v51 = vld [vmem:[#allocation9 + $0x16c] ss:$16 sps:$4 sm:$0xff]   ;;  %v12809_v19 = vld [vmem:[#allocation6 + $0x614] ss:$8 sps:$4 sm:$0xff]  }
 0x311   :  { %3091 = vmatprep.subr.bf16.mxu1 %v12758_v12  ;;  %5142 = vmatprep.subr.bf16.mxu0 %v12761_v58  ;;  %v15483_v12 = vpack.c.bf16 %v15357_v22, %v15357_v22  ;;  %v12807_v58 = vld [vmem:[#allocation6 + $0x610] ss:$8 sps:$4 sm:$0xff]  }
 0x312   :  { %3054 = vmatprep.mubr.bf16.mxu1 %v16150_v24  ;;  %v12818_v22 = vld [vmem:[#allocation9 + $0x1ac] ss:$16 sps:$4 sm:$0xff]  }
 0x314   :  { %3092 = vmatpush1.bf16.msra.mxu1 %v12756_v48  ;;  %5143 = vmatpush1.bf16.msra.mxu0 %v12759_v2  ;;  %v12812_v48 = vld [vmem:[#allocation9 + $0x18c] ss:$16 sps:$4 sm:$0xff]   ;;  %v12815_v2 = vld [vmem:[#allocation6 + $0x624] ss:$8 sps:$4 sm:$0xff]  }
 0x315   :  { %3093 = vmatprep.subr.bf16.mxu1 %v12764_v4  ;;  %5144 = vmatprep.subr.bf16.mxu0 %v12767_v61  ;;  %v12810_v4 = vld [vmem:[#allocation9 + $0x188] ss:$16 sps:$4 sm:$0xff]   ;;  %v12813_v61 = vld [vmem:[#allocation6 + $0x620] ss:$8 sps:$4 sm:$0xff]  }
 0x317   :  { %3055 = vmatmul.mubr.bf16.gmra.mrb[8].mxu1 %v15407_v14 }
 0x318   :  { %3094 = vmatpush1.bf16.msra.mxu1 %v12762_v63  ;;  %5145 = vmatpush1.bf16.msra.mxu0 %v12765_v31  ;;  %v12821_v63 = vld [vmem:[#allocation6 + $0x634] ss:$8 sps:$4 sm:$0xff]  }
 0x319   :  { %3095 = vmatprep.subr.bf16.mxu1 %v12770_v30  ;;  %5146 = vmatprep.subr.bf16.mxu0 %v12773_v11  ;;  %v12816_v31 = vld [vmem:[#allocation9 + $0x1a8] ss:$16 sps:$4 sm:$0xff]   ;;  %v12819_v30 = vld [vmem:[#allocation6 + $0x630] ss:$8 sps:$4 sm:$0xff]  }
 0x31a   :  { %3064 = vmatprep.mubr.bf16.mxu1 %v16150_v24  ;;  %v12824_v11 = vld [vmem:[#allocation9 + $0x1cc] ss:$16 sps:$4 sm:$0xff]  }
 0x31c   :  { %3096 = vmatpush1.bf16.msra.mxu1 %v12768_v17  ;;  %5147 = vmatpush1.bf16.msra.mxu0 %v12771_v16  ;;  %v12827_v17 = vld [vmem:[#allocation6 + $0x644] ss:$8 sps:$4 sm:$0xff]  }
 0x31d   :  { %3097 = vmatprep.subr.bf16.mxu1 %v12776_v57  ;;  %5148 = vmatprep.subr.bf16.mxu0 %v12779_v1  ;;  %v12822_v16 = vld [vmem:[#allocation9 + $0x1c8] ss:$16 sps:$4 sm:$0xff]   ;;  %v12825_v57 = vld [vmem:[#allocation6 + $0x640] ss:$8 sps:$4 sm:$0xff]  }
 0x31e   :  { %v12830_v1 = vld [vmem:[#allocation9 + $0x1ec] ss:$16 sps:$4 sm:$0xff]  }
 0x31f   :  { %3065 = vmatmul.mubr.bf16.gmra.mrb[12].mxu1 %v15437_v6 }
 0x320   :  { %3098 = vmatpush1.bf16.msra.mxu1 %v12774_v21  ;;  %5149 = vmatpush1.bf16.msra.mxu0 %v12777_v26  ;;  %v12833_v21 = vld [vmem:[#allocation6 + $0x654] ss:$8 sps:$4 sm:$0xff]  }
 0x321   :  { %3099 = vmatprep.subr.bf16.mxu1 %v12782_v54  ;;  %5150 = vmatprep.subr.bf16.mxu0 %v12785_v43  ;;  %v12828_v26 = vld [vmem:[#allocation9 + $0x1e8] ss:$16 sps:$4 sm:$0xff]   ;;  %v12831_v54 = vld [vmem:[#allocation6 + $0x650] ss:$8 sps:$4 sm:$0xff]  }
 0x322   :  { %3074 = vmatprep.mubr.bf16.mxu1 %v16150_v24  ;;  %v12836_v43 = vld [vmem:[#allocation9 + $0x20c] ss:$16 sps:$4 sm:$0xff]  }
 0x324   :  { %3100 = vmatpush1.bf16.msra.mxu1 %v12780_v41  ;;  %5151 = vmatpush1.bf16.msra.mxu0 %v12783_v34  ;;  %v12839_v41 = vld [vmem:[#allocation6 + $0x664] ss:$8 sps:$4 sm:$0xff]  }
 0x325   :  { %3101 = vmatprep.subr.bf16.mxu1 %v12788_v44  ;;  %5152 = vmatprep.subr.bf16.mxu0 %v12791_v5  ;;  %v12834_v34 = vld [vmem:[#allocation9 + $0x208] ss:$16 sps:$4 sm:$0xff]   ;;  %v12837_v44 = vld [vmem:[#allocation6 + $0x660] ss:$8 sps:$4 sm:$0xff]  }
 0x326   :  { %v12842_v5 = vld [vmem:[#allocation9 + $0x22c] ss:$16 sps:$4 sm:$0xff]  }
 0x327   :  { %3075 = vmatmul.mubr.bf16.gmra.mrb[16].mxu1 %v15457_v46 }
 0x328   :  { %3102 = vmatpush1.bf16.msra.mxu1 %v12786_v47  ;;  %5153 = vmatpush1.bf16.msra.mxu0 %v12789_v3  ;;  %v12845_v47 = vld [vmem:[#allocation6 + $0x674] ss:$8 sps:$4 sm:$0xff]  }
 0x329   :  { %3117 = vmatprep.mubr.bf16.mxu1 %v15331_v42  ;;  %3103 = vmatprep.subr.bf16.mxu1 %v12794_v7  ;;  %v12804_v42 = vld [vmem:[#allocation9 + $0x168] ss:$16 sps:$4 sm:$0xff]   ;;  %v12843_v7 = vld [vmem:[#allocation6 + $0x670] ss:$8 sps:$4 sm:$0xff]  }
 0x32a   :  { %5154 = vmatprep.subr.bf16.mxu0 %v12797_v23  ;;  %v12840_v3 = vld [vmem:[#allocation9 + $0x228] ss:$16 sps:$4 sm:$0xff]   ;;  %v12848_v23 = vld [vmem:[#allocation9 + $0x24c] ss:$16 sps:$4 sm:$0xff]  }
 0x32c   :  { %3104 = vmatpush1.bf16.msra.mxu1 %v12792_v38  ;;  %5155 = vmatpush1.bf16.msra.mxu0 %v12795_v62  ;;  %v12851_v38 = vld [vmem:[#allocation6 + $0x684] ss:$8 sps:$4 sm:$0xff]  }
 0x32d   :  { %3105 = vmatprep.subr.bf16.mxu1 %v12800_v37  ;;  %5165 = vmatprep.subr.bf16.mxu0 %v12803_v13  ;;  %v12846_v62 = vld [vmem:[#allocation9 + $0x248] ss:$16 sps:$4 sm:$0xff]   ;;  %v12849_v37 = vld [vmem:[#allocation6 + $0x680] ss:$8 sps:$4 sm:$0xff]  }
 0x32e   :  { %v12854_v13 = vld [vmem:[#allocation9 + $0x26c] ss:$16 sps:$4 sm:$0xff]  }
 0x32f   :  { %5157 = vmatmul.mubr.bf16.vlgmr.msra.gmra.mrb[60].mxu0 %v15412_v18 }
 0x330   :  { %3106 = vmatpush1.bf16.msra.mxu1 %v12798_v8  ;;  %5166 = vmatpush1.bf16.msra.mxu0 %v12801_v25  ;;  %v12857_v8 = vld [vmem:[#allocation6 + $0x694] ss:$8 sps:$4 sm:$0xff]   ;;  %v12855_v25 = vld [vmem:[#allocation6 + $0x690] ss:$8 sps:$4 sm:$0xff]  }
 0x331   :  { %5197 = vmatprep.mubr.bf16.mxu0 %v15483_v12  ;;  %3107 = vmatprep.subr.bf16.mxu1 %v12806_v51  ;;  %v12860_v51 = vld [vmem:[#allocation9 + $0x28c] ss:$16 sps:$4 sm:$0xff]  }
 0x332   :  { %5167 = vmatprep.subr.bf16.mxu0 %v12809_v19  ;;  %v12863_v19 = vld [vmem:[#allocation6 + $0x6a4] ss:$8 sps:$4 sm:$0xff]  }
 0x334   :  { %3108 = vmatpush1.bf16.msra.mxu1 %v12804_v42  ;;  %5168 = vmatpush1.bf16.msra.mxu0 %v12807_v58  ;;  %v12858_v42 = vld [vmem:[#allocation9 + $0x288] ss:$16 sps:$4 sm:$0xff]   ;;  %v12861_v58 = vld [vmem:[#allocation6 + $0x6a0] ss:$8 sps:$4 sm:$0xff]  }
 0x335   :  { %3109 = vmatprep.subr.bf16.mxu1 %v12812_v48  ;;  %5169 = vmatprep.subr.bf16.mxu0 %v12815_v2  ;;  %v12866_v48 = vld [vmem:[#allocation9 + $0x2ac] ss:$16 sps:$4 sm:$0xff]   ;;  %v12869_v2 = vld [vmem:[#allocation6 + $0x6b4] ss:$8 sps:$4 sm:$0xff]  }
 0x338   :  { %3110 = vmatpush1.bf16.msra.mxu1 %v12810_v4  ;;  %5170 = vmatpush1.bf16.msra.mxu0 %v12813_v61  ;;  %v12864_v4 = vld [vmem:[#allocation9 + $0x2a8] ss:$16 sps:$4 sm:$0xff]   ;;  %v12867_v61 = vld [vmem:[#allocation6 + $0x6b0] ss:$8 sps:$4 sm:$0xff]  }
 0x339   :  { %3111 = vmatprep.subr.bf16.mxu1 %v12818_v22  ;;  %5171 = vmatprep.subr.bf16.mxu0 %v12821_v63  ;;  %v12872_v22 = vld [vmem:[#allocation9 + $0x2cc] ss:$16 sps:$4 sm:$0xff]   ;;  %v12875_v63 = vld [vmem:[#allocation6 + $0x6c4] ss:$8 sps:$4 sm:$0xff]  }
 0x33c   :  { %3112 = vmatpush1.bf16.msra.mxu1 %v12816_v31  ;;  %5172 = vmatpush1.bf16.msra.mxu0 %v12819_v30  ;;  %v12870_v31 = vld [vmem:[#allocation9 + $0x2c8] ss:$16 sps:$4 sm:$0xff]   ;;  %v12873_v30 = vld [vmem:[#allocation6 + $0x6c0] ss:$8 sps:$4 sm:$0xff]  }
 0x33d   :  { %3113 = vmatprep.subr.bf16.mxu1 %v12824_v11  ;;  %5173 = vmatprep.subr.bf16.mxu0 %v12827_v17  ;;  %v12878_v11 = vld [vmem:[#allocation9 + $0x2ec] ss:$16 sps:$4 sm:$0xff]   ;;  %v12881_v17 = vld [vmem:[#allocation6 + $0x6d4] ss:$8 sps:$4 sm:$0xff]  }
 0x340   :  { %3114 = vmatpush1.bf16.msra.mxu1 %v12822_v16  ;;  %5174 = vmatpush1.bf16.msra.mxu0 %v12825_v57  ;;  %v12876_v16 = vld [vmem:[#allocation9 + $0x2e8] ss:$16 sps:$4 sm:$0xff]   ;;  %v12879_v57 = vld [vmem:[#allocation6 + $0x6d0] ss:$8 sps:$4 sm:$0xff]  }
 0x341   :  { %3115 = vmatprep.subr.bf16.mxu1 %v12830_v1  ;;  %5175 = vmatprep.subr.bf16.mxu0 %v12833_v21  ;;  %v12884_v1 = vld [vmem:[#allocation9 + $0x30c] ss:$16 sps:$4 sm:$0xff]   ;;  %v12887_v21 = vld [vmem:[#allocation6 + $0x6e4] ss:$8 sps:$4 sm:$0xff]  }
 0x344   :  { %3116 = vmatpush1.bf16.msra.mxu1 %v12828_v26  ;;  %5176 = vmatpush1.bf16.msra.mxu0 %v12831_v54  ;;  %v12882_v26 = vld [vmem:[#allocation9 + $0x308] ss:$16 sps:$4 sm:$0xff]   ;;  %v12885_v54 = vld [vmem:[#allocation6 + $0x6e0] ss:$8 sps:$4 sm:$0xff]  }
 0x345   :  { %3168 = vmatprep.subr.bf16.mxu1 %v12836_v43  ;;  %5177 = vmatprep.subr.bf16.mxu0 %v12839_v41  ;;  %v12890_v43 = vld [vmem:[#allocation9 + $0x32c] ss:$16 sps:$4 sm:$0xff]   ;;  %v12893_v41 = vld [vmem:[#allocation6 + $0x6f4] ss:$8 sps:$4 sm:$0xff]  }
 0x347   :  { %3118 = vmatmul.mubr.bf16.vlgmr.msra.gmra.mrb[20].mxu1 %v15321_v32  ;;  %v12852_v32 = vld [vmem:[#allocation9 + $0x268] ss:$16 sps:$4 sm:$0xff]  }
 0x348   :  { %3127 = vmatprep.mubr.bf16.mxu1 %v15352_v35  ;;  %3169 = vmatpush1.bf16.msra.mxu1 %v12834_v34  ;;  %v12888_v34 = vld [vmem:[#allocation9 + $0x328] ss:$16 sps:$4 sm:$0xff]  }
 0x349   :  { %5178 = vmatpush1.bf16.msra.mxu0 %v12837_v44  ;;  %3170 = vmatprep.subr.bf16.mxu1 %v12842_v5  ;;  %v12891_v44 = vld [vmem:[#allocation6 + $0x6f0] ss:$8 sps:$4 sm:$0xff]  }
 0x34a   :  { %5179 = vmatprep.subr.bf16.mxu0 %v12845_v47  ;;  %v12896_v5 = vld [vmem:[#allocation9 + $0x34c] ss:$16 sps:$4 sm:$0xff]   ;;  %v12899_v47 = vld [vmem:[#allocation6 + $0x704] ss:$8 sps:$4 sm:$0xff]  }
 0x34c   :  { %3171 = vmatpush1.bf16.msra.mxu1 %v12840_v3  ;;  %v12894_v3 = vld [vmem:[#allocation9 + $0x348] ss:$16 sps:$4 sm:$0xff]  }
 0x34d   :  { %5180 = vmatpush1.bf16.msra.mxu0 %v12843_v7  ;;  %3172 = vmatprep.subr.bf16.mxu1 %v12848_v23  ;;  %v12897_v7 = vld [vmem:[#allocation6 + $0x700] ss:$8 sps:$4 sm:$0xff]  }
 0x34e   :  { %5181 = vmatprep.subr.bf16.mxu0 %v12851_v38  ;;  %v12902_v23 = vld [vmem:[#allocation9 + $0x36c] ss:$16 sps:$4 sm:$0xff]   ;;  %v12905_v38 = vld [vmem:[#allocation6 + $0x714] ss:$8 sps:$4 sm:$0xff]  }
 0x34f   :  { %3128 = vmatmul.mubr.bf16.gmra.mrb[24].mxu1 %v15342_v9 }
 0x350   :  { %3137 = vmatprep.mubr.bf16.mxu1 %v15374_v29  ;;  %3173 = vmatpush1.bf16.msra.mxu1 %v12846_v62  ;;  %v12900_v62 = vld [vmem:[#allocation9 + $0x368] ss:$16 sps:$4 sm:$0xff]  }
 0x351   :  { %5182 = vmatpush1.bf16.msra.mxu0 %v12849_v37  ;;  %3174 = vmatprep.subr.bf16.mxu1 %v12854_v13  ;;  %v12908_v37 = vld [vmem:[#allocation9 + $0x38c] ss:$16 sps:$4 sm:$0xff]   ;;  %v12911_v13 = vld [vmem:[#allocation6 + $0x724] ss:$8 sps:$4 sm:$0xff]  }
 0x352   :  { %5183 = vmatprep.subr.bf16.mxu0 %v12857_v8  ;;  %v12906_v8 = vld [vmem:[#allocation9 + $0x388] ss:$16 sps:$4 sm:$0xff]  }
 0x354   :  { %3175 = vmatpush1.bf16.msra.mxu1 %v12852_v32  ;;  %v12909_v32 = vld [vmem:[#allocation6 + $0x720] ss:$8 sps:$4 sm:$0xff]  }
 0x355   :  { %5184 = vmatpush1.bf16.msra.mxu0 %v12855_v25  ;;  %3176 = vmatprep.subr.bf16.mxu1 %v12860_v51  ;;  %v12914_v25 = vld [vmem:[#allocation9 + $0x3ac] ss:$16 sps:$4 sm:$0xff]   ;;  %v12917_v51 = vld [vmem:[#allocation6 + $0x734] ss:$8 sps:$4 sm:$0xff]  }
 0x356   :  { %5185 = vmatprep.subr.bf16.mxu0 %v12863_v19  ;;  %v12912_v19 = vld [vmem:[#allocation9 + $0x3a8] ss:$16 sps:$4 sm:$0xff]  }
 0x357   :  { %3138 = vmatmul.mubr.bf16.gmra.mrb[28].mxu1 %v15363_v10 }
 0x358   :  { %3147 = vmatprep.mubr.bf16.mxu1 %v15396_v52  ;;  %3177 = vmatpush1.bf16.msra.mxu1 %v12858_v42  ;;  %v12915_v42 = vld [vmem:[#allocation6 + $0x730] ss:$8 sps:$4 sm:$0xff]  }
 0x359   :  { %5186 = vmatpush1.bf16.msra.mxu0 %v12861_v58  ;;  %3178 = vmatprep.subr.bf16.mxu1 %v12866_v48  ;;  %v12920_v58 = vld [vmem:[#allocation9 + $0x3cc] ss:$16 sps:$4 sm:$0xff]   ;;  %v12923_v48 = vld [vmem:[#allocation6 + $0x744] ss:$8 sps:$4 sm:$0xff]  }
 0x35a   :  { %5187 = vmatprep.subr.bf16.mxu0 %v12869_v2  ;;  %v12918_v2 = vld [vmem:[#allocation9 + $0x3c8] ss:$16 sps:$4 sm:$0xff]  }
 0x35c   :  { %3179 = vmatpush1.bf16.msra.mxu1 %v12864_v4  ;;  %v12921_v4 = vld [vmem:[#allocation6 + $0x740] ss:$8 sps:$4 sm:$0xff]  }
 0x35d   :  { %5188 = vmatpush1.bf16.msra.mxu0 %v12867_v61  ;;  %3180 = vmatprep.subr.bf16.mxu1 %v12872_v22  ;;  %v12926_v61 = vld [vmem:[#allocation9 + $0x3ec] ss:$16 sps:$4 sm:$0xff]   ;;  %v12929_v22 = vld [vmem:[#allocation6 + $0x754] ss:$8 sps:$4 sm:$0xff]  }
 0x35e   :  { %5189 = vmatprep.subr.bf16.mxu0 %v12875_v63  ;;  %v12924_v63 = vld [vmem:[#allocation9 + $0x3e8] ss:$16 sps:$4 sm:$0xff]  }
 0x35f   :  { %3148 = vmatmul.mubr.bf16.gmra.mrb[32].mxu1 %v15385_v20 }
 0x360   :  { %3157 = vmatprep.mubr.bf16.mxu1 %v15424_v50  ;;  %3181 = vmatpush1.bf16.msra.mxu1 %v12870_v31  ;;  %v12927_v31 = vld [vmem:[#allocation6 + $0x750] ss:$8 sps:$4 sm:$0xff]  }
 0x361   :  { %5190 = vmatpush1.bf16.msra.mxu0 %v12873_v30  ;;  %3182 = vmatprep.subr.bf16.mxu1 %v12878_v11  ;;  %v12932_v30 = vld [vmem:[#allocation9 + $0x40c] ss:$16 sps:$4 sm:$0xff]   ;;  %v12935_v11 = vld [vmem:[#allocation6 + $0x764] ss:$8 sps:$4 sm:$0xff]  }
 0x362   :  { %5191 = vmatprep.subr.bf16.mxu0 %v12881_v17  ;;  %v12930_v17 = vld [vmem:[#allocation9 + $0x408] ss:$16 sps:$4 sm:$0xff]  }
 0x364   :  { %3183 = vmatpush1.bf16.msra.mxu1 %v12876_v16  ;;  %v12933_v16 = vld [vmem:[#allocation6 + $0x760] ss:$8 sps:$4 sm:$0xff]  }
 0x365   :  { %5192 = vmatpush1.bf16.msra.mxu0 %v12879_v57  ;;  %3184 = vmatprep.subr.bf16.mxu1 %v12884_v1  ;;  %v12941_v57 = vld [vmem:[#allocation9 + $0x42c] ss:$16 sps:$4 sm:$0xff]   ;;  %v12938_v1 = vld [vmem:[#allocation6 + $0x774] ss:$8 sps:$4 sm:$0xff]  }
 0x366   :  { %5193 = vmatprep.subr.bf16.mxu0 %v12887_v21  ;;  %v12939_v21 = vld [vmem:[#allocation9 + $0x428] ss:$16 sps:$4 sm:$0xff]  }
 0x367   :  { %3158 = vmatmul.mubr.bf16.gmra.mrb[36].mxu1 %v15407_v14 }
 0x368   :  { %3185 = vmatpush1.bf16.msra.mxu1 %v12882_v26  ;;  %3200 = vmatprep.mubr.bf16.mxu1 %v15352_v35  ;;  %v12903_v35 = vld [vmem:[#allocation6 + $0x710] ss:$8 sps:$4 sm:$0xff]  }
 0x369   :  { %5194 = vmatpush1.bf16.msra.mxu0 %v12885_v54  ;;  %3186 = vmatprep.subr.bf16.mxu1 %v12890_v43  ;;  %v12936_v26 = vld [vmem:[#allocation6 + $0x770] ss:$8 sps:$4 sm:$0xff]   ;;  %v12942_v43 = vld [vmem:[#allocation9 + $0x448] ss:$16 sps:$4 sm:$0xff]  }
 0x36a   :  { %5195 = vmatprep.subr.bf16.mxu0 %v12893_v41  ;;  %v12944_v54 = vld [vmem:[#allocation9 + $0x44c] ss:$16 sps:$4 sm:$0xff]   ;;  %v15503_v41 = vpack.c.bf16 %v15367_v60, %v15367_v60  ;;  %v12951_v60 = vld [vmem:[#allocation9 + $0x4a8] ss:$16 sps:$4 sm:$0xff]  }
 0x36c   :  { %3187 = vmatpush1.bf16.msra.mxu1 %v12888_v34  ;;  %v12947_v34 = vld [vmem:[#allocation9 + $0x46c] ss:$16 sps:$4 sm:$0xff]  }
 0x36d   :  { %5196 = vmatpush1.bf16.msra.mxu0 %v12891_v44  ;;  %3188 = vmatprep.subr.bf16.mxu1 %v12896_v5  ;;  %v12948_v44 = vld [vmem:[#allocation9 + $0x488] ss:$16 sps:$4 sm:$0xff]   ;;  %v12953_v5 = vld [vmem:[#allocation9 + $0x4ac] ss:$16 sps:$4 sm:$0xff]  }
 0x36e   :  { %5206 = vmatprep.subr.bf16.mxu0 %v12899_v47  ;;  %v12956_v47 = vld [vmem:[#allocation9 + $0x4cc] ss:$16 sps:$4 sm:$0xff]  }
 0x370   :  { %5198 = vmatmul.mubr.bf16.vlgmr.msra.gmra.mrb[60].mxu0 %v15461_v39  ;;  %3189 = vmatpush1.bf16.msra.mxu1 %v12894_v3  ;;  %v12954_v3 = vld [vmem:[#allocation9 + $0x4c8] ss:$16 sps:$4 sm:$0xff]  }
 0x371   :  { %5207 = vmatpush1.bf16.msra.mxu0 %v12897_v7  ;;  %3190 = vmatprep.subr.bf16.mxu1 %v12902_v23  ;;  %v12957_v7 = vld [vmem:[#allocation9 + $0x4e8] ss:$16 sps:$4 sm:$0xff]  }
 0x372   :  { %5208 = vmatprep.subr.bf16.mxu0 %v12905_v38  ;;  %5238 = vmatprep.mubr.bf16.mxu0 %v16150_v24  ;;  %v12962_v23 = vld [vmem:[#allocation6 + $0x284] ss:$8 sps:$4 sm:$0xff]   ;;  %v12965_v38 = vld [vmem:[#allocation6 + $0x294] ss:$8 sps:$4 sm:$0xff]  }
 0x374   :  { %3191 = vmatpush1.bf16.msra.mxu1 %v12900_v62  ;;  %v12963_v62 = vld [vmem:[#allocation6 + $0x290] ss:$8 sps:$4 sm:$0xff]  }
 0x375   :  { %5209 = vmatpush1.bf16.msra.mxu0 %v12903_v35  ;;  %3192 = vmatprep.subr.bf16.mxu1 %v12908_v37  ;;  %v12966_v35 = vld [vmem:[#allocation6 + $0x2a0] ss:$8 sps:$4 sm:$0xff]   ;;  %v12971_v37 = vld [vmem:[#allocation6 + $0x2b4] ss:$8 sps:$4 sm:$0xff]  }
 0x376   :  { %5210 = vmatprep.subr.bf16.mxu0 %v12911_v13  ;;  %v12969_v13 = vld [vmem:[#allocation6 + $0x2b0] ss:$8 sps:$4 sm:$0xff]  }
 0x378   :  { %3193 = vmatpush1.bf16.msra.mxu1 %v12906_v8  ;;  %v12974_v8 = vld [vmem:[#allocation6 + $0x2c4] ss:$8 sps:$4 sm:$0xff]  }
 0x379   :  { %5211 = vmatpush1.bf16.msra.mxu0 %v12909_v32  ;;  %3194 = vmatprep.subr.bf16.mxu1 %v12914_v25  ;;  %v12977_v32 = vld [vmem:[#allocation6 + $0x2d4] ss:$8 sps:$4 sm:$0xff]   ;;  %v12975_v25 = vld [vmem:[#allocation6 + $0x2d0] ss:$8 sps:$4 sm:$0xff]  }
 0x37a   :  { %5212 = vmatprep.subr.bf16.mxu0 %v12917_v51  ;;  %v12980_v51 = vld [vmem:[#allocation6 + $0x2e4] ss:$8 sps:$4 sm:$0xff]  }
 0x37c   :  { %3195 = vmatpush1.bf16.msra.mxu1 %v12912_v19 }
 0x37d   :  { %5213 = vmatpush1.bf16.msra.mxu0 %v12915_v42  ;;  %3196 = vmatprep.subr.bf16.mxu1 %v12920_v58  ;;  %v12978_v58 = vld [vmem:[#allocation6 + $0x2e0] ss:$8 sps:$4 sm:$0xff]  }
 0x37e   :  { %5214 = vmatprep.subr.bf16.mxu0 %v12923_v48 }
 0x380   :  { %3197 = vmatpush1.bf16.msra.mxu1 %v12918_v2  ;;  %v12983_v2 = vld [vmem:[#allocation6 + $0x2f4] ss:$8 sps:$4 sm:$0xff]  }
 0x381   :  { %5215 = vmatpush1.bf16.msra.mxu0 %v12921_v4  ;;  %3198 = vmatprep.subr.bf16.mxu1 %v12926_v61  ;;  %v12986_v4 = vld [vmem:[#allocation6 + $0x304] ss:$8 sps:$4 sm:$0xff]   ;;  %v12984_v61 = vld [vmem:[#allocation6 + $0x300] ss:$8 sps:$4 sm:$0xff]  }
 0x382   :  { %5216 = vmatprep.subr.bf16.mxu0 %v12929_v22  ;;  %v12989_v22 = vld [vmem:[#allocation6 + $0x314] ss:$8 sps:$4 sm:$0xff]  }
 0x384   :  { %3199 = vmatpush1.bf16.msra.mxu1 %v12924_v63  ;;  %v12987_v63 = vld [vmem:[#allocation6 + $0x310] ss:$8 sps:$4 sm:$0xff]  }
 0x385   :  { %5217 = vmatpush1.bf16.msra.mxu0 %v12927_v31  ;;  %3251 = vmatprep.subr.bf16.mxu1 %v12932_v30  ;;  %v12992_v31 = vld [vmem:[#allocation6 + $0x324] ss:$8 sps:$4 sm:$0xff]   ;;  %v12995_v30 = vld [vmem:[#allocation6 + $0x334] ss:$8 sps:$4 sm:$0xff]  }
 0x386   :  { %5218 = vmatprep.subr.bf16.mxu0 %v12935_v11  ;;  %v12993_v11 = vld [vmem:[#allocation6 + $0x330] ss:$8 sps:$4 sm:$0xff]  }
 0x387   :  { %3201 = vmatmul.mubr.bf16.vlgmr.msra.gmra.mrb[20].mxu1 %v15342_v9  ;;  %v12945_v9 = vld [vmem:[#allocation9 + $0x468] ss:$16 sps:$4 sm:$0xff]  }
 0x388   :  { %3210 = vmatprep.mubr.bf16.mxu1 %v15374_v29  ;;  %3252 = vmatpush1.bf16.msra.mxu1 %v12930_v17  ;;  %v12950_v29 = vld [vmem:[#allocation9 + $0x48c] ss:$16 sps:$4 sm:$0xff]   ;;  %v12998_v17 = vld [vmem:[#allocation6 + $0x344] ss:$8 sps:$4 sm:$0xff]  }
 0x389   :  { %5219 = vmatpush1.bf16.msra.mxu0 %v12933_v16  ;;  %3253 = vmatprep.subr.bf16.mxu1 %v12941_v57 }
 0x38a   :  { %5220 = vmatprep.subr.bf16.mxu0 %v12938_v1  ;;  %v12996_v1 = vld [vmem:[#allocation6 + $0x340] ss:$8 sps:$4 sm:$0xff]  }
 0x38c   :  { %3254 = vmatpush1.bf16.msra.mxu1 %v12939_v21  ;;  %v13001_v21 = vld [vmem:[#allocation6 + $0x354] ss:$8 sps:$4 sm:$0xff]  }
 0x38d   :  { %5221 = vmatpush1.bf16.msra.mxu0 %v12936_v26  ;;  %3255 = vmatprep.subr.bf16.mxu1 %v12944_v54  ;;  %v12999_v26 = vld [vmem:[#allocation6 + $0x350] ss:$8 sps:$4 sm:$0xff]   ;;  %v13004_v54 = vld [vmem:[#allocation6 + $0x364] ss:$8 sps:$4 sm:$0xff]  }
 0x38f   :  { %3211 = vmatmul.mubr.bf16.gmra.mrb[24].mxu1 %v15363_v10 }
 0x390   :  { %5239 = vmatmul.mubr.bf16.vlgmr.msra.gmra.mrb[60].mxu0 %v15503_v41  ;;  %3220 = vmatprep.mubr.bf16.mxu1 %v15396_v52  ;;  %v12959_v52 = vld [vmem:[#allocation9 + $0x4ec] ss:$16 sps:$4 sm:$0xff]  }
 0x391   :  { %3256 = vmatpush1.bf16.msra.mxu1 %v12942_v43 }
 0x392   :  { %3257 = vmatprep.subr.bf16.mxu1 %v12947_v34 }
 0x395   :  { %3258 = vmatpush1.bf16.msra.mxu1 %v12945_v9 }
 0x396   :  { %3259 = vmatprep.subr.bf16.mxu1 %v12950_v29  ;;  %v13002_v29 = vld [vmem:[#allocation6 + $0x360] ss:$8 sps:$4 sm:$0xff]  }
 0x397   :  { %3221 = vmatmul.mubr.bf16.gmra.mrb[28].mxu1 %v15385_v20 }
 0x398   :  { %3230 = vmatprep.mubr.bf16.mxu1 %v15424_v50  ;;  %v12960_v50 = vld [vmem:[#allocation6 + $0x280] ss:$8 sps:$4 sm:$0xff]  }
 0x399   :  { %3260 = vmatpush1.bf16.msra.mxu1 %v12948_v44 }
 0x39a   :  { %3261 = vmatprep.subr.bf16.mxu1 %v12953_v5  ;;  %v13007_v5 = vld [vmem:[#allocation6 + $0x374] ss:$8 sps:$4 sm:$0xff]  }
 0x39d   :  { %3262 = vmatpush1.bf16.msra.mxu1 %v12951_v60  ;;  %v15544_v60 = vld [vmem:[#allocation10] sm:$0xf] }
 0x39e   :  { %3263 = vmatprep.subr.bf16.mxu1 %v12956_v47  ;;  %v13005_v47 = vld [vmem:[#allocation6 + $0x370] ss:$8 sps:$4 sm:$0xff]  }
 0x39f   :  { %3231 = vmatmul.mubr.bf16.gmra.mrb[32].mxu1 %v15407_v14 }
 0x3a0   :  { %3240 = vmatprep.mubr.bf16.mxu1 %v15449_v40  ;;  %v12968_v40 = vld [vmem:[#allocation6 + $0x2a4] ss:$8 sps:$4 sm:$0xff]  }
 0x3a1   :  { %3264 = vmatpush1.bf16.msra.mxu1 %v12954_v3  ;;  %v15548_v3 = vrot.slane %v15544_v60, %v15296_v36 }
 0x3a2   :  { %3265 = vmatprep.subr.bf16.mxu1 %v12959_v52  ;;  %v13010_v52 = vld [vmem:[#allocation6 + $0x384] ss:$8 sps:$4 sm:$0xff]  }
 0x3a5   :  { %3266 = vmatpush1.bf16.msra.mxu1 %v12957_v7  ;;  %v15552_v7 = vrot.slane %v15544_v60, %v15299_v53 }
 0x3a6   :  { %4466 = vmatprep.subr.bf16.mxu1 %v12962_v23 }
 0x3a7   :  { %3241 = vmatmul.mubr.bf16.gmra.mrb[36].mxu1 %v15437_v6 }
 0x3a8   :  { %3283 = vmatprep.mubr.bf16.mxu1 %v16150_v24 }
 0x3af   :  { %3284 = vmatmul.mubr.bf16.vlgmr.msra.gmra.mrb[20].mxu1 %v15363_v10  ;;  %v12972_v10 = vld [vmem:[#allocation6 + $0x2c0] ss:$8 sps:$4 sm:$0xff]  }
 0x3b0   :  { %4467 = vmatpush1.bf16.msra.mxu1 %v12960_v50  ;;  %3293 = vmatprep.mubr.bf16.mxu1 %v16150_v24 }
 0x3b1   :  { %4468 = vmatprep.subr.bf16.mxu1 %v12965_v38 }
 0x3b4   :  { %4469 = vmatpush1.bf16.msra.mxu1 %v12963_v62 }
 0x3b5   :  { %4470 = vmatprep.subr.bf16.mxu1 %v12968_v40 }
 0x3b7   :  { %3294 = vmatmul.mubr.bf16.gmra.mrb[24].mxu1 %v15385_v20 }
 0x3b8   :  { %4471 = vmatpush1.bf16.msra.mxu1 %v12966_v35  ;;  %3303 = vmatprep.mubr.bf16.mxu1 %v16150_v24  ;;  %v13008_v35 = vld [vmem:[#allocation6 + $0x380] ss:$8 sps:$4 sm:$0xff]  }
 0x3b9   :  { %4472 = vmatprep.subr.bf16.mxu1 %v12971_v37 }
 0x3bc   :  { %4473 = vmatpush1.bf16.msra.mxu1 %v12969_v13 }
 0x3bd   :  { %4474 = vmatprep.subr.bf16.mxu1 %v12974_v8  ;;  %v13013_v8 = vld [vmem:[#allocation6 + $0x394] ss:$8 sps:$4 sm:$0xff]  }
 0x3bf   :  { %3304 = vmatmul.mubr.bf16.gmra.mrb[28].mxu1 %v15407_v14  ;;  %v12981_v14 = vld [vmem:[#allocation6 + $0x2f0] ss:$8 sps:$4 sm:$0xff]  }
 0x3c0   :  { %4475 = vmatpush1.bf16.msra.mxu1 %v12972_v10  ;;  %3313 = vmatprep.mubr.bf16.mxu1 %v16150_v24 }
 0x3c1   :  { %4476 = vmatprep.subr.bf16.mxu1 %v12977_v32  ;;  %v13011_v32 = vld [vmem:[#allocation6 + $0x390] ss:$8 sps:$4 sm:$0xff]  }
 0x3c2   :  { %v15520_v19 = vpop.f32.mrb[56].mxu0 }
 0x3c3   :  { %v15522_v20 = vpop.f32.mrb[57].mxu0 }
 0x3c4   :  { %4477 = vmatpush1.bf16.msra.mxu1 %v12975_v25  ;;  %v3946_v42 = vpop.f32.mrb[58].mxu0  ;;  %v13016_v25 = vld [vmem:[#allocation6 + $0x3a4] ss:$8 sps:$4 sm:$0xff]  }
 0x3c5   :  { %v3947_v48 = vpop.f32.mrb[59].mxu0  ;;  %4478 = vmatprep.subr.bf16.mxu1 %v12980_v51 }
 0x3c7   :  { %3314 = vmatmul.mubr.bf16.gmra.mrb[32].mxu1 %v15437_v6  ;;  %v12990_v6 = vld [vmem:[#allocation6 + $0x320] ss:$8 sps:$4 sm:$0xff]  }
 0x3c8   :  { %4479 = vmatpush1.bf16.msra.mxu1 %v12978_v58  ;;  %3323 = vmatprep.mubr.bf16.mxu1 %v16150_v24 }
 0x3c9   :  { %4480 = vmatprep.subr.bf16.mxu1 %v12983_v2 }
 0x3cc   :  { %4481 = vmatpush1.bf16.msra.mxu1 %v12981_v14  ;;  %v13014_v14 = vld [vmem:[#allocation6 + $0x3a0] ss:$8 sps:$4 sm:$0xff]  }
 0x3cd   :  { %4482 = vmatprep.subr.bf16.mxu1 %v12986_v4 }
 0x3cf   :  { %3324 = vmatmul.mubr.bf16.gmra.mrb[36].mxu1 %v15457_v46 }
 0x3d0   :  { %4483 = vmatpush1.bf16.msra.mxu1 %v12984_v61  ;;  %4498 = vmatprep.mubr.bf16.mxu1 %v15412_v18  ;;  %v13019_v61 = vld [vmem:[#allocation6 + $0x3b4] ss:$8 sps:$4 sm:$0xff]  }
 0x3d1   :  { %4484 = vmatprep.subr.bf16.mxu1 %v12989_v22 }
 0x3d4   :  { %4485 = vmatpush1.bf16.msra.mxu1 %v12987_v63  ;;  %v13017_v63 = vld [vmem:[#allocation6 + $0x3b0] ss:$8 sps:$4 sm:$0xff]  }
 0x3d5   :  { %4486 = vmatprep.subr.bf16.mxu1 %v12992_v31  ;;  %v13022_v31 = vld [vmem:[#allocation6 + $0x3c4] ss:$8 sps:$4 sm:$0xff]  }
 0x3d8   :  { %4487 = vmatpush1.bf16.msra.mxu1 %v12990_v6 }
 0x3d9   :  { %4488 = vmatprep.subr.bf16.mxu1 %v12995_v30 }
 0x3da   :  { %v15528_v16 = vpop.f32.mrb[0].mxu1 }
 0x3db   :  { %v15530_v57 = vpop.f32.mrb[1].mxu1 }
 0x3dc   :  { %4489 = vmatpush1.bf16.msra.mxu1 %v12993_v11  ;;  %v15532_v46 = vpop.f32.mrb[2].mxu1 }
 0x3dd   :  { %v15534_v18 = vpop.f32.mrb[3].mxu1  ;;  %4490 = vmatprep.subr.bf16.mxu1 %v12998_v17 }
 0x3e0   :  { %4491 = vmatpush1.bf16.msra.mxu1 %v12996_v1 }
 0x3e1   :  { %4492 = vmatprep.subr.bf16.mxu1 %v13001_v21  ;;  %v13020_v21 = vld [vmem:[#allocation6 + $0x3c0] ss:$8 sps:$4 sm:$0xff]  }
 0x3e2   :  { %v15536_v43 = vpop.f32.mrb[4].mxu1 }
 0x3e3   :  { %v15538_v34 = vpop.f32.mrb[5].mxu1 }
 0x3e4   :  { %4493 = vmatpush1.bf16.msra.mxu1 %v12999_v26  ;;  %v15540_v9 = vpop.f32.mrb[6].mxu1 }
 0x3e5   :  { %v15542_v44 = vpop.f32.mrb[7].mxu1  ;;  %4494 = vmatprep.subr.bf16.mxu1 %v13004_v54 }
 0x3e8   :  { %4495 = vmatpush1.bf16.msra.mxu1 %v13002_v29  ;;  %v13025_v29 = vld [vmem:[#allocation6 + $0x3d4] ss:$8 sps:$4 sm:$0xff]  }
 0x3e9   :  { %4496 = vmatprep.subr.bf16.mxu1 %v13007_v5 }
 0x3ea   :  { %v3056_v23 = vpop.f32.mrb[8].mxu1 }
 0x3eb   :  { %v15555_v50 = vadd.f32 %v3056_v23, %v15548_v3  ;;  %v3058_v38 = vpop.f32.mrb[9].mxu1  ;;  %v13026_v23 = vld [vmem:[#allocation6 + $0x3e0] ss:$8 sps:$4 sm:$0xff]  }
 0x3ec   :  { %4497 = vmatpush1.bf16.msra.mxu1 %v13005_v47  ;;  %v15558_v62 = vadd.f32 %v3058_v38, %v15552_v7  ;;  %v3060_v40 = vpop.f32.mrb[10].mxu1  ;;  %v13023_v47 = vld [vmem:[#allocation6 + $0x3d0] ss:$8 sps:$4 sm:$0xff]   ;;  %v13031_v38 = vld [vmem:[#allocation6 + $0x3f4] ss:$8 sps:$4 sm:$0xff]  }
 0x3ed   :  { %v15561_v37 = vadd.f32 %v3060_v40, %v15548_v3  ;;  %v3062_v13 = vpop.f32.mrb[11].mxu1  ;;  %4507 = vmatprep.subr.bf16.mxu1 %v13010_v52  ;;  %v13028_v52 = vld [vmem:[#allocation6 + $0x3e4] ss:$8 sps:$4 sm:$0xff]   ;;  %v13029_v40 = vld [vmem:[#allocation6 + $0x3f0] ss:$8 sps:$4 sm:$0xff]  }
 0x3ee   :  { %v15564_v10 = vadd.f32 %v3062_v13, %v15552_v7  ;;  %v13032_v13 = vld [vmem:[#allocation6 + $0x400] ss:$8 sps:$4 sm:$0xff]  }
 0x3ef   :  { %4499 = vmatmul.mubr.bf16.vlgmr.msra.gmra.mrb[40].mxu1 %v15319_v33 }
 0x3f0   :  { %4508 = vmatpush1.bf16.msra.mxu1 %v13008_v35  ;;  %4539 = vmatprep.mubr.bf16.mxu1 %v15461_v39  ;;  %v13034_v35 = vld [vmem:[#allocation6 + $0x404] ss:$8 sps:$4 sm:$0xff]  }
 0x3f1   :  { %4509 = vmatprep.subr.bf16.mxu1 %v13013_v8  ;;  %v13037_v8 = vld [vmem:[#allocation6 + $0x414] ss:$8 sps:$4 sm:$0xff]  }
 0x3f2   :  { %v3066_v51 = vpop.f32.mrb[12].mxu1 }
 0x3f3   :  { %v15569_v42 = vadd.f32 %v3066_v51, %v15548_v3  ;;  %v3068_v58 = vpop.f32.mrb[13].mxu1  ;;  %v13038_v51 = vld [vmem:[#allocation6 + $0x420] ss:$8 sps:$4 sm:$0xff]  }
 0x3f4   :  { %4510 = vmatpush1.bf16.msra.mxu1 %v13011_v32  ;;  %v15572_v48 = vadd.f32 %v3068_v58, %v15552_v7  ;;  %v3070_v2 = vpop.f32.mrb[14].mxu1  ;;  %v13035_v32 = vld [vmem:[#allocation6 + $0x410] ss:$8 sps:$4 sm:$0xff]   ;;  %v13043_v58 = vld [vmem:[#allocation6 + $0x434] ss:$8 sps:$4 sm:$0xff]  }
 0x3f5   :  { %v15575_v4 = vadd.f32 %v3070_v2, %v15548_v3  ;;  %v3072_v33 = vpop.f32.mrb[15].mxu1  ;;  %4511 = vmatprep.subr.bf16.mxu1 %v13016_v25  ;;  %v13040_v25 = vld [vmem:[#allocation6 + $0x424] ss:$8 sps:$4 sm:$0xff]   ;;  %v13041_v2 = vld [vmem:[#allocation6 + $0x430] ss:$8 sps:$4 sm:$0xff]  }
 0x3f6   :  { %v15578_v22 = vadd.f32 %v3072_v33, %v15552_v7  ;;  %v13044_v33 = vld [vmem:[#allocation6 + $0x440] ss:$8 sps:$4 sm:$0xff]  }
 0x3f8   :  { %4512 = vmatpush1.bf16.msra.mxu1 %v13014_v14  ;;  %v13046_v14 = vld [vmem:[#allocation6 + $0x444] ss:$8 sps:$4 sm:$0xff]  }
 0x3f9   :  { %4513 = vmatprep.subr.bf16.mxu1 %v13019_v61  ;;  %v13049_v61 = vld [vmem:[#allocation6 + $0x454] ss:$8 sps:$4 sm:$0xff]  }
 0x3fa   :  { %v3076_v6 = vpop.f32.mrb[16].mxu1 }
 0x3fb   :  { %v15581_v30 = vadd.f32 %v3076_v6, %v15548_v3  ;;  %v3078_v11 = vpop.f32.mrb[17].mxu1  ;;  %v13050_v6 = vld [vmem:[#allocation6 + $0x460] ss:$8 sps:$4 sm:$0xff]  }
 0x3fc   :  { %4514 = vmatpush1.bf16.msra.mxu1 %v13017_v63  ;;  %v15584_v17 = vadd.f32 %v3078_v11, %v15552_v7  ;;  %v3080_v1 = vpop.f32.mrb[18].mxu1  ;;  %v13047_v63 = vld [vmem:[#allocation6 + $0x450] ss:$8 sps:$4 sm:$0xff]   ;;  %v13055_v11 = vld [vmem:[#allocation6 + $0x474] ss:$8 sps:$4 sm:$0xff]  }
 0x3fd   :  { %v15587_v26 = vadd.f32 %v3080_v1, %v15548_v3  ;;  %v3082_v54 = vpop.f32.mrb[19].mxu1  ;;  %4515 = vmatprep.subr.bf16.mxu1 %v13022_v31  ;;  %v13052_v31 = vld [vmem:[#allocation6 + $0x464] ss:$8 sps:$4 sm:$0xff]   ;;  %v13053_v1 = vld [vmem:[#allocation6 + $0x470] ss:$8 sps:$4 sm:$0xff]  }
 0x3fe   :  { %v15590_v5 = vadd.f32 %v3082_v54, %v15552_v7  ;;  %v13056_v54 = vld [vmem:[#allocation6 + $0x480] ss:$8 sps:$4 sm:$0xff]  }
 0x400   :  { %4516 = vmatpush1.bf16.msra.mxu1 %v13020_v21  ;;  %v13058_v21 = vld [vmem:[#allocation6 + $0x484] ss:$8 sps:$4 sm:$0xff]  }
 0x401   :  { %4517 = vmatprep.subr.bf16.mxu1 %v13025_v29  ;;  %v13061_v29 = vld [vmem:[#allocation6 + $0x494] ss:$8 sps:$4 sm:$0xff]  }
 0x404   :  { %4518 = vmatpush1.bf16.msra.mxu1 %v13023_v47  ;;  %v13059_v47 = vld [vmem:[#allocation6 + $0x490] ss:$8 sps:$4 sm:$0xff]  }
 0x405   :  { %4519 = vmatprep.subr.bf16.mxu1 %v13028_v52  ;;  %v13064_v52 = vld [vmem:[#allocation6 + $0x4a4] ss:$8 sps:$4 sm:$0xff]  }
 0x408   :  { %4520 = vmatpush1.bf16.msra.mxu1 %v13026_v23  ;;  %v13062_v23 = vld [vmem:[#allocation6 + $0x4a0] ss:$8 sps:$4 sm:$0xff]  }
 0x409   :  { %4521 = vmatprep.subr.bf16.mxu1 %v13031_v38  ;;  %v13067_v38 = vld [vmem:[#allocation6 + $0x4b4] ss:$8 sps:$4 sm:$0xff]  }
 0x40c   :  { %4522 = vmatpush1.bf16.msra.mxu1 %v13029_v40  ;;  %v13065_v40 = vld [vmem:[#allocation6 + $0x4b0] ss:$8 sps:$4 sm:$0xff]  }
 0x40d   :  { %4523 = vmatprep.subr.bf16.mxu1 %v13034_v35  ;;  %v13070_v35 = vld [vmem:[#allocation6 + $0x4c4] ss:$8 sps:$4 sm:$0xff]  }
 0x410   :  { %4524 = vmatpush1.bf16.msra.mxu1 %v13032_v13  ;;  %v13068_v13 = vld [vmem:[#allocation6 + $0x4c0] ss:$8 sps:$4 sm:$0xff]  }
 0x411   :  { %4525 = vmatprep.subr.bf16.mxu1 %v13037_v8  ;;  %v13073_v8 = vld [vmem:[#allocation6 + $0x4d4] ss:$8 sps:$4 sm:$0xff]  }
 0x414   :  { %4526 = vmatpush1.bf16.msra.mxu1 %v13035_v32  ;;  %v13071_v32 = vld [vmem:[#allocation6 + $0x4d0] ss:$8 sps:$4 sm:$0xff]  }
 0x415   :  { %4527 = vmatprep.subr.bf16.mxu1 %v13040_v25  ;;  %v13076_v25 = vld [vmem:[#allocation6 + $0x4e4] ss:$8 sps:$4 sm:$0xff]  }
 0x418   :  { %4528 = vmatpush1.bf16.msra.mxu1 %v13038_v51  ;;  %v13074_v51 = vld [vmem:[#allocation6 + $0x4e0] ss:$8 sps:$4 sm:$0xff]  }
 0x419   :  { %4529 = vmatprep.subr.bf16.mxu1 %v13043_v58  ;;  %v13079_v58 = vld [vmem:[#allocation6 + $0x4f4] ss:$8 sps:$4 sm:$0xff]  }
 0x41c   :  { %4530 = vmatpush1.bf16.msra.mxu1 %v13041_v2  ;;  %v13077_v2 = vld [vmem:[#allocation6 + $0x4f0] ss:$8 sps:$4 sm:$0xff]  }
 0x41d   :  { %4531 = vmatprep.subr.bf16.mxu1 %v13046_v14  ;;  %v13082_v14 = vld [vmem:[#allocation6 + $0x784] ss:$8 sps:$4 sm:$0xff]  }
 0x420   :  { %4532 = vmatpush1.bf16.msra.mxu1 %v13044_v33  ;;  %v13080_v33 = vld [vmem:[#allocation6 + $0x780] ss:$8 sps:$4 sm:$0xff]  }
 0x421   :  { %4533 = vmatprep.subr.bf16.mxu1 %v13049_v61  ;;  %v13085_v61 = vld [vmem:[#allocation6 + $0x794] ss:$8 sps:$4 sm:$0xff]  }
 0x424   :  { %4534 = vmatpush1.bf16.msra.mxu1 %v13047_v63  ;;  %v13083_v63 = vld [vmem:[#allocation6 + $0x790] ss:$8 sps:$4 sm:$0xff]  }
 0x425   :  { %4535 = vmatprep.subr.bf16.mxu1 %v13052_v31  ;;  %v13088_v31 = vld [vmem:[#allocation6 + $0x7a4] ss:$8 sps:$4 sm:$0xff]  }
 0x428   :  { %4536 = vmatpush1.bf16.msra.mxu1 %v13050_v6  ;;  %v13086_v6 = vld [vmem:[#allocation6 + $0x7a0] ss:$8 sps:$4 sm:$0xff]  }
 0x429   :  { %4537 = vmatprep.subr.bf16.mxu1 %v13055_v11  ;;  %v13091_v11 = vld [vmem:[#allocation6 + $0x7b4] ss:$8 sps:$4 sm:$0xff]  }
 0x42c   :  { %4538 = vmatpush1.bf16.msra.mxu1 %v13053_v1  ;;  %v13089_v1 = vld [vmem:[#allocation6 + $0x7b0] ss:$8 sps:$4 sm:$0xff]  }
 0x42d   :  { %4548 = vmatprep.subr.bf16.mxu1 %v13058_v21  ;;  %v13094_v21 = vld [vmem:[#allocation6 + $0x7c4] ss:$8 sps:$4 sm:$0xff]  }
 0x42f   :  { %4540 = vmatmul.mubr.bf16.vlgmr.msra.gmra.mrb[40].mxu1 %v15339_v55 }
 0x430   :  { %4549 = vmatpush1.bf16.msra.mxu1 %v13056_v54  ;;  %4580 = vmatprep.mubr.bf16.mxu1 %v16150_v24  ;;  %v13092_v54 = vld [vmem:[#allocation6 + $0x7c0] ss:$8 sps:$4 sm:$0xff]  }
 0x431   :  { %4550 = vmatprep.subr.bf16.mxu1 %v13061_v29  ;;  %v13097_v29 = vld [vmem:[#allocation6 + $0x7d4] ss:$8 sps:$4 sm:$0xff]  }
 0x434   :  { %4551 = vmatpush1.bf16.msra.mxu1 %v13059_v47  ;;  %v13095_v47 = vld [vmem:[#allocation6 + $0x7d0] ss:$8 sps:$4 sm:$0xff]  }
 0x435   :  { %4552 = vmatprep.subr.bf16.mxu1 %v13064_v52  ;;  %v13100_v52 = vld [vmem:[#allocation6 + $0x7e4] ss:$8 sps:$4 sm:$0xff]  }
 0x438   :  { %4553 = vmatpush1.bf16.msra.mxu1 %v13062_v23 }
 0x439   :  { %4554 = vmatprep.subr.bf16.mxu1 %v13067_v38 }
 0x43c   :  { %4555 = vmatpush1.bf16.msra.mxu1 %v13065_v40  ;;  %v13098_v40 = vld [vmem:[#allocation6 + $0x7e0] ss:$8 sps:$4 sm:$0xff]  }
 0x43d   :  { %4556 = vmatprep.subr.bf16.mxu1 %v13070_v35 }
 0x440   :  { %4557 = vmatpush1.bf16.msra.mxu1 %v13068_v13  ;;  %v13103_v13 = vld [vmem:[#allocation6 + $0x7f4] ss:$8 sps:$4 sm:$0xff]  }
 0x441   :  { %4558 = vmatprep.subr.bf16.mxu1 %v13073_v8 }
 0x444   :  { %4559 = vmatpush1.bf16.msra.mxu1 %v13071_v32  ;;  %v13101_v32 = vld [vmem:[#allocation6 + $0x7f0] ss:$8 sps:$4 sm:$0xff]  }
 0x445   :  { %4560 = vmatprep.subr.bf16.mxu1 %v13076_v25  ;;  %v13106_v25 = vld [vmem:[#allocation6 + $0x804] ss:$8 sps:$4 sm:$0xff]  }
 0x448   :  { %4561 = vmatpush1.bf16.msra.mxu1 %v13074_v51  ;;  %v13104_v51 = vld [vmem:[#allocation6 + $0x800] ss:$8 sps:$4 sm:$0xff]  }
 0x449   :  { %4562 = vmatprep.subr.bf16.mxu1 %v13079_v58  ;;  %v13109_v58 = vld [vmem:[#allocation6 + $0x814] ss:$8 sps:$4 sm:$0xff]  }
 0x44c   :  { %4563 = vmatpush1.bf16.msra.mxu1 %v13077_v2  ;;  %v13107_v2 = vld [vmem:[#allocation6 + $0x810] ss:$8 sps:$4 sm:$0xff]  }
 0x44d   :  { %5764 = vmatprep.subr.bf16.mxu1 %v13082_v14  ;;  %v13112_v14 = vld [vmem:[#allocation6 + $0x824] ss:$8 sps:$4 sm:$0xff]  }
 0x44f   :  { %4581 = vmatmul.mubr.bf16.vlgmr.msra.gmra.mrb[40].mxu1 %v15483_v12 }
 0x450   :  { %5765 = vmatpush1.bf16.msra.mxu1 %v13080_v33  ;;  %5796 = vmatprep.mubr.bf16.mxu1 %v15461_v39  ;;  %v13110_v33 = vld [vmem:[#allocation6 + $0x820] ss:$8 sps:$4 sm:$0xff]  }
 0x451   :  { %5766 = vmatprep.subr.bf16.mxu1 %v13085_v61  ;;  %v13115_v61 = vld [vmem:[#allocation6 + $0x834] ss:$8 sps:$4 sm:$0xff]  }
 0x454   :  { %5767 = vmatpush1.bf16.msra.mxu1 %v13083_v63  ;;  %v13113_v63 = vld [vmem:[#allocation6 + $0x830] ss:$8 sps:$4 sm:$0xff]  }
 0x455   :  { %5768 = vmatprep.subr.bf16.mxu1 %v13088_v31  ;;  %v13118_v31 = vld [vmem:[#allocation6 + $0x844] ss:$8 sps:$4 sm:$0xff]  }
 0x458   :  { %5769 = vmatpush1.bf16.msra.mxu1 %v13086_v6  ;;  %v2000_v6 = vsub.s32 2, %v15293_v27 }
 0x459   :  { %5770 = vmatprep.subr.bf16.mxu1 %v13091_v11  ;;  %v13116_v11 = vld [vmem:[#allocation6 + $0x840] ss:$8 sps:$4 sm:$0xff]  }
 0x45c   :  { %5771 = vmatpush1.bf16.msra.mxu1 %v13089_v1  ;;  %v2004_v1 = vsub.s32 3, %v15293_v27 }
 0x45d   :  { %5772 = vmatprep.subr.bf16.mxu1 %v13094_v21  ;;  %v13121_v21 = vld [vmem:[#allocation6 + $0x854] ss:$8 sps:$4 sm:$0xff]  }
 0x460   :  { %5773 = vmatpush1.bf16.msra.mxu1 %v13092_v54  ;;  %v15603_v54 = vrot.slane %v15544_v60, %v2000_v6 }
 0x461   :  { %5774 = vmatprep.subr.bf16.mxu1 %v13097_v29  ;;  %v13119_v29 = vld [vmem:[#allocation6 + $0x850] ss:$8 sps:$4 sm:$0xff]  }
 0x463   :  { %v15596_v23 = vpop.f32.mrb[60].mxu0 }
 0x464   :  { %v15598_v38 = vpop.f32.mrb[61].mxu0  ;;  %5775 = vmatpush1.bf16.msra.mxu1 %v13095_v47  ;;  %v15606_v47 = vrot.slane %v15544_v60, %v2004_v1 }
 0x465   :  { %v5244_v35 = vpop.f32.mrb[62].mxu0  ;;  %5776 = vmatprep.subr.bf16.mxu1 %v13100_v52  ;;  %v13124_v52 = vld [vmem:[#allocation6 + $0x864] ss:$8 sps:$4 sm:$0xff]  }
 0x466   :  { %v5245_v8 = vpop.f32.mrb[63].mxu0 }
 0x468   :  { %5777 = vmatpush1.bf16.msra.mxu1 %v13098_v40 }
 0x469   :  { %5778 = vmatprep.subr.bf16.mxu1 %v13103_v13 }
 0x46c   :  { %5779 = vmatpush1.bf16.msra.mxu1 %v13101_v32  ;;  %v13122_v32 = vld [vmem:[#allocation6 + $0x860] ss:$8 sps:$4 sm:$0xff]  }
 0x46d   :  { %5780 = vmatprep.subr.bf16.mxu1 %v13106_v25 }
 0x470   :  { %5781 = vmatpush1.bf16.msra.mxu1 %v13104_v51 }
 0x471   :  { %5782 = vmatprep.subr.bf16.mxu1 %v13109_v58 }
 0x474   :  { %5783 = vmatpush1.bf16.msra.mxu1 %v13107_v2  ;;  %v13127_v2 = vld [vmem:[#allocation6 + $0x874] ss:$8 sps:$4 sm:$0xff]  }
 0x475   :  { %5784 = vmatprep.subr.bf16.mxu1 %v13112_v14 }
 0x478   :  { %5785 = vmatpush1.bf16.msra.mxu1 %v13110_v33 }
 0x479   :  { %5786 = vmatprep.subr.bf16.mxu1 %v13115_v61 }
 0x47c   :  { %5787 = vmatpush1.bf16.msra.mxu1 %v13113_v63  ;;  %v13125_v63 = vld [vmem:[#allocation6 + $0x870] ss:$8 sps:$4 sm:$0xff]  }
 0x47d   :  { %5788 = vmatprep.subr.bf16.mxu1 %v13118_v31  ;;  %v13130_v31 = vld [vmem:[#allocation6 + $0x884] ss:$8 sps:$4 sm:$0xff]  }
 0x480   :  { %5789 = vmatpush1.bf16.msra.mxu1 %v13116_v11 }
 0x481   :  { %5790 = vmatprep.subr.bf16.mxu1 %v13121_v21 }
 0x482   :  { %v3285_v40 = vpop.f32.mrb[20].mxu1 }
 0x483   :  { %v12068_v35 = vadd.f32 %v3285_v40, %v15603_v54  ;;  %v3287_v13 = vpop.f32.mrb[21].mxu1 }
 0x484   :  { %v12069_v8 = vadd.f32 %v3287_v13, %v15606_v47  ;;  %5791 = vmatpush1.bf16.msra.mxu1 %v13119_v29  ;;  %v3289_v27 = vpop.f32.mrb[22].mxu1 }
 0x485   :  { %v10919_v25 = vmul.f32 -1.442695, %v12068_v35  ;;  %v12070_v51 = vadd.f32 %v3289_v27, %v15603_v54  ;;  %v3291_v58 = vpop.f32.mrb[23].mxu1  ;;  %5792 = vmatprep.subr.bf16.mxu1 %v13124_v52  ;;  %v13128_v52 = vld [vmem:[#allocation6 + $0x880] ss:$8 sps:$4 sm:$0xff]  }
 0x486   :  { %v10920_v14 = vmul.f32 -1.442695, %v12069_v8  ;;  %v12071_v60 = vadd.f32 %v3291_v58, %v15606_v47  ;;  %v13133_v8 = vld [vmem:[#allocation6 + $0x894] ss:$8 sps:$4 sm:$0xff]  }
 0x487   :  { %13974 = vpow2.f32 %v10919_v25  ;;  %v11001_v33 = vmul.f32 -1.442695, %v12070_v51  ;;  %v3414_v51 = vld [vmem:[#allocation7] sm:$0x3] }
 0x488   :  { %13976 = vpow2.f32 %v10920_v14  ;;  %v11002_v61 = vmul.f32 -1.442695, %v12071_v60  ;;  %5793 = vmatpush1.bf16.msra.mxu1 %v13122_v32  ;;  %v13136_v60 = vld [vmem:[#allocation6 + $0x8a4] ss:$8 sps:$4 sm:$0xff]  }
 0x489   :  { %13978 = vpow2.f32 %v11001_v33  ;;  %5794 = vmatprep.subr.bf16.mxu1 %v13127_v2  ;;  %v13131_v2 = vld [vmem:[#allocation6 + $0x890] ss:$8 sps:$4 sm:$0xff]  }
 0x48a   :  { %13980 = vpow2.f32 %v11002_v61  ;;  %v3295_v6 = vpop.f32.mrb[24].mxu1 }
 0x48b   :  { %v12072_v11 = vadd.f32 %v3295_v6, %v15603_v54  ;;  %v3297_v1 = vpop.f32.mrb[25].mxu1  ;;  %v3419_v6 = vrot.slane %v3414_v51, %v15296_v36 }
 0x48c   :  { %v12073_v21 = vadd.f32 %v3297_v1, %v15606_v47  ;;  %5795 = vmatpush1.bf16.msra.mxu1 %v13125_v63  ;;  %v3299_v29 = vpop.f32.mrb[26].mxu1 }
 0x48d   :  { %v11083_v40 = vmul.f32 -1.442695, %v12072_v11  ;;  %v12074_v35 = vadd.f32 %v3299_v29, %v15603_v54  ;;  %v3301_v13 = vpop.f32.mrb[27].mxu1  ;;  %5805 = vmatprep.subr.bf16.mxu1 %v13130_v31  ;;  %v3423_v29 = vrot.slane %v3414_v51, %v15299_v53  ;;  %v12088_v51 = vadd.f32 %v15520_v19, %v3419_v6 }
 0x48e   :  { %v11084_v27 = vmul.f32 -1.442695, %v12073_v21  ;;  %v12075_v32 = vadd.f32 %v3301_v13, %v15606_v47  ;;  %v13134_v13 = vld [vmem:[#allocation6 + $0x8a0] ss:$8 sps:$4 sm:$0xff]   ;;  %v15634_v19 = vadd.f32 %v15532_v46, %v15548_v3  ;;  %v15638_v6 = vadd.f32 %v15534_v18, %v15552_v7 }
 0x48f   :  { %13982 = vpow2.f32 %v11083_v40  ;;  %v11165_v25 = vmul.f32 -1.442695, %v12074_v35  ;;  %5797 = vmatmul.mubr.bf16.vlgmr.msra.gmra.mrb[44].mxu1 %v15339_v55 }
 0x490   :  { %13984 = vpow2.f32 %v11084_v27  ;;  %v11166_v58 = vmul.f32 -1.442695, %v12075_v32  ;;  %5806 = vmatpush1.bf16.msra.mxu1 %v13128_v52  ;;  %5837 = vmatprep.mubr.bf16.mxu1 %v15503_v41 }
 0x491   :  { %v13975_v14 = vpop.eup %13974  ;;  %13986 = vpow2.f32 %v11165_v25  ;;  %5807 = vmatprep.subr.bf16.mxu1 %v13133_v8 }
 0x492   :  { %v13977_v33 = vpop.eup %13976  ;;  %v3952_v61 = vadd.f32 1.0, %v13975_v14  ;;  %13988 = vpow2.f32 %v11166_v58  ;;  %v3305_v63 = vpop.f32.mrb[28].mxu1  ;;  %v13139_v58 = vld [vmem:[#allocation6 + $0x8b4] ss:$8 sps:$4 sm:$0xff]  }
 0x493   :  { %v13979_v31 = vpop.eup %13978  ;;  %v3958_v11 = vadd.f32 1.0, %v13977_v33  ;;  %v12076_v55 = vadd.f32 %v3305_v63, %v15603_v54  ;;  %v3307_v1 = vpop.f32.mrb[29].mxu1  ;;  %v12089_v63 = vadd.f32 %v15522_v20, %v3423_v29  ;;  %v13142_v20 = vld [vmem:[#allocation6 + $0x8c4] ss:$8 sps:$4 sm:$0xff]  }
 0x494   :  { %v13981_v21 = vpop.eup %13980  ;;  %13990 = vrcp.f32 %v3952_v61  ;;  %v4592_v52 = vadd.f32 1.0, %v13979_v31  ;;  %v12077_v40 = vadd.f32 %v3307_v1, %v15606_v47  ;;  %5808 = vmatpush1.bf16.msra.mxu1 %v13131_v2  ;;  %v3309_v35 = vpop.f32.mrb[30].mxu1  ;;  %v15625_v61 = vld [vmem:[#allocation7 + $0x4] sm:$0x3]  ;;  %v12048_v31 = vadd.f32 %v15528_v16, %v15548_v3 }
 0x495   :  { %13992 = vrcp.f32 %v3958_v11  ;;  %v4598_v8 = vadd.f32 1.0, %v13981_v21  ;;  %v11279_v27 = vmul.f32 -1.442695, %v12076_v55  ;;  %v12078_v32 = vadd.f32 %v3309_v35, %v15603_v54  ;;  %v3311_v25 = vpop.f32.mrb[31].mxu1  ;;  %5809 = vmatprep.subr.bf16.mxu1 %v13136_v60  ;;  %v13137_v60 = vld [vmem:[#allocation6 + $0x8b0] ss:$8 sps:$4 sm:$0xff]  }
 0x496   :  { %13994 = vrcp.f32 %v4592_v52  ;;  %v11280_v14 = vmul.f32 -1.442695, %v12077_v40  ;;  %v12079_v33 = vadd.f32 %v3311_v25, %v15606_v47  ;;  %v12049_v1 = vadd.f32 %v15530_v57, %v15552_v7 }
 0x497   :  { %13996 = vrcp.f32 %v4598_v8  ;;  %v11361_v2 = vmul.f32 -1.442695, %v12078_v32  ;;  %v15642_v21 = vadd.f32 %v15536_v43, %v15548_v3  ;;  %v4717_v29 = vrot.slane %v15625_v61, %v15296_v36 }
 0x498   :  { %13998 = vpow2.f32 %v11279_v27  ;;  %v11362_v11 = vmul.f32 -1.442695, %v12079_v33  ;;  %5810 = vmatpush1.bf16.msra.mxu1 %v13134_v13  ;;  %v4721_v40 = vrot.slane %v15625_v61, %v15299_v53  ;;  %v15651_v43 = vadd.f32 %v15538_v34, %v15552_v7 }
 0x499   :  { %v13983_v55 = vpop.eup %13982  ;;  %14000 = vpow2.f32 %v11280_v14  ;;  %5811 = vmatprep.subr.bf16.mxu1 %v13139_v58  ;;  %v13140_v58 = vld [vmem:[#allocation6 + $0x8c0] ss:$8 sps:$4 sm:$0xff]   ;;  %v15657_v34 = vadd.f32 %v15540_v9, %v15548_v3  ;;  %v15670_v3 = vadd.f32 %v15542_v44, %v15552_v7 }
 0x49a   :  { %v13985_v16 = vpop.eup %13984  ;;  %v5250_v57 = vadd.f32 1.0, %v13983_v55  ;;  %14002 = vpow2.f32 %v11361_v2  ;;  %v3315_v52 = vpop.f32.mrb[32].mxu1 }
 0x49b   :  { %v13987_v46 = vpop.eup %13986  ;;  %v5256_v18 = vadd.f32 1.0, %v13985_v16  ;;  %14004 = vpow2.f32 %v11362_v11  ;;  %v12080_v35 = vadd.f32 %v3315_v52, %v15603_v54  ;;  %v3317_v13 = vpop.f32.mrb[33].mxu1  ;;  %v13145_v11 = vld [vmem:[#allocation6 + $0x8d4] ss:$8 sps:$4 sm:$0xff]  }
 0x49c   :  { %v13989_v8 = vpop.eup %13988  ;;  %14006 = vrcp.f32 %v5250_v57  ;;  %v5890_v27 = vadd.f32 1.0, %v13987_v46  ;;  %v12081_v32 = vadd.f32 %v3317_v13, %v15606_v47  ;;  %5812 = vmatpush1.bf16.msra.mxu1 %v13137_v60  ;;  %v3319_v25 = vpop.f32.mrb[34].mxu1 }
 0x49d   :  { %14008 = vrcp.f32 %v5256_v18  ;;  %v5896_v14 = vadd.f32 1.0, %v13989_v8  ;;  %v11467_v33 = vmul.f32 -1.442695, %v12080_v35  ;;  %v12082_v61 = vadd.f32 %v3319_v25, %v15603_v54  ;;  %v3321_v2 = vpop.f32.mrb[35].mxu1  ;;  %5813 = vmatprep.subr.bf16.mxu1 %v13142_v20  ;;  %v13143_v8 = vld [vmem:[#allocation6 + $0x8d0] ss:$8 sps:$4 sm:$0xff]  }
 0x49e   :  { %v13991_v55 = vpop.eup %13990  ;;  %14010 = vrcp.f32 %v5890_v27  ;;  %v11468_v16 = vmul.f32 -1.442695, %v12081_v32  ;;  %v12083_v57 = vadd.f32 %v3321_v2, %v15606_v47  ;;  %v13148_v27 = vld [vmem:[#allocation6 + $0x8e4] ss:$8 sps:$4 sm:$0xff]  }
 0x49f   :  { %v13993_v60 = vpop.eup %13992  ;;  %v3962_v52 = vsub.f32 1.0, %v13991_v55  ;;  %14012 = vrcp.f32 %v5896_v14  ;;  %v11549_v46 = vmul.f32 -1.442695, %v12082_v61  ;;  %v15660_v18 = vmul.f32 %v13991_v55, %v12088_v51 }
 0x4a0   :  { %v15662_v35 = vpop.eup %13994  ;;  %v3967_v13 = vsub.f32 1.0, %v13993_v60  ;;  %14014 = vpow2.f32 %v11467_v33  ;;  %v11550_v20 = vmul.f32 -1.442695, %v12083_v57  ;;  %5814 = vmatpush1.bf16.msra.mxu1 %v13140_v58  ;;  %v15664_v25 = vmul.f32 %v13993_v60, %v12089_v63  ;;  %v13146_v60 = vld [vmem:[#allocation6 + $0x8e0] ss:$8 sps:$4 sm:$0xff]  }
 0x4a1   :  { %v15666_v9 = vpop.eup %13996  ;;  %14016 = vpow2.f32 %v11468_v16  ;;  %5815 = vmatprep.subr.bf16.mxu1 %v13145_v11  ;;  %v4602_v51 = vsub.f32 1.0, %v15662_v35  ;;  %v3963_v32 = vmul.f32 %v12048_v31, %v3962_v52  ;;  %v12092_v33 = vadd.f32 %v15596_v23, %v4717_v29 }
 0x4a2   :  { %v13999_v14 = vpop.eup %13998  ;;  %14018 = vpow2.f32 %v11549_v46  ;;  %v3325_v58 = vpop.f32.mrb[36].mxu1  ;;  %v4607_v63 = vsub.f32 1.0, %v15666_v9  ;;  %v3968_v61 = vmul.f32 %v12049_v1, %v3967_v13  ;;  %v12093_v31 = vadd.f32 %v15598_v38, %v4721_v40 }
 0x4a3   :  { %v14001_v2 = vpop.eup %14000  ;;  %v6725_v55 = vadd.f32 1.0, %v13999_v14  ;;  %14020 = vpow2.f32 %v11550_v20  ;;  %v12084_v44 = vadd.f32 %v3325_v58, %v15603_v54  ;;  %v3327_v7 = vpop.f32.mrb[37].mxu1  ;;  %v15677_v11 = vmul.f32 %v15634_v19, %v4602_v51  ;;  %v13151_v51 = vld [vmem:[#allocation6 + $0x8f4] ss:$8 sps:$4 sm:$0xff]  }
 0x4a4   :  { %v14003_v16 = vpop.eup %14002  ;;  %v6731_v57 = vadd.f32 1.0, %v14001_v2  ;;  %v12085_v23 = vadd.f32 %v3327_v7, %v15606_v47  ;;  %5816 = vmatpush1.bf16.msra.mxu1 %v13143_v8  ;;  %v3329_v29 = vpop.f32.mrb[38].mxu1  ;;  %v15682_v1 = vmul.f32 %v15638_v6, %v4607_v63 }
 0x4a5   :  { %v14005_v52 = vpop.eup %14004  ;;  %14022 = vrcp.f32 %v6725_v55  ;;  %v7365_v46 = vadd.f32 1.0, %v14003_v16  ;;  %v11655_v13 = vmul.f32 -1.442695, %v12084_v44  ;;  %v12086_v20 = vadd.f32 %v3329_v29, %v15603_v54  ;;  %v3331_v19 = vpop.f32.mrb[39].mxu1  ;;  %5817 = vmatprep.subr.bf16.mxu1 %v13148_v27  ;;  %v13149_v54 = vld [vmem:[#allocation6 + $0x8f0] ss:$8 sps:$4 sm:$0xff]  }
 0x4a6   :  { %v14007_v14 = vpop.eup %14006  ;;  %14024 = vrcp.f32 %v6731_v57  ;;  %v7371_v38 = vadd.f32 1.0, %v14005_v52  ;;  %v11656_v40 = vmul.f32 -1.442695, %v12085_v23  ;;  %v12087_v8 = vadd.f32 %v3331_v19, %v15606_v47  ;;  %v13154_v57 = vld [vmem:[#allocation6 + $0x904] ss:$8 sps:$4 sm:$0xff]  }
 0x4a7   :  { %v14009_v58 = vpop.eup %14008  ;;  %v5260_v2 = vsub.f32 1.0, %v14007_v14  ;;  %14026 = vrcp.f32 %v7365_v46  ;;  %v11737_v6 = vmul.f32 -1.442695, %v12086_v20  ;;  %v5259_v63 = vmul.f32 %v14007_v14, %v12092_v33 }
 0x4a8   :  { %v15686_v7 = vpop.eup %14010  ;;  %v5265_v55 = vsub.f32 1.0, %v14009_v58  ;;  %14028 = vrcp.f32 %v7371_v38  ;;  %v11738_v44 = vmul.f32 -1.442695, %v12087_v8  ;;  %5818 = vmatpush1.bf16.msra.mxu1 %v13146_v60  ;;  %v5264_v27 = vmul.f32 %v14009_v58, %v12093_v31 }
 0x4a9   :  { %v15688_v16 = vpop.eup %14012  ;;  %14030 = vpow2.f32 %v11655_v13  ;;  %5819 = vmatprep.subr.bf16.mxu1 %v13151_v51  ;;  %v5900_v47 = vsub.f32 1.0, %v15686_v7  ;;  %v5261_v23 = vmul.f32 %v15642_v21, %v5260_v2  ;;  %v3964_v29 = vadd.f32 %v3963_v32, %v15660_v18  ;;  %v13152_v21 = vld [vmem:[#allocation6 + $0x900] ss:$8 sps:$4 sm:$0xff]  }
 0x4aa   :  { %v14015_v33 = vpop.eup %14014  ;;  %14032 = vpow2.f32 %v11656_v40  ;;  %v5905_v52 = vsub.f32 1.0, %v15688_v16  ;;  %v5266_v46 = vmul.f32 %v15651_v43, %v5265_v55  ;;  %v3969_v60 = vadd.f32 %v3968_v61, %v15664_v25  ;;  %v13157_v25 = vld [vmem:[#allocation6 + $0x914] ss:$8 sps:$4 sm:$0xff]  }
 0x4ab   :  { %v14017_v31 = vpop.eup %14016  ;;  %v8113_v20 = vadd.f32 1.0, %v14015_v33  ;;  %14034 = vpow2.f32 %v11737_v6  ;;  %v15697_v13 = vmul.f32 %v15657_v34, %v5900_v47  ;;  %v5262_v19 = vadd.f32 %v5261_v23, %v5259_v63 }
 0x4ac   :  { %v14019_v51 = vpop.eup %14018  ;;  %v8119_v14 = vadd.f32 1.0, %v14017_v31  ;;  %14036 = vpow2.f32 %v11738_v44  ;;  %5820 = vmatpush1.bf16.msra.mxu1 %v13149_v54  ;;  %v15700_v18 = vmul.f32 %v15670_v3, %v5905_v52  ;;  %v5267_v32 = vadd.f32 %v5266_v46, %v5264_v27  ;;  %v13155_v3 = vld [vmem:[#allocation6 + $0x910] ss:$8 sps:$4 sm:$0xff]   ;;  %v13160_v27 = vld [vmem:[#allocation6 + $0x924] ss:$8 sps:$4 sm:$0xff]  }
 0x4ad   :  { %v14021_v38 = vpop.eup %14020  ;;  %14038 = vrcp.f32 %v8113_v20  ;;  %v8753_v43 = vadd.f32 1.0, %v14019_v51  ;;  %5821 = vmatprep.subr.bf16.mxu1 %v13154_v57  ;;  %v5263_v61 = vmax.f32 %v5262_v19, 0.0  ;;  %v3965_v40 = vmax.f32 %v3964_v29, 0.0  ;;  %v13158_v20 = vld [vmem:[#allocation6 + $0x920] ss:$8 sps:$4 sm:$0xff]  }
 0x4ae   :  { %14040 = vrcp.f32 %v8119_v14  ;;  %v8759_v34 = vadd.f32 1.0, %v14021_v38  ;;  %v5268_v8 = vmax.f32 %v5267_v32, 0.0  ;;  %v3970_v58 = vmax.f32 %v3969_v60, 0.0 }
 0x4af   :  { %v15702_v2 = vpop.eup %14022  ;;  %14042 = vrcp.f32 %v8753_v43 }
 0x4b0   :  { %v15704_v6 = vpop.eup %14024  ;;  %14044 = vrcp.f32 %v8759_v34  ;;  %5822 = vmatpush1.bf16.msra.mxu1 %v13152_v21  ;;  %v15706_v63 = vmax.f32 %v5263_v61, %v5268_v8  ;;  %v15708_v55 = vmax.f32 %v3965_v40, %v3970_v58  ;;  %v6735_v44 = vsub.f32 1.0, %v15702_v2  ;;  %v13163_v21 = vld [vmem:[#allocation6 + $0x934] ss:$8 sps:$4 sm:$0xff]  }
 0x4b1   :  { %v15711_v54 = vpop.eup %14026  ;;  %5823 = vmatprep.subr.bf16.mxu1 %v13157_v25  ;;  %v6740_v57 = vsub.f32 1.0, %v15704_v6 }
 0x4b2   :  { %v15714_v47 = vpop.eup %14028  ;;  %v7375_v23 = vsub.f32 1.0, %v15711_v54  ;;  %v15718_v29 = vmul.f32 %v15555_v50, %v6735_v44 }
 0x4b3   :  { %v14031_v33 = vpop.eup %14030  ;;  %v7380_v52 = vsub.f32 1.0, %v15714_v47  ;;  %v15722_v46 = vmul.f32 %v15558_v62, %v6740_v57  ;;  %v13164_v57 = vld [vmem:[#allocation6 + $0x940] ss:$8 sps:$4 sm:$0xff]  }
 0x4b4   :  { %v14033_v60 = vpop.eup %14032  ;;  %v9501_v31 = vadd.f32 1.0, %v14031_v33  ;;  %5824 = vmatpush1.bf16.msra.mxu1 %v13155_v3  ;;  %v15725_v19 = vmul.f32 %v15561_v37, %v7375_v23  ;;  %v13161_v37 = vld [vmem:[#allocation6 + $0x930] ss:$8 sps:$4 sm:$0xff]   ;;  %v13169_v33 = vld [vmem:[#allocation6 + $0x954] ss:$8 sps:$4 sm:$0xff]  }
 0x4b5   :  { %v14035_v51 = vpop.eup %14034  ;;  %v9507_v14 = vadd.f32 1.0, %v14033_v60  ;;  %5825 = vmatprep.subr.bf16.mxu1 %v13160_v27  ;;  %v15728_v50 = vmul.f32 %v15564_v10, %v7380_v52  ;;  %v13166_v10 = vld [vmem:[#allocation6 + $0x944] ss:$8 sps:$4 sm:$0xff]  }
 0x4b6   :  { %v14037_v32 = vpop.eup %14036  ;;  %14046 = vrcp.f32 %v9501_v31  ;;  %v10141_v38 = vadd.f32 1.0, %v14035_v51 }
 0x4b7   :  { %v15730_v43 = vpop.eup %14038  ;;  %14048 = vrcp.f32 %v9507_v14  ;;  %v10147_v62 = vadd.f32 1.0, %v14037_v32  ;;  %v13170_v32 = vld [vmem:[#allocation6 + $0x960] ss:$8 sps:$4 sm:$0xff]  }
 0x4b8   :  { %v15732_v25 = vpop.eup %14040  ;;  %14050 = vrcp.f32 %v10141_v38  ;;  %5826 = vmatpush1.bf16.msra.mxu1 %v13158_v20  ;;  %v8123_v61 = vsub.f32 1.0, %v15730_v43  ;;  %v13172_v20 = vld [vmem:[#allocation6 + $0x964] ss:$8 sps:$4 sm:$0xff]  }
 0x4b9   :  { %v15735_v40 = vpop.eup %14042  ;;  %14052 = vrcp.f32 %v10147_v62  ;;  %5827 = vmatprep.subr.bf16.mxu1 %v13163_v21  ;;  %v8128_v34 = vsub.f32 1.0, %v15732_v25 }
 0x4ba   :  { %v15738_v8 = vpop.eup %14044  ;;  %v8763_v58 = vsub.f32 1.0, %v15735_v40  ;;  %v15742_v3 = vmul.f32 %v15569_v42, %v8123_v61  ;;  %v13167_v42 = vld [vmem:[#allocation6 + $0x950] ss:$8 sps:$4 sm:$0xff]  }
 0x4bb   :  { %v8768_v44 = vsub.f32 1.0, %v15738_v8  ;;  %v15746_v27 = vmul.f32 %v15572_v48, %v8128_v34  ;;  %v13178_v34 = vld [vmem:[#allocation6 + $0x984] ss:$8 sps:$4 sm:$0xff]  }
 0x4bc   :  { %5828 = vmatpush1.bf16.msra.mxu1 %v13161_v37  ;;  %v15749_v23 = vmul.f32 %v15575_v4, %v8763_v58  ;;  %v13175_v37 = vld [vmem:[#allocation6 + $0x974] ss:$8 sps:$4 sm:$0xff]   ;;  %v13176_v58 = vld [vmem:[#allocation6 + $0x980] ss:$8 sps:$4 sm:$0xff]  }
 0x4bd   :  { %5829 = vmatprep.subr.bf16.mxu1 %v13166_v10  ;;  %v15752_v52 = vmul.f32 %v15578_v22, %v8768_v44  ;;  %v13181_v44 = vld [vmem:[#allocation6 + $0x994] ss:$8 sps:$4 sm:$0xff]  }
 0x4c0   :  { %v15754_v60 = vpop.eup %14046  ;;  %5830 = vmatpush1.bf16.msra.mxu1 %v13164_v57  ;;  %v13182_v57 = vld [vmem:[#allocation6 + $0x9a0] ss:$8 sps:$4 sm:$0xff]  }
 0x4c1   :  { %v15756_v31 = vpop.eup %14048  ;;  %5831 = vmatprep.subr.bf16.mxu1 %v13169_v33  ;;  %v9511_v48 = vsub.f32 1.0, %v15754_v60  ;;  %v13185_v33 = vld [vmem:[#allocation6 + $0x9b0] ss:$8 sps:$4 sm:$0xff]  }
 0x4c2   :  { %v15759_v51 = vpop.eup %14050  ;;  %v9516_v4 = vsub.f32 1.0, %v15756_v31 }
 0x4c3   :  { %v15762_v14 = vpop.eup %14052  ;;  %v15765_v21 = vmul.f32 %v15581_v30, %v9511_v48  ;;  %v10151_v22 = vsub.f32 1.0, %v15759_v51  ;;  %v13173_v30 = vld [vmem:[#allocation6 + $0x970] ss:$8 sps:$4 sm:$0xff]   ;;  %v13193_v48 = vld [vmem:[#allocation6 + $0x9d4] ss:$8 sps:$4 sm:$0xff]  }
 0x4c4   :  { %5832 = vmatpush1.bf16.msra.mxu1 %v13167_v42  ;;  %v15769_v38 = vmul.f32 %v15584_v17, %v9516_v4  ;;  %v10156_v62 = vsub.f32 1.0, %v15762_v14  ;;  %v13179_v17 = vld [vmem:[#allocation6 + $0x990] ss:$8 sps:$4 sm:$0xff]   ;;  %v13190_v42 = vld [vmem:[#allocation6 + $0x9c4] ss:$8 sps:$4 sm:$0xff]  }
 0x4c5   :  { %5833 = vmatprep.subr.bf16.mxu1 %v13172_v20  ;;  %v15773_v61 = vmul.f32 %v15587_v26, %v10151_v22  ;;  %v13184_v26 = vld [vmem:[#allocation6 + $0x9a4] ss:$8 sps:$4 sm:$0xff]   ;;  %v13188_v20 = vld [vmem:[#allocation6 + $0x9c0] ss:$8 sps:$4 sm:$0xff]   ;;  %v13191_v4 = vld [vmem:[#allocation6 + $0x9d0] ss:$8 sps:$4 sm:$0xff]  }
 0x4c6   :  { %v15776_v10 = vmul.f32 %v15590_v5, %v10156_v62  ;;  %v13187_v5 = vld [vmem:[#allocation6 + $0x9b4] ss:$8 sps:$4 sm:$0xff]   ;;  %v13196_v22 = vld [vmem:[#allocation6 + $0x9e4] ss:$8 sps:$4 sm:$0xff]  }
 0x4c7   :  { %v13199_v62 = vld [vmem:[#allocation6 + $0x9f4] ss:$8 sps:$4 sm:$0xff]  }
 0x4c8   :  { %5834 = vmatpush1.bf16.msra.mxu1 %v13170_v32  ;;  %v13194_v32 = vld [vmem:[#allocation6 + $0x9e0] ss:$8 sps:$4 sm:$0xff]  }
 0x4c9   :  { %5835 = vmatprep.subr.bf16.mxu1 %v13175_v37  ;;  %v13197_v37 = vld [vmem:[#allocation6 + $0x9f0] ss:$8 sps:$4 sm:$0xff]  }
 0x4cc   :  { %5836 = vmatpush1.bf16.msra.mxu1 %v13173_v30  ;;  %v13202_v30 = vld [vmem:[#allocation6 + $0xc84] ss:$8 sps:$4 sm:$0xff]  }
 0x4cd   :  { %5846 = vmatprep.subr.bf16.mxu1 %v13178_v34  ;;  %v13200_v34 = vld [vmem:[#allocation6 + $0xc80] ss:$8 sps:$4 sm:$0xff]  }
 0x4cf   :  { %5838 = vmatmul.mubr.bf16.vlgmr.msra.gmra.mrb[44].mxu1 %v15483_v12 }
 0x4d0   :  { %5847 = vmatpush1.bf16.msra.mxu1 %v13176_v58  ;;  %5878 = vmatprep.mubr.bf16.mxu1 %v16150_v24  ;;  %v15782_v58 = vpack.c.bf16 %v15379_v28, %v15379_v28  ;;  %v13212_v28 = vld [vmem:[#allocation6 + $0xcc0] ss:$8 sps:$4 sm:$0xff]  }
 0x4d1   :  { %5848 = vmatprep.subr.bf16.mxu1 %v13181_v44  ;;  %v13205_v44 = vld [vmem:[#allocation6 + $0xc94] ss:$8 sps:$4 sm:$0xff]  }
 0x4d4   :  { %5849 = vmatpush1.bf16.msra.mxu1 %v13179_v17  ;;  %v13203_v17 = vld [vmem:[#allocation6 + $0xc90] ss:$8 sps:$4 sm:$0xff]  }
 0x4d5   :  { %5850 = vmatprep.subr.bf16.mxu1 %v13184_v26  ;;  %v13208_v26 = vld [vmem:[#allocation6 + $0xca4] ss:$8 sps:$4 sm:$0xff]  }
 0x4d8   :  { %5851 = vmatpush1.bf16.msra.mxu1 %v13182_v57  ;;  %v13206_v57 = vld [vmem:[#allocation6 + $0xca0] ss:$8 sps:$4 sm:$0xff]  }
 0x4d9   :  { %5852 = vmatprep.subr.bf16.mxu1 %v13187_v5  ;;  %v13211_v5 = vld [vmem:[#allocation6 + $0xcb4] ss:$8 sps:$4 sm:$0xff]  }
 0x4dc   :  { %5853 = vmatpush1.bf16.msra.mxu1 %v13185_v33  ;;  %v13209_v33 = vld [vmem:[#allocation6 + $0xcb0] ss:$8 sps:$4 sm:$0xff]  }
 0x4dd   :  { %5854 = vmatprep.subr.bf16.mxu1 %v13190_v42  ;;  %v13214_v42 = vld [vmem:[#allocation6 + $0xcc4] ss:$8 sps:$4 sm:$0xff]  }
 0x4e0   :  { %5855 = vmatpush1.bf16.msra.mxu1 %v13188_v20  ;;  %v13217_v20 = vld [vmem:[#allocation6 + $0xcd4] ss:$8 sps:$4 sm:$0xff]  }
 0x4e1   :  { %5856 = vmatprep.subr.bf16.mxu1 %v13193_v48  ;;  %v13215_v48 = vld [vmem:[#allocation6 + $0xcd0] ss:$8 sps:$4 sm:$0xff]  }
 0x4e4   :  { %5857 = vmatpush1.bf16.msra.mxu1 %v13191_v4  ;;  %v13220_v4 = vld [vmem:[#allocation6 + $0xce4] ss:$8 sps:$4 sm:$0xff]  }
 0x4e5   :  { %5858 = vmatprep.subr.bf16.mxu1 %v13196_v22  ;;  %v13218_v22 = vld [vmem:[#allocation6 + $0xce0] ss:$8 sps:$4 sm:$0xff]  }
 0x4e8   :  { %5859 = vmatpush1.bf16.msra.mxu1 %v13194_v32  ;;  %v13223_v32 = vld [vmem:[#allocation6 + $0xcf4] ss:$8 sps:$4 sm:$0xff]  }
 0x4e9   :  { %5860 = vmatprep.subr.bf16.mxu1 %v13199_v62  ;;  %v13221_v62 = vld [vmem:[#allocation6 + $0xcf0] ss:$8 sps:$4 sm:$0xff]  }
 0x4ec   :  { %5861 = vmatpush1.bf16.msra.mxu1 %v13197_v37  ;;  %v13226_v37 = vld [vmem:[#allocation6 + $0xd04] ss:$8 sps:$4 sm:$0xff]  }
 0x4ed   :  { %7239 = vmatprep.subr.bf16.mxu1 %v13202_v30  ;;  %v13224_v30 = vld [vmem:[#allocation6 + $0xd00] ss:$8 sps:$4 sm:$0xff]  }
 0x4ef   :  { %5879 = vmatmul.mubr.bf16.vlgmr.msra.gmra.mrb[44].mxu1 %v15782_v58 }
 0x4f0   :  { %7240 = vmatpush1.bf16.msra.mxu1 %v13200_v34  ;;  %7271 = vmatprep.mubr.bf16.mxu1 %v15503_v41  ;;  %v13229_v34 = vld [vmem:[#allocation6 + $0xd14] ss:$8 sps:$4 sm:$0xff]  }
 0x4f1   :  { %7241 = vmatprep.subr.bf16.mxu1 %v13205_v44  ;;  %v13227_v44 = vld [vmem:[#allocation6 + $0xd10] ss:$8 sps:$4 sm:$0xff]  }
 0x4f4   :  { %7242 = vmatpush1.bf16.msra.mxu1 %v13203_v17  ;;  %v13232_v17 = vld [vmem:[#allocation6 + $0xd24] ss:$8 sps:$4 sm:$0xff]  }
 0x4f5   :  { %7243 = vmatprep.subr.bf16.mxu1 %v13208_v26  ;;  %v13230_v26 = vld [vmem:[#allocation6 + $0xd20] ss:$8 sps:$4 sm:$0xff]  }
 0x4f8   :  { %7244 = vmatpush1.bf16.msra.mxu1 %v13206_v57  ;;  %v13235_v57 = vld [vmem:[#allocation6 + $0xd34] ss:$8 sps:$4 sm:$0xff]  }
 0x4f9   :  { %7245 = vmatprep.subr.bf16.mxu1 %v13211_v5  ;;  %v13233_v5 = vld [vmem:[#allocation6 + $0xd30] ss:$8 sps:$4 sm:$0xff]  }
 0x4fc   :  { %7246 = vmatpush1.bf16.msra.mxu1 %v13209_v33  ;;  %v13238_v33 = vld [vmem:[#allocation6 + $0xd44] ss:$8 sps:$4 sm:$0xff]  }
 0x4fd   :  { %7247 = vmatprep.subr.bf16.mxu1 %v13214_v42  ;;  %v13236_v42 = vld [vmem:[#allocation6 + $0xd40] ss:$8 sps:$4 sm:$0xff]  }
 0x500   :  { %7248 = vmatpush1.bf16.msra.mxu1 %v13212_v28  ;;  %v4054_v28 = vld [vmem:[#allocation7 + $0x2] sm:$0x3] }
 0x501   :  { %7249 = vmatprep.subr.bf16.mxu1 %v13217_v20  ;;  %v13241_v20 = vld [vmem:[#allocation6 + $0xd54] ss:$8 sps:$4 sm:$0xff]  }
 0x504   :  { %7250 = vmatpush1.bf16.msra.mxu1 %v13215_v48  ;;  %v4059_v48 = vrot.slane %v4054_v28, %v15296_v36 }
 0x505   :  { %7251 = vmatprep.subr.bf16.mxu1 %v13220_v4  ;;  %v4063_v4 = vrot.slane %v4054_v28, %v15299_v53 }
 0x508   :  { %7252 = vmatpush1.bf16.msra.mxu1 %v13218_v22  ;;  %v13239_v22 = vld [vmem:[#allocation6 + $0xd50] ss:$8 sps:$4 sm:$0xff]  }
 0x509   :  { %7253 = vmatprep.subr.bf16.mxu1 %v13223_v32  ;;  %v13244_v32 = vld [vmem:[#allocation6 + $0xd64] ss:$8 sps:$4 sm:$0xff]  }
 0x50c   :  { %7254 = vmatpush1.bf16.msra.mxu1 %v13221_v62 }
 0x50d   :  { %7255 = vmatprep.subr.bf16.mxu1 %v13226_v37 }
 0x510   :  { %7256 = vmatpush1.bf16.msra.mxu1 %v13224_v30 }
 0x511   :  { %7257 = vmatprep.subr.bf16.mxu1 %v13229_v34 }
 0x514   :  { %7258 = vmatpush1.bf16.msra.mxu1 %v13227_v44 }
 0x515   :  { %7259 = vmatprep.subr.bf16.mxu1 %v13232_v17  ;;  %v13242_v17 = vld [vmem:[#allocation6 + $0xd60] ss:$8 sps:$4 sm:$0xff]  }
 0x518   :  { %7260 = vmatpush1.bf16.msra.mxu1 %v13230_v26 }
 0x519   :  { %7261 = vmatprep.subr.bf16.mxu1 %v13235_v57 }
 0x51c   :  { %7262 = vmatpush1.bf16.msra.mxu1 %v13233_v5  ;;  %v13247_v5 = vld [vmem:[#allocation6 + $0xd74] ss:$8 sps:$4 sm:$0xff]  }
 0x51d   :  { %7263 = vmatprep.subr.bf16.mxu1 %v13238_v33 }
 0x520   :  { %7264 = vmatpush1.bf16.msra.mxu1 %v13236_v42 }
 0x521   :  { %7265 = vmatprep.subr.bf16.mxu1 %v13241_v20  ;;  %v13245_v20 = vld [vmem:[#allocation6 + $0xd70] ss:$8 sps:$4 sm:$0xff]  }
 0x522   :  { %v4582_v62 = vpop.f32.mrb[40].mxu1 }
 0x523   :  { %v12090_v37 = vadd.f32 %v4582_v62, %v4059_v48  ;;  %v4584_v30 = vpop.f32.mrb[41].mxu1  ;;  %v13250_v48 = vld [vmem:[#allocation6 + $0xd84] ss:$8 sps:$4 sm:$0xff]  }
 0x524   :  { %v12091_v34 = vadd.f32 %v4584_v30, %v4063_v4  ;;  %v4586_v44 = vpop.f32.mrb[42].mxu1  ;;  %7266 = vmatpush1.bf16.msra.mxu1 %v13239_v22  ;;  %v13248_v22 = vld [vmem:[#allocation6 + $0xd80] ss:$8 sps:$4 sm:$0xff]   ;;  %v13259_v30 = vld [vmem:[#allocation6 + $0xdb4] ss:$8 sps:$4 sm:$0xff]  }
 0x525   :  { %v4601_v26 = vmul.f32 %v15662_v35, %v12090_v37  ;;  %v4587_v57 = vpop.f32.mrb[43].mxu1  ;;  %7267 = vmatprep.subr.bf16.mxu1 %v13244_v32  ;;  %v13253_v35 = vld [vmem:[#allocation6 + $0xd94] ss:$8 sps:$4 sm:$0xff]   ;;  %v15794_v32 = vpack.c.bf16 %v15389_v59, %v15389_v59  ;;  %v14331_v37 = vmov 0.0   ;;  %v13254_v59 = vld [vmem:[#allocation6 + $0xda0] ss:$8 sps:$4 sm:$0xff]  }
 0x526   :  { %v4606_v33 = vmul.f32 %v15666_v9, %v12091_v34  ;;  %11856 = vmatprep.subr.bf16.mxu0 %v14331_v37  ;;  %v13257_v34 = vld [vmem:[#allocation6 + $0xdb0] ss:$8 sps:$4 sm:$0xff]   ;;  %11872 = vmatprep.mubr.msk.bf16.mxu0 %vm14332_vm3, %v14331_v37 }
 0x527   :  { %v4604_v42 = vadd.f32 %v15677_v11, %v4601_v26  ;;  %v13251_v11 = vld [vmem:[#allocation6 + $0xd90] ss:$8 sps:$4 sm:$0xff]   ;;  %v13260_v26 = vld [vmem:[#allocation6 + $0xdc0] ss:$8 sps:$4 sm:$0xff]  }
 0x528   :  { %v4609_v28 = vadd.f32 %v15682_v1, %v4606_v33  ;;  %7268 = vmatpush1.bf16.msra.mxu1 %v13242_v17  ;;  %v13256_v1 = vld [vmem:[#allocation6 + $0xda4] ss:$8 sps:$4 sm:$0xff]   ;;  %v13359_v57 = vld [vmem:[%s16136_s7 + $0x58] sm:$0xff]  }
 0x529   :  { %v4605_v24 = vmax.f32 %v4604_v42, 0.0  ;;  %7269 = vmatprep.subr.bf16.mxu1 %v13247_v5  ;;  %v13355_v44 = vld [vmem:[%s16136_s7 + $0x50] sm:$0xff]  }
 0x52a   :  { %v4610_v4 = vmax.f32 %v4609_v28, 0.0  ;;  %v13262_v17 = vld [vmem:[#allocation6 + $0xdc4] ss:$8 sps:$4 sm:$0xff]   ;;  %v13265_v5 = vld [vmem:[#allocation6 + $0xdd4] ss:$8 sps:$4 sm:$0xff]  }
 0x52b   :  { %v13263_v33 = vld [vmem:[#allocation6 + $0xdd0] ss:$8 sps:$4 sm:$0xff]   ;;  %v13268_v42 = vld [vmem:[#allocation6 + $0xde4] ss:$8 sps:$4 sm:$0xff]  }
 0x52c   :  { %v4611_v62 = vmax.f32 %v4605_v24, %v4610_v4  ;;  %7270 = vmatpush1.bf16.msra.mxu1 %v13245_v20  ;;  %v13347_v24 = vld [vmem:[%s16136_s7 + $0x40] sm:$0xff]   ;;  %v13367_v4 = vld [vmem:[%s16136_s7 + $0x68] sm:$0xff]  }
 0x52d   :  { %7280 = vmatprep.subr.bf16.mxu1 %v13250_v48  ;;  %11857 = vmatpush3.bf16.msra.mxu0 %v13347_v24  ;;  %v13363_v28 = vld [vmem:[%s16136_s7 + $0x60] sm:$0xff]   ;;  %v13375_v24 = vld [vmem:[%s16136_s7 + $0x78] sm:$0xff]  }
 0x52e   :  { %v15797_v9 = vmax.f32 %v15708_v55, %v4611_v62  ;;  %11858 = vmatprep.subr.bf16.mxu0 %v14331_v37  ;;  %v13351_v55 = vld [vmem:[%s16136_s7 + $0x48] sm:$0xff]   ;;  %v13271_v48 = vld [vmem:[#allocation6 + $0xdf4] ss:$8 sps:$4 sm:$0xff]   ;;  %v13269_v62 = vld [vmem:[#allocation6 + $0xdf0] ss:$8 sps:$4 sm:$0xff]  }
 0x52f   :  { %7272 = vmatmul.mubr.bf16.vlgmr.msra.gmra.mrb[48].mxu1 %v15483_v12  ;;  %v13266_v20 = vld [vmem:[#allocation6 + $0xde0] ss:$8 sps:$4 sm:$0xff]  }
 0x530   :  { %7281 = vmatpush1.bf16.msra.mxu1 %v13248_v22  ;;  %7312 = vmatprep.mubr.bf16.mxu1 %v15794_v32  ;;  %v13274_v22 = vld [vmem:[#allocation6 + $0xe04] ss:$8 sps:$4 sm:$0xff]  }
 0x531   :  { %7282 = vmatprep.subr.bf16.mxu1 %v13253_v35  ;;  %11859 = vmatpush3.bf16.msra.mxu0 %v13351_v55  ;;  %v13371_v35 = vld [vmem:[%s16136_s7 + $0x70] sm:$0xff]  }
 0x532   :  { %11860 = vmatprep.subr.bf16.mxu0 %v14331_v37  ;;  %v13280_v55 = vld [vmem:[#allocation6 + $0xe24] ss:$8 sps:$4 sm:$0xff]  }
 0x534   :  { %7283 = vmatpush1.bf16.msra.mxu1 %v13251_v11  ;;  %v13272_v11 = vld [vmem:[#allocation6 + $0xe00] ss:$8 sps:$4 sm:$0xff]  }
 0x535   :  { %7284 = vmatprep.subr.bf16.mxu1 %v13256_v1  ;;  %11861 = vmatpush3.bf16.msra.mxu0 %v13355_v44  ;;  %v13277_v1 = vld [vmem:[#allocation6 + $0xe14] ss:$8 sps:$4 sm:$0xff]   ;;  %v13281_v44 = vld [vmem:[#allocation6 + $0xe30] ss:$8 sps:$4 sm:$0xff]  }
 0x536   :  { %11862 = vmatprep.subr.bf16.mxu0 %v14331_v37 }
 0x538   :  { %7285 = vmatpush1.bf16.msra.mxu1 %v13254_v59  ;;  %v13275_v59 = vld [vmem:[#allocation6 + $0xe10] ss:$8 sps:$4 sm:$0xff]  }
 0x539   :  { %7286 = vmatprep.subr.bf16.mxu1 %v13259_v30  ;;  %11863 = vmatpush3.bf16.msra.mxu0 %v13359_v57  ;;  %v13278_v30 = vld [vmem:[#allocation6 + $0xe20] ss:$8 sps:$4 sm:$0xff]   ;;  %v13289_v57 = vld [vmem:[#allocation6 + $0xe54] ss:$8 sps:$4 sm:$0xff]  }
 0x53a   :  { %11864 = vmatprep.subr.bf16.mxu0 %v14331_v37 }
 0x53c   :  { %7287 = vmatpush1.bf16.msra.mxu1 %v13257_v34  ;;  %v13283_v34 = vld [vmem:[#allocation6 + $0xe34] ss:$8 sps:$4 sm:$0xff]  }
 0x53d   :  { %7288 = vmatprep.subr.bf16.mxu1 %v13262_v17  ;;  %11865 = vmatpush3.bf16.msra.mxu0 %v13363_v28  ;;  %v13286_v17 = vld [vmem:[#allocation6 + $0xe44] ss:$8 sps:$4 sm:$0xff]   ;;  %v13295_v28 = vld [vmem:[#allocation6 + $0xe74] ss:$8 sps:$4 sm:$0xff]  }
 0x53e   :  { %11866 = vmatprep.subr.bf16.mxu0 %v14331_v37 }
 0x540   :  { %7289 = vmatpush1.bf16.msra.mxu1 %v13260_v26  ;;  %v13284_v26 = vld [vmem:[#allocation6 + $0xe40] ss:$8 sps:$4 sm:$0xff]  }
 0x541   :  { %7290 = vmatprep.subr.bf16.mxu1 %v13265_v5  ;;  %11867 = vmatpush3.bf16.msra.mxu0 %v13367_v4  ;;  %v13287_v5 = vld [vmem:[#allocation6 + $0xe50] ss:$8 sps:$4 sm:$0xff]   ;;  %v13296_v4 = vld [vmem:[#allocation6 + $0xe80] ss:$8 sps:$4 sm:$0xff]  }
 0x542   :  { %11868 = vmatprep.subr.bf16.mxu0 %v14331_v37 }
 0x544   :  { %7291 = vmatpush1.bf16.msra.mxu1 %v13263_v33  ;;  %v13292_v33 = vld [vmem:[#allocation6 + $0xe64] ss:$8 sps:$4 sm:$0xff]  }
 0x545   :  { %7292 = vmatprep.subr.bf16.mxu1 %v13268_v42  ;;  %11869 = vmatpush3.bf16.msra.mxu0 %v13371_v35  ;;  %v13290_v42 = vld [vmem:[#allocation6 + $0xe60] ss:$8 sps:$4 sm:$0xff]   ;;  %v16167_v35 = vmov 0  }
 0x546   :  { %11870 = vmatprep.subr.bf16.mxu0 %v14331_v37 }
 0x548   :  { %7293 = vmatpush1.bf16.msra.mxu1 %v13266_v20  ;;  %v13293_v20 = vld [vmem:[#allocation6 + $0xe70] ss:$8 sps:$4 sm:$0xff]  }
 0x549   :  { %7294 = vmatprep.subr.bf16.mxu1 %v13271_v48  ;;  %11871 = vmatpush3.bf16.msra.mxu0 %v13375_v24  ;;  %v13298_v48 = vld [vmem:[#allocation6 + $0xe84] ss:$8 sps:$4 sm:$0xff]   ;;  %v13302_v24 = vld [vmem:[#allocation6 + $0xea0] ss:$8 sps:$4 sm:$0xff]  }
 0x54a   :  { %11876 = vmatprep.subr.bf16.mxu0 %v14331_v37 }
 0x54c   :  { %7295 = vmatpush1.bf16.msra.mxu1 %v13269_v62  ;;  %v13301_v62 = vld [vmem:[#allocation6 + $0xe94] ss:$8 sps:$4 sm:$0xff]  }
 0x54d   :  { %7296 = vmatprep.subr.bf16.mxu1 %v13274_v22  ;;  %v13299_v22 = vld [vmem:[#allocation6 + $0xe90] ss:$8 sps:$4 sm:$0xff]  }
 0x550   :  { %7297 = vmatpush1.bf16.msra.mxu1 %v13272_v11  ;;  %v13304_v11 = vld [vmem:[#allocation6 + $0xea4] ss:$8 sps:$4 sm:$0xff]  }
 0x551   :  { %7298 = vmatprep.subr.bf16.mxu1 %v13277_v1  ;;  %v13307_v1 = vld [vmem:[#allocation6 + $0xeb4] ss:$8 sps:$4 sm:$0xff]  }
 0x554   :  { %7299 = vmatpush1.bf16.msra.mxu1 %v13275_v59  ;;  %v13305_v59 = vld [vmem:[#allocation6 + $0xeb0] ss:$8 sps:$4 sm:$0xff]  }
 0x555   :  { %7300 = vmatprep.subr.bf16.mxu1 %v13280_v55  ;;  %v13310_v55 = vld [vmem:[#allocation6 + $0xec4] ss:$8 sps:$4 sm:$0xff]  }
 0x558   :  { %7301 = vmatpush1.bf16.msra.mxu1 %v13278_v30  ;;  %v13308_v30 = vld [vmem:[#allocation6 + $0xec0] ss:$8 sps:$4 sm:$0xff]  }
 0x559   :  { %7302 = vmatprep.subr.bf16.mxu1 %v13283_v34  ;;  %v13313_v34 = vld [vmem:[#allocation6 + $0xed4] ss:$8 sps:$4 sm:$0xff]  }
 0x55c   :  { %7303 = vmatpush1.bf16.msra.mxu1 %v13281_v44  ;;  %v13311_v44 = vld [vmem:[#allocation6 + $0xed0] ss:$8 sps:$4 sm:$0xff]  }
 0x55d   :  { %7304 = vmatprep.subr.bf16.mxu1 %v13286_v17  ;;  %v13316_v17 = vld [vmem:[#allocation6 + $0xee4] ss:$8 sps:$4 sm:$0xff]  }
 0x560   :  { %7305 = vmatpush1.bf16.msra.mxu1 %v13284_v26  ;;  %v13314_v26 = vld [vmem:[#allocation6 + $0xee0] ss:$8 sps:$4 sm:$0xff]  }
 0x561   :  { %7306 = vmatprep.subr.bf16.mxu1 %v13289_v57  ;;  %v13319_v57 = vld [vmem:[#allocation6 + $0xef4] ss:$8 sps:$4 sm:$0xff]  }
 0x564   :  { %7307 = vmatpush1.bf16.msra.mxu1 %v13287_v5  ;;  %v13317_v5 = vld [vmem:[#allocation6 + $0xef0] ss:$8 sps:$4 sm:$0xff]  }
 0x565   :  { %7308 = vmatprep.subr.bf16.mxu1 %v13292_v33  ;;  %v13322_v33 = vld [vmem:[#allocation6 + $0x1184] ss:$8 sps:$4 sm:$0xff]  }
 0x568   :  { %7309 = vmatpush1.bf16.msra.mxu1 %v13290_v42  ;;  %v13320_v42 = vld [vmem:[#allocation6 + $0x1180] ss:$8 sps:$4 sm:$0xff]  }
 0x569   :  { %7310 = vmatprep.subr.bf16.mxu1 %v13295_v28  ;;  %v15840_v28 = vpack.c.bf16 %v15401_v56, %v15401_v56  ;;  %v13332_v56 = vld [vmem:[#allocation6 + $0x11c0] ss:$8 sps:$4 sm:$0xff]  }
 0x56c   :  { %7311 = vmatpush1.bf16.msra.mxu1 %v13293_v20  ;;  %v13325_v20 = vld [vmem:[#allocation6 + $0x1194] ss:$8 sps:$4 sm:$0xff]  }
 0x56d   :  { %7321 = vmatprep.subr.bf16.mxu1 %v13298_v48  ;;  %v13323_v48 = vld [vmem:[#allocation6 + $0x1190] ss:$8 sps:$4 sm:$0xff]  }
 0x56f   :  { %7313 = vmatmul.mubr.bf16.vlgmr.msra.gmra.mrb[48].mxu1 %v15782_v58 }
 0x570   :  { %7322 = vmatpush1.bf16.msra.mxu1 %v13296_v4  ;;  %7353 = vmatprep.mubr.bf16.mxu1 %v16167_v35  ;;  %v13328_v4 = vld [vmem:[#allocation6 + $0x11a4] ss:$8 sps:$4 sm:$0xff]  }
 0x571   :  { %7323 = vmatprep.subr.bf16.mxu1 %v13301_v62  ;;  %v13326_v62 = vld [vmem:[#allocation6 + $0x11a0] ss:$8 sps:$4 sm:$0xff]  }
 0x574   :  { %7324 = vmatpush1.bf16.msra.mxu1 %v13299_v22  ;;  %v13331_v22 = vld [vmem:[#allocation6 + $0x11b4] ss:$8 sps:$4 sm:$0xff]  }
 0x575   :  { %7325 = vmatprep.subr.bf16.mxu1 %v13304_v11  ;;  %v13329_v11 = vld [vmem:[#allocation6 + $0x11b0] ss:$8 sps:$4 sm:$0xff]  }
 0x578   :  { %7326 = vmatpush1.bf16.msra.mxu1 %v13302_v24  ;;  %v13334_v24 = vld [vmem:[#allocation6 + $0x11c4] ss:$8 sps:$4 sm:$0xff]  }
 0x579   :  { %7327 = vmatprep.subr.bf16.mxu1 %v13307_v1  ;;  %v13337_v1 = vld [vmem:[#allocation6 + $0x11d4] ss:$8 sps:$4 sm:$0xff]  }
 0x57c   :  { %7328 = vmatpush1.bf16.msra.mxu1 %v13305_v59  ;;  %v13335_v59 = vld [vmem:[#allocation6 + $0x11d0] ss:$8 sps:$4 sm:$0xff]  }
 0x57d   :  { %7329 = vmatprep.subr.bf16.mxu1 %v13310_v55  ;;  %v13340_v55 = vld [vmem:[#allocation6 + $0x11e4] ss:$8 sps:$4 sm:$0xff]  }
 0x580   :  { %7330 = vmatpush1.bf16.msra.mxu1 %v13308_v30  ;;  %v13338_v30 = vld [vmem:[#allocation6 + $0x11e0] ss:$8 sps:$4 sm:$0xff]  }
 0x581   :  { %7331 = vmatprep.subr.bf16.mxu1 %v13313_v34  ;;  %v13343_v34 = vld [vmem:[#allocation6 + $0x11f4] ss:$8 sps:$4 sm:$0xff]  }
 0x584   :  { %7332 = vmatpush1.bf16.msra.mxu1 %v13311_v44  ;;  %v13341_v44 = vld [vmem:[#allocation6 + $0x11f0] ss:$8 sps:$4 sm:$0xff]  }
 0x585   :  { %7333 = vmatprep.subr.bf16.mxu1 %v13316_v17  ;;  %v13346_v17 = vld [vmem:[#allocation6 + $0x1204] ss:$8 sps:$4 sm:$0xff]  }
 0x588   :  { %7334 = vmatpush1.bf16.msra.mxu1 %v13314_v26  ;;  %v13344_v26 = vld [vmem:[#allocation6 + $0x1200] ss:$8 sps:$4 sm:$0xff]  }
 0x589   :  { %7335 = vmatprep.subr.bf16.mxu1 %v13319_v57  ;;  %v13350_v57 = vld [vmem:[#allocation6 + $0x1214] ss:$8 sps:$4 sm:$0xff]  }
 0x58c   :  { %7336 = vmatpush1.bf16.msra.mxu1 %v13317_v5  ;;  %v13348_v5 = vld [vmem:[#allocation6 + $0x1210] ss:$8 sps:$4 sm:$0xff]  }
 0x58d   :  { %8627 = vmatprep.subr.bf16.mxu1 %v13322_v33  ;;  %v13354_v33 = vld [vmem:[#allocation6 + $0x1224] ss:$8 sps:$4 sm:$0xff]  }
 0x58f   :  { %7354 = vmatmul.mubr.bf16.vlgmr.msra.gmra.mrb[48].mxu1 %v15840_v28 }
 0x590   :  { %8628 = vmatpush1.bf16.msra.mxu1 %v13320_v42  ;;  %8659 = vmatprep.mubr.bf16.mxu1 %v15794_v32  ;;  %v13352_v42 = vld [vmem:[#allocation6 + $0x1220] ss:$8 sps:$4 sm:$0xff]  }
 0x591   :  { %8629 = vmatprep.subr.bf16.mxu1 %v13325_v20  ;;  %v13358_v20 = vld [vmem:[#allocation6 + $0x1234] ss:$8 sps:$4 sm:$0xff]  }
 0x594   :  { %8630 = vmatpush1.bf16.msra.mxu1 %v13323_v48  ;;  %v13356_v48 = vld [vmem:[#allocation6 + $0x1230] ss:$8 sps:$4 sm:$0xff]  }
 0x595   :  { %8631 = vmatprep.subr.bf16.mxu1 %v13328_v4  ;;  %v13362_v4 = vld [vmem:[#allocation6 + $0x1244] ss:$8 sps:$4 sm:$0xff]  }
 0x598   :  { %8632 = vmatpush1.bf16.msra.mxu1 %v13326_v62  ;;  %v13360_v62 = vld [vmem:[#allocation6 + $0x1240] ss:$8 sps:$4 sm:$0xff]  }
 0x599   :  { %8633 = vmatprep.subr.bf16.mxu1 %v13331_v22  ;;  %v5352_v22 = vld [vmem:[#allocation7 + $0x6] sm:$0x3] }
 0x59c   :  { %8634 = vmatpush1.bf16.msra.mxu1 %v13329_v11  ;;  %v13366_v11 = vld [vmem:[#allocation6 + $0x1254] ss:$8 sps:$4 sm:$0xff]  }
 0x59d   :  { %8635 = vmatprep.subr.bf16.mxu1 %v13334_v24  ;;  %v5357_v24 = vrot.slane %v5352_v22, %v15296_v36 }
 0x5a0   :  { %8636 = vmatpush1.bf16.msra.mxu1 %v13332_v56  ;;  %v5361_v56 = vrot.slane %v5352_v22, %v15299_v53  ;;  %v13378_v22 = vld [vmem:[#allocation6 + $0x1284] ss:$8 sps:$4 sm:$0xff]  }
 0x5a1   :  { %8637 = vmatprep.subr.bf16.mxu1 %v13337_v1  ;;  %v13364_v1 = vld [vmem:[#allocation6 + $0x1250] ss:$8 sps:$4 sm:$0xff]  }
 0x5a4   :  { %8638 = vmatpush1.bf16.msra.mxu1 %v13335_v59  ;;  %v13370_v59 = vld [vmem:[#allocation6 + $0x1264] ss:$8 sps:$4 sm:$0xff]  }
 0x5a5   :  { %8639 = vmatprep.subr.bf16.mxu1 %v13340_v55 }
 0x5a8   :  { %8640 = vmatpush1.bf16.msra.mxu1 %v13338_v30 }
 0x5a9   :  { %8641 = vmatprep.subr.bf16.mxu1 %v13343_v34 }
 0x5ac   :  { %8642 = vmatpush1.bf16.msra.mxu1 %v13341_v44 }
 0x5ad   :  { %8643 = vmatprep.subr.bf16.mxu1 %v13346_v17 }
 0x5b0   :  { %8644 = vmatpush1.bf16.msra.mxu1 %v13344_v26  ;;  %v13368_v26 = vld [vmem:[#allocation6 + $0x1260] ss:$8 sps:$4 sm:$0xff]  }
 0x5b1   :  { %8645 = vmatprep.subr.bf16.mxu1 %v13350_v57 }
 0x5b4   :  { %8646 = vmatpush1.bf16.msra.mxu1 %v13348_v5 }
 0x5b5   :  { %8647 = vmatprep.subr.bf16.mxu1 %v13354_v33  ;;  %v13374_v33 = vld [vmem:[#allocation6 + $0x1274] ss:$8 sps:$4 sm:$0xff]  }
 0x5b8   :  { %8648 = vmatpush1.bf16.msra.mxu1 %v13352_v42 }
 0x5b9   :  { %8649 = vmatprep.subr.bf16.mxu1 %v13358_v20 }
 0x5bc   :  { %8650 = vmatpush1.bf16.msra.mxu1 %v13356_v48 }
 0x5bd   :  { %8651 = vmatprep.subr.bf16.mxu1 %v13362_v4  ;;  %v13372_v4 = vld [vmem:[#allocation6 + $0x1270] ss:$8 sps:$4 sm:$0xff]  }
 0x5c0   :  { %8652 = vmatpush1.bf16.msra.mxu1 %v13360_v62 }
 0x5c1   :  { %8653 = vmatprep.subr.bf16.mxu1 %v13366_v11 }
 0x5c2   :  { %v5880_v55 = vpop.f32.mrb[44].mxu1 }
 0x5c3   :  { %v12094_v30 = vadd.f32 %v5880_v55, %v5357_v24  ;;  %v5882_v34 = vpop.f32.mrb[45].mxu1  ;;  %v13386_v55 = vld [vmem:[#allocation6 + $0x12a4] ss:$8 sps:$4 sm:$0xff]  }
 0x5c4   :  { %v12095_v44 = vadd.f32 %v5882_v34, %v5361_v56  ;;  %v5884_v17 = vpop.f32.mrb[46].mxu1  ;;  %8654 = vmatpush1.bf16.msra.mxu1 %v13364_v1  ;;  %v13376_v56 = vld [vmem:[#allocation6 + $0x1280] ss:$8 sps:$4 sm:$0xff]   ;;  %v15852_v1 = vpack.c.bf16 %v15416_v0, %v15416_v0  ;;  %v13387_v34 = vld [vmem:[%s16136_s7 + $0x10] sm:$0xff]  }
 0x5c5   :  { %v5899_v57 = vmul.f32 %v15686_v7, %v12094_v30  ;;  %v5885_v5 = vpop.f32.mrb[47].mxu1  ;;  %8655 = vmatprep.subr.bf16.mxu1 %v13370_v59  ;;  %v13382_v7 = vld [vmem:[#allocation6 + $0x1294] ss:$8 sps:$4 sm:$0xff]   ;;  %v13380_v59 = vld [vmem:[#allocation6 + $0x1290] ss:$8 sps:$4 sm:$0xff]   ;;  %v13383_v0 = vld [vmem:[%s16136_s7 + $0x8] sm:$0xff]  }
 0x5c6   :  { %v5904_v42 = vmul.f32 %v15688_v16, %v12095_v44  ;;  %v13390_v30 = vld [vmem:[#allocation6 + $0x12b4] ss:$8 sps:$4 sm:$0xff]   ;;  %v13388_v44 = vld [vmem:[#allocation6 + $0x12b0] ss:$8 sps:$4 sm:$0xff]   ;;  %v13394_v17 = vld [vmem:[#allocation6 + $0x12c4] ss:$8 sps:$4 sm:$0xff]  }
 0x5c7   :  { %v5902_v20 = vadd.f32 %v15697_v13, %v5899_v57  ;;  %v13379_v13 = vld [vmem:[%s16136_s7] sm:$0xff]  }
 0x5c8   :  { %v5907_v48 = vadd.f32 %v15700_v18, %v5904_v42  ;;  %8656 = vmatpush1.bf16.msra.mxu1 %v13368_v26  ;;  %v13391_v26 = vld [vmem:[%s16136_s7 + $0x18] sm:$0xff]   ;;  %v13392_v57 = vld [vmem:[#allocation6 + $0x12c0] ss:$8 sps:$4 sm:$0xff]  }
 0x5c9   :  { %v5903_v62 = vmax.f32 %v5902_v20, 0.0  ;;  %8657 = vmatprep.subr.bf16.mxu1 %v13374_v33  ;;  %v13398_v5 = vld [vmem:[#allocation6 + $0x12d4] ss:$8 sps:$4 sm:$0xff]   ;;  %v13396_v42 = vld [vmem:[#allocation6 + $0x12d0] ss:$8 sps:$4 sm:$0xff]  }
 0x5ca   :  { %v5908_v11 = vmax.f32 %v5907_v48, 0.0  ;;  %v13395_v33 = vld [vmem:[%s16136_s7 + $0x20] sm:$0xff]   ;;  %v13399_v48 = vld [vmem:[%s16136_s7 + $0x28] sm:$0xff]  }
 0x5cb   :  { %v13402_v20 = vld [vmem:[#allocation6 + $0x12e4] ss:$8 sps:$4 sm:$0xff]  }
 0x5cc   :  { %v5909_v24 = vmax.f32 %v5903_v62, %v5908_v11  ;;  %8658 = vmatpush1.bf16.msra.mxu1 %v13372_v4  ;;  %v13400_v4 = vld [vmem:[#allocation6 + $0x12e0] ss:$8 sps:$4 sm:$0xff]   ;;  %v13406_v62 = vld [vmem:[#allocation6 + $0x12f4] ss:$8 sps:$4 sm:$0xff]   ;;  %v13404_v11 = vld [vmem:[#allocation6 + $0x12f0] ss:$8 sps:$4 sm:$0xff]  }
 0x5cd   :  { %8668 = vmatprep.subr.bf16.mxu1 %v13378_v22  ;;  %v13403_v22 = vld [vmem:[%s16136_s7 + $0x30] sm:$0xff]  }
 0x5ce   :  { %v5910_v16 = vmax.f32 %v15706_v63, %v5909_v24  ;;  %v13384_v63 = vld [vmem:[#allocation6 + $0x12a0] ss:$8 sps:$4 sm:$0xff]   ;;  %v13410_v24 = vld [vmem:[#allocation6 + $0x1304] ss:$8 sps:$4 sm:$0xff]  }
 0x5cf   :  { %8660 = vmatmul.mubr.bf16.vlgmr.msra.gmra.mrb[52].mxu1 %v15782_v58 }
 0x5d0   :  { %8669 = vmatpush1.bf16.msra.mxu1 %v13376_v56  ;;  %8700 = vmatprep.mubr.bf16.mxu1 %v15852_v1  ;;  %v5911_v18 = vpack.c.bf16 %v5910_v16, %v5910_v16  ;;  %v13407_v56 = vld [vmem:[%s16136_s7 + $0x38] sm:$0xff]   ;;  %v13413_v16 = vld [vmem:[#allocation6 + $0xa04] ss:$8 sps:$4 sm:$0xff]  }
 0x5d1   :  { %8670 = vmatprep.subr.bf16.mxu1 %v13382_v7  ;;  %v13408_v7 = vld [vmem:[#allocation6 + $0x1300] ss:$8 sps:$4 sm:$0xff]  }
 0x5d2   :  { %11873 = vmatmul.mubr.bf16.vlgmr.msra.gmra.mrb[64].mxu0 %v5911_v18  ;;  %v13411_v18 = vld [vmem:[#allocation6 + $0xa00] ss:$8 sps:$4 sm:$0xff]  }
 0x5d3   :  { %11877 = vmatpush3.bf16.msra.mxu0 %v13379_v13  ;;  %11892 = vmatprep.mubr.msk.bf16.mxu0 %vm14332_vm3, %v14331_v37  ;;  %v13416_v13 = vld [vmem:[#allocation6 + $0x1314] ss:$8 sps:$4 sm:$0xff]  }
 0x5d4   :  { %8671 = vmatpush1.bf16.msra.mxu1 %v13380_v59  ;;  %11878 = vmatprep.subr.bf16.mxu0 %v14331_v37  ;;  %v4613_v59 = vpack.c.bf16 %v15797_v9, %v15797_v9  ;;  %v13426_v9 = vld [vmem:[#allocation6 + $0x1330] ss:$8 sps:$4 sm:$0xff]  }
 0x5d5   :  { %8672 = vmatprep.subr.bf16.mxu1 %v13386_v55  ;;  %v13414_v55 = vld [vmem:[#allocation6 + $0x1310] ss:$8 sps:$4 sm:$0xff]  }
 0x5d7   :  { %11879 = vmatpush3.bf16.msra.mxu0 %v13383_v0  ;;  %v13419_v0 = vld [vmem:[#allocation6 + $0xa14] ss:$8 sps:$4 sm:$0xff]  }
 0x5d8   :  { %8673 = vmatpush1.bf16.msra.mxu1 %v13384_v63  ;;  %11880 = vmatprep.subr.bf16.mxu0 %v14331_v37  ;;  %v13422_v63 = vld [vmem:[#allocation6 + $0x1324] ss:$8 sps:$4 sm:$0xff]  }
 0x5d9   :  { %8674 = vmatprep.subr.bf16.mxu1 %v13390_v30  ;;  %v13417_v30 = vld [vmem:[#allocation6 + $0xa10] ss:$8 sps:$4 sm:$0xff]  }
 0x5db   :  { %11881 = vmatpush3.bf16.msra.mxu0 %v13387_v34  ;;  %v13420_v34 = vld [vmem:[#allocation6 + $0x1320] ss:$8 sps:$4 sm:$0xff]  }
 0x5dc   :  { %8675 = vmatpush1.bf16.msra.mxu1 %v13388_v44  ;;  %11882 = vmatprep.subr.bf16.mxu0 %v14331_v37  ;;  %v13425_v44 = vld [vmem:[#allocation6 + $0xa24] ss:$8 sps:$4 sm:$0xff]  }
 0x5dd   :  { %8676 = vmatprep.subr.bf16.mxu1 %v13394_v17  ;;  %v13428_v17 = vld [vmem:[#allocation6 + $0x1334] ss:$8 sps:$4 sm:$0xff]  }
 0x5df   :  { %11883 = vmatpush3.bf16.msra.mxu0 %v13391_v26  ;;  %v13423_v26 = vld [vmem:[#allocation6 + $0xa20] ss:$8 sps:$4 sm:$0xff]  }
 0x5e0   :  { %8677 = vmatpush1.bf16.msra.mxu1 %v13392_v57  ;;  %11884 = vmatprep.subr.bf16.mxu0 %v14331_v37  ;;  %v13431_v57 = vld [vmem:[#allocation6 + $0xa34] ss:$8 sps:$4 sm:$0xff]  }
 0x5e1   :  { %8678 = vmatprep.subr.bf16.mxu1 %v13398_v5  ;;  %v13434_v5 = vld [vmem:[#allocation6 + $0x1344] ss:$8 sps:$4 sm:$0xff]  }
 0x5e3   :  { %11885 = vmatpush3.bf16.msra.mxu0 %v13395_v33  ;;  %v13429_v33 = vld [vmem:[#allocation6 + $0xa30] ss:$8 sps:$4 sm:$0xff]  }
 0x5e4   :  { %8679 = vmatpush1.bf16.msra.mxu1 %v13396_v42  ;;  %11886 = vmatprep.subr.bf16.mxu0 %v14331_v37  ;;  %v13437_v42 = vld [vmem:[#allocation6 + $0xa44] ss:$8 sps:$4 sm:$0xff]  }
 0x5e5   :  { %8680 = vmatprep.subr.bf16.mxu1 %v13402_v20  ;;  %v13440_v20 = vld [vmem:[#allocation6 + $0x1354] ss:$8 sps:$4 sm:$0xff]  }
 0x5e7   :  { %11887 = vmatpush3.bf16.msra.mxu0 %v13399_v48  ;;  %v13435_v48 = vld [vmem:[#allocation6 + $0xa40] ss:$8 sps:$4 sm:$0xff]  }
 0x5e8   :  { %8681 = vmatpush1.bf16.msra.mxu1 %v13400_v4  ;;  %11888 = vmatprep.subr.bf16.mxu0 %v14331_v37  ;;  %v13438_v4 = vld [vmem:[#allocation6 + $0x1350] ss:$8 sps:$4 sm:$0xff]  }
 0x5e9   :  { %8682 = vmatprep.subr.bf16.mxu1 %v13406_v62  ;;  %v13443_v62 = vld [vmem:[#allocation6 + $0xa54] ss:$8 sps:$4 sm:$0xff]  }
 0x5eb   :  { %11889 = vmatpush3.bf16.msra.mxu0 %v13403_v22  ;;  %v13446_v22 = vld [vmem:[#allocation6 + $0x1364] ss:$8 sps:$4 sm:$0xff]  }
 0x5ec   :  { %8683 = vmatpush1.bf16.msra.mxu1 %v13404_v11  ;;  %11890 = vmatprep.subr.bf16.mxu0 %v14331_v37  ;;  %v13441_v11 = vld [vmem:[#allocation6 + $0xa50] ss:$8 sps:$4 sm:$0xff]  }
 0x5ed   :  { %8684 = vmatprep.subr.bf16.mxu1 %v13410_v24  ;;  %v13444_v24 = vld [vmem:[#allocation6 + $0x1360] ss:$8 sps:$4 sm:$0xff]  }
 0x5ef   :  { %11891 = vmatpush3.bf16.msra.mxu0 %v13407_v56  ;;  %v13449_v56 = vld [vmem:[#allocation6 + $0xa64] ss:$8 sps:$4 sm:$0xff]  }
 0x5f0   :  { %8685 = vmatpush1.bf16.msra.mxu1 %v13408_v7  ;;  %6599 = vmatprep.subr.bf16.mxu0 %v13413_v16  ;;  %v13452_v7 = vld [vmem:[#allocation6 + $0x1374] ss:$8 sps:$4 sm:$0xff]   ;;  %v13447_v16 = vld [vmem:[#allocation6 + $0xa60] ss:$8 sps:$4 sm:$0xff]  }
 0x5f1   :  { %8686 = vmatprep.subr.bf16.mxu1 %v13416_v13  ;;  %v13450_v13 = vld [vmem:[#allocation6 + $0x1370] ss:$8 sps:$4 sm:$0xff]  }
 0x5f2   :  { %11893 = vmatmul.mubr.bf16.vlgmr.msra.gmra.mrb[68].mxu0 %v4613_v59  ;;  %v13458_v59 = vld [vmem:[#allocation6 + $0x1384] ss:$8 sps:$4 sm:$0xff]  }
 0x5f3   :  { %6600 = vmatpush1.bf16.msra.mxu0 %v13411_v18  ;;  %6631 = vmatprep.mubr.bf16.mxu0 %v15483_v12  ;;  %v13432_v12 = vld [vmem:[#allocation6 + $0x1340] ss:$8 sps:$4 sm:$0xff]   ;;  %v13455_v18 = vld [vmem:[#allocation6 + $0xa74] ss:$8 sps:$4 sm:$0xff]  }
 0x5f4   :  { %8687 = vmatpush1.bf16.msra.mxu1 %v13414_v55  ;;  %6601 = vmatprep.subr.bf16.mxu0 %v13419_v0  ;;  %v13453_v55 = vld [vmem:[#allocation6 + $0xa70] ss:$8 sps:$4 sm:$0xff]   ;;  %v13456_v0 = vld [vmem:[#allocation6 + $0x1380] ss:$8 sps:$4 sm:$0xff]  }
 0x5f5   :  { %8688 = vmatprep.subr.bf16.mxu1 %v13422_v63  ;;  %v13461_v63 = vld [vmem:[#allocation6 + $0xa84] ss:$8 sps:$4 sm:$0xff]  }
 0x5f7   :  { %6602 = vmatpush1.bf16.msra.mxu0 %v13417_v30  ;;  %v13464_v30 = vld [vmem:[#allocation6 + $0x1394] ss:$8 sps:$4 sm:$0xff]  }
 0x5f8   :  { %8689 = vmatpush1.bf16.msra.mxu1 %v13420_v34  ;;  %6603 = vmatprep.subr.bf16.mxu0 %v13425_v44  ;;  %v13459_v34 = vld [vmem:[#allocation6 + $0xa80] ss:$8 sps:$4 sm:$0xff]   ;;  %v13462_v44 = vld [vmem:[#allocation6 + $0x1390] ss:$8 sps:$4 sm:$0xff]  }
 0x5f9   :  { %8690 = vmatprep.subr.bf16.mxu1 %v13428_v17  ;;  %v13467_v17 = vld [vmem:[#allocation6 + $0xa94] ss:$8 sps:$4 sm:$0xff]  }
 0x5fb   :  { %6604 = vmatpush1.bf16.msra.mxu0 %v13423_v26  ;;  %v13470_v26 = vld [vmem:[#allocation6 + $0x13a4] ss:$8 sps:$4 sm:$0xff]  }
 0x5fc   :  { %8691 = vmatpush1.bf16.msra.mxu1 %v13426_v9  ;;  %6605 = vmatprep.subr.bf16.mxu0 %v13431_v57  ;;  %v13465_v9 = vld [vmem:[#allocation6 + $0xa90] ss:$8 sps:$4 sm:$0xff]   ;;  %v13468_v57 = vld [vmem:[#allocation6 + $0x13a0] ss:$8 sps:$4 sm:$0xff]  }
 0x5fd   :  { %8692 = vmatprep.subr.bf16.mxu1 %v13434_v5  ;;  %v13473_v5 = vld [vmem:[#allocation6 + $0xaa4] ss:$8 sps:$4 sm:$0xff]  }
 0x5ff   :  { %6606 = vmatpush1.bf16.msra.mxu0 %v13429_v33  ;;  %v13476_v33 = vld [vmem:[#allocation6 + $0x13b4] ss:$8 sps:$4 sm:$0xff]  }
 0x600   :  { %8693 = vmatpush1.bf16.msra.mxu1 %v13432_v12  ;;  %6607 = vmatprep.subr.bf16.mxu0 %v13437_v42  ;;  %v13471_v12 = vld [vmem:[#allocation6 + $0xaa0] ss:$8 sps:$4 sm:$0xff]   ;;  %v13474_v42 = vld [vmem:[#allocation6 + $0x13b0] ss:$8 sps:$4 sm:$0xff]  }
 0x601   :  { %8694 = vmatprep.subr.bf16.mxu1 %v13440_v20  ;;  %v13479_v20 = vld [vmem:[#allocation6 + $0xab4] ss:$8 sps:$4 sm:$0xff]  }
 0x603   :  { %6608 = vmatpush1.bf16.msra.mxu0 %v13435_v48  ;;  %v13482_v48 = vld [vmem:[#allocation6 + $0x13c4] ss:$8 sps:$4 sm:$0xff]  }
 0x604   :  { %8695 = vmatpush1.bf16.msra.mxu1 %v13438_v4  ;;  %6609 = vmatprep.subr.bf16.mxu0 %v13443_v62  ;;  %v13477_v4 = vld [vmem:[#allocation6 + $0xab0] ss:$8 sps:$4 sm:$0xff]   ;;  %v13480_v62 = vld [vmem:[#allocation6 + $0x13c0] ss:$8 sps:$4 sm:$0xff]  }
 0x605   :  { %8696 = vmatprep.subr.bf16.mxu1 %v13446_v22  ;;  %v13485_v22 = vld [vmem:[#allocation6 + $0xac4] ss:$8 sps:$4 sm:$0xff]  }
 0x607   :  { %6610 = vmatpush1.bf16.msra.mxu0 %v13441_v11  ;;  %v13488_v11 = vld [vmem:[#allocation6 + $0x13d4] ss:$8 sps:$4 sm:$0xff]  }
 0x608   :  { %8697 = vmatpush1.bf16.msra.mxu1 %v13444_v24  ;;  %6611 = vmatprep.subr.bf16.mxu0 %v13449_v56  ;;  %v13483_v24 = vld [vmem:[#allocation6 + $0xac0] ss:$8 sps:$4 sm:$0xff]   ;;  %v13486_v56 = vld [vmem:[#allocation6 + $0x13d0] ss:$8 sps:$4 sm:$0xff]  }
 0x609   :  { %8698 = vmatprep.subr.bf16.mxu1 %v13452_v7  ;;  %v13491_v7 = vld [vmem:[#allocation6 + $0xad4] ss:$8 sps:$4 sm:$0xff]  }
 0x60b   :  { %6612 = vmatpush1.bf16.msra.mxu0 %v13447_v16  ;;  %v13494_v16 = vld [vmem:[#allocation6 + $0x13e4] ss:$8 sps:$4 sm:$0xff]  }
 0x60c   :  { %8699 = vmatpush1.bf16.msra.mxu1 %v13450_v13  ;;  %6613 = vmatprep.subr.bf16.mxu0 %v13455_v18  ;;  %v13489_v13 = vld [vmem:[#allocation6 + $0xad0] ss:$8 sps:$4 sm:$0xff]   ;;  %v13492_v18 = vld [vmem:[#allocation6 + $0x13e0] ss:$8 sps:$4 sm:$0xff]  }
 0x60d   :  { %8709 = vmatprep.subr.bf16.mxu1 %v13458_v59  ;;  %v13497_v59 = vld [vmem:[#allocation6 + $0xae4] ss:$8 sps:$4 sm:$0xff]  }
 0x60f   :  { %6614 = vmatpush1.bf16.msra.mxu0 %v13453_v55  ;;  %8701 = vmatmul.mubr.bf16.vlgmr.msra.gmra.mrb[52].mxu1 %v15840_v28  ;;  %v13500_v55 = vld [vmem:[#allocation6 + $0x13f4] ss:$8 sps:$4 sm:$0xff]  }
 0x610   :  { %8710 = vmatpush1.bf16.msra.mxu1 %v13456_v0  ;;  %6615 = vmatprep.subr.bf16.mxu0 %v13461_v63  ;;  %v13495_v0 = vld [vmem:[#allocation6 + $0xae0] ss:$8 sps:$4 sm:$0xff]   ;;  %v13498_v63 = vld [vmem:[#allocation6 + $0x13f0] ss:$8 sps:$4 sm:$0xff]  }
 0x611   :  { %8711 = vmatprep.subr.bf16.mxu1 %v13464_v30  ;;  %8741 = vmatprep.mubr.bf16.mxu1 %v16167_v35  ;;  %v13503_v30 = vld [vmem:[#allocation6 + $0xaf4] ss:$8 sps:$4 sm:$0xff]  }
 0x613   :  { %6616 = vmatpush1.bf16.msra.mxu0 %v13459_v34  ;;  %v13506_v34 = vld [vmem:[#allocation6 + $0x1404] ss:$8 sps:$4 sm:$0xff]  }
 0x614   :  { %8712 = vmatpush1.bf16.msra.mxu1 %v13462_v44  ;;  %6617 = vmatprep.subr.bf16.mxu0 %v13467_v17  ;;  %v13501_v44 = vld [vmem:[#allocation6 + $0xaf0] ss:$8 sps:$4 sm:$0xff]   ;;  %v13504_v17 = vld [vmem:[#allocation6 + $0x1400] ss:$8 sps:$4 sm:$0xff]  }
 0x615   :  { %8713 = vmatprep.subr.bf16.mxu1 %v13470_v26  ;;  %v15897_v26 = vpack.c.bf16 %v15430_v15, %v15430_v15  ;;  %v13513_v15 = vld [vmem:[#allocation6 + $0xb10] ss:$8 sps:$4 sm:$0xff]  }
 0x617   :  { %6618 = vmatpush1.bf16.msra.mxu0 %v13465_v9  ;;  %v13509_v9 = vld [vmem:[#allocation6 + $0xb04] ss:$8 sps:$4 sm:$0xff]  }
 0x618   :  { %8714 = vmatpush1.bf16.msra.mxu1 %v13468_v57  ;;  %6619 = vmatprep.subr.bf16.mxu0 %v13473_v5  ;;  %v13512_v57 = vld [vmem:[#allocation6 + $0x1414] ss:$8 sps:$4 sm:$0xff]   ;;  %v13507_v5 = vld [vmem:[#allocation6 + $0xb00] ss:$8 sps:$4 sm:$0xff]  }
 0x619   :  { %8715 = vmatprep.subr.bf16.mxu1 %v13476_v33  ;;  %v13510_v33 = vld [vmem:[#allocation6 + $0x1410] ss:$8 sps:$4 sm:$0xff]  }
 0x61b   :  { %6620 = vmatpush1.bf16.msra.mxu0 %v13471_v12  ;;  %v13515_v12 = vld [vmem:[#allocation6 + $0xb14] ss:$8 sps:$4 sm:$0xff]  }
 0x61c   :  { %8716 = vmatpush1.bf16.msra.mxu1 %v13474_v42  ;;  %6621 = vmatprep.subr.bf16.mxu0 %v13479_v20  ;;  %v13518_v42 = vld [vmem:[#allocation6 + $0x1424] ss:$8 sps:$4 sm:$0xff]   ;;  %v13516_v20 = vld [vmem:[#allocation6 + $0x1420] ss:$8 sps:$4 sm:$0xff]  }
 0x61d   :  { %8717 = vmatprep.subr.bf16.mxu1 %v13482_v48  ;;  %v13521_v48 = vld [vmem:[#allocation6 + $0xb24] ss:$8 sps:$4 sm:$0xff]  }
 0x61f   :  { %6622 = vmatpush1.bf16.msra.mxu0 %v13477_v4  ;;  %v13524_v4 = vld [vmem:[#allocation6 + $0x1434] ss:$8 sps:$4 sm:$0xff]  }
 0x620   :  { %8718 = vmatpush1.bf16.msra.mxu1 %v13480_v62  ;;  %6623 = vmatprep.subr.bf16.mxu0 %v13485_v22  ;;  %v13519_v62 = vld [vmem:[#allocation6 + $0xb20] ss:$8 sps:$4 sm:$0xff]   ;;  %v13522_v22 = vld [vmem:[#allocation6 + $0x1430] ss:$8 sps:$4 sm:$0xff]  }
 0x621   :  { %8719 = vmatprep.subr.bf16.mxu1 %v13488_v11  ;;  %v13527_v11 = vld [vmem:[#allocation6 + $0xb34] ss:$8 sps:$4 sm:$0xff]  }
 0x623   :  { %6624 = vmatpush1.bf16.msra.mxu0 %v13483_v24  ;;  %v13530_v24 = vld [vmem:[#allocation6 + $0x1444] ss:$8 sps:$4 sm:$0xff]  }
 0x624   :  { %8720 = vmatpush1.bf16.msra.mxu1 %v13486_v56  ;;  %6625 = vmatprep.subr.bf16.mxu0 %v13491_v7  ;;  %v13528_v56 = vld [vmem:[#allocation6 + $0x1440] ss:$8 sps:$4 sm:$0xff]   ;;  %v13533_v7 = vld [vmem:[#allocation6 + $0xb44] ss:$8 sps:$4 sm:$0xff]  }
 0x625   :  { %8721 = vmatprep.subr.bf16.mxu1 %v13494_v16  ;;  %v13536_v16 = vld [vmem:[#allocation6 + $0x1454] ss:$8 sps:$4 sm:$0xff]  }
 0x627   :  { %6626 = vmatpush1.bf16.msra.mxu0 %v13489_v13  ;;  %v13531_v13 = vld [vmem:[#allocation6 + $0xb40] ss:$8 sps:$4 sm:$0xff]  }
 0x628   :  { %8722 = vmatpush1.bf16.msra.mxu1 %v13492_v18  ;;  %6627 = vmatprep.subr.bf16.mxu0 %v13497_v59  ;;  %v13534_v18 = vld [vmem:[#allocation6 + $0x1450] ss:$8 sps:$4 sm:$0xff]   ;;  %v13539_v59 = vld [vmem:[#allocation6 + $0xb54] ss:$8 sps:$4 sm:$0xff]  }
 0x629   :  { %8723 = vmatprep.subr.bf16.mxu1 %v13500_v55  ;;  %v13542_v55 = vld [vmem:[#allocation6 + $0x1464] ss:$8 sps:$4 sm:$0xff]  }
 0x62b   :  { %6628 = vmatpush1.bf16.msra.mxu0 %v13495_v0  ;;  %v13537_v0 = vld [vmem:[#allocation6 + $0xb50] ss:$8 sps:$4 sm:$0xff]  }
 0x62c   :  { %8724 = vmatpush1.bf16.msra.mxu1 %v13498_v63  ;;  %6629 = vmatprep.subr.bf16.mxu0 %v13503_v30  ;;  %v13540_v63 = vld [vmem:[#allocation6 + $0x1460] ss:$8 sps:$4 sm:$0xff]   ;;  %v13545_v30 = vld [vmem:[#allocation6 + $0xb64] ss:$8 sps:$4 sm:$0xff]  }
 0x62d   :  { %9375 = vmatprep.subr.bf16.mxu1 %v13506_v34  ;;  %v13548_v34 = vld [vmem:[#allocation6 + $0x1474] ss:$8 sps:$4 sm:$0xff]  }
 0x62f   :  { %6630 = vmatpush1.bf16.msra.mxu0 %v13501_v44  ;;  %8742 = vmatmul.mubr.bf16.vlgmr.msra.gmra.mrb[52].mxu1 %v15897_v26  ;;  %v13543_v44 = vld [vmem:[#allocation6 + $0xb60] ss:$8 sps:$4 sm:$0xff]  }
 0x630   :  { %9376 = vmatpush1.bf16.msra.mxu1 %v13504_v17  ;;  %9407 = vmatprep.mubr.bf16.mxu1 %v15840_v28  ;;  %v13546_v17 = vld [vmem:[#allocation6 + $0x1470] ss:$8 sps:$4 sm:$0xff]  }
 0x631   :  { %6640 = vmatprep.subr.bf16.mxu0 %v13509_v9  ;;  %9377 = vmatprep.subr.bf16.mxu1 %v13512_v57  ;;  %v13551_v9 = vld [vmem:[#allocation6 + $0xb74] ss:$8 sps:$4 sm:$0xff]   ;;  %v13554_v57 = vld [vmem:[#allocation6 + $0x1484] ss:$8 sps:$4 sm:$0xff]  }
 0x632   :  { %6632 = vmatmul.mubr.bf16.vlgmr.msra.gmra.mrb[72].mxu0 %v15461_v39  ;;  %v13525_v39 = vld [vmem:[#allocation6 + $0xb30] ss:$8 sps:$4 sm:$0xff]  }
 0x633   :  { %6641 = vmatpush1.bf16.msra.mxu0 %v13507_v5  ;;  %6672 = vmatprep.mubr.bf16.mxu0 %v15782_v58  ;;  %v13549_v5 = vld [vmem:[#allocation6 + $0xb70] ss:$8 sps:$4 sm:$0xff]  }
 0x634   :  { %9378 = vmatpush1.bf16.msra.mxu1 %v13510_v33  ;;  %6642 = vmatprep.subr.bf16.mxu0 %v13515_v12  ;;  %v13552_v33 = vld [vmem:[#allocation6 + $0x1480] ss:$8 sps:$4 sm:$0xff]   ;;  %v13557_v12 = vld [vmem:[#allocation6 + $0xb84] ss:$8 sps:$4 sm:$0xff]  }
 0x635   :  { %9379 = vmatprep.subr.bf16.mxu1 %v13518_v42  ;;  %v13560_v42 = vld [vmem:[#allocation6 + $0x1494] ss:$8 sps:$4 sm:$0xff]  }
 0x637   :  { %6643 = vmatpush1.bf16.msra.mxu0 %v13513_v15  ;;  %v13555_v15 = vld [vmem:[#allocation6 + $0xb80] ss:$8 sps:$4 sm:$0xff]  }
 0x638   :  { %9380 = vmatpush1.bf16.msra.mxu1 %v13516_v20  ;;  %6644 = vmatprep.subr.bf16.mxu0 %v13521_v48  ;;  %v13558_v20 = vld [vmem:[#allocation6 + $0x1490] ss:$8 sps:$4 sm:$0xff]   ;;  %v13563_v48 = vld [vmem:[#allocation6 + $0xb94] ss:$8 sps:$4 sm:$0xff]  }
 0x639   :  { %9381 = vmatprep.subr.bf16.mxu1 %v13524_v4  ;;  %v13566_v4 = vld [vmem:[#allocation6 + $0x14a4] ss:$8 sps:$4 sm:$0xff]  }
 0x63b   :  { %6645 = vmatpush1.bf16.msra.mxu0 %v13519_v62  ;;  %v13561_v62 = vld [vmem:[#allocation6 + $0xb90] ss:$8 sps:$4 sm:$0xff]  }
 0x63c   :  { %9382 = vmatpush1.bf16.msra.mxu1 %v13522_v22  ;;  %6646 = vmatprep.subr.bf16.mxu0 %v13527_v11  ;;  %v13564_v22 = vld [vmem:[#allocation6 + $0x14a0] ss:$8 sps:$4 sm:$0xff]   ;;  %v13569_v11 = vld [vmem:[#allocation6 + $0xba4] ss:$8 sps:$4 sm:$0xff]  }
 0x63d   :  { %9383 = vmatprep.subr.bf16.mxu1 %v13530_v24  ;;  %v13572_v24 = vld [vmem:[#allocation6 + $0x14b4] ss:$8 sps:$4 sm:$0xff]  }
 0x63f   :  { %6647 = vmatpush1.bf16.msra.mxu0 %v13525_v39  ;;  %v13567_v39 = vld [vmem:[#allocation6 + $0xba0] ss:$8 sps:$4 sm:$0xff]  }
 0x640   :  { %9384 = vmatpush1.bf16.msra.mxu1 %v13528_v56  ;;  %6648 = vmatprep.subr.bf16.mxu0 %v13533_v7  ;;  %v13570_v56 = vld [vmem:[#allocation6 + $0x14b0] ss:$8 sps:$4 sm:$0xff]   ;;  %v13575_v7 = vld [vmem:[#allocation6 + $0xbb4] ss:$8 sps:$4 sm:$0xff]  }
 0x641   :  { %9385 = vmatprep.subr.bf16.mxu1 %v13536_v16  ;;  %v13578_v16 = vld [vmem:[#allocation6 + $0x14c4] ss:$8 sps:$4 sm:$0xff]  }
 0x643   :  { %6649 = vmatpush1.bf16.msra.mxu0 %v13531_v13  ;;  %v13573_v13 = vld [vmem:[#allocation6 + $0xbb0] ss:$8 sps:$4 sm:$0xff]  }
 0x644   :  { %9386 = vmatpush1.bf16.msra.mxu1 %v13534_v18  ;;  %6650 = vmatprep.subr.bf16.mxu0 %v13539_v59  ;;  %v13576_v18 = vld [vmem:[#allocation6 + $0x14c0] ss:$8 sps:$4 sm:$0xff]   ;;  %v13581_v59 = vld [vmem:[#allocation6 + $0xbc4] ss:$8 sps:$4 sm:$0xff]  }
 0x645   :  { %9387 = vmatprep.subr.bf16.mxu1 %v13542_v55  ;;  %v6827_v55 = vld [vmem:[#allocation7 + $0xa] sm:$0x3] }
 0x647   :  { %6651 = vmatpush1.bf16.msra.mxu0 %v13537_v0  ;;  %v13584_v0 = vld [vmem:[#allocation6 + $0x14d4] ss:$8 sps:$4 sm:$0xff]  }
 0x648   :  { %9388 = vmatpush1.bf16.msra.mxu1 %v13540_v63  ;;  %6652 = vmatprep.subr.bf16.mxu0 %v13545_v30  ;;  %v13579_v63 = vld [vmem:[#allocation6 + $0xbc0] ss:$8 sps:$4 sm:$0xff]   ;;  %v6832_v30 = vrot.slane %v6827_v55, %v15296_v36 }
 0x649   :  { %9389 = vmatprep.subr.bf16.mxu1 %v13548_v34  ;;  %v6836_v34 = vrot.slane %v6827_v55, %v15299_v53 }
 0x64b   :  { %6653 = vmatpush1.bf16.msra.mxu0 %v13543_v44  ;;  %v13582_v44 = vld [vmem:[#allocation6 + $0x14d0] ss:$8 sps:$4 sm:$0xff]  }
 0x64c   :  { %9390 = vmatpush1.bf16.msra.mxu1 %v13546_v17  ;;  %6654 = vmatprep.subr.bf16.mxu0 %v13551_v9  ;;  %v13587_v17 = vld [vmem:[#allocation6 + $0xbd4] ss:$8 sps:$4 sm:$0xff]   ;;  %v13590_v9 = vld [vmem:[#allocation6 + $0x14e4] ss:$8 sps:$4 sm:$0xff]  }
 0x64d   :  { %9391 = vmatprep.subr.bf16.mxu1 %v13554_v57 }
 0x64f   :  { %6655 = vmatpush1.bf16.msra.mxu0 %v13549_v5 }
 0x650   :  { %9392 = vmatpush1.bf16.msra.mxu1 %v13552_v33  ;;  %6656 = vmatprep.subr.bf16.mxu0 %v13557_v12  ;;  %v13585_v12 = vld [vmem:[#allocation6 + $0xbd0] ss:$8 sps:$4 sm:$0xff]  }
 0x651   :  { %9393 = vmatprep.subr.bf16.mxu1 %v13560_v42 }
 0x653   :  { %6657 = vmatpush1.bf16.msra.mxu0 %v13555_v15 }
 0x654   :  { %9394 = vmatpush1.bf16.msra.mxu1 %v13558_v20  ;;  %6658 = vmatprep.subr.bf16.mxu0 %v13563_v48  ;;  %v13588_v20 = vld [vmem:[#allocation6 + $0x14e0] ss:$8 sps:$4 sm:$0xff]   ;;  %v13593_v48 = vld [vmem:[#allocation6 + $0xbe4] ss:$8 sps:$4 sm:$0xff]  }
 0x655   :  { %9395 = vmatprep.subr.bf16.mxu1 %v13566_v4 }
 0x657   :  { %6659 = vmatpush1.bf16.msra.mxu0 %v13561_v62 }
 0x658   :  { %9396 = vmatpush1.bf16.msra.mxu1 %v13564_v22  ;;  %6660 = vmatprep.subr.bf16.mxu0 %v13569_v11  ;;  %v13596_v22 = vld [vmem:[#allocation6 + $0x14f4] ss:$8 sps:$4 sm:$0xff]  }
 0x659   :  { %9397 = vmatprep.subr.bf16.mxu1 %v13572_v24 }
 0x65b   :  { %6661 = vmatpush1.bf16.msra.mxu0 %v13567_v39  ;;  %v13591_v39 = vld [vmem:[#allocation6 + $0xbe0] ss:$8 sps:$4 sm:$0xff]  }
 0x65c   :  { %9398 = vmatpush1.bf16.msra.mxu1 %v13570_v56  ;;  %6662 = vmatprep.subr.bf16.mxu0 %v13575_v7  ;;  %v13594_v7 = vld [vmem:[#allocation6 + $0x14f0] ss:$8 sps:$4 sm:$0xff]  }
 0x65d   :  { %9399 = vmatprep.subr.bf16.mxu1 %v13578_v16  ;;  %v13599_v16 = vld [vmem:[#allocation6 + $0xbf4] ss:$8 sps:$4 sm:$0xff]  }
 0x65f   :  { %6663 = vmatpush1.bf16.msra.mxu0 %v13573_v13 }
 0x660   :  { %9400 = vmatpush1.bf16.msra.mxu1 %v13576_v18  ;;  %6664 = vmatprep.subr.bf16.mxu0 %v13581_v59  ;;  %v13602_v18 = vld [vmem:[#allocation6 + $0x1504] ss:$8 sps:$4 sm:$0xff]  }
 0x661   :  { %9401 = vmatprep.subr.bf16.mxu1 %v13584_v0  ;;  %v13608_v0 = vld [vmem:[#allocation6 + $0x1514] ss:$8 sps:$4 sm:$0xff]  }
 0x662   :  { %v7355_v57 = vpop.f32.mrb[48].mxu1 }
 0x663   :  { %6665 = vmatpush1.bf16.msra.mxu0 %v13579_v63  ;;  %v12098_v5 = vadd.f32 %v7355_v57, %v6832_v30  ;;  %v7357_v33 = vpop.f32.mrb[49].mxu1  ;;  %v13606_v63 = vld [vmem:[#allocation6 + $0x1510] ss:$8 sps:$4 sm:$0xff]   ;;  %v13611_v30 = vld [vmem:[#allocation6 + $0xc14] ss:$8 sps:$4 sm:$0xff]  }
 0x664   :  { %v12099_v42 = vadd.f32 %v7357_v33, %v6836_v34  ;;  %v7359_v15 = vpop.f32.mrb[50].mxu1  ;;  %9402 = vmatpush1.bf16.msra.mxu1 %v13582_v44  ;;  %6666 = vmatprep.subr.bf16.mxu0 %v13587_v17  ;;  %v13614_v34 = vld [vmem:[#allocation6 + $0x1524] ss:$8 sps:$4 sm:$0xff]   ;;  %v13609_v44 = vld [vmem:[#allocation6 + $0xc10] ss:$8 sps:$4 sm:$0xff]  }
 0x665   :  { %v7374_v4 = vmul.f32 %v15711_v54, %v12098_v5  ;;  %v7360_v62 = vpop.f32.mrb[51].mxu1  ;;  %9403 = vmatprep.subr.bf16.mxu1 %v13590_v9  ;;  %v13597_v54 = vld [vmem:[#allocation6 + $0xbf0] ss:$8 sps:$4 sm:$0xff]   ;;  %v13612_v17 = vld [vmem:[#allocation6 + $0x1520] ss:$8 sps:$4 sm:$0xff]  }
 0x666   :  { %v7379_v11 = vmul.f32 %v15714_v47, %v12099_v42  ;;  %v13600_v47 = vld [vmem:[#allocation6 + $0x1500] ss:$8 sps:$4 sm:$0xff]   ;;  %v13617_v9 = vld [vmem:[#allocation6 + $0xc24] ss:$8 sps:$4 sm:$0xff]   ;;  %v13620_v57 = vld [vmem:[#allocation6 + $0x1534] ss:$8 sps:$4 sm:$0xff]  }
 0x667   :  { %v7377_v24 = vadd.f32 %v15725_v19, %v7374_v4  ;;  %6667 = vmatpush1.bf16.msra.mxu0 %v13585_v12  ;;  %v13605_v19 = vld [vmem:[#allocation6 + $0xc04] ss:$8 sps:$4 sm:$0xff]   ;;  %v13615_v5 = vld [vmem:[#allocation6 + $0xc20] ss:$8 sps:$4 sm:$0xff]   ;;  %v13618_v33 = vld [vmem:[#allocation6 + $0x1530] ss:$8 sps:$4 sm:$0xff]  }
 0x668   :  { %v7382_v56 = vadd.f32 %v15728_v50, %v7379_v11  ;;  %9404 = vmatpush1.bf16.msra.mxu1 %v13588_v20  ;;  %6668 = vmatprep.subr.bf16.mxu0 %v13593_v48  ;;  %v13603_v50 = vld [vmem:[#allocation6 + $0xc00] ss:$8 sps:$4 sm:$0xff]   ;;  %v13623_v12 = vld [vmem:[#allocation6 + $0xc34] ss:$8 sps:$4 sm:$0xff]   ;;  %v13626_v42 = vld [vmem:[#allocation6 + $0x1544] ss:$8 sps:$4 sm:$0xff]  }
 0x669   :  { %v7378_v13 = vmax.f32 %v7377_v24, 0.0  ;;  %9405 = vmatprep.subr.bf16.mxu1 %v13596_v22  ;;  %v13621_v15 = vld [vmem:[#allocation6 + $0xc30] ss:$8 sps:$4 sm:$0xff]   ;;  %v13624_v20 = vld [vmem:[#allocation6 + $0x1540] ss:$8 sps:$4 sm:$0xff]  }
 0x66a   :  { %v7383_v59 = vmax.f32 %v7382_v56, 0.0  ;;  %v13629_v48 = vld [vmem:[#allocation6 + $0xc44] ss:$8 sps:$4 sm:$0xff]   ;;  %v13632_v4 = vld [vmem:[#allocation6 + $0x1554] ss:$8 sps:$4 sm:$0xff]  }
 0x66b   :  { %6669 = vmatpush1.bf16.msra.mxu0 %v13591_v39  ;;  %v13627_v62 = vld [vmem:[#allocation6 + $0xc40] ss:$8 sps:$4 sm:$0xff]   ;;  %v13630_v22 = vld [vmem:[#allocation6 + $0x1550] ss:$8 sps:$4 sm:$0xff]   ;;  %v13635_v11 = vld [vmem:[#allocation6 + $0xc54] ss:$8 sps:$4 sm:$0xff]  }
 0x66c   :  { %v15909_v55 = vmax.f32 %v7378_v13, %v7383_v59  ;;  %9406 = vmatpush1.bf16.msra.mxu1 %v13594_v7  ;;  %6670 = vmatprep.subr.bf16.mxu0 %v13599_v16  ;;  %v13638_v24 = vld [vmem:[#allocation6 + $0x1564] ss:$8 sps:$4 sm:$0xff]   ;;  %v13633_v39 = vld [vmem:[#allocation6 + $0xc50] ss:$8 sps:$4 sm:$0xff]   ;;  %v13636_v56 = vld [vmem:[#allocation6 + $0x1560] ss:$8 sps:$4 sm:$0xff]  }
 0x66d   :  { %9416 = vmatprep.subr.bf16.mxu1 %v13602_v18  ;;  %v13641_v7 = vld [vmem:[#allocation6 + $0xc64] ss:$8 sps:$4 sm:$0xff]   ;;  %v13644_v16 = vld [vmem:[#allocation6 + $0x1574] ss:$8 sps:$4 sm:$0xff]   ;;  %v13639_v13 = vld [vmem:[#allocation6 + $0xc60] ss:$8 sps:$4 sm:$0xff]  }
 0x66e   :  { %v13642_v18 = vld [vmem:[#allocation6 + $0x1570] ss:$8 sps:$4 sm:$0xff]   ;;  %v13647_v59 = vld [vmem:[#allocation6 + $0xc74] ss:$8 sps:$4 sm:$0xff]  }
 0x66f   :  { %6671 = vmatpush1.bf16.msra.mxu0 %v13597_v54  ;;  %9408 = vmatmul.mubr.bf16.vlgmr.msra.gmra.mrb[56].mxu1 %v15794_v32  ;;  %v13650_v54 = vld [vmem:[#allocation6 + $0x1584] ss:$8 sps:$4 sm:$0xff]  }
 0x670   :  { %9417 = vmatpush1.bf16.msra.mxu1 %v13600_v47  ;;  %9448 = vmatprep.mubr.bf16.mxu1 %v15897_v26  ;;  %v13645_v47 = vld [vmem:[#allocation6 + $0xc70] ss:$8 sps:$4 sm:$0xff]  }
 0x671   :  { %6681 = vmatprep.subr.bf16.mxu0 %v13605_v19  ;;  %9418 = vmatprep.subr.bf16.mxu1 %v13608_v0  ;;  %v13648_v19 = vld [vmem:[#allocation6 + $0x1580] ss:$8 sps:$4 sm:$0xff]   ;;  %v13653_v0 = vld [vmem:[#allocation6 + $0x1594] ss:$8 sps:$4 sm:$0xff]  }
 0x672   :  { %6673 = vmatmul.mubr.bf16.vlgmr.msra.gmra.mrb[72].mxu0 %v15503_v41 }
 0x673   :  { %6682 = vmatpush1.bf16.msra.mxu0 %v13603_v50  ;;  %6713 = vmatprep.mubr.bf16.mxu0 %v16167_v35  ;;  %v13696_v50 = vld [vmem:[%s16136_s7 + $0x80] sm:$0xff]  }
 0x674   :  { %9419 = vmatpush1.bf16.msra.mxu1 %v13606_v63  ;;  %6683 = vmatprep.subr.bf16.mxu0 %v13611_v30  ;;  %v13651_v63 = vld [vmem:[#allocation6 + $0x1590] ss:$8 sps:$4 sm:$0xff]   ;;  %v13656_v30 = vld [vmem:[#allocation6 + $0x15a4] ss:$8 sps:$4 sm:$0xff]  }
 0x675   :  { %9420 = vmatprep.subr.bf16.mxu1 %v13614_v34  ;;  %v13697_v34 = vld [vmem:[%s16136_s7 + $0x88] sm:$0xff]  }
 0x677   :  { %6684 = vmatpush1.bf16.msra.mxu0 %v13609_v44  ;;  %v13654_v44 = vld [vmem:[#allocation6 + $0x15a0] ss:$8 sps:$4 sm:$0xff]  }
 0x678   :  { %9421 = vmatpush1.bf16.msra.mxu1 %v13612_v17  ;;  %6685 = vmatprep.subr.bf16.mxu0 %v13617_v9  ;;  %v13659_v17 = vld [vmem:[#allocation6 + $0x15b4] ss:$8 sps:$4 sm:$0xff]  }
 0x679   :  { %9422 = vmatprep.subr.bf16.mxu1 %v13620_v57  ;;  %v13698_v9 = vld [vmem:[%s16136_s7 + $0x90] sm:$0xff]  }
 0x67a   :  { %v13657_v57 = vld [vmem:[#allocation6 + $0x15b0] ss:$8 sps:$4 sm:$0xff]  }
 0x67b   :  { %6686 = vmatpush1.bf16.msra.mxu0 %v13615_v5  ;;  %v13662_v5 = vld [vmem:[#allocation6 + $0x15c4] ss:$8 sps:$4 sm:$0xff]  }
 0x67c   :  { %9423 = vmatpush1.bf16.msra.mxu1 %v13618_v33  ;;  %6687 = vmatprep.subr.bf16.mxu0 %v13623_v12  ;;  %v13699_v33 = vld [vmem:[%s16136_s7 + $0x98] sm:$0xff]   ;;  %v13660_v12 = vld [vmem:[#allocation6 + $0x15c0] ss:$8 sps:$4 sm:$0xff]  }
 0x67d   :  { %9424 = vmatprep.subr.bf16.mxu1 %v13626_v42  ;;  %v13665_v42 = vld [vmem:[#allocation6 + $0x15d4] ss:$8 sps:$4 sm:$0xff]  }
 0x67f   :  { %6688 = vmatpush1.bf16.msra.mxu0 %v13621_v15  ;;  %v13663_v15 = vld [vmem:[#allocation6 + $0x15d0] ss:$8 sps:$4 sm:$0xff]  }
 0x680   :  { %9425 = vmatpush1.bf16.msra.mxu1 %v13624_v20  ;;  %6689 = vmatprep.subr.bf16.mxu0 %v13629_v48  ;;  %v13668_v20 = vld [vmem:[#allocation6 + $0x15e4] ss:$8 sps:$4 sm:$0xff]   ;;  %v13666_v48 = vld [vmem:[#allocation6 + $0x15e0] ss:$8 sps:$4 sm:$0xff]  }
 0x681   :  { %9426 = vmatprep.subr.bf16.mxu1 %v13632_v4 }
 0x683   :  { %6690 = vmatpush1.bf16.msra.mxu0 %v13627_v62  ;;  %v13671_v62 = vld [vmem:[#allocation6 + $0x15f4] ss:$8 sps:$4 sm:$0xff]  }
 0x684   :  { %9427 = vmatpush1.bf16.msra.mxu1 %v13630_v22  ;;  %6691 = vmatprep.subr.bf16.mxu0 %v13635_v11 }
 0x685   :  { %9428 = vmatprep.subr.bf16.mxu1 %v13638_v24 }
 0x687   :  { %6692 = vmatpush1.bf16.msra.mxu0 %v13633_v39  ;;  %v13669_v39 = vld [vmem:[#allocation6 + $0x15f0] ss:$8 sps:$4 sm:$0xff]  }
 0x688   :  { %9429 = vmatpush1.bf16.msra.mxu1 %v13636_v56  ;;  %6693 = vmatprep.subr.bf16.mxu0 %v13641_v7  ;;  %v13674_v56 = vld [vmem:[#allocation6 + $0x1604] ss:$8 sps:$4 sm:$0xff]   ;;  %v13672_v7 = vld [vmem:[#allocation6 + $0x1600] ss:$8 sps:$4 sm:$0xff]  }
 0x689   :  { %9430 = vmatprep.subr.bf16.mxu1 %v13644_v16  ;;  %v13677_v16 = vld [vmem:[#allocation6 + $0x1614] ss:$8 sps:$4 sm:$0xff]  }
 0x68b   :  { %6694 = vmatpush1.bf16.msra.mxu0 %v13639_v13  ;;  %v13675_v13 = vld [vmem:[#allocation6 + $0x1610] ss:$8 sps:$4 sm:$0xff]  }
 0x68c   :  { %9431 = vmatpush1.bf16.msra.mxu1 %v13642_v18  ;;  %6695 = vmatprep.subr.bf16.mxu0 %v13647_v59  ;;  %v13680_v18 = vld [vmem:[#allocation6 + $0x1624] ss:$8 sps:$4 sm:$0xff]   ;;  %v13678_v59 = vld [vmem:[#allocation6 + $0x1620] ss:$8 sps:$4 sm:$0xff]  }
 0x68d   :  { %9432 = vmatprep.subr.bf16.mxu1 %v13650_v54  ;;  %v13683_v54 = vld [vmem:[#allocation6 + $0x1634] ss:$8 sps:$4 sm:$0xff]  }
 0x68f   :  { %6696 = vmatpush1.bf16.msra.mxu0 %v13645_v47  ;;  %v13681_v47 = vld [vmem:[#allocation6 + $0x1630] ss:$8 sps:$4 sm:$0xff]  }
 0x690   :  { %9433 = vmatpush1.bf16.msra.mxu1 %v13648_v19  ;;  %11896 = vmatprep.subr.bf16.mxu0 %v14331_v37  ;;  %v13686_v19 = vld [vmem:[#allocation6 + $0x1644] ss:$8 sps:$4 sm:$0xff]  }
 0x691   :  { %9434 = vmatprep.subr.bf16.mxu1 %v13653_v0  ;;  %v13684_v0 = vld [vmem:[#allocation6 + $0x1640] ss:$8 sps:$4 sm:$0xff]  }
 0x692   :  { %6714 = vmatmul.mubr.bf16.vlgmr.msra.gmra.mrb[72].mxu0 %v15794_v32 }
 0x693   :  { %11897 = vmatpush3.bf16.msra.mxu0 %v13696_v50  ;;  %11912 = vmatprep.mubr.msk.bf16.mxu0 %vm14332_vm3, %v14331_v37  ;;  %v13689_v50 = vld [vmem:[#allocation6 + $0x1654] ss:$8 sps:$4 sm:$0xff]  }
 0x694   :  { %9435 = vmatpush1.bf16.msra.mxu1 %v13651_v63  ;;  %11898 = vmatprep.subr.bf16.mxu0 %v14331_v37  ;;  %v13687_v63 = vld [vmem:[#allocation6 + $0x1650] ss:$8 sps:$4 sm:$0xff]  }
 0x695   :  { %9436 = vmatprep.subr.bf16.mxu1 %v13656_v30  ;;  %v13692_v30 = vld [vmem:[#allocation6 + $0x1664] ss:$8 sps:$4 sm:$0xff]  }
 0x697   :  { %11899 = vmatpush3.bf16.msra.mxu0 %v13697_v34  ;;  %v13690_v34 = vld [vmem:[#allocation6 + $0x1660] ss:$8 sps:$4 sm:$0xff]  }
 0x698   :  { %9437 = vmatpush1.bf16.msra.mxu1 %v13654_v44  ;;  %11900 = vmatprep.subr.bf16.mxu0 %v14331_v37 }
 0x699   :  { %9438 = vmatprep.subr.bf16.mxu1 %v13659_v17  ;;  %v13695_v17 = vld [vmem:[#allocation6 + $0x1674] ss:$8 sps:$4 sm:$0xff]  }
 0x69b   :  { %11901 = vmatpush3.bf16.msra.mxu0 %v13698_v9 }
 0x69c   :  { %9439 = vmatpush1.bf16.msra.mxu1 %v13657_v57  ;;  %11902 = vmatprep.subr.bf16.mxu0 %v14331_v37 }
 0x69d   :  { %9440 = vmatprep.subr.bf16.mxu1 %v13662_v5 }
 0x69f   :  { %11903 = vmatpush3.bf16.msra.mxu0 %v13699_v33 }
 0x6a0   :  { %9441 = vmatpush1.bf16.msra.mxu1 %v13660_v12  ;;  %11904 = vmatprep.subr.bf16.mxu0 %v14331_v37  ;;  %v13693_v12 = vld [vmem:[#allocation6 + $0x1670] ss:$8 sps:$4 sm:$0xff]  }
 0x6a1   :  { %9442 = vmatprep.subr.bf16.mxu1 %v13665_v42  ;;  %v15941_v42 = vpack.c.bf16 %v15442_v45, %v15442_v45  ;;  %v13702_v45 = vld [vmem:[%s16136_s7 + $0xb0] sm:$0xff]  }
 0x6a4   :  { %9443 = vmatpush1.bf16.msra.mxu1 %v13663_v15  ;;  %v13700_v15 = vld [vmem:[%s16136_s7 + $0xa0] sm:$0xff]  }
 0x6a5   :  { %v6011_v4 = vpop.f32.mrb[64].mxu0  ;;  %9444 = vmatprep.subr.bf16.mxu1 %v13668_v20  ;;  %11905 = vmatpush3.bf16.msra.mxu0 %v13700_v15  ;;  %v13701_v20 = vld [vmem:[%s16136_s7 + $0xa8] sm:$0xff]  }
 0x6a6   :  { %v11874_v22 = vpop.f32.mrb[65].mxu0  ;;  %11906 = vmatprep.subr.bf16.mxu0 %v14331_v37 }
 0x6a7   :  { %v6014_v11 = vpop.f32.mrb[66].mxu0 }
 0x6a8   :  { %v11875_v24 = vpop.f32.mrb[67].mxu0  ;;  %9445 = vmatpush1.bf16.msra.mxu1 %v13666_v48  ;;  %v13703_v48 = vld [vmem:[%s16136_s7 + $0xb8] sm:$0xff]  }
 0x6a9   :  { %9446 = vmatprep.subr.bf16.mxu1 %v13671_v62  ;;  %11907 = vmatpush3.bf16.msra.mxu0 %v13701_v20  ;;  %v8215_v62 = vld [vmem:[#allocation7 + $0xe] sm:$0x3] }
 0x6aa   :  { %11908 = vmatprep.subr.bf16.mxu0 %v14331_v37  ;;  %v8220_v22 = vrot.slane %v8215_v62, %v15296_v36  ;;  %v8224_v11 = vrot.slane %v8215_v62, %v15299_v53 }
 0x6ac   :  { %9447 = vmatpush1.bf16.msra.mxu1 %v13669_v39 }
 0x6ad   :  { %9457 = vmatprep.subr.bf16.mxu1 %v13674_v56  ;;  %11909 = vmatpush3.bf16.msra.mxu0 %v13702_v45 }
 0x6ae   :  { %11910 = vmatprep.subr.bf16.mxu0 %v14331_v37 }
 0x6af   :  { %9449 = vmatmul.mubr.bf16.vlgmr.msra.gmra.mrb[56].mxu1 %v15852_v1 }
 0x6b0   :  { %9458 = vmatpush1.bf16.msra.mxu1 %v13672_v7  ;;  %9489 = vmatprep.mubr.bf16.mxu1 %v16167_v35 }
 0x6b1   :  { %9459 = vmatprep.subr.bf16.mxu1 %v13677_v16  ;;  %11911 = vmatpush3.bf16.msra.mxu0 %v13703_v48 }
 0x6b4   :  { %9460 = vmatpush1.bf16.msra.mxu1 %v13675_v13 }
 0x6b5   :  { %9461 = vmatprep.subr.bf16.mxu1 %v13680_v18 }
 0x6b8   :  { %9462 = vmatpush1.bf16.msra.mxu1 %v13678_v59 }
 0x6b9   :  { %9463 = vmatprep.subr.bf16.mxu1 %v13683_v54 }
 0x6bc   :  { %9464 = vmatpush1.bf16.msra.mxu1 %v13681_v47 }
 0x6bd   :  { %9465 = vmatprep.subr.bf16.mxu1 %v13686_v19 }
 0x6c0   :  { %9466 = vmatpush1.bf16.msra.mxu1 %v13684_v0 }
 0x6c1   :  { %9467 = vmatprep.subr.bf16.mxu1 %v13689_v50 }
 0x6c4   :  { %9468 = vmatpush1.bf16.msra.mxu1 %v13687_v63  ;;  %v6187_v63 = vld [vmem:[#allocation7 + $0x8] sm:$0x3] }
 0x6c5   :  { %v6099_v44 = vpop.f32.mrb[68].mxu0  ;;  %9469 = vmatprep.subr.bf16.mxu1 %v13692_v30  ;;  %v6192_v30 = vrot.slane %v6187_v63, %v15296_v36 }
 0x6c6   :  { %v15937_v9 = vadd.f32 %v6099_v44, %v6011_v4  ;;  %v11894_v57 = vpop.f32.mrb[69].mxu0  ;;  %v13706_v4 = vld [vmem:[#allocation6 + $0xf04] ss:$8 sps:$4 sm:$0xff]  }
 0x6c7   :  { %v6102_v5 = vpop.f32.mrb[70].mxu0  ;;  %7987 = vmatprep.subr.bf16.mxu0 %v13706_v4  ;;  %v13704_v4 = vld [vmem:[#allocation6 + $0xf00] ss:$8 sps:$4 sm:$0xff]  }
 0x6c8   :  { %v11895_v33 = vpop.f32.mrb[71].mxu0  ;;  %9470 = vmatpush1.bf16.msra.mxu1 %v13690_v34  ;;  %v6196_v34 = vrot.slane %v6187_v63, %v15299_v53  ;;  %v13739_v63 = vld [vmem:[#allocation6 + $0xfb4] ss:$8 sps:$4 sm:$0xff]  }
 0x6c9   :  { %9471 = vmatprep.subr.bf16.mxu1 %v13695_v17 }
 0x6cc   :  { %9472 = vmatpush1.bf16.msra.mxu1 %v13693_v12 }
 0x6cd   :  { %11936 = vmatprep.subr.bf16.mxu1 %v14331_v37 }
 0x6cf   :  { %9490 = vmatmul.mubr.bf16.vlgmr.msra.gmra.mrb[56].mxu1 %v15941_v42 }
 0x6d0   :  { %11952 = vmatprep.mubr.msk.bf16.mxu1 %vm14332_vm3, %v14331_v37 }
 0x702   :  { %v8743_v24 = vpop.f32.mrb[52].mxu1 }
 0x703   :  { %v12102_v39 = vadd.f32 %v8743_v24, %v8220_v22  ;;  %v8745_v56 = vpop.f32.mrb[53].mxu1  ;;  %v13709_v22 = vld [vmem:[#allocation6 + $0xf14] ss:$8 sps:$4 sm:$0xff]   ;;  %v13718_v24 = vld [vmem:[#allocation6 + $0xf44] ss:$8 sps:$4 sm:$0xff]  }
 0x704   :  { %v12103_v7 = vadd.f32 %v8745_v56, %v8224_v11  ;;  %v8747_v16 = vpop.f32.mrb[54].mxu1  ;;  %v13712_v11 = vld [vmem:[#allocation6 + $0xf24] ss:$8 sps:$4 sm:$0xff]   ;;  %v13719_v56 = vld [vmem:[#allocation6 + $0xf50] ss:$8 sps:$4 sm:$0xff]  }
 0x705   :  { %v8762_v13 = vmul.f32 %v15735_v40, %v12102_v39  ;;  %v8748_v18 = vpop.f32.mrb[55].mxu1  ;;  %v13721_v39 = vld [vmem:[#allocation6 + $0xf54] ss:$8 sps:$4 sm:$0xff]  }
 0x706   :  { %v8767_v59 = vmul.f32 %v15738_v8, %v12103_v7  ;;  %v13724_v7 = vld [vmem:[#allocation6 + $0xf64] ss:$8 sps:$4 sm:$0xff]   ;;  %v13727_v16 = vld [vmem:[#allocation6 + $0xf74] ss:$8 sps:$4 sm:$0xff]  }
 0x707   :  { %v8765_v54 = vadd.f32 %v15749_v23, %v8762_v13  ;;  %v13725_v13 = vld [vmem:[#allocation6 + $0xf70] ss:$8 sps:$4 sm:$0xff]   ;;  %v13730_v18 = vld [vmem:[#allocation6 + $0xf84] ss:$8 sps:$4 sm:$0xff]  }
 0x708   :  { %v8770_v47 = vadd.f32 %v15752_v52, %v8767_v59  ;;  %v13728_v59 = vld [vmem:[#allocation6 + $0xf80] ss:$8 sps:$4 sm:$0xff]  }
 0x709   :  { %v8766_v19 = vmax.f32 %v8765_v54, 0.0  ;;  %v13733_v54 = vld [vmem:[#allocation6 + $0xf94] ss:$8 sps:$4 sm:$0xff]  }
 0x70a   :  { %v8771_v0 = vmax.f32 %v8770_v47, 0.0  ;;  %v13731_v47 = vld [vmem:[#allocation6 + $0xf90] ss:$8 sps:$4 sm:$0xff]  }
 0x70c   :  { %v15968_v50 = vmax.f32 %v8766_v19, %v8771_v0  ;;  %v13736_v19 = vld [vmem:[#allocation6 + $0xfa4] ss:$8 sps:$4 sm:$0xff]   ;;  %v13734_v0 = vld [vmem:[#allocation6 + $0xfa0] ss:$8 sps:$4 sm:$0xff]  }
 0x765   :  { %v6715_v44 = vpop.f32.mrb[72].mxu0 }
 0x766   :  { %v12096_v17 = vadd.f32 %v6715_v44, %v6192_v30  ;;  %v6717_v57 = vpop.f32.mrb[73].mxu0  ;;  %v8963_v30 = vld [vmem:[#allocation7 + $0x10] sm:$0x3] }
 0x767   :  { %v12097_v40 = vadd.f32 %v6717_v57, %v6196_v34  ;;  %v6719_v5 = vpop.f32.mrb[74].mxu0  ;;  %v13737_v34 = vld [vmem:[#allocation6 + $0xfb0] ss:$8 sps:$4 sm:$0xff]   ;;  %v8968_v44 = vrot.slane %v8963_v30, %v15296_v36  ;;  %v8972_v57 = vrot.slane %v8963_v30, %v15299_v53 }
 0x768   :  { %v6734_v8 = vmul.f32 %v15702_v2, %v12096_v17  ;;  %v6720_v33 = vpop.f32.mrb[75].mxu0  ;;  %v13707_v2 = vld [vmem:[#allocation6 + $0xf10] ss:$8 sps:$4 sm:$0xff]   ;;  %v13742_v17 = vld [vmem:[#allocation6 + $0xfc4] ss:$8 sps:$4 sm:$0xff]  }
 0x769   :  { %v6739_v23 = vmul.f32 %v15704_v6, %v12097_v40  ;;  %v13710_v6 = vld [vmem:[#allocation6 + $0xf20] ss:$8 sps:$4 sm:$0xff]   ;;  %v13779_v30 = vld [vmem:[#allocation6 + $0x1090] ss:$8 sps:$4 sm:$0xff]  }
 0x76a   :  { %v6737_v52 = vadd.f32 %v15718_v29, %v6734_v8  ;;  %v13715_v29 = vld [vmem:[#allocation6 + $0xf34] ss:$8 sps:$4 sm:$0xff]   ;;  %v13740_v5 = vld [vmem:[#allocation6 + $0xfc0] ss:$8 sps:$4 sm:$0xff]  }
 0x76b   :  { %v6742_v12 = vadd.f32 %v15722_v46, %v6739_v23  ;;  %v13713_v46 = vld [vmem:[#allocation6 + $0xf30] ss:$8 sps:$4 sm:$0xff]   ;;  %v13745_v23 = vld [vmem:[#allocation6 + $0xfd4] ss:$8 sps:$4 sm:$0xff]  }
 0x76c   :  { %v6738_v15 = vmax.f32 %v6737_v52, 0.0 }
 0x76d   :  { %v6743_v20 = vmax.f32 %v6742_v12, 0.0 }
 0x76f   :  { %v6744_v45 = vmax.f32 %v6738_v15, %v6743_v20 }
 0x771   :  { %v7385_v48 = vmax.f32 %v6744_v45, %v15909_v55  ;;  %v13716_v55 = vld [vmem:[#allocation6 + $0xf40] ss:$8 sps:$4 sm:$0xff]  }
 0x773   :  { %v7386_v62 = vpack.c.bf16 %v7385_v48, %v7385_v48  ;;  %v13743_v48 = vld [vmem:[#allocation6 + $0xfd0] ss:$8 sps:$4 sm:$0xff]  }
 0x775   :  { %11913 = vmatmul.mubr.bf16.vlgmr.msra.gmra.mrb[76].mxu0 %v7386_v62  ;;  %v13748_v62 = vld [vmem:[#allocation6 + $0xfe4] ss:$8 sps:$4 sm:$0xff]  }
 0x776   :  { %7988 = vmatpush1.bf16.msra.mxu0 %v13704_v4  ;;  %8019 = vmatprep.mubr.bf16.mxu0 %v15782_v58  ;;  %v13722_v58 = vld [vmem:[#allocation6 + $0xf60] ss:$8 sps:$4 sm:$0xff]  }
 0x777   :  { %7989 = vmatprep.subr.bf16.mxu0 %v13709_v22 }
 0x77a   :  { %7990 = vmatpush1.bf16.msra.mxu0 %v13707_v2 }
 0x77b   :  { %7991 = vmatprep.subr.bf16.mxu0 %v13712_v11 }
 0x77e   :  { %7992 = vmatpush1.bf16.msra.mxu0 %v13710_v6  ;;  %v13746_v6 = vld [vmem:[#allocation6 + $0xfe0] ss:$8 sps:$4 sm:$0xff]  }
 0x77f   :  { %7993 = vmatprep.subr.bf16.mxu0 %v13715_v29  ;;  %v13751_v29 = vld [vmem:[#allocation6 + $0xff4] ss:$8 sps:$4 sm:$0xff]  }
 0x782   :  { %7994 = vmatpush1.bf16.msra.mxu0 %v13713_v46 }
 0x783   :  { %7995 = vmatprep.subr.bf16.mxu0 %v13718_v24  ;;  %v13752_v24 = vld [vmem:[#allocation6 + $0x1000] ss:$8 sps:$4 sm:$0xff]  }
 0x786   :  { %7996 = vmatpush1.bf16.msra.mxu0 %v13716_v55  ;;  %v13760_v55 = vld [vmem:[#allocation6 + $0x1024] ss:$8 sps:$4 sm:$0xff]  }
 0x787   :  { %7997 = vmatprep.subr.bf16.mxu0 %v13721_v39  ;;  %v13758_v39 = vld [vmem:[#allocation6 + $0x1020] ss:$8 sps:$4 sm:$0xff]  }
 0x78a   :  { %7998 = vmatpush1.bf16.msra.mxu0 %v13719_v56  ;;  %v13763_v56 = vld [vmem:[#allocation6 + $0x1034] ss:$8 sps:$4 sm:$0xff]  }
 0x78b   :  { %7999 = vmatprep.subr.bf16.mxu0 %v13724_v7  ;;  %v13761_v7 = vld [vmem:[#allocation6 + $0x1030] ss:$8 sps:$4 sm:$0xff]  }
 0x78e   :  { %8000 = vmatpush1.bf16.msra.mxu0 %v13722_v58  ;;  %v13766_v58 = vld [vmem:[#allocation6 + $0x1044] ss:$8 sps:$4 sm:$0xff]  }
 0x78f   :  { %8001 = vmatprep.subr.bf16.mxu0 %v13727_v16  ;;  %v13764_v16 = vld [vmem:[#allocation6 + $0x1040] ss:$8 sps:$4 sm:$0xff]  }
 0x792   :  { %8002 = vmatpush1.bf16.msra.mxu0 %v13725_v13  ;;  %v13769_v13 = vld [vmem:[#allocation6 + $0x1054] ss:$8 sps:$4 sm:$0xff]  }
 0x793   :  { %8003 = vmatprep.subr.bf16.mxu0 %v13730_v18  ;;  %v13772_v18 = vld [vmem:[#allocation6 + $0x1064] ss:$8 sps:$4 sm:$0xff]  }
 0x796   :  { %8004 = vmatpush1.bf16.msra.mxu0 %v13728_v59  ;;  %v13770_v59 = vld [vmem:[#allocation6 + $0x1060] ss:$8 sps:$4 sm:$0xff]  }
 0x797   :  { %8005 = vmatprep.subr.bf16.mxu0 %v13733_v54  ;;  %v13775_v54 = vld [vmem:[#allocation6 + $0x1074] ss:$8 sps:$4 sm:$0xff]  }
 0x79a   :  { %8006 = vmatpush1.bf16.msra.mxu0 %v13731_v47  ;;  %v13773_v47 = vld [vmem:[#allocation6 + $0x1070] ss:$8 sps:$4 sm:$0xff]  }
 0x79b   :  { %8007 = vmatprep.subr.bf16.mxu0 %v13736_v19  ;;  %v13778_v19 = vld [vmem:[#allocation6 + $0x1084] ss:$8 sps:$4 sm:$0xff]  }
 0x79e   :  { %8008 = vmatpush1.bf16.msra.mxu0 %v13734_v0  ;;  %v13776_v0 = vld [vmem:[#allocation6 + $0x1080] ss:$8 sps:$4 sm:$0xff]  }
 0x79f   :  { %8009 = vmatprep.subr.bf16.mxu0 %v13739_v63  ;;  %v13781_v63 = vld [vmem:[#allocation6 + $0x1094] ss:$8 sps:$4 sm:$0xff]  }
 0x7a2   :  { %8010 = vmatpush1.bf16.msra.mxu0 %v13737_v34  ;;  %v9491_v40 = vpop.f32.mrb[56].mxu1  ;;  %v13784_v34 = vld [vmem:[#allocation6 + $0x10a4] ss:$8 sps:$4 sm:$0xff]  }
 0x7a3   :  { %v12104_v8 = vadd.f32 %v9491_v40, %v8968_v44  ;;  %8011 = vmatprep.subr.bf16.mxu0 %v13742_v17  ;;  %v9493_v33 = vpop.f32.mrb[57].mxu1  ;;  %v13782_v44 = vld [vmem:[#allocation6 + $0x10a0] ss:$8 sps:$4 sm:$0xff]   ;;  %v13787_v17 = vld [vmem:[#allocation6 + $0x10b4] ss:$8 sps:$4 sm:$0xff]  }
 0x7a4   :  { %v12105_v52 = vadd.f32 %v9493_v33, %v8972_v57  ;;  %v9495_v12 = vpop.f32.mrb[58].mxu1  ;;  %v13785_v57 = vld [vmem:[#allocation6 + $0x10b0] ss:$8 sps:$4 sm:$0xff]   ;;  %v13790_v40 = vld [vmem:[#allocation6 + $0x10c4] ss:$8 sps:$4 sm:$0xff]  }
 0x7a5   :  { %v9510_v15 = vmul.f32 %v15754_v60, %v12104_v8  ;;  %v9496_v20 = vpop.f32.mrb[59].mxu1  ;;  %v13749_v60 = vld [vmem:[#allocation6 + $0xff0] ss:$8 sps:$4 sm:$0xff]   ;;  %v13793_v8 = vld [vmem:[#allocation6 + $0x10d4] ss:$8 sps:$4 sm:$0xff]  }
 0x7a6   :  { %v9515_v45 = vmul.f32 %v15756_v31, %v12105_v52  ;;  %8012 = vmatpush1.bf16.msra.mxu0 %v13740_v5  ;;  %v13754_v31 = vld [vmem:[#allocation6 + $0x1004] ss:$8 sps:$4 sm:$0xff]   ;;  %v13788_v5 = vld [vmem:[#allocation6 + $0x10c0] ss:$8 sps:$4 sm:$0xff]   ;;  %v13791_v33 = vld [vmem:[#allocation6 + $0x10d0] ss:$8 sps:$4 sm:$0xff]  }
 0x7a7   :  { %v9513_v4 = vadd.f32 %v15765_v21, %v9510_v15  ;;  %8013 = vmatprep.subr.bf16.mxu0 %v13745_v23  ;;  %v13757_v21 = vld [vmem:[#allocation6 + $0x1014] ss:$8 sps:$4 sm:$0xff]   ;;  %v13796_v23 = vld [vmem:[#allocation6 + $0x10e4] ss:$8 sps:$4 sm:$0xff]   ;;  %v13794_v52 = vld [vmem:[#allocation6 + $0x10e0] ss:$8 sps:$4 sm:$0xff]  }
 0x7a8   :  { %v9518_v22 = vadd.f32 %v15769_v38, %v9515_v45  ;;  %v13755_v38 = vld [vmem:[#allocation6 + $0x1010] ss:$8 sps:$4 sm:$0xff]   ;;  %v13799_v12 = vld [vmem:[#allocation6 + $0x10f4] ss:$8 sps:$4 sm:$0xff]   ;;  %v13802_v20 = vld [vmem:[#allocation6 + $0x1104] ss:$8 sps:$4 sm:$0xff]  }
 0x7a9   :  { %v9514_v2 = vmax.f32 %v9513_v4, 0.0  ;;  %v13797_v15 = vld [vmem:[#allocation6 + $0x10f0] ss:$8 sps:$4 sm:$0xff]   ;;  %v13800_v45 = vld [vmem:[#allocation6 + $0x1100] ss:$8 sps:$4 sm:$0xff]  }
 0x7aa   :  { %v9519_v11 = vmax.f32 %v9518_v22, 0.0  ;;  %8014 = vmatpush1.bf16.msra.mxu0 %v13743_v48  ;;  %v13805_v48 = vld [vmem:[#allocation6 + $0x1114] ss:$8 sps:$4 sm:$0xff]   ;;  %v13803_v4 = vld [vmem:[#allocation6 + $0x1110] ss:$8 sps:$4 sm:$0xff]  }
 0x7ab   :  { %8015 = vmatprep.subr.bf16.mxu0 %v13748_v62  ;;  %v13808_v62 = vld [vmem:[#allocation6 + $0x1124] ss:$8 sps:$4 sm:$0xff]   ;;  %v13806_v22 = vld [vmem:[#allocation6 + $0x1120] ss:$8 sps:$4 sm:$0xff]  }
 0x7ac   :  { %v15984_v46 = vmax.f32 %v9514_v2, %v9519_v11  ;;  %v13811_v2 = vld [vmem:[#allocation6 + $0x1134] ss:$8 sps:$4 sm:$0xff]   ;;  %v13809_v11 = vld [vmem:[#allocation6 + $0x1130] ss:$8 sps:$4 sm:$0xff]  }
 0x7ae   :  { %8016 = vmatpush1.bf16.msra.mxu0 %v13746_v6  ;;  %v13814_v6 = vld [vmem:[#allocation6 + $0x1144] ss:$8 sps:$4 sm:$0xff]  }
 0x7af   :  { %8017 = vmatprep.subr.bf16.mxu0 %v13751_v29  ;;  %v13812_v29 = vld [vmem:[#allocation6 + $0x1140] ss:$8 sps:$4 sm:$0xff]  }
 0x7b2   :  { %8018 = vmatpush1.bf16.msra.mxu0 %v13749_v60  ;;  %v13817_v60 = vld [vmem:[#allocation6 + $0x1154] ss:$8 sps:$4 sm:$0xff]  }
 0x7b3   :  { %8028 = vmatprep.subr.bf16.mxu0 %v13754_v31  ;;  %v13820_v31 = vld [vmem:[#allocation6 + $0x1164] ss:$8 sps:$4 sm:$0xff]  }
 0x7b5   :  { %8020 = vmatmul.mubr.bf16.vlgmr.msra.gmra.mrb[80].mxu0 %v15503_v41  ;;  %v13767_v41 = vld [vmem:[#allocation6 + $0x1050] ss:$8 sps:$4 sm:$0xff]  }
 0x7b6   :  { %8029 = vmatpush1.bf16.msra.mxu0 %v13752_v24  ;;  %8060 = vmatprep.mubr.bf16.mxu0 %v15840_v28  ;;  %v13818_v24 = vld [vmem:[#allocation6 + $0x1160] ss:$8 sps:$4 sm:$0xff]  }
 0x7b7   :  { %8030 = vmatprep.subr.bf16.mxu0 %v13757_v21  ;;  %v13823_v21 = vld [vmem:[#allocation6 + $0x1174] ss:$8 sps:$4 sm:$0xff]  }
 0x7ba   :  { %8031 = vmatpush1.bf16.msra.mxu0 %v13755_v38  ;;  %v13821_v38 = vld [vmem:[#allocation6 + $0x1170] ss:$8 sps:$4 sm:$0xff]  }
 0x7bb   :  { %8032 = vmatprep.subr.bf16.mxu0 %v13760_v55  ;;  %v13824_v55 = vld [vmem:[%s16136_s7 + $0xc0] sm:$0xff]  }
 0x7be   :  { %8033 = vmatpush1.bf16.msra.mxu0 %v13758_v39  ;;  %v13825_v39 = vld [vmem:[%s16136_s7 + $0xc8] sm:$0xff]  }
 0x7bf   :  { %8034 = vmatprep.subr.bf16.mxu0 %v13763_v56  ;;  %v13826_v56 = vld [vmem:[%s16136_s7 + $0xd0] sm:$0xff]  }
 0x7c2   :  { %8035 = vmatpush1.bf16.msra.mxu0 %v13761_v7  ;;  %v13827_v7 = vld [vmem:[%s16136_s7 + $0xd8] sm:$0xff]  }
 0x7c3   :  { %8036 = vmatprep.subr.bf16.mxu0 %v13766_v58 }
 0x7c6   :  { %8037 = vmatpush1.bf16.msra.mxu0 %v13764_v16 }
 0x7c7   :  { %8038 = vmatprep.subr.bf16.mxu0 %v13769_v13 }
 0x7ca   :  { %8039 = vmatpush1.bf16.msra.mxu0 %v13767_v41 }
 0x7cb   :  { %8040 = vmatprep.subr.bf16.mxu0 %v13772_v18 }
 0x7ce   :  { %8041 = vmatpush1.bf16.msra.mxu0 %v13770_v59  ;;  %v13828_v59 = vld [vmem:[%s16136_s7 + $0xe0] sm:$0xff]  }
 0x7cf   :  { %8042 = vmatprep.subr.bf16.mxu0 %v13775_v54  ;;  %v13829_v54 = vld [vmem:[%s16136_s7 + $0xe8] sm:$0xff]  }
 0x7d2   :  { %8043 = vmatpush1.bf16.msra.mxu0 %v13773_v47  ;;  %v13831_v47 = vld [vmem:[%s16136_s7 + $0xf8] sm:$0xff]  }
 0x7d3   :  { %8044 = vmatprep.subr.bf16.mxu0 %v13778_v19  ;;  %v13834_v19 = vld [vmem:[#allocation6 + $0x1684] ss:$8 sps:$4 sm:$0xff]  }
 0x7d6   :  { %8045 = vmatpush1.bf16.msra.mxu0 %v13776_v0  ;;  %v7575_v0 = vld [vmem:[#allocation7 + $0xc] sm:$0x3] }
 0x7d7   :  { %8046 = vmatprep.subr.bf16.mxu0 %v13781_v63  ;;  %v7580_v63 = vrot.slane %v7575_v0, %v15296_v36 }
 0x7da   :  { %8047 = vmatpush1.bf16.msra.mxu0 %v13779_v30  ;;  %v7584_v30 = vrot.slane %v7575_v0, %v15299_v53  ;;  %v13880_v0 = vld [vmem:[#allocation6 + $0x1780] ss:$8 sps:$4 sm:$0xff]  }
 0x7db   :  { %8048 = vmatprep.subr.bf16.mxu0 %v13784_v34 }
 0x7de   :  { %8049 = vmatpush1.bf16.msra.mxu0 %v13782_v44 }
 0x7df   :  { %8050 = vmatprep.subr.bf16.mxu0 %v13787_v17 }
 0x7e2   :  { %8051 = vmatpush1.bf16.msra.mxu0 %v13785_v57 }
 0x7e3   :  { %8052 = vmatprep.subr.bf16.mxu0 %v13790_v40 }
 0x7e6   :  { %8053 = vmatpush1.bf16.msra.mxu0 %v13788_v5 }
 0x7e7   :  { %8054 = vmatprep.subr.bf16.mxu0 %v13793_v8 }
 0x7ea   :  { %8055 = vmatpush1.bf16.msra.mxu0 %v13791_v33 }
 0x7eb   :  { %8056 = vmatprep.subr.bf16.mxu0 %v13796_v23 }
 0x7ee   :  { %8057 = vmatpush1.bf16.msra.mxu0 %v13794_v52 }
 0x7ef   :  { %8058 = vmatprep.subr.bf16.mxu0 %v13799_v12 }
 0x7f2   :  { %8059 = vmatpush1.bf16.msra.mxu0 %v13797_v15 }
 0x7f3   :  { %8069 = vmatprep.subr.bf16.mxu0 %v13802_v20 }
 0x7f5   :  { %8061 = vmatmul.mubr.bf16.vlgmr.msra.gmra.mrb[80].mxu0 %v15794_v32  ;;  %v13815_v32 = vld [vmem:[#allocation6 + $0x1150] ss:$8 sps:$4 sm:$0xff]  }
 0x7f6   :  { %8070 = vmatpush1.bf16.msra.mxu0 %v13800_v45  ;;  %8101 = vmatprep.mubr.bf16.mxu0 %v16167_v35 }
 0x7f7   :  { %8071 = vmatprep.subr.bf16.mxu0 %v13805_v48  ;;  %v13832_v48 = vld [vmem:[#allocation6 + $0x1680] ss:$8 sps:$4 sm:$0xff]  }
 0x7fa   :  { %8072 = vmatpush1.bf16.msra.mxu0 %v13803_v4 }
 0x7fb   :  { %8073 = vmatprep.subr.bf16.mxu0 %v13808_v62  ;;  %v13837_v62 = vld [vmem:[#allocation6 + $0x1694] ss:$8 sps:$4 sm:$0xff]  }
 0x7fe   :  { %8074 = vmatpush1.bf16.msra.mxu0 %v13806_v22  ;;  %v13840_v22 = vld [vmem:[#allocation6 + $0x16a4] ss:$8 sps:$4 sm:$0xff]  }
 0x7ff   :  { %8075 = vmatprep.subr.bf16.mxu0 %v13811_v2  ;;  %v13846_v2 = vld [vmem:[#allocation6 + $0x16c4] ss:$8 sps:$4 sm:$0xff]  }
 0x802   :  { %8076 = vmatpush1.bf16.msra.mxu0 %v13809_v11  ;;  %v13849_v11 = vld [vmem:[#allocation6 + $0x16d4] ss:$8 sps:$4 sm:$0xff]  }
 0x803   :  { %8077 = vmatprep.subr.bf16.mxu0 %v13814_v6  ;;  %v13847_v6 = vld [vmem:[#allocation6 + $0x16d0] ss:$8 sps:$4 sm:$0xff]  }
 0x806   :  { %8078 = vmatpush1.bf16.msra.mxu0 %v13812_v29  ;;  %v13852_v29 = vld [vmem:[#allocation6 + $0x16e4] ss:$8 sps:$4 sm:$0xff]  }
 0x807   :  { %8079 = vmatprep.subr.bf16.mxu0 %v13817_v60  ;;  %v13855_v60 = vld [vmem:[#allocation6 + $0x16f4] ss:$8 sps:$4 sm:$0xff]  }
 0x80a   :  { %8080 = vmatpush1.bf16.msra.mxu0 %v13815_v32  ;;  %v13853_v32 = vld [vmem:[#allocation6 + $0x16f0] ss:$8 sps:$4 sm:$0xff]  }
 0x80b   :  { %8081 = vmatprep.subr.bf16.mxu0 %v13820_v31  ;;  %v13858_v31 = vld [vmem:[#allocation6 + $0x1704] ss:$8 sps:$4 sm:$0xff]  }
 0x80e   :  { %8082 = vmatpush1.bf16.msra.mxu0 %v13818_v24  ;;  %v13856_v24 = vld [vmem:[#allocation6 + $0x1700] ss:$8 sps:$4 sm:$0xff]  }
 0x80f   :  { %8083 = vmatprep.subr.bf16.mxu0 %v13823_v21  ;;  %v13861_v21 = vld [vmem:[#allocation6 + $0x1714] ss:$8 sps:$4 sm:$0xff]  }
 0x812   :  { %8084 = vmatpush1.bf16.msra.mxu0 %v13821_v38  ;;  %v13859_v38 = vld [vmem:[#allocation6 + $0x1710] ss:$8 sps:$4 sm:$0xff]  }
 0x813   :  { %11916 = vmatprep.subr.bf16.mxu0 %v14331_v37 }
 0x815   :  { %8102 = vmatmul.mubr.bf16.vlgmr.msra.gmra.mrb[80].mxu0 %v15852_v1 }
 0x816   :  { %11917 = vmatpush3.bf16.msra.mxu0 %v13824_v55  ;;  %11932 = vmatprep.mubr.msk.bf16.mxu0 %vm14332_vm3, %v14331_v37  ;;  %v13864_v55 = vld [vmem:[#allocation6 + $0x1724] ss:$8 sps:$4 sm:$0xff]  }
 0x817   :  { %11918 = vmatprep.subr.bf16.mxu0 %v14331_v37 }
 0x81a   :  { %11919 = vmatpush3.bf16.msra.mxu0 %v13825_v39  ;;  %v13862_v39 = vld [vmem:[#allocation6 + $0x1720] ss:$8 sps:$4 sm:$0xff]  }
 0x81b   :  { %11920 = vmatprep.subr.bf16.mxu0 %v14331_v37 }
 0x81e   :  { %11921 = vmatpush3.bf16.msra.mxu0 %v13826_v56  ;;  %v13867_v56 = vld [vmem:[#allocation6 + $0x1734] ss:$8 sps:$4 sm:$0xff]  }
 0x81f   :  { %11922 = vmatprep.subr.bf16.mxu0 %v14331_v37 }
 0x822   :  { %11923 = vmatpush3.bf16.msra.mxu0 %v13827_v7  ;;  %v13865_v7 = vld [vmem:[#allocation6 + $0x1730] ss:$8 sps:$4 sm:$0xff]  }
 0x823   :  { %11924 = vmatprep.subr.bf16.mxu0 %v14331_v37 }
 0x826   :  { %11925 = vmatpush3.bf16.msra.mxu0 %v13828_v59  ;;  %v13876_v59 = vld [vmem:[#allocation6 + $0x1764] ss:$8 sps:$4 sm:$0xff]  }
 0x827   :  { %11926 = vmatprep.subr.bf16.mxu0 %v14331_v37 }
 0x82a   :  { %11927 = vmatpush3.bf16.msra.mxu0 %v13829_v54  ;;  %v13874_v54 = vld [vmem:[#allocation6 + $0x1760] ss:$8 sps:$4 sm:$0xff]  }
 0x82b   :  { %11928 = vmatprep.subr.bf16.mxu0 %v14331_v37 }
 0x848   :  { %v7486_v58 = vpop.f32.mrb[76].mxu0 }
 0x849   :  { %v16011_v16 = vadd.f32 %v7486_v58, %v15937_v9  ;;  %v11914_v13 = vpop.f32.mrb[77].mxu0  ;;  %v13830_v9 = vld [vmem:[%s16136_s7 + $0xf0] sm:$0xff]  }
 0x84a   :  { %v7489_v41 = vpop.f32.mrb[78].mxu0  ;;  %11929 = vmatpush3.bf16.msra.mxu0 %v13830_v9  ;;  %v13870_v58 = vld [vmem:[#allocation6 + $0x1744] ss:$8 sps:$4 sm:$0xff]   ;;  %v13868_v13 = vld [vmem:[#allocation6 + $0x1740] ss:$8 sps:$4 sm:$0xff]  }
 0x84b   :  { %v11915_v18 = vpop.f32.mrb[79].mxu0  ;;  %11930 = vmatprep.subr.bf16.mxu0 %v14331_v37  ;;  %v13873_v41 = vld [vmem:[#allocation6 + $0x1754] ss:$8 sps:$4 sm:$0xff]  }
 0x84c   :  { %v13871_v18 = vld [vmem:[#allocation6 + $0x1750] ss:$8 sps:$4 sm:$0xff]   ;;  %v13879_v9 = vld [vmem:[#allocation6 + $0x1774] ss:$8 sps:$4 sm:$0xff]  }
 0x84e   :  { %11931 = vmatpush3.bf16.msra.mxu0 %v13831_v47  ;;  %v13877_v47 = vld [vmem:[#allocation6 + $0x1770] ss:$8 sps:$4 sm:$0xff]  }
 0x84f   :  { %10015 = vmatprep.subr.bf16.mxu0 %v13834_v19  ;;  %v13882_v19 = vld [vmem:[#allocation6 + $0x1784] ss:$8 sps:$4 sm:$0xff]  }
 0x8e8   :  { %v8103_v34 = vpop.f32.mrb[80].mxu0 }
 0x8e9   :  { %v12100_v44 = vadd.f32 %v8103_v34, %v7580_v63  ;;  %v8105_v17 = vpop.f32.mrb[81].mxu0  ;;  %v13885_v63 = vld [vmem:[#allocation6 + $0x1794] ss:$8 sps:$4 sm:$0xff]   ;;  %v13888_v34 = vld [vmem:[#allocation6 + $0x17a4] ss:$8 sps:$4 sm:$0xff]  }
 0x8ea   :  { %v12101_v57 = vadd.f32 %v8105_v17, %v7584_v30  ;;  %v8107_v40 = vpop.f32.mrb[82].mxu0  ;;  %v13883_v30 = vld [vmem:[#allocation6 + $0x1790] ss:$8 sps:$4 sm:$0xff]   ;;  %v13891_v17 = vld [vmem:[#allocation6 + $0x17b4] ss:$8 sps:$4 sm:$0xff]  }
 0x8eb   :  { %v8122_v5 = vmul.f32 %v15730_v43, %v12100_v44  ;;  %v8108_v8 = vpop.f32.mrb[83].mxu0  ;;  %v13835_v43 = vld [vmem:[#allocation6 + $0x1690] ss:$8 sps:$4 sm:$0xff]   ;;  %v13886_v44 = vld [vmem:[#allocation6 + $0x17a0] ss:$8 sps:$4 sm:$0xff]  }
 0x8ec   :  { %v8127_v33 = vmul.f32 %v15732_v25, %v12101_v57  ;;  %v13838_v25 = vld [vmem:[#allocation6 + $0x16a0] ss:$8 sps:$4 sm:$0xff]   ;;  %v13889_v57 = vld [vmem:[#allocation6 + $0x17b0] ss:$8 sps:$4 sm:$0xff]   ;;  %v13894_v40 = vld [vmem:[#allocation6 + $0x17c4] ss:$8 sps:$4 sm:$0xff]  }
 0x8ed   :  { %v8125_v23 = vadd.f32 %v15742_v3, %v8122_v5  ;;  %v13843_v3 = vld [vmem:[#allocation6 + $0x16b4] ss:$8 sps:$4 sm:$0xff]   ;;  %v13892_v5 = vld [vmem:[#allocation6 + $0x17c0] ss:$8 sps:$4 sm:$0xff]  }
 0x8ee   :  { %v8130_v52 = vadd.f32 %v15746_v27, %v8127_v33  ;;  %v13841_v27 = vld [vmem:[#allocation6 + $0x16b0] ss:$8 sps:$4 sm:$0xff]   ;;  %v13897_v8 = vld [vmem:[#allocation6 + $0x17d4] ss:$8 sps:$4 sm:$0xff]   ;;  %v13900_v33 = vld [vmem:[#allocation6 + $0x17e4] ss:$8 sps:$4 sm:$0xff]  }
 0x8ef   :  { %v8126_v12 = vmax.f32 %v8125_v23, 0.0  ;;  %v13903_v23 = vld [vmem:[#allocation6 + $0x17f4] ss:$8 sps:$4 sm:$0xff]  }
 0x8f0   :  { %v8131_v15 = vmax.f32 %v8130_v52, 0.0  ;;  %v13952_v52 = vld [vmem:[%s16136_s7 + $0x100] sm:$0xff]  }
 0x8f1   :  { %11937 = vmatpush3.bf16.msra.mxu1 %v13952_v52 }
 0x8f2   :  { %v8132_v20 = vmax.f32 %v8126_v12, %v8131_v15  ;;  %v13953_v12 = vld [vmem:[%s16136_s7 + $0x108] sm:$0xff]   ;;  %v13901_v15 = vld [vmem:[#allocation6 + $0x17f0] ss:$8 sps:$4 sm:$0xff]   ;;  %11938 = vmatprep.subr.bf16.mxu1 %v14331_v37 }
 0x8f4   :  { %v8773_v45 = vmax.f32 %v8132_v20, %v15968_v50  ;;  %v13844_v50 = vld [vmem:[#allocation6 + $0x16c0] ss:$8 sps:$4 sm:$0xff]   ;;  %v13906_v20 = vld [vmem:[#allocation6 + $0x1804] ss:$8 sps:$4 sm:$0xff]  }
 0x8f5   :  { %11939 = vmatpush3.bf16.msra.mxu1 %v13953_v12 }
 0x8f6   :  { %v8774_v4 = vpack.c.bf16 %v8773_v45, %v8773_v45  ;;  %v13954_v45 = vld [vmem:[%s16136_s7 + $0x110] sm:$0xff]   ;;  %11940 = vmatprep.subr.bf16.mxu1 %v14331_v37 }
 0x8f8   :  { %11933 = vmatmul.mubr.bf16.vlgmr.msra.gmra.mrb[84].mxu0 %v8774_v4  ;;  %v13909_v4 = vld [vmem:[#allocation6 + $0x1814] ss:$8 sps:$4 sm:$0xff]  }
 0x8f9   :  { %10016 = vmatpush1.bf16.msra.mxu0 %v13832_v48  ;;  %10047 = vmatprep.mubr.bf16.mxu0 %v15852_v1  ;;  %v13850_v1 = vld [vmem:[#allocation6 + $0x16e0] ss:$8 sps:$4 sm:$0xff]  }
 0x8fa   :  { %10017 = vmatprep.subr.bf16.mxu0 %v13837_v62  ;;  %v13904_v48 = vld [vmem:[#allocation6 + $0x1800] ss:$8 sps:$4 sm:$0xff]   ;;  %11941 = vmatpush3.bf16.msra.mxu1 %v13954_v45  ;;  %v13955_v62 = vld [vmem:[%s16136_s7 + $0x118] sm:$0xff]  }
 0x8fb   :  { %11942 = vmatprep.subr.bf16.mxu1 %v14331_v37 }
 0x8fd   :  { %10018 = vmatpush1.bf16.msra.mxu0 %v13835_v43  ;;  %v13907_v43 = vld [vmem:[#allocation6 + $0x1810] ss:$8 sps:$4 sm:$0xff]  }
 0x8fe   :  { %10019 = vmatprep.subr.bf16.mxu0 %v13840_v22  ;;  %v13912_v22 = vld [vmem:[#allocation6 + $0x1824] ss:$8 sps:$4 sm:$0xff]   ;;  %11943 = vmatpush3.bf16.msra.mxu1 %v13955_v62 }
 0x8ff   :  { %11944 = vmatprep.subr.bf16.mxu1 %v14331_v37 }
 0x901   :  { %10020 = vmatpush1.bf16.msra.mxu0 %v13838_v25  ;;  %v13910_v25 = vld [vmem:[#allocation6 + $0x1820] ss:$8 sps:$4 sm:$0xff]  }
 0x902   :  { %10021 = vmatprep.subr.bf16.mxu0 %v13843_v3  ;;  %v13915_v3 = vld [vmem:[#allocation6 + $0x1834] ss:$8 sps:$4 sm:$0xff]  }
 0x905   :  { %10022 = vmatpush1.bf16.msra.mxu0 %v13841_v27  ;;  %v13913_v27 = vld [vmem:[#allocation6 + $0x1830] ss:$8 sps:$4 sm:$0xff]  }
 0x906   :  { %10023 = vmatprep.subr.bf16.mxu0 %v13846_v2  ;;  %v13918_v2 = vld [vmem:[#allocation6 + $0x1844] ss:$8 sps:$4 sm:$0xff]  }
 0x909   :  { %10024 = vmatpush1.bf16.msra.mxu0 %v13844_v50  ;;  %v13916_v50 = vld [vmem:[#allocation6 + $0x1840] ss:$8 sps:$4 sm:$0xff]  }
 0x90a   :  { %10025 = vmatprep.subr.bf16.mxu0 %v13849_v11  ;;  %v13921_v11 = vld [vmem:[#allocation6 + $0x1854] ss:$8 sps:$4 sm:$0xff]  }
 0x90d   :  { %10026 = vmatpush1.bf16.msra.mxu0 %v13847_v6  ;;  %v13919_v6 = vld [vmem:[#allocation6 + $0x1850] ss:$8 sps:$4 sm:$0xff]  }
 0x90e   :  { %10027 = vmatprep.subr.bf16.mxu0 %v13852_v29  ;;  %v13924_v29 = vld [vmem:[#allocation6 + $0x1864] ss:$8 sps:$4 sm:$0xff]  }
 0x911   :  { %10028 = vmatpush1.bf16.msra.mxu0 %v13850_v1  ;;  %v13922_v1 = vld [vmem:[#allocation6 + $0x1860] ss:$8 sps:$4 sm:$0xff]  }
 0x912   :  { %10029 = vmatprep.subr.bf16.mxu0 %v13855_v60  ;;  %v13927_v60 = vld [vmem:[#allocation6 + $0x1874] ss:$8 sps:$4 sm:$0xff]  }
 0x915   :  { %10030 = vmatpush1.bf16.msra.mxu0 %v13853_v32  ;;  %v13925_v32 = vld [vmem:[#allocation6 + $0x1870] ss:$8 sps:$4 sm:$0xff]  }
 0x916   :  { %10031 = vmatprep.subr.bf16.mxu0 %v13858_v31  ;;  %v13930_v31 = vld [vmem:[#allocation6 + $0x1884] ss:$8 sps:$4 sm:$0xff]  }
 0x919   :  { %10032 = vmatpush1.bf16.msra.mxu0 %v13856_v24  ;;  %v13928_v24 = vld [vmem:[#allocation6 + $0x1880] ss:$8 sps:$4 sm:$0xff]  }
 0x91a   :  { %10033 = vmatprep.subr.bf16.mxu0 %v13861_v21  ;;  %v13933_v21 = vld [vmem:[#allocation6 + $0x1894] ss:$8 sps:$4 sm:$0xff]  }
 0x91d   :  { %10034 = vmatpush1.bf16.msra.mxu0 %v13859_v38  ;;  %v13931_v38 = vld [vmem:[#allocation6 + $0x1890] ss:$8 sps:$4 sm:$0xff]  }
 0x91e   :  { %10035 = vmatprep.subr.bf16.mxu0 %v13864_v55  ;;  %v13936_v55 = vld [vmem:[#allocation6 + $0x18a4] ss:$8 sps:$4 sm:$0xff]  }
 0x921   :  { %10036 = vmatpush1.bf16.msra.mxu0 %v13862_v39  ;;  %v13934_v39 = vld [vmem:[#allocation6 + $0x18a0] ss:$8 sps:$4 sm:$0xff]  }
 0x922   :  { %10037 = vmatprep.subr.bf16.mxu0 %v13867_v56  ;;  %v13939_v56 = vld [vmem:[#allocation6 + $0x18b4] ss:$8 sps:$4 sm:$0xff]  }
 0x925   :  { %10038 = vmatpush1.bf16.msra.mxu0 %v13865_v7  ;;  %v13937_v7 = vld [vmem:[#allocation6 + $0x18b0] ss:$8 sps:$4 sm:$0xff]  }
 0x926   :  { %10039 = vmatprep.subr.bf16.mxu0 %v13870_v58  ;;  %v13942_v58 = vld [vmem:[#allocation6 + $0x18c4] ss:$8 sps:$4 sm:$0xff]  }
 0x929   :  { %10040 = vmatpush1.bf16.msra.mxu0 %v13868_v13  ;;  %v13940_v13 = vld [vmem:[#allocation6 + $0x18c0] ss:$8 sps:$4 sm:$0xff]  }
 0x92a   :  { %10041 = vmatprep.subr.bf16.mxu0 %v13873_v41  ;;  %v13945_v41 = vld [vmem:[#allocation6 + $0x18d4] ss:$8 sps:$4 sm:$0xff]  }
 0x92d   :  { %10042 = vmatpush1.bf16.msra.mxu0 %v13871_v18  ;;  %v13948_v18 = vld [vmem:[#allocation6 + $0x18e4] ss:$8 sps:$4 sm:$0xff]  }
 0x92e   :  { %10043 = vmatprep.subr.bf16.mxu0 %v13876_v59  ;;  %v13951_v59 = vld [vmem:[#allocation6 + $0x18f4] ss:$8 sps:$4 sm:$0xff]  }
 0x931   :  { %10044 = vmatpush1.bf16.msra.mxu0 %v13874_v54  ;;  %v13949_v54 = vld [vmem:[#allocation6 + $0x18f0] ss:$8 sps:$4 sm:$0xff]  }
 0x932   :  { %10045 = vmatprep.subr.bf16.mxu0 %v13879_v9  ;;  %v1799_v9 = vpack.c.bf16 %v15453_v49, %v15453_v49  ;;  %v13957_v49 = vld [vmem:[%s16136_s7 + $0x128] sm:$0xff]  }
 0x935   :  { %10046 = vmatpush1.bf16.msra.mxu0 %v13877_v47 }
 0x936   :  { %10056 = vmatprep.subr.bf16.mxu0 %v13882_v19 }
 0x938   :  { %10048 = vmatmul.mubr.bf16.vlgmr.msra.gmra.mrb[88].mxu0 %v15840_v28  ;;  %v13895_v28 = vld [vmem:[#allocation6 + $0x17d0] ss:$8 sps:$4 sm:$0xff]  }
 0x939   :  { %10057 = vmatpush1.bf16.msra.mxu0 %v13880_v0  ;;  %10088 = vmatprep.mubr.bf16.mxu0 %v15941_v42  ;;  %v13898_v42 = vld [vmem:[#allocation6 + $0x17e0] ss:$8 sps:$4 sm:$0xff]  }
 0x93a   :  { %10058 = vmatprep.subr.bf16.mxu0 %v13885_v63 }
 0x93d   :  { %10059 = vmatpush1.bf16.msra.mxu0 %v13883_v30 }
 0x93e   :  { %10060 = vmatprep.subr.bf16.mxu0 %v13888_v34  ;;  %v13956_v34 = vld [vmem:[%s16136_s7 + $0x120] sm:$0xff]  }
 0x93f   :  { %11945 = vmatpush3.bf16.msra.mxu1 %v13956_v34 }
 0x940   :  { %11946 = vmatprep.subr.bf16.mxu1 %v14331_v37 }
 0x941   :  { %10061 = vmatpush1.bf16.msra.mxu0 %v13886_v44  ;;  %v13959_v44 = vld [vmem:[%s16136_s7 + $0x138] sm:$0xff]  }
 0x942   :  { %10062 = vmatprep.subr.bf16.mxu0 %v13891_v17  ;;  %v13960_v17 = vld [vmem:[%s16138_s9] sm:$0xff]  }
 0x943   :  { %11947 = vmatpush3.bf16.msra.mxu1 %v13957_v49 }
 0x944   :  { %11948 = vmatprep.subr.bf16.mxu1 %v14331_v37 }
 0x945   :  { %10063 = vmatpush1.bf16.msra.mxu0 %v13889_v57  ;;  %v13961_v57 = vld [vmem:[%s16138_s9 + $0x8] sm:$0xff]  }
 0x946   :  { %10064 = vmatprep.subr.bf16.mxu0 %v13894_v40  ;;  %v13962_v40 = vld [vmem:[%s16138_s9 + $0x10] sm:$0xff]  }
 0x949   :  { %10065 = vmatpush1.bf16.msra.mxu0 %v13892_v5  ;;  %v13963_v5 = vld [vmem:[%s16138_s9 + $0x18] sm:$0xff]  }
 0x94a   :  { %10066 = vmatprep.subr.bf16.mxu0 %v13897_v8  ;;  %v13964_v8 = vld [vmem:[%s16138_s9 + $0x20] sm:$0xff]  }
 0x94d   :  { %10067 = vmatpush1.bf16.msra.mxu0 %v13895_v28  ;;  %v13965_v28 = vld [vmem:[%s16138_s9 + $0x28] sm:$0xff]  }
 0x94e   :  { %10068 = vmatprep.subr.bf16.mxu0 %v13900_v33  ;;  %v9603_v33 = vld [vmem:[#allocation7 + $0x12] sm:$0x3] }
 0x951   :  { %10069 = vmatpush1.bf16.msra.mxu0 %v13898_v42  ;;  %v9608_v42 = vrot.slane %v9603_v33, %v15296_v36 }
 0x952   :  { %10070 = vmatprep.subr.bf16.mxu0 %v13903_v23  ;;  %v9612_v23 = vrot.slane %v9603_v33, %v15299_v53 }
 0x955   :  { %10071 = vmatpush1.bf16.msra.mxu0 %v13901_v15 }
 0x956   :  { %10072 = vmatprep.subr.bf16.mxu0 %v13906_v20 }
 0x959   :  { %10073 = vmatpush1.bf16.msra.mxu0 %v13904_v48 }
 0x95a   :  { %10074 = vmatprep.subr.bf16.mxu0 %v13909_v4 }
 0x95d   :  { %10075 = vmatpush1.bf16.msra.mxu0 %v13907_v43 }
 0x95e   :  { %10076 = vmatprep.subr.bf16.mxu0 %v13912_v22 }
 0x961   :  { %10077 = vmatpush1.bf16.msra.mxu0 %v13910_v25 }
 0x962   :  { %10078 = vmatprep.subr.bf16.mxu0 %v13915_v3 }
 0x965   :  { %10079 = vmatpush1.bf16.msra.mxu0 %v13913_v27 }
 0x966   :  { %10080 = vmatprep.subr.bf16.mxu0 %v13918_v2  ;;  %v13970_v2 = vld [vmem:[#allocation15 + $0x10] sm:$0xff]  }
 0x969   :  { %10081 = vmatpush1.bf16.msra.mxu0 %v13916_v50  ;;  %v13971_v50 = vld [vmem:[#allocation15 + $0x18] sm:$0xff]  }
 0x96a   :  { %10082 = vmatprep.subr.bf16.mxu0 %v13921_v11 }
 0x96d   :  { %10083 = vmatpush1.bf16.msra.mxu0 %v13919_v6  ;;  %v11763_v6 = vld [vmem:[#allocation12] ss:$0 sm:$0xff] }
 0x96e   :  { %10084 = vmatprep.subr.bf16.mxu0 %v13924_v29 }
 0x971   :  { %10085 = vmatpush1.bf16.msra.mxu0 %v13922_v1 }
 0x972   :  { %10086 = vmatprep.subr.bf16.mxu0 %v13927_v60 }
 0x975   :  { %10087 = vmatpush1.bf16.msra.mxu0 %v13925_v32 }
 0x976   :  { %10097 = vmatprep.subr.bf16.mxu0 %v13930_v31 }
 0x978   :  { %10089 = vmatmul.mubr.bf16.vlgmr.msra.gmra.mrb[88].mxu0 %v15897_v26  ;;  %v13943_v26 = vld [vmem:[#allocation6 + $0x18d0] ss:$8 sps:$4 sm:$0xff]  }
 0x979   :  { %10098 = vmatpush1.bf16.msra.mxu0 %v13928_v24  ;;  %10129 = vmatprep.mubr.bf16.mxu0 %v16167_v35  ;;  %v13946_v35 = vld [vmem:[#allocation6 + $0x18e0] ss:$8 sps:$4 sm:$0xff]  }
 0x97a   :  { %10099 = vmatprep.subr.bf16.mxu0 %v13933_v21 }
 0x97d   :  { %10100 = vmatpush1.bf16.msra.mxu0 %v13931_v38  ;;  %v13972_v38 = vld [vmem:[#allocation15 + $0x20] sm:$0xff]  }
 0x97e   :  { %10101 = vmatprep.subr.bf16.mxu0 %v13936_v55  ;;  %v13973_v55 = vld [vmem:[#allocation15 + $0x28] ss:$0 sps:$4 sm:$0x33]  }
 0x981   :  { %10102 = vmatpush1.bf16.msra.mxu0 %v13934_v39  ;;  %v10453_v39 = vsel %vm10451_vm6, %v13973_v55, 0 }
 0x982   :  { %10103 = vmatprep.subr.bf16.mxu0 %v13939_v56  ;;  %v11764_v56 = vld [vmem:[#allocation13] ss:$0 sm:$0xff] }
 0x985   :  { %10104 = vmatpush1.bf16.msra.mxu0 %v13937_v7 }
 0x986   :  { %10105 = vmatprep.subr.bf16.mxu0 %v13942_v58 }
 0x989   :  { %10106 = vmatpush1.bf16.msra.mxu0 %v13940_v13 }
 0x98a   :  { %10107 = vmatprep.subr.bf16.mxu0 %v13945_v41 }
 0x98d   :  { %10108 = vmatpush1.bf16.msra.mxu0 %v13943_v26 }
 0x98e   :  { %10109 = vmatprep.subr.bf16.mxu0 %v13948_v18 }
 0x991   :  { %10110 = vmatpush1.bf16.msra.mxu0 %v13946_v35 }
 0x992   :  { %10111 = vmatprep.subr.bf16.mxu0 %v13951_v59  ;;  %v11774_v59 = vld [vmem:[#allocation16] ss:$0 sm:$0xff] }
 0x995   :  { %10112 = vmatpush1.bf16.msra.mxu0 %v13949_v54 }
 0x996   :  { %11956 = vmatprep.subr.bf16.mxu0 %v14331_v37 }
 0x998   :  { %10130 = vmatmul.mubr.bf16.vlgmr.msra.gmra.mrb[88].mxu0 %v1799_v9 }
 0x999   :  { %11972 = vmatprep.mubr.msk.bf16.mxu0 %vm14332_vm3, %v14331_v37  ;;  %11957 = vmatpush3.bf16.msra.mxu0 %v13960_v17 }
 0x99a   :  { %11958 = vmatprep.subr.bf16.mxu0 %v14331_v37 }
 0x99d   :  { %11959 = vmatpush3.bf16.msra.mxu0 %v13961_v57 }
 0x99e   :  { %11960 = vmatprep.subr.bf16.mxu0 %v14331_v37 }
 0x9a1   :  { %11961 = vmatpush3.bf16.msra.mxu0 %v13962_v40 }
 0x9a2   :  { %11962 = vmatprep.subr.bf16.mxu0 %v14331_v37 }
 0x9a5   :  { %11963 = vmatpush3.bf16.msra.mxu0 %v13963_v5 }
 0x9a6   :  { %11964 = vmatprep.subr.bf16.mxu0 %v14331_v37 }
 0x9a9   :  { %11965 = vmatpush3.bf16.msra.mxu0 %v13964_v8 }
 0x9aa   :  { %11966 = vmatprep.subr.bf16.mxu0 %v14331_v37 }
 0x9ad   :  { %11967 = vmatpush3.bf16.msra.mxu0 %v13965_v28 }
 0x9ae   :  { %11968 = vmatprep.subr.bf16.mxu0 %v14331_v37 }
 0x9cb   :  { %v8874_v47 = vpop.f32.mrb[84].mxu0 }
 0x9cc   :  { %v16062_v19 = vadd.f32 %v8874_v47, %v16011_v16  ;;  %v11934_v0 = vpop.f32.mrb[85].mxu0  ;;  %v13958_v16 = vld [vmem:[%s16136_s7 + $0x130] sm:$0xff]  }
 0x9cd   :  { %v8877_v63 = vpop.f32.mrb[86].mxu0  ;;  %11949 = vmatpush3.bf16.msra.mxu1 %v13958_v16 }
 0x9ce   :  { %v11935_v30 = vpop.f32.mrb[87].mxu0  ;;  %11950 = vmatprep.subr.bf16.mxu1 %v14331_v37 }
 0x9d1   :  { %11951 = vmatpush3.bf16.msra.mxu1 %v13959_v44 }
 0x9d2   :  { %11976 = vmatprep.subr.bf16.mxu1 %v14331_v37 }
 0xa6b   :  { %v10131_v52 = vpop.f32.mrb[88].mxu0 }
 0xa6c   :  { %v12106_v12 = vadd.f32 %v10131_v52, %v9608_v42  ;;  %v10133_v15 = vpop.f32.mrb[89].mxu0 }
 0xa6d   :  { %v12107_v20 = vadd.f32 %v10133_v15, %v9612_v23  ;;  %v10135_v45 = vpop.f32.mrb[90].mxu0 }
 0xa6e   :  { %v10150_v48 = vmul.f32 %v15759_v51, %v12106_v12  ;;  %v10136_v4 = vpop.f32.mrb[91].mxu0  ;;  %v13966_v51 = vld [vmem:[%s16138_s9 + $0x30] sm:$0xff]  }
 0xa6f   :  { %v10155_v62 = vmul.f32 %v15762_v14, %v12107_v20  ;;  %11969 = vmatpush3.bf16.msra.mxu0 %v13966_v51  ;;  %v13967_v14 = vld [vmem:[%s16138_s9 + $0x38] ss:$0 sps:$4 sm:$0xff]  }
 0xa70   :  { %v10153_v43 = vadd.f32 %v15773_v61, %v10150_v48  ;;  %11970 = vmatprep.subr.bf16.mxu0 %v14331_v37  ;;  %v10352_v61 = vsel %vm10350_vm4, %v13967_v14, 0 }
 0xa71   :  { %v10158_v22 = vadd.f32 %v15776_v10, %v10155_v62  ;;  %v13968_v10 = vld [vmem:[#allocation15] sm:$0xff]  }
 0xa72   :  { %v10154_v25 = vmax.f32 %v10153_v43, 0.0 }
 0xa73   :  { %v10159_v3 = vmax.f32 %v10158_v22, 0.0  ;;  %11971 = vmatpush3.bf16.msra.mxu0 %v10352_v61 }
 0xa75   :  { %v10160_v27 = vmax.f32 %v10154_v25, %v10159_v3 }
 0xa77   :  { %v10161_v36 = vmax.f32 %v15984_v46, %v10160_v27  ;;  %v13969_v46 = vld [vmem:[#allocation15 + $0x8] sm:$0xff]  }
 0xa79   :  { %v10162_v53 = vpack.c.bf16 %v10161_v36, %v10161_v36 }
 0xa7b   :  { %11953 = vmatmul.mubr.bf16.vlgmr.msra.gmra.mrb[60].mxu1 %v10162_v53 }
 0xa7c   :  { %11988 = vmatprep.mubr.msk.bf16.mxu1 %vm14332_vm3, %v14331_v37  ;;  %11977 = vmatpush3.bf16.msra.mxu1 %v13968_v10 }
 0xa7d   :  { %11978 = vmatprep.subr.bf16.mxu1 %v14331_v37 }
 0xa80   :  { %11979 = vmatpush3.bf16.msra.mxu1 %v13969_v46 }
 0xa81   :  { %11980 = vmatprep.subr.bf16.mxu1 %v14331_v37 }
 0xa84   :  { %11981 = vmatpush3.bf16.msra.mxu1 %v13970_v2 }
 0xa85   :  { %11982 = vmatprep.subr.bf16.mxu1 %v14331_v37 }
 0xa88   :  { %11983 = vmatpush3.bf16.msra.mxu1 %v13971_v50 }
 0xa89   :  { %11984 = vmatprep.subr.bf16.mxu1 %v14331_v37 }
 0xa8c   :  { %11985 = vmatpush3.bf16.msra.mxu1 %v13972_v38 }
 0xa8d   :  { %11986 = vmatprep.subr.bf16.mxu1 %v14331_v37 }
 0xa90   :  { %11987 = vmatpush3.bf16.msra.mxu1 %v10453_v39 }
 0xb4e   :  { %v10262_v11 = vpop.f32.mrb[60].mxu1 }
 0xb4f   :  { %v10268_v29 = vadd.f32 %v10262_v11, %v16062_v19  ;;  %v11954_v1 = vpop.f32.mrb[61].mxu1 }
 0xb50   :  { %v10265_v60 = vpop.f32.mrb[62].mxu1 }
 0xb51   :  { %v10276_v32 = vadd.f32 %v11763_v6, %v10268_v29  ;;  %v11955_v31 = vpop.f32.mrb[63].mxu1 }
 0xb53   :  { %v10277_v24 = vmax.f32 %v10276_v32, 0.0 }
 0xb55   :  { %v10278_v21 = vpack.c.bf16 %v10277_v24, %v10277_v24 }
 0xb57   :  { %11973 = vmatmul.mubr.msk.bf16.vlgmr.msra.gmra.mrb[92].mxu0 %vm10346_vm5, %v10278_v21 }
 0xc2a   :  { %v10388_v7 = vpop.f32.mrb[92].mxu0 }
 0xc2b   :  { %v10389_v58 = vadd.f32 %v11764_v56, %v10388_v7  ;;  %v11974_v13 = vpop.f32.mrb[93].mxu0 }
 0xc2c   :  { %v10391_v41 = vpop.f32.mrb[94].mxu0 }
 0xc2d   :  { %v10394_v26 = vmax.f32 %v10389_v58, 0.0  ;;  %v11975_v18 = vpop.f32.mrb[95].mxu0 }
 0xc2f   :  { %v10395_v35 = vpack.c.bf16 %v10394_v26, %v10394_v26 }
 0xc31   :  { %11989 = vmatmul.mubr.msk.bf16.vlgmr.msra.gmra.mrb[64].mxu1 %vm10447_vm7, %v10395_v35 }
 0xd04   :  { %v10489_v54 = vpop.f32.mrb[64].mxu1 }
 0xd05   :  { %v10490_v9 = vadd.f32 %v11774_v59, %v10489_v54  ;;  %v11990_v47 = vpop.f32.mrb[65].mxu1 }
 0xd06   :  { %v10492_v19 = vpop.f32.mrb[66].mxu1 }
 0xd07   :  { %10495 = vst [vmem:[%s16142_s13] sm:$0xff] %v10490_v9  ;;  %v11991_v37 = vpop.f32.mrb[67].mxu1 }
 0xd08   :  { %10500 = vsyncpa [#allocation3], 1 }
 0xd09   :  { %10501 = vsyncpa [#allocation5], 1 }
 0xd0a   :  { %10502 = vsyncpa [#allocation8], 1 }
 0xd0b   :  { %10503 = vsyncpa [#allocation11], 1 }
 0xd0c   :  { %10504 = vsyncpa [#allocation14], 1 }
 0xd0d   :  { %10505 = vsyncpa [#allocation17], 1 }

</bundles_post_ra>
